<compile_context>
chip_gen: v5e
topology: v5e:2x2
jax: 0.10.0
libtpu: 0.0.40
codegen_flags: <defaults>
</compile_context>

<pallas_src>
import functools

import jax
import jax.numpy as jnp
from jax import lax
from jax.experimental import pallas as pl
from jax.experimental.pallas import tpu as pltpu

EPS = 1e-5


# ---------------------------------------------------------------------------
# Fused Pallas kernel
# ---------------------------------------------------------------------------
def _basic_block_kernel(xp_ref, w1_ref, w2_ref, g1_ref, b1_ref, g2_ref, b2_ref,
                        out_ref, pad2_ref, patches_ref, *, dims):
    """Fused BasicBlock forward.

    xp_ref      : (N, H+2, W+2, C)   spatially zero-padded NHWC input
    w1/w2_ref   : (9*C, C)           dense im2col conv weights (rows ordered kh, kw, ci)
    g*/b*_ref   : (1, C)             BN gamma / beta
    out_ref     : (N, H, W, C)       NHWC output
    pad2_ref    : (N, H+2, W+2, C)   VMEM scratch: re-padded intermediate for conv2
    patches_ref : (N*H*W, 9*C)       VMEM scratch: im2col patches matrix
    """
    N, H, W, C = dims
    P = N * H * W

    def conv3x3(src_ref, w_ref):
        # Classic im2col: one dense-K matmul per conv (K = 9*Cin), assembled from nine
        # ref-window slices written to static lane windows of the patches scratch.
        for kh in range(3):
            for kw in range(3):
                t = kh * 3 + kw
                patches_ref[:, t * C:(t + 1) * C] = (
                    src_ref[:, kh:kh + H, kw:kw + W, :].reshape(P, C))
        return jnp.dot(patches_ref[...], w_ref[...],
                       preferred_element_type=jnp.float32)          # (P, C) fp32

    def batchnorm(acc, gamma, beta):
        # PyTorch training-mode BN: biased batch statistics over (N, H, W), fp32.
        # Two-pass (centered) variance for numerical robustness.
        inv_cnt = 1.0 / float(P)
        mean = jnp.sum(acc, axis=0, keepdims=True) * inv_cnt        # (1, C)
        centered = acc - mean
        var = jnp.sum(centered * centered, axis=0, keepdims=True) * inv_cnt
        scale = gamma * lax.rsqrt(var + EPS)                        # (1, C)
        return centered * scale + beta

    # conv1 -> bn1 -> relu   (intermediate stays in VMEM)
    h1 = jnp.maximum(batchnorm(conv3x3(xp_ref, w1_ref), g1_ref[...], b1_ref[...]), 0.0)

    # Re-pad the intermediate for conv2: write the interior once, zero only the border.
    pad2_ref[:, 1:H + 1, 1:W + 1, :] = h1.reshape(N, H, W, C)
    zero_row = jnp.zeros((N, 1, W + 2, C), jnp.float32)
    pad2_ref[:, 0:1, :, :] = zero_row
    pad2_ref[:, H + 1:H + 2, :, :] = zero_row
    zero_col = jnp.zeros((N, H, 1, C), jnp.float32)
    pad2_ref[:, 1:H + 1, 0:1, :] = zero_col
    pad2_ref[:, 1:H + 1, W + 1:W + 2, :] = zero_col

    # conv2 -> bn2 -> +residual -> relu  (residual read directly from the input ref)
    y = batchnorm(conv3x3(pad2_ref, w2_ref), g2_ref[...], b2_ref[...])
    residual = xp_ref[:, 1:H + 1, 1:W + 1, :].reshape(P, C)
    out_ref[...] = jnp.maximum(y + residual, 0.0).reshape(N, H, W, C)


# ---------------------------------------------------------------------------
# Wrapper
# ---------------------------------------------------------------------------
def _im2col_weight(w_oihw):
    """PyTorch (Cout, Cin, 3, 3) conv weight -> dense (9*Cin, Cout) im2col matrix
    with row index kh*3*Cin + kw*Cin + ci (matches the kernel's patch ordering)."""
    Cout, Cin, KH, KW = w_oihw.shape
    return jnp.transpose(w_oihw, (2, 3, 1, 0)).reshape(KH * KW * Cin, Cout).astype(jnp.float32)


def basic_block_forward(x_nchw, params):
    """BasicBlock.forward with stride=1, downsample=None. Input/output are NCHW."""
    w1, g1, b1, w2, g2, b2 = params
    N, C, H, W = x_nchw.shape
    assert w1.shape[0] == C, "stride=1 / downsample=None requires inplanes == planes"

    # NCHW -> NHWC with one-pixel spatial zero padding (H and W).
    x_nhwc = jnp.transpose(x_nchw, (0, 2, 3, 1)).astype(jnp.float32)
    x_pad = jnp.pad(x_nhwc, ((0, 0), (1, 1), (1, 1), (0, 0)))

    w1m = _im2col_weight(w1)
    w2m = _im2col_weight(w2)

    vmem = pl.BlockSpec(memory_space=pltpu.MemorySpace.VMEM)
    kern = functools.partial(_basic_block_kernel, dims=(N, H, W, C))

    out_nhwc = pl.pallas_call(
        kern,
        out_shape=jax.ShapeDtypeStruct((N, H, W, C), jnp.float32),
        in_specs=[vmem] * 7,
        out_specs=vmem,
        scratch_shapes=[
            pltpu.VMEM((N, H + 2, W + 2, C), jnp.float32),   # pad2 (re-padded h1)
            pltpu.VMEM((N * H * W, 9 * C), jnp.float32),     # im2col patches
        ],
    )(x_pad, w1m, w2m,
      g1.reshape(1, C).astype(jnp.float32), b1.reshape(1, C).astype(jnp.float32),
      g2.reshape(1, C).astype(jnp.float32), b2.reshape(1, C).astype(jnp.float32))

    return jnp.transpose(out_nhwc, (0, 3, 1, 2))


# ---------------------------------------------------------------------------
# Pure-JAX reference (correctness check)
# ---------------------------------------------------------------------------
def _ref_forward(x_nchw, params):
    w1, g1, b1, w2, g2, b2 = params
    x = jnp.transpose(x_nchw, (0, 2, 3, 1))

    def conv(inp, w):
        return lax.conv_general_dilated(
            inp, jnp.transpose(w, (2, 3, 1, 0)), (1, 1), "SAME",
            dimension_numbers=("NHWC", "HWIO", "NHWC"))

    def bn(inp, g, b):
        mean = jnp.mean(inp, axis=(0, 1, 2), keepdims=True)
        var = jnp.mean((inp - mean) ** 2, axis=(0, 1, 2), keepdims=True)
        return (inp - mean) * lax.rsqrt(var + EPS) * g + b

    out = jax.nn.relu(bn(conv(x, w1), g1, b1))
    out = bn(conv(out, w2), g2, b2) + x
    out = jax.nn.relu(out)
    return jnp.transpose(out, (0, 3, 1, 2))


# ---------------------------------------------------------------------------
# Main
# ---------------------------------------------------------------------------
if __name__ == "__main__":
    # Small shapes: inplanes == planes so downsample=None is valid.
    N, C, H, W = 2, 8, 16, 16
    planes = C

    key = jax.random.PRNGKey(0)
    k_x, k_w1, k_w2, k_g1, k_b1, k_g2, k_b2 = jax.random.split(key, 7)

    x = jax.random.normal(k_x, (N, C, H, W), jnp.float32)

    # Conv weights in PyTorch (Cout, Cin, 3, 3) layout.
    w1 = 0.1 * jax.random.normal(k_w1, (planes, C, 3, 3), jnp.float32)
    w2 = 0.1 * jax.random.normal(k_w2, (planes, planes, 3, 3), jnp.float32)
    g1 = 1.0 + 0.1 * jax.random.normal(k_g1, (planes,), jnp.float32)
    b1 = 0.1 * jax.random.normal(k_b1, (planes,), jnp.float32)
    g2 = 1.0 + 0.1 * jax.random.normal(k_g2, (planes,), jnp.float32)
    b2 = 0.1 * jax.random.normal(k_b2, (planes,), jnp.float32)
    params = (w1, g1, b1, w2, g2, b2)

    out = jax.block_until_ready(basic_block_forward(x, params))
    ref = jax.block_until_ready(_ref_forward(x, params))

    assert out.shape == (N, planes, H, W)
    err = float(jnp.max(jnp.abs(out - ref)))
    if err > 2e-4:
        raise AssertionError(f"Pallas BasicBlock mismatch vs reference: max|err|={err}")

    print("KERNEL_OK")
</pallas_src>

<mosaic_0001>
module attributes {stable_mosaic.version = 11 : i64} {
  func.func @_basic_block_kernel(%arg0: memref<2x18x18x8xf32, #tpu.memory_space<vmem>>, %arg1: memref<72x8xf32, #tpu.memory_space<vmem>>, %arg2: memref<72x8xf32, #tpu.memory_space<vmem>>, %arg3: memref<1x8xf32, #tpu.memory_space<vmem>>, %arg4: memref<1x8xf32, #tpu.memory_space<vmem>>, %arg5: memref<1x8xf32, #tpu.memory_space<vmem>>, %arg6: memref<1x8xf32, #tpu.memory_space<vmem>>, %arg7: memref<2x16x16x8xf32, #tpu.memory_space<vmem>>, %arg8: memref<2x18x18x8xf32, #tpu.memory_space<vmem>>, %arg9: memref<512x72xf32, #tpu.memory_space<vmem>>) attributes {dimension_semantics = [], scalar_prefetch = 0 : i64, scratch_operands = 2 : i64, tpu.core_type = #tpu.core_type<tc>} {
    %c0 = arith.constant 0 : index
    %c0_0 = arith.constant 0 : index
    %c0_1 = arith.constant 0 : index
    %c0_2 = arith.constant 0 : index
    %0 = vector.load %arg0[%c0, %c0_0, %c0_1, %c0_2] : memref<2x18x18x8xf32, #tpu.memory_space<vmem>>, vector<2x16x16x8xf32>
    %1 = vector.shape_cast %0 : vector<2x16x16x8xf32> to vector<512x8xf32>
    %c0_3 = arith.constant 0 : index
    %c0_4 = arith.constant 0 : index
    %2 = vector.load %arg9[%c0_3, %c0_4] : memref<512x72xf32, #tpu.memory_space<vmem>>, vector<512x8xf32>
    tpu.vector_store %arg9[%c0_3, %c0_4], %1 {strides = array<i32>} : memref<512x72xf32, #tpu.memory_space<vmem>>, vector<512x8xf32>,
    %c0_5 = arith.constant 0 : index
    %c0_6 = arith.constant 0 : index
    %c1 = arith.constant 1 : index
    %c0_7 = arith.constant 0 : index
    %3 = vector.load %arg0[%c0_5, %c0_6, %c1, %c0_7] : memref<2x18x18x8xf32, #tpu.memory_space<vmem>>, vector<2x16x16x8xf32>
    %4 = vector.shape_cast %3 : vector<2x16x16x8xf32> to vector<512x8xf32>
    %c0_8 = arith.constant 0 : index
    %c8 = arith.constant 8 : index
    %5 = vector.load %arg9[%c0_8, %c8] : memref<512x72xf32, #tpu.memory_space<vmem>>, vector<512x8xf32>
    tpu.vector_store %arg9[%c0_8, %c8], %4 {strides = array<i32>} : memref<512x72xf32, #tpu.memory_space<vmem>>, vector<512x8xf32>,
    %c0_9 = arith.constant 0 : index
    %c0_10 = arith.constant 0 : index
    %c2 = arith.constant 2 : index
    %c0_11 = arith.constant 0 : index
    %6 = vector.load %arg0[%c0_9, %c0_10, %c2, %c0_11] : memref<2x18x18x8xf32, #tpu.memory_space<vmem>>, vector<2x16x16x8xf32>
    %7 = vector.shape_cast %6 : vector<2x16x16x8xf32> to vector<512x8xf32>
    %c0_12 = arith.constant 0 : index
    %c16 = arith.constant 16 : index
    %8 = vector.load %arg9[%c0_12, %c16] : memref<512x72xf32, #tpu.memory_space<vmem>>, vector<512x8xf32>
    tpu.vector_store %arg9[%c0_12, %c16], %7 {strides = array<i32>} : memref<512x72xf32, #tpu.memory_space<vmem>>, vector<512x8xf32>,
    %c0_13 = arith.constant 0 : index
    %c1_14 = arith.constant 1 : index
    %c0_15 = arith.constant 0 : index
    %c0_16 = arith.constant 0 : index
    %9 = vector.load %arg0[%c0_13, %c1_14, %c0_15, %c0_16] : memref<2x18x18x8xf32, #tpu.memory_space<vmem>>, vector<2x16x16x8xf32>
    %10 = vector.shape_cast %9 : vector<2x16x16x8xf32> to vector<512x8xf32>
    %c0_17 = arith.constant 0 : index
    %c24 = arith.constant 24 : index
    %11 = vector.load %arg9[%c0_17, %c24] : memref<512x72xf32, #tpu.memory_space<vmem>>, vector<512x8xf32>
    tpu.vector_store %arg9[%c0_17, %c24], %10 {strides = array<i32>} : memref<512x72xf32, #tpu.memory_space<vmem>>, vector<512x8xf32>,
    %c0_18 = arith.constant 0 : index
    %c1_19 = arith.constant 1 : index
    %c1_20 = arith.constant 1 : index
    %c0_21 = arith.constant 0 : index
    %12 = vector.load %arg0[%c0_18, %c1_19, %c1_20, %c0_21] : memref<2x18x18x8xf32, #tpu.memory_space<vmem>>, vector<2x16x16x8xf32>
    %13 = vector.shape_cast %12 : vector<2x16x16x8xf32> to vector<512x8xf32>
    %c0_22 = arith.constant 0 : index
    %c32 = arith.constant 32 : index
    %14 = vector.load %arg9[%c0_22, %c32] : memref<512x72xf32, #tpu.memory_space<vmem>>, vector<512x8xf32>
    tpu.vector_store %arg9[%c0_22, %c32], %13 {strides = array<i32>} : memref<512x72xf32, #tpu.memory_space<vmem>>, vector<512x8xf32>,
    %c0_23 = arith.constant 0 : index
    %c1_24 = arith.constant 1 : index
    %c2_25 = arith.constant 2 : index
    %c0_26 = arith.constant 0 : index
    %15 = vector.load %arg0[%c0_23, %c1_24, %c2_25, %c0_26] : memref<2x18x18x8xf32, #tpu.memory_space<vmem>>, vector<2x16x16x8xf32>
    %16 = vector.shape_cast %15 : vector<2x16x16x8xf32> to vector<512x8xf32>
    %c0_27 = arith.constant 0 : index
    %c40 = arith.constant 40 : index
    %17 = vector.load %arg9[%c0_27, %c40] : memref<512x72xf32, #tpu.memory_space<vmem>>, vector<512x8xf32>
    tpu.vector_store %arg9[%c0_27, %c40], %16 {strides = array<i32>} : memref<512x72xf32, #tpu.memory_space<vmem>>, vector<512x8xf32>,
    %c0_28 = arith.constant 0 : index
    %c2_29 = arith.constant 2 : index
    %c0_30 = arith.constant 0 : index
    %c0_31 = arith.constant 0 : index
    %18 = vector.load %arg0[%c0_28, %c2_29, %c0_30, %c0_31] : memref<2x18x18x8xf32, #tpu.memory_space<vmem>>, vector<2x16x16x8xf32>
    %19 = vector.shape_cast %18 : vector<2x16x16x8xf32> to vector<512x8xf32>
    %c0_32 = arith.constant 0 : index
    %c48 = arith.constant 48 : index
    %20 = vector.load %arg9[%c0_32, %c48] : memref<512x72xf32, #tpu.memory_space<vmem>>, vector<512x8xf32>
    tpu.vector_store %arg9[%c0_32, %c48], %19 {strides = array<i32>} : memref<512x72xf32, #tpu.memory_space<vmem>>, vector<512x8xf32>,
    %c0_33 = arith.constant 0 : index
    %c2_34 = arith.constant 2 : index
    %c1_35 = arith.constant 1 : index
    %c0_36 = arith.constant 0 : index
    %21 = vector.load %arg0[%c0_33, %c2_34, %c1_35, %c0_36] : memref<2x18x18x8xf32, #tpu.memory_space<vmem>>, vector<2x16x16x8xf32>
    %22 = vector.shape_cast %21 : vector<2x16x16x8xf32> to vector<512x8xf32>
    %c0_37 = arith.constant 0 : index
    %c56 = arith.constant 56 : index
    %23 = vector.load %arg9[%c0_37, %c56] : memref<512x72xf32, #tpu.memory_space<vmem>>, vector<512x8xf32>
    tpu.vector_store %arg9[%c0_37, %c56], %22 {strides = array<i32>} : memref<512x72xf32, #tpu.memory_space<vmem>>, vector<512x8xf32>,
    %c0_38 = arith.constant 0 : index
    %c2_39 = arith.constant 2 : index
    %c2_40 = arith.constant 2 : index
    %c0_41 = arith.constant 0 : index
    %24 = vector.load %arg0[%c0_38, %c2_39, %c2_40, %c0_41] : memref<2x18x18x8xf32, #tpu.memory_space<vmem>>, vector<2x16x16x8xf32>
    %25 = vector.shape_cast %24 : vector<2x16x16x8xf32> to vector<512x8xf32>
    %c0_42 = arith.constant 0 : index
    %c64 = arith.constant 64 : index
    %26 = vector.load %arg9[%c0_42, %c64] : memref<512x72xf32, #tpu.memory_space<vmem>>, vector<512x8xf32>
    tpu.vector_store %arg9[%c0_42, %c64], %25 {strides = array<i32>} : memref<512x72xf32, #tpu.memory_space<vmem>>, vector<512x8xf32>,
    %c0_43 = arith.constant 0 : index
    %c0_44 = arith.constant 0 : index
    %27 = vector.load %arg9[%c0_43, %c0_44] : memref<512x72xf32, #tpu.memory_space<vmem>>, vector<512x72xf32>
    %c0_45 = arith.constant 0 : index
    %c0_46 = arith.constant 0 : index
    %28 = vector.load %arg1[%c0_45, %c0_46] : memref<72x8xf32, #tpu.memory_space<vmem>>, vector<72x8xf32>
    %cst = arith.constant dense<0.000000e+00> : vector<512x8xf32>
    %29 = tpu.matmul %27, %28, %cst {dimension_numbers = #tpu.dot_dimension_numbers<[1], [0], [0], [1], [0, 0, 1, 1], [], []>} : vector<512x72xf32>, vector<72x8xf32>, vector<512x8xf32> -> vector<512x8xf32>
    %c0_47 = arith.constant 0 : index
    %c0_48 = arith.constant 0 : index
    %30 = vector.load %arg3[%c0_47, %c0_48] : memref<1x8xf32, #tpu.memory_space<vmem>>, vector<1x8xf32>
    %c0_49 = arith.constant 0 : index
    %c0_50 = arith.constant 0 : index
    %31 = vector.load %arg4[%c0_49, %c0_50] : memref<1x8xf32, #tpu.memory_space<vmem>>, vector<1x8xf32>
    %cst_51 = arith.constant dense<0.000000e+00> : vector<8xf32>
    %32 = vector.multi_reduction <add>, %29, %cst_51 [0] : vector<512x8xf32> to vector<8xf32>
    %33 = vector.shape_cast %32 : vector<8xf32> to vector<1x8xf32>
    %cst_52 = arith.constant 0.001953125 : f32
    %34 = vector.broadcast %cst_52 : f32 to vector<1x8xf32>
    %35 = arith.mulf %33, %34 : vector<1x8xf32>
    %36 = vector.broadcast %35 : vector<1x8xf32> to vector<512x8xf32>
    %37 = arith.subf %29, %36 : vector<512x8xf32>
    %38 = arith.mulf %37, %37 : vector<512x8xf32>
    %cst_53 = arith.constant dense<0.000000e+00> : vector<8xf32>
    %39 = vector.multi_reduction <add>, %38, %cst_53 [0] : vector<512x8xf32> to vector<8xf32>
    %40 = vector.shape_cast %39 : vector<8xf32> to vector<1x8xf32>
    %cst_54 = arith.constant 0.001953125 : f32
    %41 = vector.broadcast %cst_54 : f32 to vector<1x8xf32>
    %42 = arith.mulf %40, %41 : vector<1x8xf32>
    %cst_55 = arith.constant 9.99999974E-6 : f32
    %43 = vector.broadcast %cst_55 : f32 to vector<1x8xf32>
    %44 = arith.addf %42, %43 : vector<1x8xf32>
    %45 = math.rsqrt %44 : vector<1x8xf32>
    %46 = arith.mulf %30, %45 : vector<1x8xf32>
    %47 = vector.broadcast %46 : vector<1x8xf32> to vector<512x8xf32>
    %48 = arith.mulf %37, %47 : vector<512x8xf32>
    %49 = vector.broadcast %31 : vector<1x8xf32> to vector<512x8xf32>
    %50 = arith.addf %48, %49 : vector<512x8xf32>
    %cst_56 = arith.constant 0.000000e+00 : f32
    %51 = vector.broadcast %cst_56 : f32 to vector<512x8xf32>
    %52 = arith.maximumf %50, %51 : vector<512x8xf32>
    %53 = vector.shape_cast %52 : vector<512x8xf32> to vector<2x16x16x8xf32>
    %c0_57 = arith.constant 0 : index
    %c1_58 = arith.constant 1 : index
    %c1_59 = arith.constant 1 : index
    %c0_60 = arith.constant 0 : index
    %54 = vector.load %arg8[%c0_57, %c1_58, %c1_59, %c0_60] : memref<2x18x18x8xf32, #tpu.memory_space<vmem>>, vector<2x16x16x8xf32>
    tpu.vector_store %arg8[%c0_57, %c1_58, %c1_59, %c0_60], %53 {strides = array<i32>} : memref<2x18x18x8xf32, #tpu.memory_space<vmem>>, vector<2x16x16x8xf32>,
    %cst_61 = arith.constant 0.000000e+00 : f32
    %55 = vector.broadcast %cst_61 : f32 to vector<2x1x18x8xf32>
    %c0_62 = arith.constant 0 : index
    %c0_63 = arith.constant 0 : index
    %c0_64 = arith.constant 0 : index
    %c0_65 = arith.constant 0 : index
    %56 = vector.load %arg8[%c0_62, %c0_63, %c0_64, %c0_65] : memref<2x18x18x8xf32, #tpu.memory_space<vmem>>, vector<2x1x18x8xf32>
    tpu.vector_store %arg8[%c0_62, %c0_63, %c0_64, %c0_65], %55 {strides = array<i32>} : memref<2x18x18x8xf32, #tpu.memory_space<vmem>>, vector<2x1x18x8xf32>,
    %c0_66 = arith.constant 0 : index
    %c17 = arith.constant 17 : index
    %c0_67 = arith.constant 0 : index
    %c0_68 = arith.constant 0 : index
    %57 = vector.load %arg8[%c0_66, %c17, %c0_67, %c0_68] : memref<2x18x18x8xf32, #tpu.memory_space<vmem>>, vector<2x1x18x8xf32>
    tpu.vector_store %arg8[%c0_66, %c17, %c0_67, %c0_68], %55 {strides = array<i32>} : memref<2x18x18x8xf32, #tpu.memory_space<vmem>>, vector<2x1x18x8xf32>,
    %cst_69 = arith.constant 0.000000e+00 : f32
    %58 = vector.broadcast %cst_69 : f32 to vector<2x16x1x8xf32>
    %c0_70 = arith.constant 0 : index
    %c1_71 = arith.constant 1 : index
    %c0_72 = arith.constant 0 : index
    %c0_73 = arith.constant 0 : index
    %59 = vector.load %arg8[%c0_70, %c1_71, %c0_72, %c0_73] : memref<2x18x18x8xf32, #tpu.memory_space<vmem>>, vector<2x16x1x8xf32>
    tpu.vector_store %arg8[%c0_70, %c1_71, %c0_72, %c0_73], %58 {strides = array<i32>} : memref<2x18x18x8xf32, #tpu.memory_space<vmem>>, vector<2x16x1x8xf32>,
    %c0_74 = arith.constant 0 : index
    %c1_75 = arith.constant 1 : index
    %c17_76 = arith.constant 17 : index
    %c0_77 = arith.constant 0 : index
    %60 = vector.load %arg8[%c0_74, %c1_75, %c17_76, %c0_77] : memref<2x18x18x8xf32, #tpu.memory_space<vmem>>, vector<2x16x1x8xf32>
    tpu.vector_store %arg8[%c0_74, %c1_75, %c17_76, %c0_77], %58 {strides = array<i32>} : memref<2x18x18x8xf32, #tpu.memory_space<vmem>>, vector<2x16x1x8xf32>,
    %c0_78 = arith.constant 0 : index
    %c0_79 = arith.constant 0 : index
    %c0_80 = arith.constant 0 : index
    %c0_81 = arith.constant 0 : index
    %61 = vector.load %arg8[%c0_78, %c0_79, %c0_80, %c0_81] : memref<2x18x18x8xf32, #tpu.memory_space<vmem>>, vector<2x16x16x8xf32>
    %62 = vector.shape_cast %61 : vector<2x16x16x8xf32> to vector<512x8xf32>
    %c0_82 = arith.constant 0 : index
    %c0_83 = arith.constant 0 : index
    %63 = vector.load %arg9[%c0_82, %c0_83] : memref<512x72xf32, #tpu.memory_space<vmem>>, vector<512x8xf32>
    tpu.vector_store %arg9[%c0_82, %c0_83], %62 {strides = array<i32>} : memref<512x72xf32, #tpu.memory_space<vmem>>, vector<512x8xf32>,
    %c0_84 = arith.constant 0 : index
    %c0_85 = arith.constant 0 : index
    %c1_86 = arith.constant 1 : index
    %c0_87 = arith.constant 0 : index
    %64 = vector.load %arg8[%c0_84, %c0_85, %c1_86, %c0_87] : memref<2x18x18x8xf32, #tpu.memory_space<vmem>>, vector<2x16x16x8xf32>
    %65 = vector.shape_cast %64 : vector<2x16x16x8xf32> to vector<512x8xf32>
    %c0_88 = arith.constant 0 : index
    %c8_89 = arith.constant 8 : index
    %66 = vector.load %arg9[%c0_88, %c8_89] : memref<512x72xf32, #tpu.memory_space<vmem>>, vector<512x8xf32>
    tpu.vector_store %arg9[%c0_88, %c8_89], %65 {strides = array<i32>} : memref<512x72xf32, #tpu.memory_space<vmem>>, vector<512x8xf32>,
    %c0_90 = arith.constant 0 : index
    %c0_91 = arith.constant 0 : index
    %c2_92 = arith.constant 2 : index
    %c0_93 = arith.constant 0 : index
    %67 = vector.load %arg8[%c0_90, %c0_91, %c2_92, %c0_93] : memref<2x18x18x8xf32, #tpu.memory_space<vmem>>, vector<2x16x16x8xf32>
    %68 = vector.shape_cast %67 : vector<2x16x16x8xf32> to vector<512x8xf32>
    %c0_94 = arith.constant 0 : index
    %c16_95 = arith.constant 16 : index
    %69 = vector.load %arg9[%c0_94, %c16_95] : memref<512x72xf32, #tpu.memory_space<vmem>>, vector<512x8xf32>
    tpu.vector_store %arg9[%c0_94, %c16_95], %68 {strides = array<i32>} : memref<512x72xf32, #tpu.memory_space<vmem>>, vector<512x8xf32>,
    %c0_96 = arith.constant 0 : index
    %c1_97 = arith.constant 1 : index
    %c0_98 = arith.constant 0 : index
    %c0_99 = arith.constant 0 : index
    %70 = vector.load %arg8[%c0_96, %c1_97, %c0_98, %c0_99] : memref<2x18x18x8xf32, #tpu.memory_space<vmem>>, vector<2x16x16x8xf32>
    %71 = vector.shape_cast %70 : vector<2x16x16x8xf32> to vector<512x8xf32>
    %c0_100 = arith.constant 0 : index
    %c24_101 = arith.constant 24 : index
    %72 = vector.load %arg9[%c0_100, %c24_101] : memref<512x72xf32, #tpu.memory_space<vmem>>, vector<512x8xf32>
    tpu.vector_store %arg9[%c0_100, %c24_101], %71 {strides = array<i32>} : memref<512x72xf32, #tpu.memory_space<vmem>>, vector<512x8xf32>,
    %c0_102 = arith.constant 0 : index
    %c1_103 = arith.constant 1 : index
    %c1_104 = arith.constant 1 : index
    %c0_105 = arith.constant 0 : index
    %73 = vector.load %arg8[%c0_102, %c1_103, %c1_104, %c0_105] : memref<2x18x18x8xf32, #tpu.memory_space<vmem>>, vector<2x16x16x8xf32>
    %74 = vector.shape_cast %73 : vector<2x16x16x8xf32> to vector<512x8xf32>
    %c0_106 = arith.constant 0 : index
    %c32_107 = arith.constant 32 : index
    %75 = vector.load %arg9[%c0_106, %c32_107] : memref<512x72xf32, #tpu.memory_space<vmem>>, vector<512x8xf32>
    tpu.vector_store %arg9[%c0_106, %c32_107], %74 {strides = array<i32>} : memref<512x72xf32, #tpu.memory_space<vmem>>, vector<512x8xf32>,
    %c0_108 = arith.constant 0 : index
    %c1_109 = arith.constant 1 : index
    %c2_110 = arith.constant 2 : index
    %c0_111 = arith.constant 0 : index
    %76 = vector.load %arg8[%c0_108, %c1_109, %c2_110, %c0_111] : memref<2x18x18x8xf32, #tpu.memory_space<vmem>>, vector<2x16x16x8xf32>
    %77 = vector.shape_cast %76 : vector<2x16x16x8xf32> to vector<512x8xf32>
    %c0_112 = arith.constant 0 : index
    %c40_113 = arith.constant 40 : index
    %78 = vector.load %arg9[%c0_112, %c40_113] : memref<512x72xf32, #tpu.memory_space<vmem>>, vector<512x8xf32>
    tpu.vector_store %arg9[%c0_112, %c40_113], %77 {strides = array<i32>} : memref<512x72xf32, #tpu.memory_space<vmem>>, vector<512x8xf32>,
    %c0_114 = arith.constant 0 : index
    %c2_115 = arith.constant 2 : index
    %c0_116 = arith.constant 0 : index
    %c0_117 = arith.constant 0 : index
    %79 = vector.load %arg8[%c0_114, %c2_115, %c0_116, %c0_117] : memref<2x18x18x8xf32, #tpu.memory_space<vmem>>, vector<2x16x16x8xf32>
    %80 = vector.shape_cast %79 : vector<2x16x16x8xf32> to vector<512x8xf32>
    %c0_118 = arith.constant 0 : index
    %c48_119 = arith.constant 48 : index
    %81 = vector.load %arg9[%c0_118, %c48_119] : memref<512x72xf32, #tpu.memory_space<vmem>>, vector<512x8xf32>
    tpu.vector_store %arg9[%c0_118, %c48_119], %80 {strides = array<i32>} : memref<512x72xf32, #tpu.memory_space<vmem>>, vector<512x8xf32>,
    %c0_120 = arith.constant 0 : index
    %c2_121 = arith.constant 2 : index
    %c1_122 = arith.constant 1 : index
    %c0_123 = arith.constant 0 : index
    %82 = vector.load %arg8[%c0_120, %c2_121, %c1_122, %c0_123] : memref<2x18x18x8xf32, #tpu.memory_space<vmem>>, vector<2x16x16x8xf32>
    %83 = vector.shape_cast %82 : vector<2x16x16x8xf32> to vector<512x8xf32>
    %c0_124 = arith.constant 0 : index
    %c56_125 = arith.constant 56 : index
    %84 = vector.load %arg9[%c0_124, %c56_125] : memref<512x72xf32, #tpu.memory_space<vmem>>, vector<512x8xf32>
    tpu.vector_store %arg9[%c0_124, %c56_125], %83 {strides = array<i32>} : memref<512x72xf32, #tpu.memory_space<vmem>>, vector<512x8xf32>,
    %c0_126 = arith.constant 0 : index
    %c2_127 = arith.constant 2 : index
    %c2_128 = arith.constant 2 : index
    %c0_129 = arith.constant 0 : index
    %85 = vector.load %arg8[%c0_126, %c2_127, %c2_128, %c0_129] : memref<2x18x18x8xf32, #tpu.memory_space<vmem>>, vector<2x16x16x8xf32>
    %86 = vector.shape_cast %85 : vector<2x16x16x8xf32> to vector<512x8xf32>
    %c0_130 = arith.constant 0 : index
    %c64_131 = arith.constant 64 : index
    %87 = vector.load %arg9[%c0_130, %c64_131] : memref<512x72xf32, #tpu.memory_space<vmem>>, vector<512x8xf32>
    tpu.vector_store %arg9[%c0_130, %c64_131], %86 {strides = array<i32>} : memref<512x72xf32, #tpu.memory_space<vmem>>, vector<512x8xf32>,
    %c0_132 = arith.constant 0 : index
    %c0_133 = arith.constant 0 : index
    %88 = vector.load %arg9[%c0_132, %c0_133] : memref<512x72xf32, #tpu.memory_space<vmem>>, vector<512x72xf32>
    %c0_134 = arith.constant 0 : index
    %c0_135 = arith.constant 0 : index
    %89 = vector.load %arg2[%c0_134, %c0_135] : memref<72x8xf32, #tpu.memory_space<vmem>>, vector<72x8xf32>
    %cst_136 = arith.constant dense<0.000000e+00> : vector<512x8xf32>
    %90 = tpu.matmul %88, %89, %cst_136 {dimension_numbers = #tpu.dot_dimension_numbers<[1], [0], [0], [1], [0, 0, 1, 1], [], []>} : vector<512x72xf32>, vector<72x8xf32>, vector<512x8xf32> -> vector<512x8xf32>
    %c0_137 = arith.constant 0 : index
    %c0_138 = arith.constant 0 : index
    %91 = vector.load %arg5[%c0_137, %c0_138] : memref<1x8xf32, #tpu.memory_space<vmem>>, vector<1x8xf32>
    %c0_139 = arith.constant 0 : index
    %c0_140 = arith.constant 0 : index
    %92 = vector.load %arg6[%c0_139, %c0_140] : memref<1x8xf32, #tpu.memory_space<vmem>>, vector<1x8xf32>
    %cst_141 = arith.constant dense<0.000000e+00> : vector<8xf32>
    %93 = vector.multi_reduction <add>, %90, %cst_141 [0] : vector<512x8xf32> to vector<8xf32>
    %94 = vector.shape_cast %93 : vector<8xf32> to vector<1x8xf32>
    %cst_142 = arith.constant 0.001953125 : f32
    %95 = vector.broadcast %cst_142 : f32 to vector<1x8xf32>
    %96 = arith.mulf %94, %95 : vector<1x8xf32>
    %97 = vector.broadcast %96 : vector<1x8xf32> to vector<512x8xf32>
    %98 = arith.subf %90, %97 : vector<512x8xf32>
    %99 = arith.mulf %98, %98 : vector<512x8xf32>
    %cst_143 = arith.constant dense<0.000000e+00> : vector<8xf32>
    %100 = vector.multi_reduction <add>, %99, %cst_143 [0] : vector<512x8xf32> to vector<8xf32>
    %101 = vector.shape_cast %100 : vector<8xf32> to vector<1x8xf32>
    %cst_144 = arith.constant 0.001953125 : f32
    %102 = vector.broadcast %cst_144 : f32 to vector<1x8xf32>
    %103 = arith.mulf %101, %102 : vector<1x8xf32>
    %cst_145 = arith.constant 9.99999974E-6 : f32
    %104 = vector.broadcast %cst_145 : f32 to vector<1x8xf32>
    %105 = arith.addf %103, %104 : vector<1x8xf32>
    %106 = math.rsqrt %105 : vector<1x8xf32>
    %107 = arith.mulf %91, %106 : vector<1x8xf32>
    %108 = vector.broadcast %107 : vector<1x8xf32> to vector<512x8xf32>
    %109 = arith.mulf %98, %108 : vector<512x8xf32>
    %110 = vector.broadcast %92 : vector<1x8xf32> to vector<512x8xf32>
    %111 = arith.addf %109, %110 : vector<512x8xf32>
    %c0_146 = arith.constant 0 : index
    %c1_147 = arith.constant 1 : index
    %c1_148 = arith.constant 1 : index
    %c0_149 = arith.constant 0 : index
    %112 = vector.load %arg0[%c0_146, %c1_147, %c1_148, %c0_149] : memref<2x18x18x8xf32, #tpu.memory_space<vmem>>, vector<2x16x16x8xf32>
    %113 = vector.shape_cast %112 : vector<2x16x16x8xf32> to vector<512x8xf32>
    %114 = arith.addf %111, %113 : vector<512x8xf32>
    %cst_150 = arith.constant 0.000000e+00 : f32
    %115 = vector.broadcast %cst_150 : f32 to vector<512x8xf32>
    %116 = arith.maximumf %114, %115 : vector<512x8xf32>
    %117 = vector.shape_cast %116 : vector<512x8xf32> to vector<2x16x16x8xf32>
    %c0_151 = arith.constant 0 : index
    %c0_152 = arith.constant 0 : index
    %c0_153 = arith.constant 0 : index
    %c0_154 = arith.constant 0 : index
    %118 = vector.load %arg7[%c0_151, %c0_152, %c0_153, %c0_154] : memref<2x16x16x8xf32, #tpu.memory_space<vmem>>, vector<2x16x16x8xf32>
    tpu.vector_store %arg7[%c0_151, %c0_152, %c0_153, %c0_154], %117 {strides = array<i32>} : memref<2x16x16x8xf32, #tpu.memory_space<vmem>>, vector<2x16x16x8xf32>,
    return
  }
}

</mosaic_0001>

<bundles_post_ra>
// kernel: tpu_custom_call.1
= control target key start
LH: loop header
LB: loop body
LE: loop exit
PB: predicated region body
PF: predicated region fallthrough
CT: control target
= control target key end

     0   :  { %s9552_s28 = smov 8   ;;  %vm90_vm0 = vcmask 64512   ;;  %vm475_vm1 = vcmask 130112   ;;  %s9553_s20 = smov 16   ;;  %vm860_vm2 = vcmask 195712   ;;  %vm1246_vm3 = vcmask 261312   ;;  %s16661_s0 = inlined_call_operand.vmem [shape: f32[2,18,18,8], index: 0, kind: input, shape index: {}]   ;;  %s16662_s1 = inlined_call_operand.vmem [shape: f32[72,8], index: 1, kind: input, shape index: {}]   ;;  %s16663_s4 = inlined_call_operand.vmem [shape: f32[1,8], index: 4, kind: input, shape index: {}]   ;;  %s16664_s3 = inlined_call_operand.vmem [shape: f32[1,8], index: 3, kind: input, shape index: {}]   ;;  %s16665_s2 = inlined_call_operand.vmem [shape: f32[72,8], index: 2, kind: input, shape index: {}]   ;;  %s16666_s6 = inlined_call_operand.vmem [shape: f32[1,8], index: 6, kind: input, shape index: {}]   ;;  %s16667_s5 = inlined_call_operand.vmem [shape: f32[1,8], index: 5, kind: input, shape index: {}]   ;;  %s16668_s7 = inlined_call_operand.vmem [shape: f32[2,16,16,8], index: 7, kind: output, shape index: {}]  }
   0x1   :  { %v157_v0 = vld [vmem:[%s16661_s0 + $0x19] sm:$0xff]  ;;  %v155_v1 = vld [vmem:[%s16661_s0 + $0x1] sm:$0xff]  ;;  %v159_v2 = vld [vmem:[%s16661_s0 + $0x31] sm:$0xff]  ;;  %s9554_s22 = smov 24   ;;  %s9555_s13 = smov 32   ;;  %vm1631_vm4 = vcmask 326912  }
   0x2   :  { %287 = vrot.lane.b32.xlu1 %v157_v0, %s9552_s28  ;;  %283 = vrot.lane.b32.xlu0 %v155_v1, %s9552_s28  ;;  %v158_v3 = vld [vmem:[%s16661_s0 + $0x21] sm:$0xff]  ;;  %v156_v4 = vld [vmem:[%s16661_s0 + $0x9] sm:$0xff]  ;;  %s9556_s29 = smov 40   ;;  %vm2016_vm5 = vcmask 392512   ;;  %s9557_s9 = smov 48   ;;  %vm2402_vm6 = vcmask 458112  }
   0x3   :  { %291 = vrot.lane.b32.xlu2 %v159_v2, %s9552_s28  ;;  %v160_v5 = vld [vmem:[%s16661_s0 + $0x39] sm:$0xff]  ;;  %v162_v6 = vld [vmem:[%s16661_s0 + $0x51] sm:$0xff]  ;;  %v161_v7 = vld [vmem:[%s16661_s0 + $0x49] sm:$0xff]  ;;  %s9558_s24 = smov 56   ;;  %vm2787_vm7 = vcmask 523712   ;;  %s9559_s21 = smov 64  }
   0x4   :  { %v163_v8 = vld [vmem:[%s16661_s0 + $0x61] sm:$0xff]  ;;  %v165_v9 = vld [vmem:[%s16661_s0 + $0x79] sm:$0xff]  ;;  %v164_v10 = vld [vmem:[%s16661_s0 + $0x69] sm:$0xff]  ;;  %vm3172_vm8 = vcmask 589312   ;;  %vm3310_vm9 = vcmask 588800   ;;  %vm4387_vm13 = vcmask 58368  }
   0x5   :  { %v166_v11 = vld [vmem:[%s16661_s0 + $0x81] sm:$0xff]  ;;  %v168_v12 = vld [vmem:[%s16661_s0 + $0x99] sm:$0xff]  ;;  %v167_v13 = vld [vmem:[%s16661_s0 + $0x91] sm:$0xff]  ;;  %vm4399_vm14 = vcmask 57344  }
   0x6   :  { %v169_v14 = vld [vmem:[%s16661_s0 + $0xa9] sm:$0xff]  ;;  %v171_v15 = vld [vmem:[%s16661_s0 + $0xc1] sm:$0xff]  ;;  %v170_v16 = vld [vmem:[%s16661_s0 + $0xb1] sm:$0xff] }
   0x7   :  { %v172_v17 = vld [vmem:[%s16661_s0 + $0xc9] sm:$0xff]  ;;  %v174_v18 = vld [vmem:[%s16661_s0 + $0xe1] sm:$0xff]  ;;  %v173_v19 = vld [vmem:[%s16661_s0 + $0xd9] sm:$0xff] }
   0x8   :  { %v175_v20 = vld [vmem:[%s16661_s0 + $0xf1] sm:$0xff]  ;;  %v177_v21 = vld [vmem:[%s16661_s0 + $0x109] sm:$0xff]  ;;  %v176_v22 = vld [vmem:[%s16661_s0 + $0xf9] sm:$0xff] }
   0x9   :  { %v178_v23 = vld [vmem:[%s16661_s0 + $0x111] sm:$0xff]  ;;  %v180_v24 = vld [vmem:[%s16661_s0 + $0x129] sm:$0xff]  ;;  %v179_v25 = vld [vmem:[%s16661_s0 + $0x121] sm:$0xff] }
   0xa   :  { %289 = vrot.lane.b32.xlu1 %v158_v3, %s9552_s28  ;;  %285 = vrot.lane.b32.xlu0 %v156_v4, %s9552_s28  ;;  %v181_v26 = vld [vmem:[%s16661_s0 + $0x139] sm:$0xff]  ;;  %v183_v27 = vld [vmem:[%s16661_s0 + $0x151] sm:$0xff] }
   0xb   :  { %293 = vrot.lane.b32.xlu2 %v160_v5, %s9552_s28  ;;  %v182_v28 = vld [vmem:[%s16661_s0 + $0x141] sm:$0xff]  ;;  %v184_v29 = vld [vmem:[%s16661_s0 + $0x159] sm:$0xff]  ;;  %v186_v30 = vld [vmem:[%s16661_s0 + $0x171] sm:$0xff] }
   0xc   :  { %v185_v31 = vld [vmem:[%s16661_s0 + $0x169] sm:$0xff]  ;;  %v187_v32 = vld [vmem:[%s16661_s0 + $0x1b1] sm:$0xff]  ;;  %v26_v33 = vld [vmem:[%s16661_s0] sm:$0xff] }
   0xd   :  { %v9738_v34 = vld [vmem:[%s16661_s0 + $0x18] sm:$0xff]  ;;  %91 = vst.msk [vmem:[#allocation3] sm:$0xff] %vm90_vm0, %v26_v33  ;;  %v189_v35 = vld [vmem:[%s16661_s0 + $0x1c9] sm:$0xff]  ;;  %v9765_v39 = vld [vmem:[%s16661_s0 + $0x20] sm:$0xff] }
   0xe   :  { %93 = vst.msk [vmem:[#allocation3 + $0x10] sm:$0xff] %vm90_vm0, %v9738_v34  ;;  %v188_v36 = vld [vmem:[%s16661_s0 + $0x1b9] sm:$0xff]  ;;  %v190_v37 = vld [vmem:[%s16661_s0 + $0x1d1] sm:$0xff]  ;;  %v27_v40 = vld [vmem:[%s16661_s0 + $0x8] sm:$0xff] }
   0xf   :  { %v9758_v38 = vld [vmem:[%s16661_s0 + $0x30] sm:$0xff]  ;;  %94 = vst.msk [vmem:[#allocation3 + $0x18] sm:$0xff] %vm90_vm0, %v9765_v39  ;;  %v191_v42 = vld [vmem:[%s16661_s0 + $0x1e1] sm:$0xff]  ;;  %v193_v44 = vld [vmem:[%s16661_s0 + $0x1f9] sm:$0xff] }
  0x10   :  { %95 = vst.msk [vmem:[#allocation3 + $0x20] sm:$0xff] %vm90_vm0, %v9758_v38  ;;  %v192_v41 = vld [vmem:[%s16661_s0 + $0x1e9] sm:$0xff]  ;;  %v9789_v45 = vld [vmem:[%s16661_s0 + $0x38] sm:$0xff]  ;;  %v194_v49 = vld [vmem:[%s16661_s0 + $0x201] sm:$0xff] }
  0x11   :  { %92 = vst.msk [vmem:[#allocation3 + $0x8] sm:$0xff] %vm90_vm0, %v27_v40  ;;  %v9796_v46 = vld [vmem:[%s16661_s0 + $0x50] sm:$0xff]  ;;  %v9801_v47 = vld [vmem:[%s16661_s0 + $0x48] sm:$0xff]  ;;  %v196_v51 = vld [vmem:[%s16661_s0 + $0x219] sm:$0xff] }
  0x12   :  { %297 = vrot.lane.b32.xlu1 %v162_v6, %s9552_s28  ;;  %295 = vrot.lane.b32.xlu0 %v161_v7, %s9552_s28  ;;  %96 = vst.msk [vmem:[#allocation3 + $0x28] sm:$0xff] %vm90_vm0, %v9789_v45  ;;  %v195_v48 = vld [vmem:[%s16661_s0 + $0x211] sm:$0xff]  ;;  %v9823_v52 = vld [vmem:[%s16661_s0 + $0x60] sm:$0xff] }
  0x13   :  { %299 = vrot.lane.b32.xlu2 %v163_v8, %s9552_s28  ;;  %98 = vst.msk [vmem:[#allocation3 + $0x38] sm:$0xff] %vm90_vm0, %v9796_v46  ;;  %v9830_v53 = vld [vmem:[%s16661_s0 + $0x78] sm:$0xff]  ;;  %v9835_v54 = vld [vmem:[%s16661_s0 + $0x68] sm:$0xff]  ;;  %v9857_v59 = vld [vmem:[%s16661_s0 + $0x80] sm:$0xff] }
  0x14   :  { %97 = vst.msk [vmem:[#allocation3 + $0x30] sm:$0xff] %vm90_vm0, %v9801_v47  ;;  %v198_v55 = vld [vmem:[%s16661_s0 + $0x231] sm:$0xff]  ;;  %v197_v56 = vld [vmem:[%s16661_s0 + $0x229] sm:$0xff]  ;;  %v199_v58 = vld [vmem:[%s16661_s0 + $0x241] sm:$0xff] }
  0x15   :  { %99 = vst.msk [vmem:[#allocation3 + $0x40] sm:$0xff] %vm90_vm0, %v9823_v52  ;;  %v9864_v62 = vld [vmem:[%s16661_s0 + $0x98] sm:$0xff]  ;;  %v9872_v63 = vld [vmem:[%s16661_s0 + $0x90] sm:$0xff]  ;;  %v202_v3 = vld [vmem:[%s16661_s0 + $0x261] sm:$0xff] }
  0x16   :  { %101 = vst.msk [vmem:[#allocation3 + $0x50] sm:$0xff] %vm90_vm0, %v9830_v53  ;;  %v201_v0 = vld [vmem:[%s16661_s0 + $0x259] sm:$0xff]  ;;  %v200_v1 = vld [vmem:[%s16661_s0 + $0x249] sm:$0xff] }
  0x17   :  { %100 = vst.msk [vmem:[#allocation3 + $0x48] sm:$0xff] %vm90_vm0, %v9835_v54  ;;  %v9893_v4 = vld [vmem:[%s16661_s0 + $0xa8] sm:$0xff]  ;;  %v9900_v7 = vld [vmem:[%s16661_s0 + $0xc0] sm:$0xff]  ;;  %v9908_v8 = vld [vmem:[%s16661_s0 + $0xb0] sm:$0xff] }
  0x18   :  { %102 = vst.msk [vmem:[#allocation3 + $0x58] sm:$0xff] %vm90_vm0, %v9857_v59  ;;  %v212_v40 = vld [vmem:[%s16661_s0 + $0x2d9] sm:$0xff] }
  0x19   :  { %104 = vst.msk [vmem:[#allocation3 + $0x68] sm:$0xff] %vm90_vm0, %v9864_v62 }
  0x1a   :  { %303 = vrot.lane.b32.xlu1 %v165_v9, %s9552_s28  ;;  %301 = vrot.lane.b32.xlu0 %v164_v10, %s9552_s28  ;;  %103 = vst.msk [vmem:[#allocation3 + $0x60] sm:$0xff] %vm90_vm0, %v9872_v63  ;;  %v204_v9 = vld [vmem:[%s16661_s0 + $0x279] sm:$0xff]  ;;  %v203_v10 = vld [vmem:[%s16661_s0 + $0x271] sm:$0xff] }
  0x1b   :  { %305 = vrot.lane.b32.xlu2 %v166_v11, %s9552_s28  ;;  %105 = vst.msk [vmem:[#allocation3 + $0x70] sm:$0xff] %vm90_vm0, %v9893_v4 }
  0x1c   :  { %107 = vst.msk [vmem:[#allocation3 + $0x80] sm:$0xff] %vm90_vm0, %v9900_v7 }
  0x1d   :  { %106 = vst.msk [vmem:[#allocation3 + $0x78] sm:$0xff] %vm90_vm0, %v9908_v8 }
  0x22   :  { %309 = vrot.lane.b32.xlu1 %v168_v12, %s9552_s28  ;;  %307 = vrot.lane.b32.xlu0 %v167_v13, %s9552_s28  ;;  %v205_v12 = vld [vmem:[%s16661_s0 + $0x289] sm:$0xff] }
  0x23   :  { %311 = vrot.lane.b32.xlu2 %v169_v14, %s9552_s28  ;;  %v9929_v13 = vld [vmem:[%s16661_s0 + $0xc8] sm:$0xff] }
  0x24   :  { %108 = vst.msk [vmem:[#allocation3 + $0x88] sm:$0xff] %vm90_vm0, %v9929_v13 }
  0x2a   :  { %315 = vrot.lane.b32.xlu1 %v171_v15, %s9552_s28  ;;  %313 = vrot.lane.b32.xlu0 %v170_v16, %s9552_s28  ;;  %v9936_v16 = vld [vmem:[%s16661_s0 + $0xe0] sm:$0xff] }
  0x2b   :  { %317 = vrot.lane.b32.xlu2 %v172_v17, %s9552_s28  ;;  %v9944_v17 = vld [vmem:[%s16661_s0 + $0xd8] sm:$0xff]  ;;  %110 = vst.msk [vmem:[#allocation3 + $0x98] sm:$0xff] %vm90_vm0, %v9936_v16 }
  0x2c   :  { %109 = vst.msk [vmem:[#allocation3 + $0x90] sm:$0xff] %vm90_vm0, %v9944_v17 }
  0x32   :  { %321 = vrot.lane.b32.xlu1 %v174_v18, %s9552_s28  ;;  %319 = vrot.lane.b32.xlu0 %v173_v19, %s9552_s28  ;;  %v207_v18 = vld [vmem:[%s16661_s0 + $0x2a1] sm:$0xff]  ;;  %v206_v19 = vld [vmem:[%s16661_s0 + $0x291] sm:$0xff] }
  0x33   :  { %323 = vrot.lane.b32.xlu2 %v175_v20, %s9552_s28 }
  0x3a   :  { %327 = vrot.lane.b32.xlu1 %v177_v21, %s9552_s28  ;;  %325 = vrot.lane.b32.xlu0 %v176_v22, %s9552_s28  ;;  %v208_v21 = vld [vmem:[%s16661_s0 + $0x2a9] sm:$0xff] }
  0x3b   :  { %329 = vrot.lane.b32.xlu2 %v178_v23, %s9552_s28  ;;  %v9965_v22 = vld [vmem:[%s16661_s0 + $0xf0] sm:$0xff] }
  0x3c   :  { %111 = vst.msk [vmem:[#allocation3 + $0xa0] sm:$0xff] %vm90_vm0, %v9965_v22 }
  0x42   :  { %333 = vrot.lane.b32.xlu1 %v180_v24, %s9552_s28  ;;  %331 = vrot.lane.b32.xlu0 %v179_v25, %s9552_s28  ;;  %v9972_v25 = vld [vmem:[%s16661_s0 + $0x108] sm:$0xff] }
  0x43   :  { %335 = vrot.lane.b32.xlu2 %v181_v26, %s9552_s28  ;;  %v9980_v26 = vld [vmem:[%s16661_s0 + $0xf8] sm:$0xff]  ;;  %113 = vst.msk [vmem:[#allocation3 + $0xb0] sm:$0xff] %vm90_vm0, %v9972_v25 }
  0x44   :  { %112 = vst.msk [vmem:[#allocation3 + $0xa8] sm:$0xff] %vm90_vm0, %v9980_v26 }
  0x4a   :  { %339 = vrot.lane.b32.xlu1 %v183_v27, %s9552_s28  ;;  %337 = vrot.lane.b32.xlu0 %v182_v28, %s9552_s28  ;;  %v210_v27 = vld [vmem:[%s16661_s0 + $0x2c1] sm:$0xff]  ;;  %v209_v28 = vld [vmem:[%s16661_s0 + $0x2b9] sm:$0xff] }
  0x4b   :  { %341 = vrot.lane.b32.xlu2 %v184_v29, %s9552_s28 }
  0x52   :  { %345 = vrot.lane.b32.xlu1 %v186_v30, %s9552_s28  ;;  %343 = vrot.lane.b32.xlu0 %v185_v31, %s9552_s28  ;;  %v211_v30 = vld [vmem:[%s16661_s0 + $0x2d1] sm:$0xff] }
  0x53   :  { %347 = vrot.lane.b32.xlu2 %v187_v32, %s9552_s28  ;;  %v10001_v31 = vld [vmem:[%s16661_s0 + $0x110] sm:$0xff] }
  0x54   :  { %114 = vst.msk [vmem:[#allocation3 + $0xb8] sm:$0xff] %vm90_vm0, %v10001_v31 }
  0x5a   :  { %351 = vrot.lane.b32.xlu1 %v189_v35, %s9552_s28  ;;  %349 = vrot.lane.b32.xlu0 %v188_v36, %s9552_s28  ;;  %v10008_v35 = vld [vmem:[%s16661_s0 + $0x128] sm:$0xff]  ;;  %v10016_v36 = vld [vmem:[%s16661_s0 + $0x120] sm:$0xff] }
  0x5b   :  { %353 = vrot.lane.b32.xlu2 %v190_v37, %s9552_s28  ;;  %v213_v37 = vld [vmem:[%s16661_s0 + $0x2e9] sm:$0xff]  ;;  %116 = vst.msk [vmem:[#allocation3 + $0xc8] sm:$0xff] %vm90_vm0, %v10008_v35 }
  0x5c   :  { %115 = vst.msk [vmem:[#allocation3 + $0xc0] sm:$0xff] %vm90_vm0, %v10016_v36 }
  0x5d   :  { %v292_v43 = vpop.permute.xlu2 %291 }
  0x5e   :  { %480 = vst.msk [vmem:[#allocation3 + $0x20] sm:$0xff] %vm475_vm1, %v292_v43  ;;  %v10037_v43 = vld [vmem:[%s16661_s0 + $0x138] sm:$0xff] }
  0x5f   :  { %117 = vst.msk [vmem:[#allocation3 + $0xd0] sm:$0xff] %vm90_vm0, %v10037_v43 }
  0x62   :  { %357 = vrot.lane.b32.xlu1 %v192_v41, %s9552_s28  ;;  %355 = vrot.lane.b32.xlu0 %v191_v42, %s9552_s28  ;;  %v214_v42 = vld [vmem:[%s16661_s0 + $0x2f1] sm:$0xff] }
  0x63   :  { %359 = vrot.lane.b32.xlu2 %v193_v44, %s9552_s28 }
  0x65   :  { %v294_v50 = vpop.permute.xlu2 %293 }
  0x66   :  { %481 = vst.msk [vmem:[#allocation3 + $0x28] sm:$0xff] %vm475_vm1, %v294_v50  ;;  %v10052_v50 = vld [vmem:[%s16661_s0 + $0x140] sm:$0xff] }
  0x67   :  { %118 = vst.msk [vmem:[#allocation3 + $0xd8] sm:$0xff] %vm90_vm0, %v10052_v50 }
  0x6a   :  { %363 = vrot.lane.b32.xlu1 %v195_v48, %s9552_s28  ;;  %361 = vrot.lane.b32.xlu0 %v194_v49, %s9552_s28  ;;  %v10044_v49 = vld [vmem:[%s16661_s0 + $0x150] sm:$0xff] }
  0x6b   :  { %365 = vrot.lane.b32.xlu2 %v196_v51, %s9552_s28  ;;  %v216_v51 = vld [vmem:[%s16661_s0 + $0x309] sm:$0xff]  ;;  %119 = vst.msk [vmem:[#allocation3 + $0xe0] sm:$0xff] %vm90_vm0, %v10044_v49 }
  0x6d   :  { %v300_v57 = vpop.permute.xlu2 %299 }
  0x6e   :  { %484 = vst.msk [vmem:[#allocation3 + $0x40] sm:$0xff] %vm475_vm1, %v300_v57  ;;  %v217_v57 = vld [vmem:[%s16661_s0 + $0x319] sm:$0xff] }
  0x72   :  { %369 = vrot.lane.b32.xlu1 %v198_v55, %s9552_s28  ;;  %367 = vrot.lane.b32.xlu0 %v197_v56, %s9552_s28  ;;  %v215_v55 = vld [vmem:[%s16661_s0 + $0x301] sm:$0xff] }
  0x73   :  { %371 = vrot.lane.b32.xlu2 %v199_v58, %s9552_s28  ;;  %v10073_v58 = vld [vmem:[%s16661_s0 + $0x158] sm:$0xff] }
  0x74   :  { %v288_v60 = vpop.permute.xlu1 %287  ;;  %v284_v61 = vpop.permute.xlu0 %283  ;;  %120 = vst.msk [vmem:[#allocation3 + $0xe8] sm:$0xff] %vm90_vm0, %v10073_v58 }
  0x75   :  { %478 = vst.msk [vmem:[#allocation3 + $0x10] sm:$0xff] %vm475_vm1, %v288_v60  ;;  %v306_v2 = vpop.permute.xlu2 %305 }
  0x76   :  { %476 = vst.msk [vmem:[#allocation3] sm:$0xff] %vm475_vm1, %v284_v61 }
  0x77   :  { %487 = vst.msk [vmem:[#allocation3 + $0x58] sm:$0xff] %vm475_vm1, %v306_v2  ;;  %v540_v2 = vld [vmem:[%s16661_s0 + $0x2] sm:$0xff] }
  0x7a   :  { %375 = vrot.lane.b32.xlu1 %v201_v0, %s9552_s28  ;;  %373 = vrot.lane.b32.xlu0 %v200_v1, %s9552_s28  ;;  %v10080_v0 = vld [vmem:[%s16661_s0 + $0x170] sm:$0xff]  ;;  %v10088_v1 = vld [vmem:[%s16661_s0 + $0x168] sm:$0xff] }
  0x7b   :  { %377 = vrot.lane.b32.xlu2 %v202_v3, %s9552_s28  ;;  %v218_v3 = vld [vmem:[%s16661_s0 + $0x321] sm:$0xff]  ;;  %122 = vst.msk [vmem:[#allocation3 + $0xf8] sm:$0xff] %vm90_vm0, %v10080_v0 }
  0x7c   :  { %v290_v5 = vpop.permute.xlu1 %289  ;;  %v286_v6 = vpop.permute.xlu0 %285  ;;  %121 = vst.msk [vmem:[#allocation3 + $0xf0] sm:$0xff] %vm90_vm0, %v10088_v1 }
  0x7d   :  { %479 = vst.msk [vmem:[#allocation3 + $0x18] sm:$0xff] %vm475_vm1, %v290_v5  ;;  %v312_v11 = vpop.permute.xlu2 %311 }
  0x7e   :  { %477 = vst.msk [vmem:[#allocation3 + $0x8] sm:$0xff] %vm475_vm1, %v286_v6  ;;  %v541_v6 = vld [vmem:[%s16661_s0 + $0xa] sm:$0xff] }
  0x7f   :  { %490 = vst.msk [vmem:[#allocation3 + $0x70] sm:$0xff] %vm475_vm1, %v312_v11 }
  0x82   :  { %381 = vrot.lane.b32.xlu1 %v204_v9, %s9552_s28  ;;  %379 = vrot.lane.b32.xlu0 %v203_v10, %s9552_s28  ;;  %v58_v9 = vld [vmem:[%s16661_s0 + $0x1b0] sm:$0xff] }
  0x83   :  { %383 = vrot.lane.b32.xlu2 %v205_v12, %s9552_s28  ;;  %123 = vst.msk [vmem:[#allocation3 + $0x100] sm:$0xff] %vm90_vm0, %v58_v9  ;;  %v10113_v12 = vld [vmem:[%s16661_s0 + $0x1c8] sm:$0xff] }
  0x84   :  { %v298_v14 = vpop.permute.xlu1 %297  ;;  %v296_v15 = vpop.permute.xlu0 %295  ;;  %125 = vst.msk [vmem:[#allocation3 + $0x110] sm:$0xff] %vm90_vm0, %v10113_v12 }
  0x85   :  { %483 = vst.msk [vmem:[#allocation3 + $0x38] sm:$0xff] %vm475_vm1, %v298_v14  ;;  %v318_v20 = vpop.permute.xlu2 %317  ;;  %v59_v14 = vld [vmem:[%s16661_s0 + $0x1b8] sm:$0xff] }
  0x86   :  { %482 = vst.msk [vmem:[#allocation3 + $0x30] sm:$0xff] %vm475_vm1, %v296_v15  ;;  %v543_v15 = vld [vmem:[%s16661_s0 + $0x22] sm:$0xff] }
  0x87   :  { %493 = vst.msk [vmem:[#allocation3 + $0x88] sm:$0xff] %vm475_vm1, %v318_v20  ;;  %v544_v20 = vld [vmem:[%s16661_s0 + $0x32] sm:$0xff] }
  0x88   :  { %124 = vst.msk [vmem:[#allocation3 + $0x108] sm:$0xff] %vm90_vm0, %v59_v14 }
  0x8a   :  { %387 = vrot.lane.b32.xlu1 %v207_v18, %s9552_s28  ;;  %385 = vrot.lane.b32.xlu0 %v206_v19, %s9552_s28  ;;  %v542_v18 = vld [vmem:[%s16661_s0 + $0x1a] sm:$0xff] }
  0x8b   :  { %389 = vrot.lane.b32.xlu2 %v208_v21, %s9552_s28  ;;  %v10139_v21 = vld [vmem:[%s16661_s0 + $0x1d0] sm:$0xff] }
  0x8c   :  { %v304_v23 = vpop.permute.xlu1 %303  ;;  %v302_v24 = vpop.permute.xlu0 %301  ;;  %126 = vst.msk [vmem:[#allocation3 + $0x118] sm:$0xff] %vm90_vm0, %v10139_v21 }
  0x8d   :  { %486 = vst.msk [vmem:[#allocation3 + $0x50] sm:$0xff] %vm475_vm1, %v304_v23  ;;  %v324_v29 = vpop.permute.xlu2 %323 }
  0x8e   :  { %485 = vst.msk [vmem:[#allocation3 + $0x48] sm:$0xff] %vm475_vm1, %v302_v24 }
  0x8f   :  { %496 = vst.msk [vmem:[#allocation3 + $0xa0] sm:$0xff] %vm475_vm1, %v324_v29  ;;  %v546_v29 = vld [vmem:[%s16661_s0 + $0x4a] sm:$0xff] }
  0x92   :  { %393 = vrot.lane.b32.xlu1 %v210_v27, %s9552_s28  ;;  %391 = vrot.lane.b32.xlu0 %v209_v28, %s9552_s28  ;;  %v10146_v27 = vld [vmem:[%s16661_s0 + $0x1e8] sm:$0xff]  ;;  %v10154_v28 = vld [vmem:[%s16661_s0 + $0x1e0] sm:$0xff] }
  0x93   :  { %395 = vrot.lane.b32.xlu2 %v211_v30, %s9552_s28  ;;  %v545_v30 = vld [vmem:[%s16661_s0 + $0x3a] sm:$0xff]  ;;  %128 = vst.msk [vmem:[#allocation3 + $0x128] sm:$0xff] %vm90_vm0, %v10146_v27 }
  0x94   :  { %v310_v32 = vpop.permute.xlu1 %309  ;;  %v308_v33 = vpop.permute.xlu0 %307  ;;  %127 = vst.msk [vmem:[#allocation3 + $0x120] sm:$0xff] %vm90_vm0, %v10154_v28 }
  0x95   :  { %489 = vst.msk [vmem:[#allocation3 + $0x68] sm:$0xff] %vm475_vm1, %v310_v32  ;;  %v330_v41 = vpop.permute.xlu2 %329 }
  0x96   :  { %488 = vst.msk [vmem:[#allocation3 + $0x60] sm:$0xff] %vm475_vm1, %v308_v33  ;;  %v547_v33 = vld [vmem:[%s16661_s0 + $0x52] sm:$0xff] }
  0x97   :  { %499 = vst.msk [vmem:[#allocation3 + $0xb8] sm:$0xff] %vm475_vm1, %v330_v41 }
  0x9a   :  { %399 = vrot.lane.b32.xlu1 %v213_v37, %s9552_s28  ;;  %397 = vrot.lane.b32.xlu0 %v212_v40, %s9552_s28  ;;  %v10175_v37 = vld [vmem:[%s16661_s0 + $0x1f8] sm:$0xff] }
  0x9b   :  { %401 = vrot.lane.b32.xlu2 %v214_v42, %s9552_s28  ;;  %129 = vst.msk [vmem:[#allocation3 + $0x130] sm:$0xff] %vm90_vm0, %v10175_v37  ;;  %v10182_v42 = vld [vmem:[%s16661_s0 + $0x210] sm:$0xff] }
  0x9c   :  { %v316_v44 = vpop.permute.xlu1 %315  ;;  %v314_v48 = vpop.permute.xlu0 %313  ;;  %131 = vst.msk [vmem:[#allocation3 + $0x140] sm:$0xff] %vm90_vm0, %v10182_v42 }
  0x9d   :  { %492 = vst.msk [vmem:[#allocation3 + $0x80] sm:$0xff] %vm475_vm1, %v316_v44  ;;  %v336_v56 = vpop.permute.xlu2 %335  ;;  %v10190_v44 = vld [vmem:[%s16661_s0 + $0x200] sm:$0xff] }
  0x9e   :  { %491 = vst.msk [vmem:[#allocation3 + $0x78] sm:$0xff] %vm475_vm1, %v314_v48  ;;  %v549_v48 = vld [vmem:[%s16661_s0 + $0x6a] sm:$0xff] }
  0x9f   :  { %502 = vst.msk [vmem:[#allocation3 + $0xd0] sm:$0xff] %vm475_vm1, %v336_v56  ;;  %v550_v56 = vld [vmem:[%s16661_s0 + $0x7a] sm:$0xff] }
  0xa0   :  { %130 = vst.msk [vmem:[#allocation3 + $0x138] sm:$0xff] %vm90_vm0, %v10190_v44 }
  0xa2   :  { %405 = vrot.lane.b32.xlu1 %v216_v51, %s9552_s28  ;;  %403 = vrot.lane.b32.xlu0 %v215_v55, %s9552_s28  ;;  %v548_v51 = vld [vmem:[%s16661_s0 + $0x62] sm:$0xff] }
  0xa3   :  { %407 = vrot.lane.b32.xlu2 %v217_v57, %s9552_s28  ;;  %v10211_v57 = vld [vmem:[%s16661_s0 + $0x218] sm:$0xff] }
  0xa4   :  { %v322_v60 = vpop.permute.xlu1 %321  ;;  %v320_v61 = vpop.permute.xlu0 %319  ;;  %132 = vst.msk [vmem:[#allocation3 + $0x148] sm:$0xff] %vm90_vm0, %v10211_v57 }
  0xa5   :  { %495 = vst.msk [vmem:[#allocation3 + $0x98] sm:$0xff] %vm475_vm1, %v322_v60  ;;  %v342_v5 = vpop.permute.xlu2 %341 }
  0xa6   :  { %494 = vst.msk [vmem:[#allocation3 + $0x90] sm:$0xff] %vm475_vm1, %v320_v61 }
  0xa7   :  { %505 = vst.msk [vmem:[#allocation3 + $0xe8] sm:$0xff] %vm475_vm1, %v342_v5  ;;  %v552_v5 = vld [vmem:[%s16661_s0 + $0x92] sm:$0xff] }
  0xaa   :  { %668 = vrot.lane.b32.xlu1 %v540_v2, %s9553_s20  ;;  %409 = vrot.lane.b32.xlu0 %v218_v3, %s9552_s28  ;;  %v10218_v2 = vld [vmem:[%s16661_s0 + $0x230] sm:$0xff]  ;;  %v10226_v3 = vld [vmem:[%s16661_s0 + $0x228] sm:$0xff] }
  0xab   :  { %670 = vrot.lane.b32.xlu2 %v541_v6, %s9553_s20  ;;  %v551_v6 = vld [vmem:[%s16661_s0 + $0x82] sm:$0xff]  ;;  %134 = vst.msk [vmem:[#allocation3 + $0x158] sm:$0xff] %vm90_vm0, %v10218_v2 }
  0xac   :  { %v328_v10 = vpop.permute.xlu1 %327  ;;  %v326_v11 = vpop.permute.xlu0 %325  ;;  %133 = vst.msk [vmem:[#allocation3 + $0x150] sm:$0xff] %vm90_vm0, %v10226_v3 }
  0xad   :  { %498 = vst.msk [vmem:[#allocation3 + $0xb0] sm:$0xff] %vm475_vm1, %v328_v10  ;;  %v348_v19 = vpop.permute.xlu2 %347  ;;  %v553_v10 = vld [vmem:[%s16661_s0 + $0x9a] sm:$0xff] }
  0xae   :  { %497 = vst.msk [vmem:[#allocation3 + $0xa8] sm:$0xff] %vm475_vm1, %v326_v11  ;;  %v10247_v11 = vld [vmem:[%s16661_s0 + $0x240] sm:$0xff] }
  0xaf   :  { %508 = vst.msk [vmem:[#allocation3 + $0x100] sm:$0xff] %vm475_vm1, %v348_v19  ;;  %v10262_v19 = vld [vmem:[%s16661_s0 + $0x248] sm:$0xff] }
  0xb0   :  { %135 = vst.msk [vmem:[#allocation3 + $0x160] sm:$0xff] %vm90_vm0, %v10247_v11 }
  0xb1   :  { %136 = vst.msk [vmem:[#allocation3 + $0x168] sm:$0xff] %vm90_vm0, %v10262_v19 }
  0xb2   :  { %674 = vrot.lane.b32.xlu1 %v543_v15, %s9553_s20  ;;  %672 = vrot.lane.b32.xlu0 %v542_v18, %s9553_s20  ;;  %v10254_v18 = vld [vmem:[%s16661_s0 + $0x258] sm:$0xff] }
  0xb3   :  { %676 = vrot.lane.b32.xlu2 %v544_v20, %s9553_s20  ;;  %v555_v20 = vld [vmem:[%s16661_s0 + $0xb2] sm:$0xff]  ;;  %137 = vst.msk [vmem:[#allocation3 + $0x170] sm:$0xff] %vm90_vm0, %v10254_v18 }
  0xb4   :  { %v334_v23 = vpop.permute.xlu1 %333  ;;  %v332_v24 = vpop.permute.xlu0 %331 }
  0xb5   :  { %501 = vst.msk [vmem:[#allocation3 + $0xc8] sm:$0xff] %vm475_vm1, %v334_v23  ;;  %v354_v32 = vpop.permute.xlu2 %353  ;;  %v554_v23 = vld [vmem:[%s16661_s0 + $0xaa] sm:$0xff] }
  0xb6   :  { %500 = vst.msk [vmem:[#allocation3 + $0xc0] sm:$0xff] %vm475_vm1, %v332_v24 }
  0xb7   :  { %511 = vst.msk [vmem:[#allocation3 + $0x118] sm:$0xff] %vm475_vm1, %v354_v32 }
  0xba   :  { %680 = vrot.lane.b32.xlu1 %v546_v29, %s9553_s20  ;;  %678 = vrot.lane.b32.xlu0 %v545_v30, %s9553_s20  ;;  %v556_v29 = vld [vmem:[%s16661_s0 + $0xc2] sm:$0xff] }
  0xbb   :  { %682 = vrot.lane.b32.xlu2 %v547_v33, %s9553_s20  ;;  %v10283_v30 = vld [vmem:[%s16661_s0 + $0x260] sm:$0xff] }
  0xbc   :  { %v340_v40 = vpop.permute.xlu1 %339  ;;  %v338_v41 = vpop.permute.xlu0 %337  ;;  %138 = vst.msk [vmem:[#allocation3 + $0x178] sm:$0xff] %vm90_vm0, %v10283_v30 }
  0xbd   :  { %504 = vst.msk [vmem:[#allocation3 + $0xe0] sm:$0xff] %vm475_vm1, %v340_v40  ;;  %v360_v55 = vpop.permute.xlu2 %359  ;;  %v10290_v40 = vld [vmem:[%s16661_s0 + $0x278] sm:$0xff] }
  0xbe   :  { %503 = vst.msk [vmem:[#allocation3 + $0xd8] sm:$0xff] %vm475_vm1, %v338_v41  ;;  %v10298_v41 = vld [vmem:[%s16661_s0 + $0x270] sm:$0xff] }
  0xbf   :  { %514 = vst.msk [vmem:[#allocation3 + $0x130] sm:$0xff] %vm475_vm1, %v360_v55 }
  0xc0   :  { %140 = vst.msk [vmem:[#allocation3 + $0x188] sm:$0xff] %vm90_vm0, %v10290_v40 }
  0xc1   :  { %139 = vst.msk [vmem:[#allocation3 + $0x180] sm:$0xff] %vm90_vm0, %v10298_v41 }
  0xc2   :  { %686 = vrot.lane.b32.xlu1 %v549_v48, %s9553_s20  ;;  %684 = vrot.lane.b32.xlu0 %v548_v51, %s9553_s20  ;;  %v558_v48 = vld [vmem:[%s16661_s0 + $0xda] sm:$0xff]  ;;  %v557_v51 = vld [vmem:[%s16661_s0 + $0xca] sm:$0xff] }
  0xc3   :  { %688 = vrot.lane.b32.xlu2 %v550_v56, %s9553_s20  ;;  %v559_v56 = vld [vmem:[%s16661_s0 + $0xe2] sm:$0xff] }
  0xc4   :  { %v346_v60 = vpop.permute.xlu1 %345  ;;  %v344_v61 = vpop.permute.xlu0 %343 }
  0xc5   :  { %507 = vst.msk [vmem:[#allocation3 + $0xf8] sm:$0xff] %vm475_vm1, %v346_v60  ;;  %v366_v9 = vpop.permute.xlu2 %365  ;;  %v10319_v60 = vld [vmem:[%s16661_s0 + $0x288] sm:$0xff] }
  0xc6   :  { %506 = vst.msk [vmem:[#allocation3 + $0xf0] sm:$0xff] %vm475_vm1, %v344_v61 }
  0xc7   :  { %517 = vst.msk [vmem:[#allocation3 + $0x148] sm:$0xff] %vm475_vm1, %v366_v9  ;;  %v10334_v9 = vld [vmem:[%s16661_s0 + $0x290] sm:$0xff] }
  0xc8   :  { %141 = vst.msk [vmem:[#allocation3 + $0x190] sm:$0xff] %vm90_vm0, %v10319_v60 }
  0xc9   :  { %142 = vst.msk [vmem:[#allocation3 + $0x198] sm:$0xff] %vm90_vm0, %v10334_v9 }
  0xca   :  { %692 = vrot.lane.b32.xlu1 %v552_v5, %s9553_s20  ;;  %690 = vrot.lane.b32.xlu0 %v551_v6, %s9553_s20  ;;  %v10326_v6 = vld [vmem:[%s16661_s0 + $0x2a0] sm:$0xff] }
  0xcb   :  { %694 = vrot.lane.b32.xlu2 %v553_v10, %s9553_s20  ;;  %v561_v10 = vld [vmem:[%s16661_s0 + $0xfa] sm:$0xff]  ;;  %143 = vst.msk [vmem:[#allocation3 + $0x1a0] sm:$0xff] %vm90_vm0, %v10326_v6 }
  0xcc   :  { %v352_v14 = vpop.permute.xlu1 %351  ;;  %v350_v15 = vpop.permute.xlu0 %349 }
  0xcd   :  { %510 = vst.msk [vmem:[#allocation3 + $0x110] sm:$0xff] %vm475_vm1, %v352_v14  ;;  %v372_v24 = vpop.permute.xlu2 %371  ;;  %v560_v14 = vld [vmem:[%s16661_s0 + $0xf2] sm:$0xff] }
  0xce   :  { %509 = vst.msk [vmem:[#allocation3 + $0x108] sm:$0xff] %vm475_vm1, %v350_v15 }
  0xcf   :  { %520 = vst.msk [vmem:[#allocation3 + $0x160] sm:$0xff] %vm475_vm1, %v372_v24 }
  0xd2   :  { %698 = vrot.lane.b32.xlu1 %v555_v20, %s9553_s20  ;;  %696 = vrot.lane.b32.xlu0 %v554_v23, %s9553_s20  ;;  %v562_v20 = vld [vmem:[%s16661_s0 + $0x10a] sm:$0xff] }
  0xd3   :  { %700 = vrot.lane.b32.xlu2 %v556_v29, %s9553_s20  ;;  %v10355_v23 = vld [vmem:[%s16661_s0 + $0x2a8] sm:$0xff] }
  0xd4   :  { %v358_v32 = vpop.permute.xlu1 %357  ;;  %v356_v33 = vpop.permute.xlu0 %355  ;;  %144 = vst.msk [vmem:[#allocation3 + $0x1a8] sm:$0xff] %vm90_vm0, %v10355_v23 }
  0xd5   :  { %513 = vst.msk [vmem:[#allocation3 + $0x128] sm:$0xff] %vm475_vm1, %v358_v32  ;;  %v378_v55 = vpop.permute.xlu2 %377  ;;  %v10362_v32 = vld [vmem:[%s16661_s0 + $0x2c0] sm:$0xff] }
  0xd6   :  { %512 = vst.msk [vmem:[#allocation3 + $0x120] sm:$0xff] %vm475_vm1, %v356_v33  ;;  %v10370_v33 = vld [vmem:[%s16661_s0 + $0x2b8] sm:$0xff] }
  0xd7   :  { %523 = vst.msk [vmem:[#allocation3 + $0x178] sm:$0xff] %vm475_vm1, %v378_v55 }
  0xd8   :  { %146 = vst.msk [vmem:[#allocation3 + $0x1b8] sm:$0xff] %vm90_vm0, %v10362_v32 }
  0xd9   :  { %145 = vst.msk [vmem:[#allocation3 + $0x1b0] sm:$0xff] %vm90_vm0, %v10370_v33 }
  0xda   :  { %704 = vrot.lane.b32.xlu1 %v558_v48, %s9553_s20  ;;  %702 = vrot.lane.b32.xlu0 %v557_v51, %s9553_s20  ;;  %v564_v48 = vld [vmem:[%s16661_s0 + $0x122] sm:$0xff]  ;;  %v563_v51 = vld [vmem:[%s16661_s0 + $0x112] sm:$0xff] }
  0xdb   :  { %706 = vrot.lane.b32.xlu2 %v559_v56, %s9553_s20  ;;  %v565_v56 = vld [vmem:[%s16661_s0 + $0x12a] sm:$0xff] }
  0xdc   :  { %v364_v61 = vpop.permute.xlu1 %363  ;;  %v362_v5 = vpop.permute.xlu0 %361 }
  0xdd   :  { %516 = vst.msk [vmem:[#allocation3 + $0x140] sm:$0xff] %vm475_vm1, %v364_v61  ;;  %v384_v15 = vpop.permute.xlu2 %383  ;;  %v10391_v61 = vld [vmem:[%s16661_s0 + $0x2d0] sm:$0xff] }
  0xde   :  { %515 = vst.msk [vmem:[#allocation3 + $0x138] sm:$0xff] %vm475_vm1, %v362_v5 }
  0xdf   :  { %526 = vst.msk [vmem:[#allocation3 + $0x190] sm:$0xff] %vm475_vm1, %v384_v15  ;;  %v10406_v15 = vld [vmem:[%s16661_s0 + $0x2d8] sm:$0xff] }
  0xe0   :  { %147 = vst.msk [vmem:[#allocation3 + $0x1c0] sm:$0xff] %vm90_vm0, %v10391_v61 }
  0xe1   :  { %148 = vst.msk [vmem:[#allocation3 + $0x1c8] sm:$0xff] %vm90_vm0, %v10406_v15 }
  0xe2   :  { %710 = vrot.lane.b32.xlu1 %v561_v10, %s9553_s20  ;;  %708 = vrot.lane.b32.xlu0 %v560_v14, %s9553_s20  ;;  %v10398_v14 = vld [vmem:[%s16661_s0 + $0x2e8] sm:$0xff] }
  0xe3   :  { %712 = vrot.lane.b32.xlu2 %v562_v20, %s9553_s20  ;;  %v567_v20 = vld [vmem:[%s16661_s0 + $0x142] sm:$0xff]  ;;  %149 = vst.msk [vmem:[#allocation3 + $0x1d0] sm:$0xff] %vm90_vm0, %v10398_v14 }
  0xe4   :  { %v370_v24 = vpop.permute.xlu1 %369  ;;  %v368_v29 = vpop.permute.xlu0 %367 }
  0xe5   :  { %519 = vst.msk [vmem:[#allocation3 + $0x158] sm:$0xff] %vm475_vm1, %v370_v24  ;;  %v390_v55 = vpop.permute.xlu2 %389  ;;  %v566_v24 = vld [vmem:[%s16661_s0 + $0x13a] sm:$0xff] }
  0xe6   :  { %518 = vst.msk [vmem:[#allocation3 + $0x150] sm:$0xff] %vm475_vm1, %v368_v29 }
  0xe7   :  { %529 = vst.msk [vmem:[#allocation3 + $0x1a8] sm:$0xff] %vm475_vm1, %v390_v55 }
  0xea   :  { %716 = vrot.lane.b32.xlu1 %v564_v48, %s9553_s20  ;;  %714 = vrot.lane.b32.xlu0 %v563_v51, %s9553_s20  ;;  %v568_v48 = vld [vmem:[%s16661_s0 + $0x152] sm:$0xff] }
  0xeb   :  { %718 = vrot.lane.b32.xlu2 %v565_v56, %s9553_s20  ;;  %v10427_v51 = vld [vmem:[%s16661_s0 + $0x2f0] sm:$0xff] }
  0xec   :  { %v376_v5 = vpop.permute.xlu1 %375  ;;  %v374_v10 = vpop.permute.xlu0 %373  ;;  %150 = vst.msk [vmem:[#allocation3 + $0x1d8] sm:$0xff] %vm90_vm0, %v10427_v51 }
  0xed   :  { %522 = vst.msk [vmem:[#allocation3 + $0x170] sm:$0xff] %vm475_vm1, %v376_v5  ;;  %v396_v29 = vpop.permute.xlu2 %395  ;;  %v10434_v5 = vld [vmem:[%s16661_s0 + $0x308] sm:$0xff] }
  0xee   :  { %521 = vst.msk [vmem:[#allocation3 + $0x168] sm:$0xff] %vm475_vm1, %v374_v10  ;;  %v10442_v10 = vld [vmem:[%s16661_s0 + $0x300] sm:$0xff] }
  0xef   :  { %532 = vst.msk [vmem:[#allocation3 + $0x1c0] sm:$0xff] %vm475_vm1, %v396_v29 }
  0xf0   :  { %16751 = vst [vmem:[#allocation4_spill] sm:$0xff] %v10442_v10 }
  0xf1   :  { %152 = vst.msk [vmem:[#allocation3 + $0x1e8] sm:$0xff] %vm90_vm0, %v10434_v5 }
  0xf2   :  { %722 = vrot.lane.b32.xlu1 %v567_v20, %s9553_s20  ;;  %720 = vrot.lane.b32.xlu0 %v566_v24, %s9553_s20  ;;  %v570_v20 = vld [vmem:[%s16661_s0 + $0x16a] sm:$0xff]  ;;  %v569_v24 = vld [vmem:[%s16661_s0 + $0x15a] sm:$0xff]  ;;  %151 = vst.msk [vmem:[#allocation3 + $0x1e0] sm:$0xff] %vm90_vm0, %v10442_v10 }
  0xf3   :  { %724 = vrot.lane.b32.xlu2 %v568_v48, %s9553_s20  ;;  %v571_v48 = vld [vmem:[%s16661_s0 + $0x172] sm:$0xff] }
  0xf4   :  { %v382_v55 = vpop.permute.xlu1 %381  ;;  %v380_v56 = vpop.permute.xlu0 %379 }
  0xf5   :  { %525 = vst.msk [vmem:[#allocation3 + $0x188] sm:$0xff] %vm475_vm1, %v382_v55  ;;  %v402_v29 = vpop.permute.xlu2 %401  ;;  %v10463_v55 = vld [vmem:[%s16661_s0 + $0x318] sm:$0xff] }
  0xf6   :  { %524 = vst.msk [vmem:[#allocation3 + $0x180] sm:$0xff] %vm475_vm1, %v380_v56 }
  0xf7   :  { %535 = vst.msk [vmem:[#allocation3 + $0x1d8] sm:$0xff] %vm475_vm1, %v402_v29 }
  0xf8   :  { %16752 = vst [vmem:[#allocation5_spill] sm:$0xff] %v10463_v55 }
  0xf9   :  { %153 = vst.msk [vmem:[#allocation3 + $0x1f0] sm:$0xff] %vm90_vm0, %v10463_v55  ;;  %v572_v55 = vld [vmem:[%s16661_s0 + $0x1b2] sm:$0xff] }
  0xfa   :  { %728 = vrot.lane.b32.xlu1 %v570_v20, %s9553_s20  ;;  %726 = vrot.lane.b32.xlu0 %v569_v24, %s9553_s20  ;;  %v10470_v20 = vld [vmem:[%s16661_s0 + $0x320] sm:$0xff] }
  0xfb   :  { %16753 = vst [vmem:[#allocation6_spill] sm:$0xff] %v10470_v20  ;;  %730 = vrot.lane.b32.xlu2 %v571_v48, %s9553_s20  ;;  %v573_v24 = vld [vmem:[%s16661_s0 + $0x1ba] sm:$0xff]  ;;  %v574_v48 = vld [vmem:[%s16661_s0 + $0x1ca] sm:$0xff] }
  0xfc   :  { %v388_v56 = vpop.permute.xlu1 %387  ;;  %v386_v29 = vpop.permute.xlu0 %385  ;;  %154 = vst.msk [vmem:[#allocation3 + $0x1f8] sm:$0xff] %vm90_vm0, %v10470_v20 }
  0xfd   :  { %528 = vst.msk [vmem:[#allocation3 + $0x1a0] sm:$0xff] %vm475_vm1, %v388_v56  ;;  %v408_v10 = vpop.permute.xlu2 %407 }
  0xfe   :  { %527 = vst.msk [vmem:[#allocation3 + $0x198] sm:$0xff] %vm475_vm1, %v386_v29 }
  0xff   :  { %538 = vst.msk [vmem:[#allocation3 + $0x1f0] sm:$0xff] %vm475_vm1, %v408_v10  ;;  %v576_v10 = vld [vmem:[%s16661_s0 + $0x1e2] sm:$0xff] }
 0x102   :  { %734 = vrot.lane.b32.xlu1 %v573_v24, %s9553_s20  ;;  %732 = vrot.lane.b32.xlu0 %v572_v55, %s9553_s20  ;;  %v575_v55 = vld [vmem:[%s16661_s0 + $0x1d2] sm:$0xff] }
 0x103   :  { %736 = vrot.lane.b32.xlu2 %v574_v48, %s9553_s20  ;;  %v577_v48 = vld [vmem:[%s16661_s0 + $0x1ea] sm:$0xff] }
 0x104   :  { %v394_v56 = vpop.permute.xlu1 %393  ;;  %v392_v29 = vpop.permute.xlu0 %391 }
 0x105   :  { %531 = vst.msk [vmem:[#allocation3 + $0x1b8] sm:$0xff] %vm475_vm1, %v394_v56  ;;  %v671_v24 = vpop.permute.xlu2 %670 }
 0x106   :  { %530 = vst.msk [vmem:[#allocation3 + $0x1b0] sm:$0xff] %vm475_vm1, %v392_v29 }
 0x107   :  { %862 = vst.msk [vmem:[#allocation3 + $0x8] sm:$0xff] %vm860_vm2, %v671_v24  ;;  %v579_v24 = vld [vmem:[%s16661_s0 + $0x202] sm:$0xff] }
 0x10a   :  { %740 = vrot.lane.b32.xlu1 %v576_v10, %s9553_s20  ;;  %738 = vrot.lane.b32.xlu0 %v575_v55, %s9553_s20  ;;  %v578_v10 = vld [vmem:[%s16661_s0 + $0x1fa] sm:$0xff] }
 0x10b   :  { %742 = vrot.lane.b32.xlu2 %v577_v48, %s9553_s20  ;;  %v580_v48 = vld [vmem:[%s16661_s0 + $0x212] sm:$0xff] }
 0x10c   :  { %v400_v56 = vpop.permute.xlu1 %399  ;;  %v398_v29 = vpop.permute.xlu0 %397 }
 0x10d   :  { %534 = vst.msk [vmem:[#allocation3 + $0x1d0] sm:$0xff] %vm475_vm1, %v400_v56  ;;  %v677_v55 = vpop.permute.xlu2 %676 }
 0x10e   :  { %533 = vst.msk [vmem:[#allocation3 + $0x1c8] sm:$0xff] %vm475_vm1, %v398_v29 }
 0x10f   :  { %865 = vst.msk [vmem:[#allocation3 + $0x20] sm:$0xff] %vm860_vm2, %v677_v55  ;;  %v582_v55 = vld [vmem:[%s16661_s0 + $0x22a] sm:$0xff] }
 0x112   :  { %746 = vrot.lane.b32.xlu1 %v579_v24, %s9553_s20  ;;  %744 = vrot.lane.b32.xlu0 %v578_v10, %s9553_s20  ;;  %v581_v24 = vld [vmem:[%s16661_s0 + $0x21a] sm:$0xff] }
 0x113   :  { %748 = vrot.lane.b32.xlu2 %v580_v48, %s9553_s20  ;;  %v583_v48 = vld [vmem:[%s16661_s0 + $0x232] sm:$0xff] }
 0x114   :  { %v406_v56 = vpop.permute.xlu1 %405  ;;  %v404_v29 = vpop.permute.xlu0 %403 }
 0x115   :  { %537 = vst.msk [vmem:[#allocation3 + $0x1e8] sm:$0xff] %vm475_vm1, %v406_v56  ;;  %v683_v10 = vpop.permute.xlu2 %682 }
 0x116   :  { %536 = vst.msk [vmem:[#allocation3 + $0x1e0] sm:$0xff] %vm475_vm1, %v404_v29 }
 0x117   :  { %868 = vst.msk [vmem:[#allocation3 + $0x38] sm:$0xff] %vm860_vm2, %v683_v10  ;;  %v585_v10 = vld [vmem:[%s16661_s0 + $0x24a] sm:$0xff] }
 0x11a   :  { %752 = vrot.lane.b32.xlu1 %v582_v55, %s9553_s20  ;;  %750 = vrot.lane.b32.xlu0 %v581_v24, %s9553_s20  ;;  %v584_v55 = vld [vmem:[%s16661_s0 + $0x242] sm:$0xff] }
 0x11b   :  { %754 = vrot.lane.b32.xlu2 %v583_v48, %s9553_s20  ;;  %v586_v48 = vld [vmem:[%s16661_s0 + $0x25a] sm:$0xff] }
 0x11c   :  { %v669_v56 = vpop.permute.xlu1 %668  ;;  %v410_v29 = vpop.permute.xlu0 %409 }
 0x11d   :  { %861 = vst.msk [vmem:[#allocation3] sm:$0xff] %vm860_vm2, %v669_v56  ;;  %v689_v24 = vpop.permute.xlu2 %688 }
 0x11e   :  { %539 = vst.msk [vmem:[#allocation3 + $0x1f8] sm:$0xff] %vm475_vm1, %v410_v29 }
 0x11f   :  { %871 = vst.msk [vmem:[#allocation3 + $0x50] sm:$0xff] %vm860_vm2, %v689_v24  ;;  %v588_v24 = vld [vmem:[%s16661_s0 + $0x272] sm:$0xff] }
 0x122   :  { %758 = vrot.lane.b32.xlu1 %v585_v10, %s9553_s20  ;;  %756 = vrot.lane.b32.xlu0 %v584_v55, %s9553_s20  ;;  %v587_v10 = vld [vmem:[%s16661_s0 + $0x262] sm:$0xff] }
 0x123   :  { %760 = vrot.lane.b32.xlu2 %v586_v48, %s9553_s20  ;;  %v589_v48 = vld [vmem:[%s16661_s0 + $0x27a] sm:$0xff] }
 0x124   :  { %v675_v56 = vpop.permute.xlu1 %674  ;;  %v673_v29 = vpop.permute.xlu0 %672 }
 0x125   :  { %864 = vst.msk [vmem:[#allocation3 + $0x18] sm:$0xff] %vm860_vm2, %v675_v56  ;;  %v695_v55 = vpop.permute.xlu2 %694 }
 0x126   :  { %863 = vst.msk [vmem:[#allocation3 + $0x10] sm:$0xff] %vm860_vm2, %v673_v29 }
 0x127   :  { %874 = vst.msk [vmem:[#allocation3 + $0x68] sm:$0xff] %vm860_vm2, %v695_v55  ;;  %v591_v55 = vld [vmem:[%s16661_s0 + $0x292] sm:$0xff] }
 0x12a   :  { %764 = vrot.lane.b32.xlu1 %v588_v24, %s9553_s20  ;;  %762 = vrot.lane.b32.xlu0 %v587_v10, %s9553_s20  ;;  %v590_v24 = vld [vmem:[%s16661_s0 + $0x28a] sm:$0xff] }
 0x12b   :  { %766 = vrot.lane.b32.xlu2 %v589_v48, %s9553_s20  ;;  %v592_v48 = vld [vmem:[%s16661_s0 + $0x2a2] sm:$0xff] }
 0x12c   :  { %v681_v56 = vpop.permute.xlu1 %680  ;;  %v679_v29 = vpop.permute.xlu0 %678 }
 0x12d   :  { %867 = vst.msk [vmem:[#allocation3 + $0x30] sm:$0xff] %vm860_vm2, %v681_v56  ;;  %v701_v10 = vpop.permute.xlu2 %700 }
 0x12e   :  { %866 = vst.msk [vmem:[#allocation3 + $0x28] sm:$0xff] %vm860_vm2, %v679_v29 }
 0x12f   :  { %877 = vst.msk [vmem:[#allocation3 + $0x80] sm:$0xff] %vm860_vm2, %v701_v10  ;;  %v594_v10 = vld [vmem:[%s16661_s0 + $0x2ba] sm:$0xff] }
 0x132   :  { %770 = vrot.lane.b32.xlu1 %v591_v55, %s9553_s20  ;;  %768 = vrot.lane.b32.xlu0 %v590_v24, %s9553_s20  ;;  %v593_v55 = vld [vmem:[%s16661_s0 + $0x2aa] sm:$0xff] }
 0x133   :  { %772 = vrot.lane.b32.xlu2 %v592_v48, %s9553_s20  ;;  %v595_v48 = vld [vmem:[%s16661_s0 + $0x2c2] sm:$0xff] }
 0x134   :  { %v687_v56 = vpop.permute.xlu1 %686  ;;  %v685_v29 = vpop.permute.xlu0 %684 }
 0x135   :  { %870 = vst.msk [vmem:[#allocation3 + $0x48] sm:$0xff] %vm860_vm2, %v687_v56  ;;  %v707_v24 = vpop.permute.xlu2 %706 }
 0x136   :  { %869 = vst.msk [vmem:[#allocation3 + $0x40] sm:$0xff] %vm860_vm2, %v685_v29 }
 0x137   :  { %880 = vst.msk [vmem:[#allocation3 + $0x98] sm:$0xff] %vm860_vm2, %v707_v24  ;;  %v597_v24 = vld [vmem:[%s16661_s0 + $0x2da] sm:$0xff] }
 0x13a   :  { %776 = vrot.lane.b32.xlu1 %v594_v10, %s9553_s20  ;;  %774 = vrot.lane.b32.xlu0 %v593_v55, %s9553_s20  ;;  %v596_v10 = vld [vmem:[%s16661_s0 + $0x2d2] sm:$0xff] }
 0x13b   :  { %778 = vrot.lane.b32.xlu2 %v595_v48, %s9553_s20  ;;  %v598_v48 = vld [vmem:[%s16661_s0 + $0x2ea] sm:$0xff] }
 0x13c   :  { %v693_v56 = vpop.permute.xlu1 %692  ;;  %v691_v29 = vpop.permute.xlu0 %690 }
 0x13d   :  { %873 = vst.msk [vmem:[#allocation3 + $0x60] sm:$0xff] %vm860_vm2, %v693_v56  ;;  %v713_v55 = vpop.permute.xlu2 %712 }
 0x13e   :  { %872 = vst.msk [vmem:[#allocation3 + $0x58] sm:$0xff] %vm860_vm2, %v691_v29 }
 0x13f   :  { %883 = vst.msk [vmem:[#allocation3 + $0xb0] sm:$0xff] %vm860_vm2, %v713_v55  ;;  %v600_v55 = vld [vmem:[%s16661_s0 + $0x302] sm:$0xff] }
 0x142   :  { %782 = vrot.lane.b32.xlu1 %v597_v24, %s9553_s20  ;;  %780 = vrot.lane.b32.xlu0 %v596_v10, %s9553_s20  ;;  %v599_v24 = vld [vmem:[%s16661_s0 + $0x2f2] sm:$0xff] }
 0x143   :  { %784 = vrot.lane.b32.xlu2 %v598_v48, %s9553_s20  ;;  %v601_v48 = vld [vmem:[%s16661_s0 + $0x30a] sm:$0xff] }
 0x144   :  { %v699_v56 = vpop.permute.xlu1 %698  ;;  %v697_v29 = vpop.permute.xlu0 %696 }
 0x145   :  { %876 = vst.msk [vmem:[#allocation3 + $0x78] sm:$0xff] %vm860_vm2, %v699_v56  ;;  %v719_v10 = vpop.permute.xlu2 %718 }
 0x146   :  { %875 = vst.msk [vmem:[#allocation3 + $0x70] sm:$0xff] %vm860_vm2, %v697_v29 }
 0x147   :  { %886 = vst.msk [vmem:[#allocation3 + $0xc8] sm:$0xff] %vm860_vm2, %v719_v10  ;;  %v603_v10 = vld [vmem:[%s16661_s0 + $0x322] sm:$0xff] }
 0x14a   :  { %788 = vrot.lane.b32.xlu1 %v600_v55, %s9553_s20  ;;  %786 = vrot.lane.b32.xlu0 %v599_v24, %s9553_s20  ;;  %v602_v55 = vld [vmem:[%s16661_s0 + $0x31a] sm:$0xff] }
 0x14b   :  { %790 = vrot.lane.b32.xlu2 %v601_v48, %s9553_s20 }
 0x14c   :  { %v705_v56 = vpop.permute.xlu1 %704  ;;  %v703_v29 = vpop.permute.xlu0 %702 }
 0x14d   :  { %879 = vst.msk [vmem:[#allocation3 + $0x90] sm:$0xff] %vm860_vm2, %v705_v56  ;;  %v725_v24 = vpop.permute.xlu2 %724 }
 0x14e   :  { %878 = vst.msk [vmem:[#allocation3 + $0x88] sm:$0xff] %vm860_vm2, %v703_v29 }
 0x14f   :  { %889 = vst.msk [vmem:[#allocation3 + $0xe0] sm:$0xff] %vm860_vm2, %v725_v24 }
 0x152   :  { %794 = vrot.lane.b32.xlu1 %v603_v10, %s9553_s20  ;;  %792 = vrot.lane.b32.xlu0 %v602_v55, %s9553_s20 }
 0x153   :  { %1054 = vrot.lane.b32.xlu2 %v9738_v34, %s9554_s22 }
 0x154   :  { %v711_v56 = vpop.permute.xlu1 %710  ;;  %v709_v20 = vpop.permute.xlu0 %708 }
 0x155   :  { %882 = vst.msk [vmem:[#allocation3 + $0xa8] sm:$0xff] %vm860_vm2, %v711_v56  ;;  %v731_v48 = vpop.permute.xlu2 %730 }
 0x156   :  { %881 = vst.msk [vmem:[#allocation3 + $0xa0] sm:$0xff] %vm860_vm2, %v709_v20 }
 0x157   :  { %892 = vst.msk [vmem:[#allocation3 + $0xf8] sm:$0xff] %vm860_vm2, %v731_v48 }
 0x15a   :  { %1058 = vrot.lane.b32.xlu1 %v9758_v38, %s9554_s22  ;;  %1056 = vrot.lane.b32.xlu0 %v9765_v39, %s9554_s22 }
 0x15b   :  { %1060 = vrot.lane.b32.xlu2 %v9789_v45, %s9554_s22 }
 0x15c   :  { %v717_v29 = vpop.permute.xlu1 %716  ;;  %v715_v10 = vpop.permute.xlu0 %714 }
 0x15d   :  { %885 = vst.msk [vmem:[#allocation3 + $0xc0] sm:$0xff] %vm860_vm2, %v717_v29  ;;  %v737_v34 = vpop.permute.xlu2 %736  ;;  %v16755_v29 = vld [vmem:[#allocation5_spill] sm:$0xff] }
 0x15e   :  { %884 = vst.msk [vmem:[#allocation3 + $0xb8] sm:$0xff] %vm860_vm2, %v715_v10 }
 0x15f   :  { %895 = vst.msk [vmem:[#allocation3 + $0x110] sm:$0xff] %vm860_vm2, %v737_v34  ;;  %v9006_v34 = vld [vmem:[%s16661_s0 + $0x338] sm:$0xff] }
 0x162   :  { %1064 = vrot.lane.b32.xlu1 %v9796_v46, %s9554_s22  ;;  %1062 = vrot.lane.b32.xlu0 %v9801_v47, %s9554_s22 }
 0x163   :  { %1066 = vrot.lane.b32.xlu2 %v9823_v52, %s9554_s22 }
 0x164   :  { %v723_v38 = vpop.permute.xlu1 %722  ;;  %v721_v39 = vpop.permute.xlu0 %720 }
 0x165   :  { %888 = vst.msk [vmem:[#allocation3 + $0xd8] sm:$0xff] %vm860_vm2, %v723_v38  ;;  %v743_v45 = vpop.permute.xlu2 %742 }
 0x166   :  { %887 = vst.msk [vmem:[#allocation3 + $0xd0] sm:$0xff] %vm860_vm2, %v721_v39 }
 0x167   :  { %898 = vst.msk [vmem:[#allocation3 + $0x128] sm:$0xff] %vm860_vm2, %v743_v45  ;;  %v9008_v45 = vld [vmem:[%s16661_s0 + $0x21] sm:$0xff] }
 0x16a   :  { %1070 = vrot.lane.b32.xlu1 %v9830_v53, %s9554_s22  ;;  %1068 = vrot.lane.b32.xlu0 %v9835_v54, %s9554_s22 }
 0x16b   :  { %1072 = vrot.lane.b32.xlu2 %v9857_v59, %s9554_s22 }
 0x16c   :  { %v729_v46 = vpop.permute.xlu1 %728  ;;  %v727_v47 = vpop.permute.xlu0 %726 }
 0x16d   :  { %891 = vst.msk [vmem:[#allocation3 + $0xf0] sm:$0xff] %vm860_vm2, %v729_v46  ;;  %v749_v52 = vpop.permute.xlu2 %748  ;;  %v9007_v46 = vld [vmem:[%s16661_s0 + $0x19] sm:$0xff] }
 0x16e   :  { %890 = vst.msk [vmem:[#allocation3 + $0xe8] sm:$0xff] %vm860_vm2, %v727_v47 }
 0x16f   :  { %901 = vst.msk [vmem:[#allocation3 + $0x140] sm:$0xff] %vm860_vm2, %v749_v52  ;;  %v9009_v52 = vld [vmem:[%s16661_s0 + $0x31] sm:$0xff] }
 0x172   :  { %1076 = vrot.lane.b32.xlu1 %v9864_v62, %s9554_s22  ;;  %1074 = vrot.lane.b32.xlu0 %v9872_v63, %s9554_s22 }
 0x173   :  { %1078 = vrot.lane.b32.xlu2 %v9893_v4, %s9554_s22 }
 0x174   :  { %v735_v53 = vpop.permute.xlu1 %734  ;;  %v733_v54 = vpop.permute.xlu0 %732 }
 0x175   :  { %894 = vst.msk [vmem:[#allocation3 + $0x108] sm:$0xff] %vm860_vm2, %v735_v53  ;;  %v755_v59 = vpop.permute.xlu2 %754 }
 0x176   :  { %893 = vst.msk [vmem:[#allocation3 + $0x100] sm:$0xff] %vm860_vm2, %v733_v54 }
 0x177   :  { %904 = vst.msk [vmem:[#allocation3 + $0x158] sm:$0xff] %vm860_vm2, %v755_v59  ;;  %v9011_v59 = vld [vmem:[%s16661_s0 + $0x49] sm:$0xff] }
 0x17a   :  { %1082 = vrot.lane.b32.xlu1 %v9900_v7, %s9554_s22  ;;  %1080 = vrot.lane.b32.xlu0 %v9908_v8, %s9554_s22 }
 0x17b   :  { %1084 = vrot.lane.b32.xlu2 %v9929_v13, %s9554_s22 }
 0x17c   :  { %v741_v62 = vpop.permute.xlu1 %740  ;;  %v739_v63 = vpop.permute.xlu0 %738 }
 0x17d   :  { %897 = vst.msk [vmem:[#allocation3 + $0x120] sm:$0xff] %vm860_vm2, %v741_v62  ;;  %v761_v4 = vpop.permute.xlu2 %760  ;;  %v9010_v62 = vld [vmem:[%s16661_s0 + $0x39] sm:$0xff] }
 0x17e   :  { %896 = vst.msk [vmem:[#allocation3 + $0x118] sm:$0xff] %vm860_vm2, %v739_v63 }
 0x17f   :  { %907 = vst.msk [vmem:[#allocation3 + $0x170] sm:$0xff] %vm860_vm2, %v761_v4  ;;  %v9012_v4 = vld [vmem:[%s16661_s0 + $0x51] sm:$0xff] }
 0x182   :  { %1088 = vrot.lane.b32.xlu1 %v9936_v16, %s9554_s22  ;;  %1086 = vrot.lane.b32.xlu0 %v9944_v17, %s9554_s22 }
 0x183   :  { %1090 = vrot.lane.b32.xlu2 %v9965_v22, %s9554_s22 }
 0x184   :  { %v747_v7 = vpop.permute.xlu1 %746  ;;  %v745_v8 = vpop.permute.xlu0 %744 }
 0x185   :  { %900 = vst.msk [vmem:[#allocation3 + $0x138] sm:$0xff] %vm860_vm2, %v747_v7  ;;  %v767_v13 = vpop.permute.xlu2 %766 }
 0x186   :  { %899 = vst.msk [vmem:[#allocation3 + $0x130] sm:$0xff] %vm860_vm2, %v745_v8 }
 0x187   :  { %910 = vst.msk [vmem:[#allocation3 + $0x188] sm:$0xff] %vm860_vm2, %v767_v13  ;;  %v9014_v13 = vld [vmem:[%s16661_s0 + $0x69] sm:$0xff] }
 0x18a   :  { %1094 = vrot.lane.b32.xlu1 %v9972_v25, %s9554_s22  ;;  %1092 = vrot.lane.b32.xlu0 %v9980_v26, %s9554_s22 }
 0x18b   :  { %1096 = vrot.lane.b32.xlu2 %v10001_v31, %s9554_s22 }
 0x18c   :  { %v753_v16 = vpop.permute.xlu1 %752  ;;  %v751_v17 = vpop.permute.xlu0 %750 }
 0x18d   :  { %903 = vst.msk [vmem:[#allocation3 + $0x150] sm:$0xff] %vm860_vm2, %v753_v16  ;;  %v773_v22 = vpop.permute.xlu2 %772  ;;  %v9013_v16 = vld [vmem:[%s16661_s0 + $0x61] sm:$0xff] }
 0x18e   :  { %902 = vst.msk [vmem:[#allocation3 + $0x148] sm:$0xff] %vm860_vm2, %v751_v17 }
 0x18f   :  { %913 = vst.msk [vmem:[#allocation3 + $0x1a0] sm:$0xff] %vm860_vm2, %v773_v22  ;;  %v9015_v22 = vld [vmem:[%s16661_s0 + $0x79] sm:$0xff] }
 0x192   :  { %1100 = vrot.lane.b32.xlu1 %v10008_v35, %s9554_s22  ;;  %1098 = vrot.lane.b32.xlu0 %v10016_v36, %s9554_s22 }
 0x193   :  { %1102 = vrot.lane.b32.xlu2 %v10037_v43, %s9554_s22 }
 0x194   :  { %v759_v25 = vpop.permute.xlu1 %758  ;;  %v757_v26 = vpop.permute.xlu0 %756 }
 0x195   :  { %906 = vst.msk [vmem:[#allocation3 + $0x168] sm:$0xff] %vm860_vm2, %v759_v25  ;;  %v779_v31 = vpop.permute.xlu2 %778 }
 0x196   :  { %905 = vst.msk [vmem:[#allocation3 + $0x160] sm:$0xff] %vm860_vm2, %v757_v26 }
 0x197   :  { %916 = vst.msk [vmem:[#allocation3 + $0x1b8] sm:$0xff] %vm860_vm2, %v779_v31  ;;  %v9017_v31 = vld [vmem:[%s16661_s0 + $0x91] sm:$0xff] }
 0x19a   :  { %1106 = vrot.lane.b32.xlu1 %v10044_v49, %s9554_s22  ;;  %1104 = vrot.lane.b32.xlu0 %v10052_v50, %s9554_s22  ;;  %v8973_v49 = vld [vmem:[%s16661_s0 + $0x180] sm:$0xff] }
 0x19b   :  { %1108 = vrot.lane.b32.xlu2 %v10073_v58, %s9554_s22  ;;  %v8974_v58 = vld [vmem:[%s16661_s0 + $0x188] sm:$0xff] }
 0x19c   :  { %v765_v35 = vpop.permute.xlu1 %764  ;;  %v763_v36 = vpop.permute.xlu0 %762 }
 0x19d   :  { %909 = vst.msk [vmem:[#allocation3 + $0x180] sm:$0xff] %vm860_vm2, %v765_v35  ;;  %v785_v43 = vpop.permute.xlu2 %784  ;;  %v9016_v35 = vld [vmem:[%s16661_s0 + $0x81] sm:$0xff] }
 0x19e   :  { %908 = vst.msk [vmem:[#allocation3 + $0x178] sm:$0xff] %vm860_vm2, %v763_v36 }
 0x19f   :  { %919 = vst.msk [vmem:[#allocation3 + $0x1d0] sm:$0xff] %vm860_vm2, %v785_v43  ;;  %v9018_v43 = vld [vmem:[%s16661_s0 + $0x99] sm:$0xff] }
 0x1a2   :  { %1112 = vrot.lane.b32.xlu1 %v10080_v0, %s9554_s22  ;;  %1110 = vrot.lane.b32.xlu0 %v10088_v1, %s9554_s22 }
 0x1a3   :  { %1114 = vrot.lane.b32.xlu2 %v8973_v49, %s9554_s22 }
 0x1a4   :  { %v771_v50 = vpop.permute.xlu1 %770  ;;  %v769_v20 = vpop.permute.xlu0 %768 }
 0x1a5   :  { %912 = vst.msk [vmem:[#allocation3 + $0x198] sm:$0xff] %vm860_vm2, %v771_v50  ;;  %v791_v0 = vpop.permute.xlu2 %790 }
 0x1a6   :  { %911 = vst.msk [vmem:[#allocation3 + $0x190] sm:$0xff] %vm860_vm2, %v769_v20  ;;  %v9020_v20 = vld [vmem:[%s16661_s0 + $0xb1] sm:$0xff] }
 0x1a7   :  { %922 = vst.msk [vmem:[#allocation3 + $0x1e8] sm:$0xff] %vm860_vm2, %v791_v0 }
 0x1aa   :  { %1118 = vrot.lane.b32.xlu1 %v10113_v12, %s9554_s22  ;;  %1116 = vrot.lane.b32.xlu0 %v8974_v58, %s9554_s22  ;;  %v9019_v58 = vld [vmem:[%s16661_s0 + $0xa9] sm:$0xff] }
 0x1ab   :  { %1120 = vrot.lane.b32.xlu2 %v10139_v21, %s9554_s22 }
 0x1ac   :  { %v777_v1 = vpop.permute.xlu1 %776  ;;  %v775_v55 = vpop.permute.xlu0 %774 }
 0x1ad   :  { %915 = vst.msk [vmem:[#allocation3 + $0x1b0] sm:$0xff] %vm860_vm2, %v777_v1  ;;  %v1055_v24 = vpop.permute.xlu2 %1054  ;;  %v9021_v1 = vld [vmem:[%s16661_s0 + $0xc1] sm:$0xff] }
 0x1ae   :  { %914 = vst.msk [vmem:[#allocation3 + $0x1a8] sm:$0xff] %vm860_vm2, %v775_v55 }
 0x1af   :  { %1247 = vst.msk [vmem:[#allocation3] sm:$0xff] %vm1246_vm3, %v1055_v24 }
 0x1b2   :  { %1124 = vrot.lane.b32.xlu1 %v10146_v27, %s9554_s22  ;;  %1122 = vrot.lane.b32.xlu0 %v10154_v28, %s9554_s22 }
 0x1b3   :  { %1126 = vrot.lane.b32.xlu2 %v10175_v37, %s9554_s22 }
 0x1b4   :  { %v783_v12 = vpop.permute.xlu1 %782  ;;  %v781_v56 = vpop.permute.xlu0 %780 }
 0x1b5   :  { %918 = vst.msk [vmem:[#allocation3 + $0x1c8] sm:$0xff] %vm860_vm2, %v783_v12  ;;  %v1061_v21 = vpop.permute.xlu2 %1060  ;;  %v9023_v12 = vld [vmem:[%s16661_s0 + $0xd9] sm:$0xff] }
 0x1b6   :  { %917 = vst.msk [vmem:[#allocation3 + $0x1c0] sm:$0xff] %vm860_vm2, %v781_v56  ;;  %v9022_v56 = vld [vmem:[%s16661_s0 + $0xc9] sm:$0xff] }
 0x1b7   :  { %1250 = vst.msk [vmem:[#allocation3 + $0x18] sm:$0xff] %vm1246_vm3, %v1061_v21 }
 0x1ba   :  { %1130 = vrot.lane.b32.xlu1 %v10182_v42, %s9554_s22  ;;  %1128 = vrot.lane.b32.xlu0 %v10190_v44, %s9554_s22 }
 0x1bb   :  { %1132 = vrot.lane.b32.xlu2 %v10211_v57, %s9554_s22 }
 0x1bc   :  { %v789_v27 = vpop.permute.xlu1 %788  ;;  %v787_v28 = vpop.permute.xlu0 %786 }
 0x1bd   :  { %921 = vst.msk [vmem:[#allocation3 + $0x1e0] sm:$0xff] %vm860_vm2, %v789_v27  ;;  %v1067_v37 = vpop.permute.xlu2 %1066  ;;  %v9024_v27 = vld [vmem:[%s16661_s0 + $0xe1] sm:$0xff] }
 0x1be   :  { %920 = vst.msk [vmem:[#allocation3 + $0x1d8] sm:$0xff] %vm860_vm2, %v787_v28 }
 0x1bf   :  { %1253 = vst.msk [vmem:[#allocation3 + $0x30] sm:$0xff] %vm1246_vm3, %v1067_v37 }
 0x1c2   :  { %1136 = vrot.lane.b32.xlu1 %v10218_v2, %s9554_s22  ;;  %1134 = vrot.lane.b32.xlu0 %v10226_v3, %s9554_s22 }
 0x1c3   :  { %1138 = vrot.lane.b32.xlu2 %v10247_v11, %s9554_s22 }
 0x1c4   :  { %v795_v42 = vpop.permute.xlu1 %794  ;;  %v793_v44 = vpop.permute.xlu0 %792 }
 0x1c5   :  { %924 = vst.msk [vmem:[#allocation3 + $0x1f8] sm:$0xff] %vm860_vm2, %v795_v42  ;;  %v1073_v57 = vpop.permute.xlu2 %1072  ;;  %v9026_v42 = vld [vmem:[%s16661_s0 + $0xf9] sm:$0xff] }
 0x1c6   :  { %923 = vst.msk [vmem:[#allocation3 + $0x1f0] sm:$0xff] %vm860_vm2, %v793_v44  ;;  %v9025_v44 = vld [vmem:[%s16661_s0 + $0xf1] sm:$0xff] }
 0x1c7   :  { %1256 = vst.msk [vmem:[#allocation3 + $0x48] sm:$0xff] %vm1246_vm3, %v1073_v57 }
 0x1ca   :  { %1142 = vrot.lane.b32.xlu1 %v10254_v18, %s9554_s22  ;;  %1140 = vrot.lane.b32.xlu0 %v10262_v19, %s9554_s22 }
 0x1cb   :  { %1144 = vrot.lane.b32.xlu2 %v10283_v30, %s9554_s22 }
 0x1cc   :  { %v1059_v2 = vpop.permute.xlu1 %1058  ;;  %v1057_v3 = vpop.permute.xlu0 %1056 }
 0x1cd   :  { %1249 = vst.msk [vmem:[#allocation3 + $0x10] sm:$0xff] %vm1246_vm3, %v1059_v2  ;;  %v1079_v11 = vpop.permute.xlu2 %1078  ;;  %v9027_v2 = vld [vmem:[%s16661_s0 + $0x109] sm:$0xff] }
 0x1ce   :  { %1248 = vst.msk [vmem:[#allocation3 + $0x8] sm:$0xff] %vm1246_vm3, %v1057_v3 }
 0x1cf   :  { %1259 = vst.msk [vmem:[#allocation3 + $0x60] sm:$0xff] %vm1246_vm3, %v1079_v11 }
 0x1d2   :  { %1148 = vrot.lane.b32.xlu1 %v10290_v40, %s9554_s22  ;;  %1146 = vrot.lane.b32.xlu0 %v10298_v41, %s9554_s22 }
 0x1d3   :  { %1150 = vrot.lane.b32.xlu2 %v10319_v60, %s9554_s22 }
 0x1d4   :  { %v1065_v18 = vpop.permute.xlu1 %1064  ;;  %v1063_v19 = vpop.permute.xlu0 %1062 }
 0x1d5   :  { %1252 = vst.msk [vmem:[#allocation3 + $0x28] sm:$0xff] %vm1246_vm3, %v1065_v18  ;;  %v1085_v30 = vpop.permute.xlu2 %1084  ;;  %v9029_v18 = vld [vmem:[%s16661_s0 + $0x121] sm:$0xff] }
 0x1d6   :  { %1251 = vst.msk [vmem:[#allocation3 + $0x20] sm:$0xff] %vm1246_vm3, %v1063_v19  ;;  %v9028_v19 = vld [vmem:[%s16661_s0 + $0x111] sm:$0xff] }
 0x1d7   :  { %1262 = vst.msk [vmem:[#allocation3 + $0x78] sm:$0xff] %vm1246_vm3, %v1085_v30 }
 0x1da   :  { %1154 = vrot.lane.b32.xlu1 %v10326_v6, %s9554_s22  ;;  %1152 = vrot.lane.b32.xlu0 %v10334_v9, %s9554_s22 }
 0x1db   :  { %1156 = vrot.lane.b32.xlu2 %v10355_v23, %s9554_s22 }
 0x1dc   :  { %v1071_v40 = vpop.permute.xlu1 %1070  ;;  %v1069_v41 = vpop.permute.xlu0 %1068 }
 0x1dd   :  { %1255 = vst.msk [vmem:[#allocation3 + $0x40] sm:$0xff] %vm1246_vm3, %v1071_v40  ;;  %v1091_v60 = vpop.permute.xlu2 %1090  ;;  %v9030_v40 = vld [vmem:[%s16661_s0 + $0x129] sm:$0xff] }
 0x1de   :  { %1254 = vst.msk [vmem:[#allocation3 + $0x38] sm:$0xff] %vm1246_vm3, %v1069_v41 }
 0x1df   :  { %1265 = vst.msk [vmem:[#allocation3 + $0x90] sm:$0xff] %vm1246_vm3, %v1091_v60 }
 0x1e2   :  { %1160 = vrot.lane.b32.xlu1 %v10362_v32, %s9554_s22  ;;  %1158 = vrot.lane.b32.xlu0 %v10370_v33, %s9554_s22 }
 0x1e3   :  { %1162 = vrot.lane.b32.xlu2 %v10391_v61, %s9554_s22 }
 0x1e4   :  { %v1077_v6 = vpop.permute.xlu1 %1076  ;;  %v1075_v9 = vpop.permute.xlu0 %1074 }
 0x1e5   :  { %1258 = vst.msk [vmem:[#allocation3 + $0x58] sm:$0xff] %vm1246_vm3, %v1077_v6  ;;  %v1097_v23 = vpop.permute.xlu2 %1096  ;;  %v9032_v6 = vld [vmem:[%s16661_s0 + $0x141] sm:$0xff] }
 0x1e6   :  { %1257 = vst.msk [vmem:[#allocation3 + $0x50] sm:$0xff] %vm1246_vm3, %v1075_v9  ;;  %v9031_v9 = vld [vmem:[%s16661_s0 + $0x139] sm:$0xff] }
 0x1e7   :  { %1268 = vst.msk [vmem:[#allocation3 + $0xa8] sm:$0xff] %vm1246_vm3, %v1097_v23 }
 0x1ea   :  { %1166 = vrot.lane.b32.xlu1 %v10398_v14, %s9554_s22  ;;  %1164 = vrot.lane.b32.xlu0 %v10406_v15, %s9554_s22  ;;  %v16754_v14 = vld [vmem:[#allocation4_spill] sm:$0xff] }
 0x1eb   :  { %1168 = vrot.lane.b32.xlu2 %v10427_v51, %s9554_s22  ;;  %v9005_v51 = vld [vmem:[%s16661_s0 + $0x330] sm:$0xff] }
 0x1ec   :  { %v1083_v32 = vpop.permute.xlu1 %1082  ;;  %v1081_v33 = vpop.permute.xlu0 %1080 }
 0x1ed   :  { %1261 = vst.msk [vmem:[#allocation3 + $0x70] sm:$0xff] %vm1246_vm3, %v1083_v32  ;;  %v1103_v61 = vpop.permute.xlu2 %1102  ;;  %v9033_v32 = vld [vmem:[%s16661_s0 + $0x151] sm:$0xff] }
 0x1ee   :  { %1260 = vst.msk [vmem:[#allocation3 + $0x68] sm:$0xff] %vm1246_vm3, %v1081_v33 }
 0x1ef   :  { %1271 = vst.msk [vmem:[#allocation3 + $0xc0] sm:$0xff] %vm1246_vm3, %v1103_v61 }
 0x1f2   :  { %1172 = vrot.lane.b32.xlu1 %v10434_v5, %s9554_s22  ;;  %1170 = vrot.lane.b32.xlu0 %v16754_v14, %s9554_s22  ;;  %v16756_v5 = vld [vmem:[#allocation6_spill] sm:$0xff] }
 0x1f3   :  { %1174 = vrot.lane.b32.xlu2 %v16755_v29, %s9554_s22  ;;  %v9035_v14 = vld [vmem:[%s16661_s0 + $0x169] sm:$0xff]  ;;  %v9036_v29 = vld [vmem:[%s16661_s0 + $0x171] sm:$0xff] }
 0x1f4   :  { %v1089_v48 = vpop.permute.xlu1 %1088  ;;  %v1087_v15 = vpop.permute.xlu0 %1086 }
 0x1f5   :  { %1264 = vst.msk [vmem:[#allocation3 + $0x88] sm:$0xff] %vm1246_vm3, %v1089_v48  ;;  %v1109_v10 = vpop.permute.xlu2 %1108  ;;  %v9034_v48 = vld [vmem:[%s16661_s0 + $0x159] sm:$0xff] }
 0x1f6   :  { %1263 = vst.msk [vmem:[#allocation3 + $0x80] sm:$0xff] %vm1246_vm3, %v1087_v15 }
 0x1f7   :  { %1274 = vst.msk [vmem:[#allocation3 + $0xd8] sm:$0xff] %vm1246_vm3, %v1109_v10 }
 0x1fa   :  { %1178 = vrot.lane.b32.xlu1 %v9005_v51, %s9554_s22  ;;  %1176 = vrot.lane.b32.xlu0 %v16756_v5, %s9554_s22  ;;  %v9038_v5 = vld [vmem:[%s16661_s0 + $0x189] sm:$0xff] }
 0x1fb   :  { %1180 = vrot.lane.b32.xlu2 %v9006_v34, %s9554_s22  ;;  %v9037_v34 = vld [vmem:[%s16661_s0 + $0x181] sm:$0xff] }
 0x1fc   :  { %v1095_v38 = vpop.permute.xlu1 %1094  ;;  %v1093_v39 = vpop.permute.xlu0 %1092 }
 0x1fd   :  { %1267 = vst.msk [vmem:[#allocation3 + $0xa0] sm:$0xff] %vm1246_vm3, %v1095_v38  ;;  %v1115_v47 = vpop.permute.xlu2 %1114 }
 0x1fe   :  { %1266 = vst.msk [vmem:[#allocation3 + $0x98] sm:$0xff] %vm1246_vm3, %v1093_v39  ;;  %v9039_v39 = vld [vmem:[%s16661_s0 + $0x1c9] sm:$0xff] }
 0x1ff   :  { %1277 = vst.msk [vmem:[#allocation3 + $0xf0] sm:$0xff] %vm1246_vm3, %v1115_v47  ;;  %v9041_v47 = vld [vmem:[%s16661_s0 + $0x1e1] sm:$0xff] }
 0x202   :  { %1441 = vrot.lane.b32.xlu1 %v9008_v45, %s9555_s13  ;;  %1439 = vrot.lane.b32.xlu0 %v9007_v46, %s9555_s13 }
 0x203   :  { %1443 = vrot.lane.b32.xlu2 %v9009_v52, %s9555_s13  ;;  %v9040_v52 = vld [vmem:[%s16661_s0 + $0x1d1] sm:$0xff] }
 0x204   :  { %v1101_v53 = vpop.permute.xlu1 %1100  ;;  %v1099_v54 = vpop.permute.xlu0 %1098 }
 0x205   :  { %1270 = vst.msk [vmem:[#allocation3 + $0xb8] sm:$0xff] %vm1246_vm3, %v1101_v53  ;;  %v1121_v63 = vpop.permute.xlu2 %1120 }
 0x206   :  { %1269 = vst.msk [vmem:[#allocation3 + $0xb0] sm:$0xff] %vm1246_vm3, %v1099_v54  ;;  %v9042_v54 = vld [vmem:[%s16661_s0 + $0x1e9] sm:$0xff] }
 0x207   :  { %1280 = vst.msk [vmem:[#allocation3 + $0x108] sm:$0xff] %vm1246_vm3, %v1121_v63  ;;  %v9044_v63 = vld [vmem:[%s16661_s0 + $0x201] sm:$0xff] }
 0x20a   :  { %1447 = vrot.lane.b32.xlu1 %v9011_v59, %s9555_s13  ;;  %1445 = vrot.lane.b32.xlu0 %v9010_v62, %s9555_s13 }
 0x20b   :  { %1449 = vrot.lane.b32.xlu2 %v9012_v4, %s9555_s13  ;;  %v9043_v4 = vld [vmem:[%s16661_s0 + $0x1f9] sm:$0xff] }
 0x20c   :  { %v1107_v7 = vpop.permute.xlu1 %1106  ;;  %v1105_v8 = vpop.permute.xlu0 %1104 }
 0x20d   :  { %1273 = vst.msk [vmem:[#allocation3 + $0xd0] sm:$0xff] %vm1246_vm3, %v1107_v7  ;;  %v1127_v17 = vpop.permute.xlu2 %1126 }
 0x20e   :  { %1272 = vst.msk [vmem:[#allocation3 + $0xc8] sm:$0xff] %vm1246_vm3, %v1105_v8  ;;  %v9045_v8 = vld [vmem:[%s16661_s0 + $0x211] sm:$0xff] }
 0x20f   :  { %1283 = vst.msk [vmem:[#allocation3 + $0x120] sm:$0xff] %vm1246_vm3, %v1127_v17  ;;  %v9047_v17 = vld [vmem:[%s16661_s0 + $0x229] sm:$0xff] }
 0x212   :  { %1453 = vrot.lane.b32.xlu1 %v9014_v13, %s9555_s13  ;;  %1451 = vrot.lane.b32.xlu0 %v9013_v16, %s9555_s13 }
 0x213   :  { %1455 = vrot.lane.b32.xlu2 %v9015_v22, %s9555_s13  ;;  %v9046_v22 = vld [vmem:[%s16661_s0 + $0x219] sm:$0xff] }
 0x214   :  { %v1113_v25 = vpop.permute.xlu1 %1112  ;;  %v1111_v26 = vpop.permute.xlu0 %1110 }
 0x215   :  { %1276 = vst.msk [vmem:[#allocation3 + $0xe8] sm:$0xff] %vm1246_vm3, %v1113_v25  ;;  %v1133_v36 = vpop.permute.xlu2 %1132 }
 0x216   :  { %1275 = vst.msk [vmem:[#allocation3 + $0xe0] sm:$0xff] %vm1246_vm3, %v1111_v26  ;;  %v9048_v26 = vld [vmem:[%s16661_s0 + $0x231] sm:$0xff] }
 0x217   :  { %1286 = vst.msk [vmem:[#allocation3 + $0x138] sm:$0xff] %vm1246_vm3, %v1133_v36  ;;  %v9050_v36 = vld [vmem:[%s16661_s0 + $0x249] sm:$0xff] }
 0x21a   :  { %1459 = vrot.lane.b32.xlu1 %v9017_v31, %s9555_s13  ;;  %1457 = vrot.lane.b32.xlu0 %v9016_v35, %s9555_s13 }
 0x21b   :  { %1461 = vrot.lane.b32.xlu2 %v9018_v43, %s9555_s13  ;;  %v9049_v43 = vld [vmem:[%s16661_s0 + $0x241] sm:$0xff] }
 0x21c   :  { %v1119_v49 = vpop.permute.xlu1 %1118  ;;  %v1117_v50 = vpop.permute.xlu0 %1116 }
 0x21d   :  { %1279 = vst.msk [vmem:[#allocation3 + $0x100] sm:$0xff] %vm1246_vm3, %v1119_v49  ;;  %v1139_v0 = vpop.permute.xlu2 %1138 }
 0x21e   :  { %1278 = vst.msk [vmem:[#allocation3 + $0xf8] sm:$0xff] %vm1246_vm3, %v1117_v50  ;;  %v9051_v50 = vld [vmem:[%s16661_s0 + $0x259] sm:$0xff] }
 0x21f   :  { %1289 = vst.msk [vmem:[#allocation3 + $0x150] sm:$0xff] %vm1246_vm3, %v1139_v0  ;;  %v9053_v0 = vld [vmem:[%s16661_s0 + $0x271] sm:$0xff] }
 0x222   :  { %1465 = vrot.lane.b32.xlu1 %v9020_v20, %s9555_s13  ;;  %1463 = vrot.lane.b32.xlu0 %v9019_v58, %s9555_s13 }
 0x223   :  { %1467 = vrot.lane.b32.xlu2 %v9021_v1, %s9555_s13  ;;  %v9052_v1 = vld [vmem:[%s16661_s0 + $0x261] sm:$0xff] }
 0x224   :  { %v1125_v55 = vpop.permute.xlu1 %1124  ;;  %v1123_v24 = vpop.permute.xlu0 %1122 }
 0x225   :  { %1282 = vst.msk [vmem:[#allocation3 + $0x118] sm:$0xff] %vm1246_vm3, %v1125_v55  ;;  %v1145_v21 = vpop.permute.xlu2 %1144 }
 0x226   :  { %1281 = vst.msk [vmem:[#allocation3 + $0x110] sm:$0xff] %vm1246_vm3, %v1123_v24  ;;  %v9054_v24 = vld [vmem:[%s16661_s0 + $0x279] sm:$0xff] }
 0x227   :  { %1292 = vst.msk [vmem:[#allocation3 + $0x168] sm:$0xff] %vm1246_vm3, %v1145_v21  ;;  %v9056_v21 = vld [vmem:[%s16661_s0 + $0x291] sm:$0xff] }
 0x22a   :  { %1471 = vrot.lane.b32.xlu1 %v9023_v12, %s9555_s13  ;;  %1469 = vrot.lane.b32.xlu0 %v9022_v56, %s9555_s13 }
 0x22b   :  { %1473 = vrot.lane.b32.xlu2 %v9024_v27, %s9555_s13  ;;  %v9055_v27 = vld [vmem:[%s16661_s0 + $0x289] sm:$0xff] }
 0x22c   :  { %v1131_v28 = vpop.permute.xlu1 %1130  ;;  %v1129_v37 = vpop.permute.xlu0 %1128 }
 0x22d   :  { %1285 = vst.msk [vmem:[#allocation3 + $0x130] sm:$0xff] %vm1246_vm3, %v1131_v28  ;;  %v1151_v57 = vpop.permute.xlu2 %1150 }
 0x22e   :  { %1284 = vst.msk [vmem:[#allocation3 + $0x128] sm:$0xff] %vm1246_vm3, %v1129_v37  ;;  %v9057_v37 = vld [vmem:[%s16661_s0 + $0x2a1] sm:$0xff] }
 0x22f   :  { %1295 = vst.msk [vmem:[#allocation3 + $0x180] sm:$0xff] %vm1246_vm3, %v1151_v57  ;;  %v9059_v57 = vld [vmem:[%s16661_s0 + $0x2b9] sm:$0xff] }
 0x232   :  { %1477 = vrot.lane.b32.xlu1 %v9026_v42, %s9555_s13  ;;  %1475 = vrot.lane.b32.xlu0 %v9025_v44, %s9555_s13 }
 0x233   :  { %1479 = vrot.lane.b32.xlu2 %v9027_v2, %s9555_s13  ;;  %v9058_v2 = vld [vmem:[%s16661_s0 + $0x2a9] sm:$0xff] }
 0x234   :  { %v1137_v3 = vpop.permute.xlu1 %1136  ;;  %v1135_v11 = vpop.permute.xlu0 %1134 }
 0x235   :  { %1288 = vst.msk [vmem:[#allocation3 + $0x148] sm:$0xff] %vm1246_vm3, %v1137_v3  ;;  %v1157_v30 = vpop.permute.xlu2 %1156 }
 0x236   :  { %1287 = vst.msk [vmem:[#allocation3 + $0x140] sm:$0xff] %vm1246_vm3, %v1135_v11  ;;  %v9060_v11 = vld [vmem:[%s16661_s0 + $0x2c1] sm:$0xff] }
 0x237   :  { %1298 = vst.msk [vmem:[#allocation3 + $0x198] sm:$0xff] %vm1246_vm3, %v1157_v30  ;;  %v9062_v30 = vld [vmem:[%s16661_s0 + $0x2d9] sm:$0xff] }
 0x23a   :  { %1483 = vrot.lane.b32.xlu1 %v9029_v18, %s9555_s13  ;;  %1481 = vrot.lane.b32.xlu0 %v9028_v19, %s9555_s13 }
 0x23b   :  { %1485 = vrot.lane.b32.xlu2 %v9030_v40, %s9555_s13  ;;  %v9061_v40 = vld [vmem:[%s16661_s0 + $0x2d1] sm:$0xff] }
 0x23c   :  { %v1143_v41 = vpop.permute.xlu1 %1142  ;;  %v1141_v60 = vpop.permute.xlu0 %1140 }
 0x23d   :  { %1291 = vst.msk [vmem:[#allocation3 + $0x160] sm:$0xff] %vm1246_vm3, %v1143_v41  ;;  %v1163_v23 = vpop.permute.xlu2 %1162 }
 0x23e   :  { %1290 = vst.msk [vmem:[#allocation3 + $0x158] sm:$0xff] %vm1246_vm3, %v1141_v60  ;;  %v9063_v60 = vld [vmem:[%s16661_s0 + $0x2e9] sm:$0xff] }
 0x23f   :  { %1301 = vst.msk [vmem:[#allocation3 + $0x1b0] sm:$0xff] %vm1246_vm3, %v1163_v23  ;;  %v9065_v23 = vld [vmem:[%s16661_s0 + $0x301] sm:$0xff] }
 0x242   :  { %1489 = vrot.lane.b32.xlu1 %v9032_v6, %s9555_s13  ;;  %1487 = vrot.lane.b32.xlu0 %v9031_v9, %s9555_s13 }
 0x243   :  { %1491 = vrot.lane.b32.xlu2 %v9033_v32, %s9555_s13  ;;  %v9064_v32 = vld [vmem:[%s16661_s0 + $0x2f1] sm:$0xff] }
 0x244   :  { %v1149_v33 = vpop.permute.xlu1 %1148  ;;  %v1147_v61 = vpop.permute.xlu0 %1146 }
 0x245   :  { %1294 = vst.msk [vmem:[#allocation3 + $0x178] sm:$0xff] %vm1246_vm3, %v1149_v33  ;;  %v1169_v15 = vpop.permute.xlu2 %1168 }
 0x246   :  { %1293 = vst.msk [vmem:[#allocation3 + $0x170] sm:$0xff] %vm1246_vm3, %v1147_v61  ;;  %v9066_v61 = vld [vmem:[%s16661_s0 + $0x309] sm:$0xff] }
 0x247   :  { %1304 = vst.msk [vmem:[#allocation3 + $0x1c8] sm:$0xff] %vm1246_vm3, %v1169_v15  ;;  %v9068_v15 = vld [vmem:[%s16661_s0 + $0x321] sm:$0xff] }
 0x24a   :  { %1495 = vrot.lane.b32.xlu1 %v9035_v14, %s9555_s13  ;;  %1493 = vrot.lane.b32.xlu0 %v9034_v48, %s9555_s13 }
 0x24b   :  { %1497 = vrot.lane.b32.xlu2 %v9036_v29, %s9555_s13  ;;  %v9067_v29 = vld [vmem:[%s16661_s0 + $0x319] sm:$0xff] }
 0x24c   :  { %v1155_v51 = vpop.permute.xlu1 %1154  ;;  %v1153_v10 = vpop.permute.xlu0 %1152 }
 0x24d   :  { %1297 = vst.msk [vmem:[#allocation3 + $0x190] sm:$0xff] %vm1246_vm3, %v1155_v51  ;;  %v1175_v38 = vpop.permute.xlu2 %1174 }
 0x24e   :  { %1296 = vst.msk [vmem:[#allocation3 + $0x188] sm:$0xff] %vm1246_vm3, %v1153_v10  ;;  %v9069_v10 = vld [vmem:[%s16661_s0 + $0x331] sm:$0xff] }
 0x24f   :  { %1307 = vst.msk [vmem:[#allocation3 + $0x1e0] sm:$0xff] %vm1246_vm3, %v1175_v38  ;;  %v9071_v38 = vld [vmem:[%s16661_s0 + $0x1a] sm:$0xff] }
 0x252   :  { %1501 = vrot.lane.b32.xlu1 %v9038_v5, %s9555_s13  ;;  %1499 = vrot.lane.b32.xlu0 %v9037_v34, %s9555_s13 }
 0x253   :  { %1503 = vrot.lane.b32.xlu2 %v9039_v39, %s9555_s13  ;;  %v9070_v39 = vld [vmem:[%s16661_s0 + $0x339] sm:$0xff] }
 0x254   :  { %v1161_v45 = vpop.permute.xlu1 %1160  ;;  %v1159_v46 = vpop.permute.xlu0 %1158 }
 0x255   :  { %1300 = vst.msk [vmem:[#allocation3 + $0x1a8] sm:$0xff] %vm1246_vm3, %v1161_v45  ;;  %v1181_v53 = vpop.permute.xlu2 %1180 }
 0x256   :  { %1299 = vst.msk [vmem:[#allocation3 + $0x1a0] sm:$0xff] %vm1246_vm3, %v1159_v46  ;;  %v9072_v46 = vld [vmem:[%s16661_s0 + $0x22] sm:$0xff] }
 0x257   :  { %1310 = vst.msk [vmem:[#allocation3 + $0x1f8] sm:$0xff] %vm1246_vm3, %v1181_v53  ;;  %v9074_v53 = vld [vmem:[%s16661_s0 + $0x3a] sm:$0xff] }
 0x25a   :  { %1507 = vrot.lane.b32.xlu1 %v9041_v47, %s9555_s13  ;;  %1505 = vrot.lane.b32.xlu0 %v9040_v52, %s9555_s13 }
 0x25b   :  { %1509 = vrot.lane.b32.xlu2 %v9042_v54, %s9555_s13  ;;  %v9073_v54 = vld [vmem:[%s16661_s0 + $0x32] sm:$0xff] }
 0x25c   :  { %v1167_v59 = vpop.permute.xlu1 %1166  ;;  %v1165_v62 = vpop.permute.xlu0 %1164 }
 0x25d   :  { %1303 = vst.msk [vmem:[#allocation3 + $0x1c0] sm:$0xff] %vm1246_vm3, %v1167_v59  ;;  %v1444_v7 = vpop.permute.xlu2 %1443 }
 0x25e   :  { %1302 = vst.msk [vmem:[#allocation3 + $0x1b8] sm:$0xff] %vm1246_vm3, %v1165_v62  ;;  %v9075_v62 = vld [vmem:[%s16661_s0 + $0x4a] sm:$0xff] }
 0x25f   :  { %1634 = vst.msk [vmem:[#allocation3 + $0x10] sm:$0xff] %vm1631_vm4, %v1444_v7  ;;  %v9077_v7 = vld [vmem:[%s16661_s0 + $0x62] sm:$0xff] }
 0x262   :  { %1513 = vrot.lane.b32.xlu1 %v9044_v63, %s9555_s13  ;;  %1511 = vrot.lane.b32.xlu0 %v9043_v4, %s9555_s13 }
 0x263   :  { %1515 = vrot.lane.b32.xlu2 %v9045_v8, %s9555_s13  ;;  %v9076_v8 = vld [vmem:[%s16661_s0 + $0x52] sm:$0xff] }
 0x264   :  { %v1173_v13 = vpop.permute.xlu1 %1172  ;;  %v1171_v16 = vpop.permute.xlu0 %1170 }
 0x265   :  { %1306 = vst.msk [vmem:[#allocation3 + $0x1d8] sm:$0xff] %vm1246_vm3, %v1173_v13  ;;  %v1450_v25 = vpop.permute.xlu2 %1449 }
 0x266   :  { %1305 = vst.msk [vmem:[#allocation3 + $0x1d0] sm:$0xff] %vm1246_vm3, %v1171_v16  ;;  %v9078_v16 = vld [vmem:[%s16661_s0 + $0x6a] sm:$0xff] }
 0x267   :  { %1637 = vst.msk [vmem:[#allocation3 + $0x28] sm:$0xff] %vm1631_vm4, %v1450_v25  ;;  %v9080_v25 = vld [vmem:[%s16661_s0 + $0x82] sm:$0xff] }
 0x26a   :  { %1519 = vrot.lane.b32.xlu1 %v9047_v17, %s9555_s13  ;;  %1517 = vrot.lane.b32.xlu0 %v9046_v22, %s9555_s13 }
 0x26b   :  { %1521 = vrot.lane.b32.xlu2 %v9048_v26, %s9555_s13  ;;  %v9079_v26 = vld [vmem:[%s16661_s0 + $0x7a] sm:$0xff] }
 0x26c   :  { %v1179_v31 = vpop.permute.xlu1 %1178  ;;  %v1177_v35 = vpop.permute.xlu0 %1176 }
 0x26d   :  { %1309 = vst.msk [vmem:[#allocation3 + $0x1f0] sm:$0xff] %vm1246_vm3, %v1179_v31  ;;  %v1456_v49 = vpop.permute.xlu2 %1455 }
 0x26e   :  { %1308 = vst.msk [vmem:[#allocation3 + $0x1e8] sm:$0xff] %vm1246_vm3, %v1177_v35  ;;  %v9081_v35 = vld [vmem:[%s16661_s0 + $0x92] sm:$0xff] }
 0x26f   :  { %1640 = vst.msk [vmem:[#allocation3 + $0x40] sm:$0xff] %vm1631_vm4, %v1456_v49  ;;  %v9083_v49 = vld [vmem:[%s16661_s0 + $0xaa] sm:$0xff] }
 0x272   :  { %1525 = vrot.lane.b32.xlu1 %v9050_v36, %s9555_s13  ;;  %1523 = vrot.lane.b32.xlu0 %v9049_v43, %s9555_s13 }
 0x273   :  { %1527 = vrot.lane.b32.xlu2 %v9051_v50, %s9555_s13  ;;  %v9082_v50 = vld [vmem:[%s16661_s0 + $0x9a] sm:$0xff] }
 0x274   :  { %v1442_v20 = vpop.permute.xlu1 %1441  ;;  %v1440_v58 = vpop.permute.xlu0 %1439 }
 0x275   :  { %1633 = vst.msk [vmem:[#allocation3 + $0x8] sm:$0xff] %vm1631_vm4, %v1442_v20  ;;  %v1462_v55 = vpop.permute.xlu2 %1461 }
 0x276   :  { %1632 = vst.msk [vmem:[#allocation3] sm:$0xff] %vm1631_vm4, %v1440_v58  ;;  %v9084_v58 = vld [vmem:[%s16661_s0 + $0xb2] sm:$0xff] }
 0x277   :  { %1643 = vst.msk [vmem:[#allocation3 + $0x58] sm:$0xff] %vm1631_vm4, %v1462_v55  ;;  %v9086_v55 = vld [vmem:[%s16661_s0 + $0xca] sm:$0xff] }
 0x27a   :  { %1531 = vrot.lane.b32.xlu1 %v9053_v0, %s9555_s13  ;;  %1529 = vrot.lane.b32.xlu0 %v9052_v1, %s9555_s13 }
 0x27b   :  { %1533 = vrot.lane.b32.xlu2 %v9054_v24, %s9555_s13  ;;  %v9085_v24 = vld [vmem:[%s16661_s0 + $0xc2] sm:$0xff] }
 0x27c   :  { %v1448_v12 = vpop.permute.xlu1 %1447  ;;  %v1446_v56 = vpop.permute.xlu0 %1445 }
 0x27d   :  { %1636 = vst.msk [vmem:[#allocation3 + $0x20] sm:$0xff] %vm1631_vm4, %v1448_v12  ;;  %v1468_v28 = vpop.permute.xlu2 %1467 }
 0x27e   :  { %1635 = vst.msk [vmem:[#allocation3 + $0x18] sm:$0xff] %vm1631_vm4, %v1446_v56  ;;  %v9087_v56 = vld [vmem:[%s16661_s0 + $0xda] sm:$0xff] }
 0x27f   :  { %1646 = vst.msk [vmem:[#allocation3 + $0x70] sm:$0xff] %vm1631_vm4, %v1468_v28  ;;  %v9089_v28 = vld [vmem:[%s16661_s0 + $0xf2] sm:$0xff] }
 0x282   :  { %1537 = vrot.lane.b32.xlu1 %v9056_v21, %s9555_s13  ;;  %1535 = vrot.lane.b32.xlu0 %v9055_v27, %s9555_s13 }
 0x283   :  { %1539 = vrot.lane.b32.xlu2 %v9057_v37, %s9555_s13  ;;  %v9088_v37 = vld [vmem:[%s16661_s0 + $0xe2] sm:$0xff] }
 0x284   :  { %v1454_v42 = vpop.permute.xlu1 %1453  ;;  %v1452_v44 = vpop.permute.xlu0 %1451 }
 0x285   :  { %1639 = vst.msk [vmem:[#allocation3 + $0x38] sm:$0xff] %vm1631_vm4, %v1454_v42  ;;  %v1474_v3 = vpop.permute.xlu2 %1473 }
 0x286   :  { %1638 = vst.msk [vmem:[#allocation3 + $0x30] sm:$0xff] %vm1631_vm4, %v1452_v44  ;;  %v9090_v44 = vld [vmem:[%s16661_s0 + $0xfa] sm:$0xff] }
 0x287   :  { %1649 = vst.msk [vmem:[#allocation3 + $0x88] sm:$0xff] %vm1631_vm4, %v1474_v3  ;;  %v9092_v3 = vld [vmem:[%s16661_s0 + $0x112] sm:$0xff] }
 0x28a   :  { %1543 = vrot.lane.b32.xlu1 %v9059_v57, %s9555_s13  ;;  %1541 = vrot.lane.b32.xlu0 %v9058_v2, %s9555_s13 }
 0x28b   :  { %1545 = vrot.lane.b32.xlu2 %v9060_v11, %s9555_s13  ;;  %v9091_v11 = vld [vmem:[%s16661_s0 + $0x10a] sm:$0xff] }
 0x28c   :  { %v1460_v18 = vpop.permute.xlu1 %1459  ;;  %v1458_v19 = vpop.permute.xlu0 %1457 }
 0x28d   :  { %1642 = vst.msk [vmem:[#allocation3 + $0x50] sm:$0xff] %vm1631_vm4, %v1460_v18  ;;  %v1480_v41 = vpop.permute.xlu2 %1479 }
 0x28e   :  { %1641 = vst.msk [vmem:[#allocation3 + $0x48] sm:$0xff] %vm1631_vm4, %v1458_v19  ;;  %v9093_v19 = vld [vmem:[%s16661_s0 + $0x122] sm:$0xff] }
 0x28f   :  { %1652 = vst.msk [vmem:[#allocation3 + $0xa0] sm:$0xff] %vm1631_vm4, %v1480_v41  ;;  %v9095_v41 = vld [vmem:[%s16661_s0 + $0x13a] sm:$0xff] }
 0x292   :  { %1549 = vrot.lane.b32.xlu1 %v9062_v30, %s9555_s13  ;;  %1547 = vrot.lane.b32.xlu0 %v9061_v40, %s9555_s13 }
 0x293   :  { %1551 = vrot.lane.b32.xlu2 %v9063_v60, %s9555_s13  ;;  %v9094_v60 = vld [vmem:[%s16661_s0 + $0x12a] sm:$0xff] }
 0x294   :  { %v1466_v6 = vpop.permute.xlu1 %1465  ;;  %v1464_v9 = vpop.permute.xlu0 %1463 }
 0x295   :  { %1645 = vst.msk [vmem:[#allocation3 + $0x68] sm:$0xff] %vm1631_vm4, %v1466_v6  ;;  %v1486_v33 = vpop.permute.xlu2 %1485 }
 0x296   :  { %1644 = vst.msk [vmem:[#allocation3 + $0x60] sm:$0xff] %vm1631_vm4, %v1464_v9  ;;  %v9096_v9 = vld [vmem:[%s16661_s0 + $0x142] sm:$0xff] }
 0x297   :  { %1655 = vst.msk [vmem:[#allocation3 + $0xb8] sm:$0xff] %vm1631_vm4, %v1486_v33  ;;  %v9098_v33 = vld [vmem:[%s16661_s0 + $0x15a] sm:$0xff] }
 0x29a   :  { %1555 = vrot.lane.b32.xlu1 %v9065_v23, %s9555_s13  ;;  %1553 = vrot.lane.b32.xlu0 %v9064_v32, %s9555_s13 }
 0x29b   :  { %1557 = vrot.lane.b32.xlu2 %v9066_v61, %s9555_s13  ;;  %v9097_v61 = vld [vmem:[%s16661_s0 + $0x152] sm:$0xff] }
 0x29c   :  { %v1472_v14 = vpop.permute.xlu1 %1471  ;;  %v1470_v48 = vpop.permute.xlu0 %1469 }
 0x29d   :  { %1648 = vst.msk [vmem:[#allocation3 + $0x80] sm:$0xff] %vm1631_vm4, %v1472_v14  ;;  %v1492_v51 = vpop.permute.xlu2 %1491 }
 0x29e   :  { %1647 = vst.msk [vmem:[#allocation3 + $0x78] sm:$0xff] %vm1631_vm4, %v1470_v48  ;;  %v9099_v48 = vld [vmem:[%s16661_s0 + $0x16a] sm:$0xff] }
 0x29f   :  { %1658 = vst.msk [vmem:[#allocation3 + $0xd0] sm:$0xff] %vm1631_vm4, %v1492_v51  ;;  %v9101_v51 = vld [vmem:[%s16661_s0 + $0x182] sm:$0xff] }
 0x2a2   :  { %1561 = vrot.lane.b32.xlu1 %v9068_v15, %s9555_s13  ;;  %1559 = vrot.lane.b32.xlu0 %v9067_v29, %s9555_s13 }
 0x2a3   :  { %1563 = vrot.lane.b32.xlu2 %v9069_v10, %s9555_s13  ;;  %v9100_v10 = vld [vmem:[%s16661_s0 + $0x172] sm:$0xff] }
 0x2a4   :  { %v1478_v5 = vpop.permute.xlu1 %1477  ;;  %v1476_v34 = vpop.permute.xlu0 %1475 }
 0x2a5   :  { %1651 = vst.msk [vmem:[#allocation3 + $0x98] sm:$0xff] %vm1631_vm4, %v1478_v5  ;;  %v1498_v45 = vpop.permute.xlu2 %1497 }
 0x2a6   :  { %1650 = vst.msk [vmem:[#allocation3 + $0x90] sm:$0xff] %vm1631_vm4, %v1476_v34  ;;  %v9102_v34 = vld [vmem:[%s16661_s0 + $0x18a] sm:$0xff] }
 0x2a7   :  { %1661 = vst.msk [vmem:[#allocation3 + $0xe8] sm:$0xff] %vm1631_vm4, %v1498_v45  ;;  %v9104_v45 = vld [vmem:[%s16661_s0 + $0x1d2] sm:$0xff] }
 0x2aa   :  { %1824 = vrot.lane.b32.xlu1 %v9071_v38, %s9556_s29  ;;  %1565 = vrot.lane.b32.xlu0 %v9070_v39, %s9555_s13 }
 0x2ab   :  { %1826 = vrot.lane.b32.xlu2 %v9072_v46, %s9556_s29  ;;  %v9103_v46 = vld [vmem:[%s16661_s0 + $0x1ca] sm:$0xff] }
 0x2ac   :  { %v1484_v47 = vpop.permute.xlu1 %1483  ;;  %v1482_v52 = vpop.permute.xlu0 %1481 }
 0x2ad   :  { %1654 = vst.msk [vmem:[#allocation3 + $0xb0] sm:$0xff] %vm1631_vm4, %v1484_v47  ;;  %v1504_v59 = vpop.permute.xlu2 %1503 }
 0x2ae   :  { %1653 = vst.msk [vmem:[#allocation3 + $0xa8] sm:$0xff] %vm1631_vm4, %v1482_v52  ;;  %v9105_v52 = vld [vmem:[%s16661_s0 + $0x1e2] sm:$0xff] }
 0x2af   :  { %1664 = vst.msk [vmem:[#allocation3 + $0x100] sm:$0xff] %vm1631_vm4, %v1504_v59  ;;  %v9107_v59 = vld [vmem:[%s16661_s0 + $0x1fa] sm:$0xff] }
 0x2b2   :  { %1830 = vrot.lane.b32.xlu1 %v9074_v53, %s9556_s29  ;;  %1828 = vrot.lane.b32.xlu0 %v9073_v54, %s9556_s29 }
 0x2b3   :  { %1832 = vrot.lane.b32.xlu2 %v9075_v62, %s9556_s29  ;;  %v9106_v62 = vld [vmem:[%s16661_s0 + $0x1ea] sm:$0xff] }
 0x2b4   :  { %v1490_v63 = vpop.permute.xlu1 %1489  ;;  %v1488_v4 = vpop.permute.xlu0 %1487 }
 0x2b5   :  { %1657 = vst.msk [vmem:[#allocation3 + $0xc8] sm:$0xff] %vm1631_vm4, %v1490_v63  ;;  %v1510_v13 = vpop.permute.xlu2 %1509 }
 0x2b6   :  { %1656 = vst.msk [vmem:[#allocation3 + $0xc0] sm:$0xff] %vm1631_vm4, %v1488_v4  ;;  %v9108_v4 = vld [vmem:[%s16661_s0 + $0x202] sm:$0xff] }
 0x2b7   :  { %1667 = vst.msk [vmem:[#allocation3 + $0x118] sm:$0xff] %vm1631_vm4, %v1510_v13  ;;  %v9110_v13 = vld [vmem:[%s16661_s0 + $0x21a] sm:$0xff] }
 0x2ba   :  { %1836 = vrot.lane.b32.xlu1 %v9077_v7, %s9556_s29  ;;  %1834 = vrot.lane.b32.xlu0 %v9076_v8, %s9556_s29 }
 0x2bb   :  { %1838 = vrot.lane.b32.xlu2 %v9078_v16, %s9556_s29  ;;  %v9109_v16 = vld [vmem:[%s16661_s0 + $0x212] sm:$0xff] }
 0x2bc   :  { %v1496_v17 = vpop.permute.xlu1 %1495  ;;  %v1494_v22 = vpop.permute.xlu0 %1493 }
 0x2bd   :  { %1660 = vst.msk [vmem:[#allocation3 + $0xe0] sm:$0xff] %vm1631_vm4, %v1496_v17  ;;  %v1516_v31 = vpop.permute.xlu2 %1515 }
 0x2be   :  { %1659 = vst.msk [vmem:[#allocation3 + $0xd8] sm:$0xff] %vm1631_vm4, %v1494_v22  ;;  %v9111_v22 = vld [vmem:[%s16661_s0 + $0x22a] sm:$0xff] }
 0x2bf   :  { %1670 = vst.msk [vmem:[#allocation3 + $0x130] sm:$0xff] %vm1631_vm4, %v1516_v31  ;;  %v9113_v31 = vld [vmem:[%s16661_s0 + $0x242] sm:$0xff] }
 0x2c2   :  { %1842 = vrot.lane.b32.xlu1 %v9080_v25, %s9556_s29  ;;  %1840 = vrot.lane.b32.xlu0 %v9079_v26, %s9556_s29 }
 0x2c3   :  { %1844 = vrot.lane.b32.xlu2 %v9081_v35, %s9556_s29  ;;  %v9112_v35 = vld [vmem:[%s16661_s0 + $0x232] sm:$0xff] }
 0x2c4   :  { %v1502_v36 = vpop.permute.xlu1 %1501  ;;  %v1500_v43 = vpop.permute.xlu0 %1499 }
 0x2c5   :  { %1663 = vst.msk [vmem:[#allocation3 + $0xf8] sm:$0xff] %vm1631_vm4, %v1502_v36  ;;  %v1522_v20 = vpop.permute.xlu2 %1521 }
 0x2c6   :  { %1662 = vst.msk [vmem:[#allocation3 + $0xf0] sm:$0xff] %vm1631_vm4, %v1500_v43  ;;  %v9114_v43 = vld [vmem:[%s16661_s0 + $0x24a] sm:$0xff] }
 0x2c7   :  { %1673 = vst.msk [vmem:[#allocation3 + $0x148] sm:$0xff] %vm1631_vm4, %v1522_v20  ;;  %v9116_v20 = vld [vmem:[%s16661_s0 + $0x262] sm:$0xff] }
 0x2ca   :  { %1848 = vrot.lane.b32.xlu1 %v9083_v49, %s9556_s29  ;;  %1846 = vrot.lane.b32.xlu0 %v9082_v50, %s9556_s29 }
 0x2cb   :  { %1850 = vrot.lane.b32.xlu2 %v9084_v58, %s9556_s29  ;;  %v9115_v58 = vld [vmem:[%s16661_s0 + $0x25a] sm:$0xff] }
 0x2cc   :  { %v1508_v0 = vpop.permute.xlu1 %1507  ;;  %v1506_v1 = vpop.permute.xlu0 %1505 }
 0x2cd   :  { %1666 = vst.msk [vmem:[#allocation3 + $0x110] sm:$0xff] %vm1631_vm4, %v1508_v0  ;;  %v1528_v12 = vpop.permute.xlu2 %1527 }
 0x2ce   :  { %1665 = vst.msk [vmem:[#allocation3 + $0x108] sm:$0xff] %vm1631_vm4, %v1506_v1  ;;  %v9117_v1 = vld [vmem:[%s16661_s0 + $0x272] sm:$0xff] }
 0x2cf   :  { %1676 = vst.msk [vmem:[#allocation3 + $0x160] sm:$0xff] %vm1631_vm4, %v1528_v12  ;;  %v9119_v12 = vld [vmem:[%s16661_s0 + $0x28a] sm:$0xff] }
 0x2d2   :  { %1854 = vrot.lane.b32.xlu1 %v9086_v55, %s9556_s29  ;;  %1852 = vrot.lane.b32.xlu0 %v9085_v24, %s9556_s29 }
 0x2d3   :  { %1856 = vrot.lane.b32.xlu2 %v9087_v56, %s9556_s29  ;;  %v9118_v56 = vld [vmem:[%s16661_s0 + $0x27a] sm:$0xff] }
 0x2d4   :  { %v1514_v21 = vpop.permute.xlu1 %1513  ;;  %v1512_v27 = vpop.permute.xlu0 %1511 }
 0x2d5   :  { %1669 = vst.msk [vmem:[#allocation3 + $0x128] sm:$0xff] %vm1631_vm4, %v1514_v21  ;;  %v1534_v42 = vpop.permute.xlu2 %1533 }
 0x2d6   :  { %1668 = vst.msk [vmem:[#allocation3 + $0x120] sm:$0xff] %vm1631_vm4, %v1512_v27  ;;  %v9120_v27 = vld [vmem:[%s16661_s0 + $0x292] sm:$0xff] }
 0x2d7   :  { %1679 = vst.msk [vmem:[#allocation3 + $0x178] sm:$0xff] %vm1631_vm4, %v1534_v42  ;;  %v9122_v42 = vld [vmem:[%s16661_s0 + $0x2aa] sm:$0xff] }
 0x2da   :  { %1860 = vrot.lane.b32.xlu1 %v9089_v28, %s9556_s29  ;;  %1858 = vrot.lane.b32.xlu0 %v9088_v37, %s9556_s29 }
 0x2db   :  { %1862 = vrot.lane.b32.xlu2 %v9090_v44, %s9556_s29  ;;  %v9121_v44 = vld [vmem:[%s16661_s0 + $0x2a2] sm:$0xff] }
 0x2dc   :  { %v1520_v57 = vpop.permute.xlu1 %1519  ;;  %v1518_v2 = vpop.permute.xlu0 %1517 }
 0x2dd   :  { %1672 = vst.msk [vmem:[#allocation3 + $0x140] sm:$0xff] %vm1631_vm4, %v1520_v57  ;;  %v1540_v18 = vpop.permute.xlu2 %1539 }
 0x2de   :  { %1671 = vst.msk [vmem:[#allocation3 + $0x138] sm:$0xff] %vm1631_vm4, %v1518_v2  ;;  %v9123_v2 = vld [vmem:[%s16661_s0 + $0x2ba] sm:$0xff] }
 0x2df   :  { %1682 = vst.msk [vmem:[#allocation3 + $0x190] sm:$0xff] %vm1631_vm4, %v1540_v18  ;;  %v9125_v18 = vld [vmem:[%s16661_s0 + $0x2d2] sm:$0xff] }
 0x2e2   :  { %1866 = vrot.lane.b32.xlu1 %v9092_v3, %s9556_s29  ;;  %1864 = vrot.lane.b32.xlu0 %v9091_v11, %s9556_s29 }
 0x2e3   :  { %1868 = vrot.lane.b32.xlu2 %v9093_v19, %s9556_s29  ;;  %v9124_v19 = vld [vmem:[%s16661_s0 + $0x2c2] sm:$0xff] }
 0x2e4   :  { %v1526_v30 = vpop.permute.xlu1 %1525  ;;  %v1524_v40 = vpop.permute.xlu0 %1523 }
 0x2e5   :  { %1675 = vst.msk [vmem:[#allocation3 + $0x158] sm:$0xff] %vm1631_vm4, %v1526_v30  ;;  %v1546_v6 = vpop.permute.xlu2 %1545 }
 0x2e6   :  { %1674 = vst.msk [vmem:[#allocation3 + $0x150] sm:$0xff] %vm1631_vm4, %v1524_v40  ;;  %v9126_v40 = vld [vmem:[%s16661_s0 + $0x2da] sm:$0xff] }
 0x2e7   :  { %1685 = vst.msk [vmem:[#allocation3 + $0x1a8] sm:$0xff] %vm1631_vm4, %v1546_v6  ;;  %v9128_v6 = vld [vmem:[%s16661_s0 + $0x2f2] sm:$0xff] }
 0x2ea   :  { %1872 = vrot.lane.b32.xlu1 %v9095_v41, %s9556_s29  ;;  %1870 = vrot.lane.b32.xlu0 %v9094_v60, %s9556_s29 }
 0x2eb   :  { %1874 = vrot.lane.b32.xlu2 %v9096_v9, %s9556_s29  ;;  %v9127_v9 = vld [vmem:[%s16661_s0 + $0x2ea] sm:$0xff] }
 0x2ec   :  { %v1532_v23 = vpop.permute.xlu1 %1531  ;;  %v1530_v32 = vpop.permute.xlu0 %1529 }
 0x2ed   :  { %1678 = vst.msk [vmem:[#allocation3 + $0x170] sm:$0xff] %vm1631_vm4, %v1532_v23  ;;  %v1552_v14 = vpop.permute.xlu2 %1551 }
 0x2ee   :  { %1677 = vst.msk [vmem:[#allocation3 + $0x168] sm:$0xff] %vm1631_vm4, %v1530_v32  ;;  %v9129_v32 = vld [vmem:[%s16661_s0 + $0x302] sm:$0xff] }
 0x2ef   :  { %1688 = vst.msk [vmem:[#allocation3 + $0x1c0] sm:$0xff] %vm1631_vm4, %v1552_v14  ;;  %v9131_v14 = vld [vmem:[%s16661_s0 + $0x31a] sm:$0xff] }
 0x2f2   :  { %1878 = vrot.lane.b32.xlu1 %v9098_v33, %s9556_s29  ;;  %1876 = vrot.lane.b32.xlu0 %v9097_v61, %s9556_s29 }
 0x2f3   :  { %1880 = vrot.lane.b32.xlu2 %v9099_v48, %s9556_s29  ;;  %v9130_v48 = vld [vmem:[%s16661_s0 + $0x30a] sm:$0xff] }
 0x2f4   :  { %v1538_v15 = vpop.permute.xlu1 %1537  ;;  %v1536_v29 = vpop.permute.xlu0 %1535 }
 0x2f5   :  { %1681 = vst.msk [vmem:[#allocation3 + $0x188] sm:$0xff] %vm1631_vm4, %v1538_v15  ;;  %v1558_v5 = vpop.permute.xlu2 %1557 }
 0x2f6   :  { %1680 = vst.msk [vmem:[#allocation3 + $0x180] sm:$0xff] %vm1631_vm4, %v1536_v29  ;;  %v9132_v29 = vld [vmem:[%s16661_s0 + $0x322] sm:$0xff] }
 0x2f7   :  { %1691 = vst.msk [vmem:[#allocation3 + $0x1d8] sm:$0xff] %vm1631_vm4, %v1558_v5  ;;  %v9134_v5 = vld [vmem:[%s16661_s0 + $0x33a] sm:$0xff] }
 0x2fa   :  { %1884 = vrot.lane.b32.xlu1 %v9101_v51, %s9556_s29  ;;  %1882 = vrot.lane.b32.xlu0 %v9100_v10, %s9556_s29 }
 0x2fb   :  { %1886 = vrot.lane.b32.xlu2 %v9102_v34, %s9556_s29  ;;  %v9133_v34 = vld [vmem:[%s16661_s0 + $0x332] sm:$0xff] }
 0x2fc   :  { %v1544_v38 = vpop.permute.xlu1 %1543  ;;  %v1542_v39 = vpop.permute.xlu0 %1541 }
 0x2fd   :  { %1684 = vst.msk [vmem:[#allocation3 + $0x1a0] sm:$0xff] %vm1631_vm4, %v1544_v38  ;;  %v1564_v47 = vpop.permute.xlu2 %1563 }
 0x2fe   :  { %1683 = vst.msk [vmem:[#allocation3 + $0x198] sm:$0xff] %vm1631_vm4, %v1542_v39  ;;  %v9135_v39 = vld [vmem:[%s16661_s0 + $0x30] sm:$0xff] }
 0x2ff   :  { %1694 = vst.msk [vmem:[#allocation3 + $0x1f0] sm:$0xff] %vm1631_vm4, %v1564_v47  ;;  %v9137_v47 = vld [vmem:[%s16661_s0 + $0x48] sm:$0xff] }
 0x302   :  { %1890 = vrot.lane.b32.xlu1 %v9104_v45, %s9556_s29  ;;  %1888 = vrot.lane.b32.xlu0 %v9103_v46, %s9556_s29 }
 0x303   :  { %1892 = vrot.lane.b32.xlu2 %v9105_v52, %s9556_s29  ;;  %v9136_v52 = vld [vmem:[%s16661_s0 + $0x38] sm:$0xff] }
 0x304   :  { %v1550_v53 = vpop.permute.xlu1 %1549  ;;  %v1548_v54 = vpop.permute.xlu0 %1547 }
 0x305   :  { %1687 = vst.msk [vmem:[#allocation3 + $0x1b8] sm:$0xff] %vm1631_vm4, %v1550_v53  ;;  %v1827_v63 = vpop.permute.xlu2 %1826 }
 0x306   :  { %1686 = vst.msk [vmem:[#allocation3 + $0x1b0] sm:$0xff] %vm1631_vm4, %v1548_v54  ;;  %v9138_v54 = vld [vmem:[%s16661_s0 + $0x50] sm:$0xff] }
 0x307   :  { %2018 = vst.msk [vmem:[#allocation3 + $0x8] sm:$0xff] %vm2016_vm5, %v1827_v63  ;;  %v9140_v63 = vld [vmem:[%s16661_s0 + $0x68] sm:$0xff] }
 0x30a   :  { %1896 = vrot.lane.b32.xlu1 %v9107_v59, %s9556_s29  ;;  %1894 = vrot.lane.b32.xlu0 %v9106_v62, %s9556_s29 }
 0x30b   :  { %1898 = vrot.lane.b32.xlu2 %v9108_v4, %s9556_s29  ;;  %v9139_v4 = vld [vmem:[%s16661_s0 + $0x60] sm:$0xff] }
 0x30c   :  { %v1556_v7 = vpop.permute.xlu1 %1555  ;;  %v1554_v8 = vpop.permute.xlu0 %1553 }
 0x30d   :  { %1690 = vst.msk [vmem:[#allocation3 + $0x1d0] sm:$0xff] %vm1631_vm4, %v1556_v7  ;;  %v1833_v17 = vpop.permute.xlu2 %1832 }
 0x30e   :  { %1689 = vst.msk [vmem:[#allocation3 + $0x1c8] sm:$0xff] %vm1631_vm4, %v1554_v8  ;;  %v9141_v8 = vld [vmem:[%s16661_s0 + $0x78] sm:$0xff] }
 0x30f   :  { %2021 = vst.msk [vmem:[#allocation3 + $0x20] sm:$0xff] %vm2016_vm5, %v1833_v17  ;;  %v9143_v17 = vld [vmem:[%s16661_s0 + $0x90] sm:$0xff] }
 0x312   :  { %1902 = vrot.lane.b32.xlu1 %v9110_v13, %s9556_s29  ;;  %1900 = vrot.lane.b32.xlu0 %v9109_v16, %s9556_s29 }
 0x313   :  { %1904 = vrot.lane.b32.xlu2 %v9111_v22, %s9556_s29  ;;  %v9142_v22 = vld [vmem:[%s16661_s0 + $0x80] sm:$0xff] }
 0x314   :  { %v1562_v25 = vpop.permute.xlu1 %1561  ;;  %v1560_v26 = vpop.permute.xlu0 %1559 }
 0x315   :  { %1693 = vst.msk [vmem:[#allocation3 + $0x1e8] sm:$0xff] %vm1631_vm4, %v1562_v25  ;;  %v1839_v36 = vpop.permute.xlu2 %1838 }
 0x316   :  { %1692 = vst.msk [vmem:[#allocation3 + $0x1e0] sm:$0xff] %vm1631_vm4, %v1560_v26  ;;  %v9144_v26 = vld [vmem:[%s16661_s0 + $0x98] sm:$0xff] }
 0x317   :  { %2024 = vst.msk [vmem:[#allocation3 + $0x38] sm:$0xff] %vm2016_vm5, %v1839_v36  ;;  %v9146_v36 = vld [vmem:[%s16661_s0 + $0xb0] sm:$0xff] }
 0x31a   :  { %1908 = vrot.lane.b32.xlu1 %v9113_v31, %s9556_s29  ;;  %1906 = vrot.lane.b32.xlu0 %v9112_v35, %s9556_s29 }
 0x31b   :  { %1910 = vrot.lane.b32.xlu2 %v9114_v43, %s9556_s29  ;;  %v9145_v43 = vld [vmem:[%s16661_s0 + $0xa8] sm:$0xff] }
 0x31c   :  { %v1825_v49 = vpop.permute.xlu1 %1824  ;;  %v1566_v50 = vpop.permute.xlu0 %1565 }
 0x31d   :  { %2017 = vst.msk [vmem:[#allocation3] sm:$0xff] %vm2016_vm5, %v1825_v49  ;;  %v1845_v0 = vpop.permute.xlu2 %1844 }
 0x31e   :  { %1695 = vst.msk [vmem:[#allocation3 + $0x1f8] sm:$0xff] %vm1631_vm4, %v1566_v50  ;;  %v9147_v50 = vld [vmem:[%s16661_s0 + $0xc0] sm:$0xff] }
 0x31f   :  { %2027 = vst.msk [vmem:[#allocation3 + $0x50] sm:$0xff] %vm2016_vm5, %v1845_v0  ;;  %v9149_v0 = vld [vmem:[%s16661_s0 + $0xd8] sm:$0xff] }
 0x322   :  { %1914 = vrot.lane.b32.xlu1 %v9116_v20, %s9556_s29  ;;  %1912 = vrot.lane.b32.xlu0 %v9115_v58, %s9556_s29 }
 0x323   :  { %1916 = vrot.lane.b32.xlu2 %v9117_v1, %s9556_s29  ;;  %v9148_v1 = vld [vmem:[%s16661_s0 + $0xc8] sm:$0xff] }
 0x324   :  { %v1831_v55 = vpop.permute.xlu1 %1830  ;;  %v1829_v24 = vpop.permute.xlu0 %1828 }
 0x325   :  { %2020 = vst.msk [vmem:[#allocation3 + $0x18] sm:$0xff] %vm2016_vm5, %v1831_v55  ;;  %v1851_v21 = vpop.permute.xlu2 %1850 }
 0x326   :  { %2019 = vst.msk [vmem:[#allocation3 + $0x10] sm:$0xff] %vm2016_vm5, %v1829_v24  ;;  %v9150_v24 = vld [vmem:[%s16661_s0 + $0xe0] sm:$0xff] }
 0x327   :  { %2030 = vst.msk [vmem:[#allocation3 + $0x68] sm:$0xff] %vm2016_vm5, %v1851_v21  ;;  %v9152_v21 = vld [vmem:[%s16661_s0 + $0xf8] sm:$0xff] }
 0x32a   :  { %1920 = vrot.lane.b32.xlu1 %v9119_v12, %s9556_s29  ;;  %1918 = vrot.lane.b32.xlu0 %v9118_v56, %s9556_s29 }
 0x32b   :  { %1922 = vrot.lane.b32.xlu2 %v9120_v27, %s9556_s29  ;;  %v9151_v27 = vld [vmem:[%s16661_s0 + $0xf0] sm:$0xff] }
 0x32c   :  { %v1837_v28 = vpop.permute.xlu1 %1836  ;;  %v1835_v37 = vpop.permute.xlu0 %1834 }
 0x32d   :  { %2023 = vst.msk [vmem:[#allocation3 + $0x30] sm:$0xff] %vm2016_vm5, %v1837_v28  ;;  %v1857_v57 = vpop.permute.xlu2 %1856 }
 0x32e   :  { %2022 = vst.msk [vmem:[#allocation3 + $0x28] sm:$0xff] %vm2016_vm5, %v1835_v37  ;;  %v9153_v37 = vld [vmem:[%s16661_s0 + $0x108] sm:$0xff] }
 0x32f   :  { %2033 = vst.msk [vmem:[#allocation3 + $0x80] sm:$0xff] %vm2016_vm5, %v1857_v57  ;;  %v9155_v57 = vld [vmem:[%s16661_s0 + $0x120] sm:$0xff] }
 0x332   :  { %1926 = vrot.lane.b32.xlu1 %v9122_v42, %s9556_s29  ;;  %1924 = vrot.lane.b32.xlu0 %v9121_v44, %s9556_s29 }
 0x333   :  { %1928 = vrot.lane.b32.xlu2 %v9123_v2, %s9556_s29  ;;  %v9154_v2 = vld [vmem:[%s16661_s0 + $0x110] sm:$0xff] }
 0x334   :  { %v1843_v3 = vpop.permute.xlu1 %1842  ;;  %v1841_v11 = vpop.permute.xlu0 %1840 }
 0x335   :  { %2026 = vst.msk [vmem:[#allocation3 + $0x48] sm:$0xff] %vm2016_vm5, %v1843_v3  ;;  %v1863_v30 = vpop.permute.xlu2 %1862 }
 0x336   :  { %2025 = vst.msk [vmem:[#allocation3 + $0x40] sm:$0xff] %vm2016_vm5, %v1841_v11  ;;  %v9156_v11 = vld [vmem:[%s16661_s0 + $0x128] sm:$0xff] }
 0x337   :  { %2036 = vst.msk [vmem:[#allocation3 + $0x98] sm:$0xff] %vm2016_vm5, %v1863_v30  ;;  %v9158_v30 = vld [vmem:[%s16661_s0 + $0x140] sm:$0xff] }
 0x33a   :  { %1932 = vrot.lane.b32.xlu1 %v9125_v18, %s9556_s29  ;;  %1930 = vrot.lane.b32.xlu0 %v9124_v19, %s9556_s29 }
 0x33b   :  { %1934 = vrot.lane.b32.xlu2 %v9126_v40, %s9556_s29  ;;  %v9157_v40 = vld [vmem:[%s16661_s0 + $0x138] sm:$0xff] }
 0x33c   :  { %v1849_v41 = vpop.permute.xlu1 %1848  ;;  %v1847_v60 = vpop.permute.xlu0 %1846 }
 0x33d   :  { %2029 = vst.msk [vmem:[#allocation3 + $0x60] sm:$0xff] %vm2016_vm5, %v1849_v41  ;;  %v1869_v23 = vpop.permute.xlu2 %1868 }
 0x33e   :  { %2028 = vst.msk [vmem:[#allocation3 + $0x58] sm:$0xff] %vm2016_vm5, %v1847_v60  ;;  %v9159_v60 = vld [vmem:[%s16661_s0 + $0x150] sm:$0xff] }
 0x33f   :  { %2039 = vst.msk [vmem:[#allocation3 + $0xb0] sm:$0xff] %vm2016_vm5, %v1869_v23  ;;  %v9161_v23 = vld [vmem:[%s16661_s0 + $0x168] sm:$0xff] }
 0x342   :  { %1938 = vrot.lane.b32.xlu1 %v9128_v6, %s9556_s29  ;;  %1936 = vrot.lane.b32.xlu0 %v9127_v9, %s9556_s29 }
 0x343   :  { %1940 = vrot.lane.b32.xlu2 %v9129_v32, %s9556_s29  ;;  %v9160_v32 = vld [vmem:[%s16661_s0 + $0x158] sm:$0xff] }
 0x344   :  { %v1855_v33 = vpop.permute.xlu1 %1854  ;;  %v1853_v61 = vpop.permute.xlu0 %1852 }
 0x345   :  { %2032 = vst.msk [vmem:[#allocation3 + $0x78] sm:$0xff] %vm2016_vm5, %v1855_v33  ;;  %v1875_v15 = vpop.permute.xlu2 %1874 }
 0x346   :  { %2031 = vst.msk [vmem:[#allocation3 + $0x70] sm:$0xff] %vm2016_vm5, %v1853_v61  ;;  %v9162_v61 = vld [vmem:[%s16661_s0 + $0x170] sm:$0xff] }
 0x347   :  { %2042 = vst.msk [vmem:[#allocation3 + $0xc8] sm:$0xff] %vm2016_vm5, %v1875_v15  ;;  %v9164_v15 = vld [vmem:[%s16661_s0 + $0x188] sm:$0xff] }
 0x34a   :  { %1944 = vrot.lane.b32.xlu1 %v9131_v14, %s9556_s29  ;;  %1942 = vrot.lane.b32.xlu0 %v9130_v48, %s9556_s29 }
 0x34b   :  { %1946 = vrot.lane.b32.xlu2 %v9132_v29, %s9556_s29  ;;  %v9163_v29 = vld [vmem:[%s16661_s0 + $0x180] sm:$0xff] }
 0x34c   :  { %v1861_v51 = vpop.permute.xlu1 %1860  ;;  %v1859_v10 = vpop.permute.xlu0 %1858 }
 0x34d   :  { %2035 = vst.msk [vmem:[#allocation3 + $0x90] sm:$0xff] %vm2016_vm5, %v1861_v51  ;;  %v1881_v38 = vpop.permute.xlu2 %1880 }
 0x34e   :  { %2034 = vst.msk [vmem:[#allocation3 + $0x88] sm:$0xff] %vm2016_vm5, %v1859_v10  ;;  %v9165_v10 = vld [vmem:[%s16661_s0 + $0x198] sm:$0xff] }
 0x34f   :  { %2045 = vst.msk [vmem:[#allocation3 + $0xe0] sm:$0xff] %vm2016_vm5, %v1881_v38  ;;  %v9167_v38 = vld [vmem:[%s16661_s0 + $0x1e0] sm:$0xff] }
 0x352   :  { %1950 = vrot.lane.b32.xlu1 %v9134_v5, %s9556_s29  ;;  %1948 = vrot.lane.b32.xlu0 %v9133_v34, %s9556_s29 }
 0x353   :  { %2210 = vrot.lane.b32.xlu2 %v9135_v39, %s9557_s9  ;;  %v9166_v39 = vld [vmem:[%s16661_s0 + $0x1a0] sm:$0xff] }
 0x354   :  { %v1867_v45 = vpop.permute.xlu1 %1866  ;;  %v1865_v46 = vpop.permute.xlu0 %1864 }
 0x355   :  { %2038 = vst.msk [vmem:[#allocation3 + $0xa8] sm:$0xff] %vm2016_vm5, %v1867_v45  ;;  %v1887_v53 = vpop.permute.xlu2 %1886 }
 0x356   :  { %2037 = vst.msk [vmem:[#allocation3 + $0xa0] sm:$0xff] %vm2016_vm5, %v1865_v46  ;;  %v9168_v46 = vld [vmem:[%s16661_s0 + $0x1e8] sm:$0xff] }
 0x357   :  { %2048 = vst.msk [vmem:[#allocation3 + $0xf8] sm:$0xff] %vm2016_vm5, %v1887_v53  ;;  %v9170_v53 = vld [vmem:[%s16661_s0 + $0x200] sm:$0xff] }
 0x35a   :  { %2214 = vrot.lane.b32.xlu1 %v9137_v47, %s9557_s9  ;;  %2212 = vrot.lane.b32.xlu0 %v9136_v52, %s9557_s9 }
 0x35b   :  { %2216 = vrot.lane.b32.xlu2 %v9138_v54, %s9557_s9  ;;  %v9169_v54 = vld [vmem:[%s16661_s0 + $0x1f8] sm:$0xff] }
 0x35c   :  { %v1873_v59 = vpop.permute.xlu1 %1872  ;;  %v1871_v62 = vpop.permute.xlu0 %1870 }
 0x35d   :  { %2041 = vst.msk [vmem:[#allocation3 + $0xc0] sm:$0xff] %vm2016_vm5, %v1873_v59  ;;  %v1893_v7 = vpop.permute.xlu2 %1892 }
 0x35e   :  { %2040 = vst.msk [vmem:[#allocation3 + $0xb8] sm:$0xff] %vm2016_vm5, %v1871_v62  ;;  %v9171_v62 = vld [vmem:[%s16661_s0 + $0x210] sm:$0xff] }
 0x35f   :  { %2051 = vst.msk [vmem:[#allocation3 + $0x110] sm:$0xff] %vm2016_vm5, %v1893_v7  ;;  %v9173_v7 = vld [vmem:[%s16661_s0 + $0x228] sm:$0xff] }
 0x362   :  { %2220 = vrot.lane.b32.xlu1 %v9140_v63, %s9557_s9  ;;  %2218 = vrot.lane.b32.xlu0 %v9139_v4, %s9557_s9 }
 0x363   :  { %2222 = vrot.lane.b32.xlu2 %v9141_v8, %s9557_s9  ;;  %v9172_v8 = vld [vmem:[%s16661_s0 + $0x218] sm:$0xff] }
 0x364   :  { %v1879_v13 = vpop.permute.xlu1 %1878  ;;  %v1877_v16 = vpop.permute.xlu0 %1876 }
 0x365   :  { %2044 = vst.msk [vmem:[#allocation3 + $0xd8] sm:$0xff] %vm2016_vm5, %v1879_v13  ;;  %v1899_v25 = vpop.permute.xlu2 %1898 }
 0x366   :  { %2043 = vst.msk [vmem:[#allocation3 + $0xd0] sm:$0xff] %vm2016_vm5, %v1877_v16  ;;  %v9174_v16 = vld [vmem:[%s16661_s0 + $0x230] sm:$0xff] }
 0x367   :  { %2054 = vst.msk [vmem:[#allocation3 + $0x128] sm:$0xff] %vm2016_vm5, %v1899_v25  ;;  %v9176_v25 = vld [vmem:[%s16661_s0 + $0x248] sm:$0xff] }
 0x36a   :  { %2226 = vrot.lane.b32.xlu1 %v9143_v17, %s9557_s9  ;;  %2224 = vrot.lane.b32.xlu0 %v9142_v22, %s9557_s9 }
 0x36b   :  { %2228 = vrot.lane.b32.xlu2 %v9144_v26, %s9557_s9  ;;  %v9175_v26 = vld [vmem:[%s16661_s0 + $0x240] sm:$0xff] }
 0x36c   :  { %v1885_v31 = vpop.permute.xlu1 %1884  ;;  %v1883_v35 = vpop.permute.xlu0 %1882 }
 0x36d   :  { %2047 = vst.msk [vmem:[#allocation3 + $0xf0] sm:$0xff] %vm2016_vm5, %v1885_v31  ;;  %v1905_v49 = vpop.permute.xlu2 %1904 }
 0x36e   :  { %2046 = vst.msk [vmem:[#allocation3 + $0xe8] sm:$0xff] %vm2016_vm5, %v1883_v35  ;;  %v9177_v35 = vld [vmem:[%s16661_s0 + $0x258] sm:$0xff] }
 0x36f   :  { %2057 = vst.msk [vmem:[#allocation3 + $0x140] sm:$0xff] %vm2016_vm5, %v1905_v49  ;;  %v9179_v49 = vld [vmem:[%s16661_s0 + $0x270] sm:$0xff] }
 0x372   :  { %2232 = vrot.lane.b32.xlu1 %v9146_v36, %s9557_s9  ;;  %2230 = vrot.lane.b32.xlu0 %v9145_v43, %s9557_s9 }
 0x373   :  { %2234 = vrot.lane.b32.xlu2 %v9147_v50, %s9557_s9  ;;  %v9178_v50 = vld [vmem:[%s16661_s0 + $0x260] sm:$0xff] }
 0x374   :  { %v1891_v20 = vpop.permute.xlu1 %1890  ;;  %v1889_v58 = vpop.permute.xlu0 %1888 }
 0x375   :  { %2050 = vst.msk [vmem:[#allocation3 + $0x108] sm:$0xff] %vm2016_vm5, %v1891_v20  ;;  %v1911_v55 = vpop.permute.xlu2 %1910 }
 0x376   :  { %2049 = vst.msk [vmem:[#allocation3 + $0x100] sm:$0xff] %vm2016_vm5, %v1889_v58  ;;  %v9180_v58 = vld [vmem:[%s16661_s0 + $0x278] sm:$0xff] }
 0x377   :  { %2060 = vst.msk [vmem:[#allocation3 + $0x158] sm:$0xff] %vm2016_vm5, %v1911_v55  ;;  %v9182_v55 = vld [vmem:[%s16661_s0 + $0x290] sm:$0xff] }
 0x37a   :  { %2238 = vrot.lane.b32.xlu1 %v9149_v0, %s9557_s9  ;;  %2236 = vrot.lane.b32.xlu0 %v9148_v1, %s9557_s9 }
 0x37b   :  { %2240 = vrot.lane.b32.xlu2 %v9150_v24, %s9557_s9  ;;  %v9181_v24 = vld [vmem:[%s16661_s0 + $0x288] sm:$0xff] }
 0x37c   :  { %v1897_v12 = vpop.permute.xlu1 %1896  ;;  %v1895_v56 = vpop.permute.xlu0 %1894 }
 0x37d   :  { %2053 = vst.msk [vmem:[#allocation3 + $0x120] sm:$0xff] %vm2016_vm5, %v1897_v12  ;;  %v1917_v28 = vpop.permute.xlu2 %1916 }
 0x37e   :  { %2052 = vst.msk [vmem:[#allocation3 + $0x118] sm:$0xff] %vm2016_vm5, %v1895_v56  ;;  %v9183_v56 = vld [vmem:[%s16661_s0 + $0x2a0] sm:$0xff] }
 0x37f   :  { %2063 = vst.msk [vmem:[#allocation3 + $0x170] sm:$0xff] %vm2016_vm5, %v1917_v28  ;;  %v9185_v28 = vld [vmem:[%s16661_s0 + $0x2b8] sm:$0xff] }
 0x382   :  { %2244 = vrot.lane.b32.xlu1 %v9152_v21, %s9557_s9  ;;  %2242 = vrot.lane.b32.xlu0 %v9151_v27, %s9557_s9 }
 0x383   :  { %2246 = vrot.lane.b32.xlu2 %v9153_v37, %s9557_s9  ;;  %v9184_v37 = vld [vmem:[%s16661_s0 + $0x2a8] sm:$0xff] }
 0x384   :  { %v1903_v42 = vpop.permute.xlu1 %1902  ;;  %v1901_v44 = vpop.permute.xlu0 %1900 }
 0x385   :  { %2056 = vst.msk [vmem:[#allocation3 + $0x138] sm:$0xff] %vm2016_vm5, %v1903_v42  ;;  %v1923_v3 = vpop.permute.xlu2 %1922 }
 0x386   :  { %2055 = vst.msk [vmem:[#allocation3 + $0x130] sm:$0xff] %vm2016_vm5, %v1901_v44  ;;  %v9186_v44 = vld [vmem:[%s16661_s0 + $0x2c0] sm:$0xff] }
 0x387   :  { %2066 = vst.msk [vmem:[#allocation3 + $0x188] sm:$0xff] %vm2016_vm5, %v1923_v3  ;;  %v9188_v3 = vld [vmem:[%s16661_s0 + $0x2d8] sm:$0xff] }
 0x38a   :  { %2250 = vrot.lane.b32.xlu1 %v9155_v57, %s9557_s9  ;;  %2248 = vrot.lane.b32.xlu0 %v9154_v2, %s9557_s9 }
 0x38b   :  { %2252 = vrot.lane.b32.xlu2 %v9156_v11, %s9557_s9  ;;  %v9187_v11 = vld [vmem:[%s16661_s0 + $0x2d0] sm:$0xff] }
 0x38c   :  { %v1909_v18 = vpop.permute.xlu1 %1908  ;;  %v1907_v19 = vpop.permute.xlu0 %1906 }
 0x38d   :  { %2059 = vst.msk [vmem:[#allocation3 + $0x150] sm:$0xff] %vm2016_vm5, %v1909_v18  ;;  %v1929_v41 = vpop.permute.xlu2 %1928 }
 0x38e   :  { %2058 = vst.msk [vmem:[#allocation3 + $0x148] sm:$0xff] %vm2016_vm5, %v1907_v19  ;;  %v9189_v19 = vld [vmem:[%s16661_s0 + $0x2e8] sm:$0xff] }
 0x38f   :  { %2069 = vst.msk [vmem:[#allocation3 + $0x1a0] sm:$0xff] %vm2016_vm5, %v1929_v41  ;;  %v9191_v41 = vld [vmem:[%s16661_s0 + $0x300] sm:$0xff] }
 0x392   :  { %2256 = vrot.lane.b32.xlu1 %v9158_v30, %s9557_s9  ;;  %2254 = vrot.lane.b32.xlu0 %v9157_v40, %s9557_s9 }
 0x393   :  { %2258 = vrot.lane.b32.xlu2 %v9159_v60, %s9557_s9  ;;  %v9190_v60 = vld [vmem:[%s16661_s0 + $0x2f0] sm:$0xff] }
 0x394   :  { %v1915_v6 = vpop.permute.xlu1 %1914  ;;  %v1913_v9 = vpop.permute.xlu0 %1912 }
 0x395   :  { %2062 = vst.msk [vmem:[#allocation3 + $0x168] sm:$0xff] %vm2016_vm5, %v1915_v6  ;;  %v1935_v33 = vpop.permute.xlu2 %1934 }
 0x396   :  { %2061 = vst.msk [vmem:[#allocation3 + $0x160] sm:$0xff] %vm2016_vm5, %v1913_v9  ;;  %v9192_v9 = vld [vmem:[%s16661_s0 + $0x308] sm:$0xff] }
 0x397   :  { %2072 = vst.msk [vmem:[#allocation3 + $0x1b8] sm:$0xff] %vm2016_vm5, %v1935_v33  ;;  %v9194_v33 = vld [vmem:[%s16661_s0 + $0x320] sm:$0xff] }
 0x39a   :  { %2262 = vrot.lane.b32.xlu1 %v9161_v23, %s9557_s9  ;;  %2260 = vrot.lane.b32.xlu0 %v9160_v32, %s9557_s9 }
 0x39b   :  { %2264 = vrot.lane.b32.xlu2 %v9162_v61, %s9557_s9  ;;  %v9193_v61 = vld [vmem:[%s16661_s0 + $0x318] sm:$0xff] }
 0x39c   :  { %v1921_v14 = vpop.permute.xlu1 %1920  ;;  %v1919_v48 = vpop.permute.xlu0 %1918 }
 0x39d   :  { %2065 = vst.msk [vmem:[#allocation3 + $0x180] sm:$0xff] %vm2016_vm5, %v1921_v14  ;;  %v1941_v51 = vpop.permute.xlu2 %1940 }
 0x39e   :  { %2064 = vst.msk [vmem:[#allocation3 + $0x178] sm:$0xff] %vm2016_vm5, %v1919_v48  ;;  %v9195_v48 = vld [vmem:[%s16661_s0 + $0x330] sm:$0xff] }
 0x39f   :  { %2075 = vst.msk [vmem:[#allocation3 + $0x1d0] sm:$0xff] %vm2016_vm5, %v1941_v51  ;;  %v9197_v51 = vld [vmem:[%s16661_s0 + $0x348] sm:$0xff] }
 0x3a2   :  { %2268 = vrot.lane.b32.xlu1 %v9164_v15, %s9557_s9  ;;  %2266 = vrot.lane.b32.xlu0 %v9163_v29, %s9557_s9 }
 0x3a3   :  { %2270 = vrot.lane.b32.xlu2 %v9165_v10, %s9557_s9  ;;  %v9196_v10 = vld [vmem:[%s16661_s0 + $0x338] sm:$0xff] }
 0x3a4   :  { %v1927_v5 = vpop.permute.xlu1 %1926  ;;  %v1925_v34 = vpop.permute.xlu0 %1924 }
 0x3a5   :  { %2068 = vst.msk [vmem:[#allocation3 + $0x198] sm:$0xff] %vm2016_vm5, %v1927_v5  ;;  %v1947_v45 = vpop.permute.xlu2 %1946 }
 0x3a6   :  { %2067 = vst.msk [vmem:[#allocation3 + $0x190] sm:$0xff] %vm2016_vm5, %v1925_v34  ;;  %v9198_v34 = vld [vmem:[%s16661_s0 + $0x350] sm:$0xff] }
 0x3a7   :  { %2078 = vst.msk [vmem:[#allocation3 + $0x1e8] sm:$0xff] %vm2016_vm5, %v1947_v45  ;;  %v9200_v45 = vld [vmem:[%s16661_s0 + $0x39] sm:$0xff] }
 0x3aa   :  { %2274 = vrot.lane.b32.xlu1 %v9167_v38, %s9557_s9  ;;  %2272 = vrot.lane.b32.xlu0 %v9166_v39, %s9557_s9 }
 0x3ab   :  { %2276 = vrot.lane.b32.xlu2 %v9168_v46, %s9557_s9  ;;  %v9199_v46 = vld [vmem:[%s16661_s0 + $0x31] sm:$0xff] }
 0x3ac   :  { %v1933_v47 = vpop.permute.xlu1 %1932  ;;  %v1931_v52 = vpop.permute.xlu0 %1930 }
 0x3ad   :  { %2071 = vst.msk [vmem:[#allocation3 + $0x1b0] sm:$0xff] %vm2016_vm5, %v1933_v47  ;;  %v2211_v59 = vpop.permute.xlu2 %2210 }
 0x3ae   :  { %2070 = vst.msk [vmem:[#allocation3 + $0x1a8] sm:$0xff] %vm2016_vm5, %v1931_v52  ;;  %v9201_v52 = vld [vmem:[%s16661_s0 + $0x49] sm:$0xff] }
 0x3af   :  { %2403 = vst.msk [vmem:[#allocation3] sm:$0xff] %vm2402_vm6, %v2211_v59  ;;  %v9203_v59 = vld [vmem:[%s16661_s0 + $0x61] sm:$0xff] }
 0x3b2   :  { %2280 = vrot.lane.b32.xlu1 %v9170_v53, %s9557_s9  ;;  %2278 = vrot.lane.b32.xlu0 %v9169_v54, %s9557_s9 }
 0x3b3   :  { %2282 = vrot.lane.b32.xlu2 %v9171_v62, %s9557_s9  ;;  %v9202_v62 = vld [vmem:[%s16661_s0 + $0x51] sm:$0xff] }
 0x3b4   :  { %v1939_v63 = vpop.permute.xlu1 %1938  ;;  %v1937_v4 = vpop.permute.xlu0 %1936 }
 0x3b5   :  { %2074 = vst.msk [vmem:[#allocation3 + $0x1c8] sm:$0xff] %vm2016_vm5, %v1939_v63  ;;  %v2217_v13 = vpop.permute.xlu2 %2216 }
 0x3b6   :  { %2073 = vst.msk [vmem:[#allocation3 + $0x1c0] sm:$0xff] %vm2016_vm5, %v1937_v4  ;;  %v9204_v4 = vld [vmem:[%s16661_s0 + $0x69] sm:$0xff] }
 0x3b7   :  { %2406 = vst.msk [vmem:[#allocation3 + $0x18] sm:$0xff] %vm2402_vm6, %v2217_v13  ;;  %v9206_v13 = vld [vmem:[%s16661_s0 + $0x81] sm:$0xff] }
 0x3ba   :  { %2286 = vrot.lane.b32.xlu1 %v9173_v7, %s9557_s9  ;;  %2284 = vrot.lane.b32.xlu0 %v9172_v8, %s9557_s9 }
 0x3bb   :  { %2288 = vrot.lane.b32.xlu2 %v9174_v16, %s9557_s9  ;;  %v9205_v16 = vld [vmem:[%s16661_s0 + $0x79] sm:$0xff] }
 0x3bc   :  { %v1945_v17 = vpop.permute.xlu1 %1944  ;;  %v1943_v22 = vpop.permute.xlu0 %1942 }
 0x3bd   :  { %2077 = vst.msk [vmem:[#allocation3 + $0x1e0] sm:$0xff] %vm2016_vm5, %v1945_v17  ;;  %v2223_v31 = vpop.permute.xlu2 %2222 }
 0x3be   :  { %2076 = vst.msk [vmem:[#allocation3 + $0x1d8] sm:$0xff] %vm2016_vm5, %v1943_v22  ;;  %v9207_v22 = vld [vmem:[%s16661_s0 + $0x91] sm:$0xff] }
 0x3bf   :  { %2409 = vst.msk [vmem:[#allocation3 + $0x30] sm:$0xff] %vm2402_vm6, %v2223_v31  ;;  %v9209_v31 = vld [vmem:[%s16661_s0 + $0xa9] sm:$0xff] }
 0x3c2   :  { %2292 = vrot.lane.b32.xlu1 %v9176_v25, %s9557_s9  ;;  %2290 = vrot.lane.b32.xlu0 %v9175_v26, %s9557_s9 }
 0x3c3   :  { %2294 = vrot.lane.b32.xlu2 %v9177_v35, %s9557_s9  ;;  %v9208_v35 = vld [vmem:[%s16661_s0 + $0x99] sm:$0xff] }
 0x3c4   :  { %v1951_v36 = vpop.permute.xlu1 %1950  ;;  %v1949_v43 = vpop.permute.xlu0 %1948 }
 0x3c5   :  { %2080 = vst.msk [vmem:[#allocation3 + $0x1f8] sm:$0xff] %vm2016_vm5, %v1951_v36  ;;  %v2229_v20 = vpop.permute.xlu2 %2228 }
 0x3c6   :  { %2079 = vst.msk [vmem:[#allocation3 + $0x1f0] sm:$0xff] %vm2016_vm5, %v1949_v43  ;;  %v9210_v43 = vld [vmem:[%s16661_s0 + $0xb1] sm:$0xff] }
 0x3c7   :  { %2412 = vst.msk [vmem:[#allocation3 + $0x48] sm:$0xff] %vm2402_vm6, %v2229_v20  ;;  %v9212_v20 = vld [vmem:[%s16661_s0 + $0xc9] sm:$0xff] }
 0x3ca   :  { %2298 = vrot.lane.b32.xlu1 %v9179_v49, %s9557_s9  ;;  %2296 = vrot.lane.b32.xlu0 %v9178_v50, %s9557_s9 }
 0x3cb   :  { %2300 = vrot.lane.b32.xlu2 %v9180_v58, %s9557_s9  ;;  %v9211_v58 = vld [vmem:[%s16661_s0 + $0xc1] sm:$0xff] }
 0x3cc   :  { %v2215_v0 = vpop.permute.xlu1 %2214  ;;  %v2213_v1 = vpop.permute.xlu0 %2212 }
 0x3cd   :  { %2405 = vst.msk [vmem:[#allocation3 + $0x10] sm:$0xff] %vm2402_vm6, %v2215_v0  ;;  %v2235_v12 = vpop.permute.xlu2 %2234 }
 0x3ce   :  { %2404 = vst.msk [vmem:[#allocation3 + $0x8] sm:$0xff] %vm2402_vm6, %v2213_v1  ;;  %v9213_v1 = vld [vmem:[%s16661_s0 + $0xd9] sm:$0xff] }
 0x3cf   :  { %2415 = vst.msk [vmem:[#allocation3 + $0x60] sm:$0xff] %vm2402_vm6, %v2235_v12  ;;  %v9215_v12 = vld [vmem:[%s16661_s0 + $0xf1] sm:$0xff] }
 0x3d2   :  { %2304 = vrot.lane.b32.xlu1 %v9182_v55, %s9557_s9  ;;  %2302 = vrot.lane.b32.xlu0 %v9181_v24, %s9557_s9 }
 0x3d3   :  { %2306 = vrot.lane.b32.xlu2 %v9183_v56, %s9557_s9  ;;  %v9214_v56 = vld [vmem:[%s16661_s0 + $0xe1] sm:$0xff] }
 0x3d4   :  { %v2221_v21 = vpop.permute.xlu1 %2220  ;;  %v2219_v27 = vpop.permute.xlu0 %2218 }
 0x3d5   :  { %2408 = vst.msk [vmem:[#allocation3 + $0x28] sm:$0xff] %vm2402_vm6, %v2221_v21  ;;  %v2241_v42 = vpop.permute.xlu2 %2240 }
 0x3d6   :  { %2407 = vst.msk [vmem:[#allocation3 + $0x20] sm:$0xff] %vm2402_vm6, %v2219_v27  ;;  %v9216_v27 = vld [vmem:[%s16661_s0 + $0xf9] sm:$0xff] }
 0x3d7   :  { %2418 = vst.msk [vmem:[#allocation3 + $0x78] sm:$0xff] %vm2402_vm6, %v2241_v42  ;;  %v9218_v42 = vld [vmem:[%s16661_s0 + $0x111] sm:$0xff] }
 0x3da   :  { %2310 = vrot.lane.b32.xlu1 %v9185_v28, %s9557_s9  ;;  %2308 = vrot.lane.b32.xlu0 %v9184_v37, %s9557_s9 }
 0x3db   :  { %2312 = vrot.lane.b32.xlu2 %v9186_v44, %s9557_s9  ;;  %v9217_v44 = vld [vmem:[%s16661_s0 + $0x109] sm:$0xff] }
 0x3dc   :  { %v2227_v57 = vpop.permute.xlu1 %2226  ;;  %v2225_v2 = vpop.permute.xlu0 %2224 }
 0x3dd   :  { %2411 = vst.msk [vmem:[#allocation3 + $0x40] sm:$0xff] %vm2402_vm6, %v2227_v57  ;;  %v2247_v18 = vpop.permute.xlu2 %2246 }
 0x3de   :  { %2410 = vst.msk [vmem:[#allocation3 + $0x38] sm:$0xff] %vm2402_vm6, %v2225_v2  ;;  %v9219_v2 = vld [vmem:[%s16661_s0 + $0x121] sm:$0xff] }
 0x3df   :  { %2421 = vst.msk [vmem:[#allocation3 + $0x90] sm:$0xff] %vm2402_vm6, %v2247_v18  ;;  %v9221_v18 = vld [vmem:[%s16661_s0 + $0x139] sm:$0xff] }
 0x3e2   :  { %2316 = vrot.lane.b32.xlu1 %v9188_v3, %s9557_s9  ;;  %2314 = vrot.lane.b32.xlu0 %v9187_v11, %s9557_s9 }
 0x3e3   :  { %2318 = vrot.lane.b32.xlu2 %v9189_v19, %s9557_s9  ;;  %v9220_v19 = vld [vmem:[%s16661_s0 + $0x129] sm:$0xff] }
 0x3e4   :  { %v2233_v30 = vpop.permute.xlu1 %2232  ;;  %v2231_v40 = vpop.permute.xlu0 %2230 }
 0x3e5   :  { %2414 = vst.msk [vmem:[#allocation3 + $0x58] sm:$0xff] %vm2402_vm6, %v2233_v30  ;;  %v2253_v6 = vpop.permute.xlu2 %2252 }
 0x3e6   :  { %2413 = vst.msk [vmem:[#allocation3 + $0x50] sm:$0xff] %vm2402_vm6, %v2231_v40  ;;  %v9222_v40 = vld [vmem:[%s16661_s0 + $0x141] sm:$0xff] }
 0x3e7   :  { %2424 = vst.msk [vmem:[#allocation3 + $0xa8] sm:$0xff] %vm2402_vm6, %v2253_v6  ;;  %v9224_v6 = vld [vmem:[%s16661_s0 + $0x159] sm:$0xff] }
 0x3ea   :  { %2322 = vrot.lane.b32.xlu1 %v9191_v41, %s9557_s9  ;;  %2320 = vrot.lane.b32.xlu0 %v9190_v60, %s9557_s9 }
 0x3eb   :  { %2324 = vrot.lane.b32.xlu2 %v9192_v9, %s9557_s9  ;;  %v9223_v9 = vld [vmem:[%s16661_s0 + $0x151] sm:$0xff] }
 0x3ec   :  { %v2239_v23 = vpop.permute.xlu1 %2238  ;;  %v2237_v32 = vpop.permute.xlu0 %2236 }
 0x3ed   :  { %2417 = vst.msk [vmem:[#allocation3 + $0x70] sm:$0xff] %vm2402_vm6, %v2239_v23  ;;  %v2259_v14 = vpop.permute.xlu2 %2258 }
 0x3ee   :  { %2416 = vst.msk [vmem:[#allocation3 + $0x68] sm:$0xff] %vm2402_vm6, %v2237_v32  ;;  %v9225_v32 = vld [vmem:[%s16661_s0 + $0x169] sm:$0xff] }
 0x3ef   :  { %2427 = vst.msk [vmem:[#allocation3 + $0xc0] sm:$0xff] %vm2402_vm6, %v2259_v14  ;;  %v9227_v14 = vld [vmem:[%s16661_s0 + $0x181] sm:$0xff] }
 0x3f2   :  { %2328 = vrot.lane.b32.xlu1 %v9194_v33, %s9557_s9  ;;  %2326 = vrot.lane.b32.xlu0 %v9193_v61, %s9557_s9 }
 0x3f3   :  { %2330 = vrot.lane.b32.xlu2 %v9195_v48, %s9557_s9  ;;  %v9226_v48 = vld [vmem:[%s16661_s0 + $0x171] sm:$0xff] }
 0x3f4   :  { %v2245_v15 = vpop.permute.xlu1 %2244  ;;  %v2243_v29 = vpop.permute.xlu0 %2242 }
 0x3f5   :  { %2420 = vst.msk [vmem:[#allocation3 + $0x88] sm:$0xff] %vm2402_vm6, %v2245_v15  ;;  %v2265_v5 = vpop.permute.xlu2 %2264 }
 0x3f6   :  { %2419 = vst.msk [vmem:[#allocation3 + $0x80] sm:$0xff] %vm2402_vm6, %v2243_v29  ;;  %v9228_v29 = vld [vmem:[%s16661_s0 + $0x189] sm:$0xff] }
 0x3f7   :  { %2430 = vst.msk [vmem:[#allocation3 + $0xd8] sm:$0xff] %vm2402_vm6, %v2265_v5  ;;  %v9230_v5 = vld [vmem:[%s16661_s0 + $0x1a1] sm:$0xff] }
 0x3fa   :  { %2334 = vrot.lane.b32.xlu1 %v9197_v51, %s9557_s9  ;;  %2332 = vrot.lane.b32.xlu0 %v9196_v10, %s9557_s9 }
 0x3fb   :  { %2336 = vrot.lane.b32.xlu2 %v9198_v34, %s9557_s9  ;;  %v9229_v34 = vld [vmem:[%s16661_s0 + $0x199] sm:$0xff] }
 0x3fc   :  { %v2251_v38 = vpop.permute.xlu1 %2250  ;;  %v2249_v39 = vpop.permute.xlu0 %2248 }
 0x3fd   :  { %2423 = vst.msk [vmem:[#allocation3 + $0xa0] sm:$0xff] %vm2402_vm6, %v2251_v38  ;;  %v2271_v47 = vpop.permute.xlu2 %2270 }
 0x3fe   :  { %2422 = vst.msk [vmem:[#allocation3 + $0x98] sm:$0xff] %vm2402_vm6, %v2249_v39  ;;  %v9231_v39 = vld [vmem:[%s16661_s0 + $0x1e1] sm:$0xff] }
 0x3ff   :  { %2433 = vst.msk [vmem:[#allocation3 + $0xf0] sm:$0xff] %vm2402_vm6, %v2271_v47  ;;  %v9233_v47 = vld [vmem:[%s16661_s0 + $0x1f9] sm:$0xff] }
 0x402   :  { %2597 = vrot.lane.b32.xlu1 %v9200_v45, %s9558_s24  ;;  %2595 = vrot.lane.b32.xlu0 %v9199_v46, %s9558_s24 }
 0x403   :  { %2599 = vrot.lane.b32.xlu2 %v9201_v52, %s9558_s24  ;;  %v9232_v52 = vld [vmem:[%s16661_s0 + $0x1e9] sm:$0xff] }
 0x404   :  { %v2257_v53 = vpop.permute.xlu1 %2256  ;;  %v2255_v54 = vpop.permute.xlu0 %2254 }
 0x405   :  { %2426 = vst.msk [vmem:[#allocation3 + $0xb8] sm:$0xff] %vm2402_vm6, %v2257_v53  ;;  %v2277_v63 = vpop.permute.xlu2 %2276 }
 0x406   :  { %2425 = vst.msk [vmem:[#allocation3 + $0xb0] sm:$0xff] %vm2402_vm6, %v2255_v54  ;;  %v9234_v54 = vld [vmem:[%s16661_s0 + $0x201] sm:$0xff] }
 0x407   :  { %2436 = vst.msk [vmem:[#allocation3 + $0x108] sm:$0xff] %vm2402_vm6, %v2277_v63  ;;  %v9236_v63 = vld [vmem:[%s16661_s0 + $0x219] sm:$0xff] }
 0x40a   :  { %2603 = vrot.lane.b32.xlu1 %v9203_v59, %s9558_s24  ;;  %2601 = vrot.lane.b32.xlu0 %v9202_v62, %s9558_s24 }
 0x40b   :  { %2605 = vrot.lane.b32.xlu2 %v9204_v4, %s9558_s24  ;;  %v9235_v4 = vld [vmem:[%s16661_s0 + $0x211] sm:$0xff] }
 0x40c   :  { %v2263_v7 = vpop.permute.xlu1 %2262  ;;  %v2261_v8 = vpop.permute.xlu0 %2260 }
 0x40d   :  { %2429 = vst.msk [vmem:[#allocation3 + $0xd0] sm:$0xff] %vm2402_vm6, %v2263_v7  ;;  %v2283_v17 = vpop.permute.xlu2 %2282 }
 0x40e   :  { %2428 = vst.msk [vmem:[#allocation3 + $0xc8] sm:$0xff] %vm2402_vm6, %v2261_v8  ;;  %v9237_v8 = vld [vmem:[%s16661_s0 + $0x229] sm:$0xff] }
 0x40f   :  { %2439 = vst.msk [vmem:[#allocation3 + $0x120] sm:$0xff] %vm2402_vm6, %v2283_v17  ;;  %v9239_v17 = vld [vmem:[%s16661_s0 + $0x241] sm:$0xff] }
 0x412   :  { %2609 = vrot.lane.b32.xlu1 %v9206_v13, %s9558_s24  ;;  %2607 = vrot.lane.b32.xlu0 %v9205_v16, %s9558_s24 }
 0x413   :  { %2611 = vrot.lane.b32.xlu2 %v9207_v22, %s9558_s24  ;;  %v9238_v22 = vld [vmem:[%s16661_s0 + $0x231] sm:$0xff] }
 0x414   :  { %v2269_v25 = vpop.permute.xlu1 %2268  ;;  %v2267_v26 = vpop.permute.xlu0 %2266 }
 0x415   :  { %2432 = vst.msk [vmem:[#allocation3 + $0xe8] sm:$0xff] %vm2402_vm6, %v2269_v25  ;;  %v2289_v36 = vpop.permute.xlu2 %2288 }
 0x416   :  { %2431 = vst.msk [vmem:[#allocation3 + $0xe0] sm:$0xff] %vm2402_vm6, %v2267_v26  ;;  %v9240_v26 = vld [vmem:[%s16661_s0 + $0x249] sm:$0xff] }
 0x417   :  { %2442 = vst.msk [vmem:[#allocation3 + $0x138] sm:$0xff] %vm2402_vm6, %v2289_v36  ;;  %v9242_v36 = vld [vmem:[%s16661_s0 + $0x261] sm:$0xff] }
 0x41a   :  { %2615 = vrot.lane.b32.xlu1 %v9209_v31, %s9558_s24  ;;  %2613 = vrot.lane.b32.xlu0 %v9208_v35, %s9558_s24 }
 0x41b   :  { %2617 = vrot.lane.b32.xlu2 %v9210_v43, %s9558_s24  ;;  %v9241_v43 = vld [vmem:[%s16661_s0 + $0x259] sm:$0xff] }
 0x41c   :  { %v2275_v49 = vpop.permute.xlu1 %2274  ;;  %v2273_v50 = vpop.permute.xlu0 %2272 }
 0x41d   :  { %2435 = vst.msk [vmem:[#allocation3 + $0x100] sm:$0xff] %vm2402_vm6, %v2275_v49  ;;  %v2295_v0 = vpop.permute.xlu2 %2294 }
 0x41e   :  { %2434 = vst.msk [vmem:[#allocation3 + $0xf8] sm:$0xff] %vm2402_vm6, %v2273_v50  ;;  %v9243_v50 = vld [vmem:[%s16661_s0 + $0x271] sm:$0xff] }
 0x41f   :  { %2445 = vst.msk [vmem:[#allocation3 + $0x150] sm:$0xff] %vm2402_vm6, %v2295_v0  ;;  %v9245_v0 = vld [vmem:[%s16661_s0 + $0x289] sm:$0xff] }
 0x422   :  { %2621 = vrot.lane.b32.xlu1 %v9212_v20, %s9558_s24  ;;  %2619 = vrot.lane.b32.xlu0 %v9211_v58, %s9558_s24 }
 0x423   :  { %2623 = vrot.lane.b32.xlu2 %v9213_v1, %s9558_s24  ;;  %v9244_v1 = vld [vmem:[%s16661_s0 + $0x279] sm:$0xff] }
 0x424   :  { %v2281_v55 = vpop.permute.xlu1 %2280  ;;  %v2279_v24 = vpop.permute.xlu0 %2278 }
 0x425   :  { %2438 = vst.msk [vmem:[#allocation3 + $0x118] sm:$0xff] %vm2402_vm6, %v2281_v55  ;;  %v2301_v21 = vpop.permute.xlu2 %2300 }
 0x426   :  { %2437 = vst.msk [vmem:[#allocation3 + $0x110] sm:$0xff] %vm2402_vm6, %v2279_v24  ;;  %v9246_v24 = vld [vmem:[%s16661_s0 + $0x291] sm:$0xff] }
 0x427   :  { %2448 = vst.msk [vmem:[#allocation3 + $0x168] sm:$0xff] %vm2402_vm6, %v2301_v21  ;;  %v9248_v21 = vld [vmem:[%s16661_s0 + $0x2a9] sm:$0xff] }
 0x42a   :  { %2627 = vrot.lane.b32.xlu1 %v9215_v12, %s9558_s24  ;;  %2625 = vrot.lane.b32.xlu0 %v9214_v56, %s9558_s24 }
 0x42b   :  { %2629 = vrot.lane.b32.xlu2 %v9216_v27, %s9558_s24  ;;  %v9247_v27 = vld [vmem:[%s16661_s0 + $0x2a1] sm:$0xff] }
 0x42c   :  { %v2287_v28 = vpop.permute.xlu1 %2286  ;;  %v2285_v37 = vpop.permute.xlu0 %2284 }
 0x42d   :  { %2441 = vst.msk [vmem:[#allocation3 + $0x130] sm:$0xff] %vm2402_vm6, %v2287_v28  ;;  %v2307_v57 = vpop.permute.xlu2 %2306 }
 0x42e   :  { %2440 = vst.msk [vmem:[#allocation3 + $0x128] sm:$0xff] %vm2402_vm6, %v2285_v37  ;;  %v9249_v37 = vld [vmem:[%s16661_s0 + $0x2b9] sm:$0xff] }
 0x42f   :  { %2451 = vst.msk [vmem:[#allocation3 + $0x180] sm:$0xff] %vm2402_vm6, %v2307_v57  ;;  %v9251_v57 = vld [vmem:[%s16661_s0 + $0x2d1] sm:$0xff] }
 0x432   :  { %2633 = vrot.lane.b32.xlu1 %v9218_v42, %s9558_s24  ;;  %2631 = vrot.lane.b32.xlu0 %v9217_v44, %s9558_s24 }
 0x433   :  { %2635 = vrot.lane.b32.xlu2 %v9219_v2, %s9558_s24  ;;  %v9250_v2 = vld [vmem:[%s16661_s0 + $0x2c1] sm:$0xff] }
 0x434   :  { %v2293_v3 = vpop.permute.xlu1 %2292  ;;  %v2291_v11 = vpop.permute.xlu0 %2290 }
 0x435   :  { %2444 = vst.msk [vmem:[#allocation3 + $0x148] sm:$0xff] %vm2402_vm6, %v2293_v3  ;;  %v2313_v30 = vpop.permute.xlu2 %2312 }
 0x436   :  { %2443 = vst.msk [vmem:[#allocation3 + $0x140] sm:$0xff] %vm2402_vm6, %v2291_v11  ;;  %v9252_v11 = vld [vmem:[%s16661_s0 + $0x2d9] sm:$0xff] }
 0x437   :  { %2454 = vst.msk [vmem:[#allocation3 + $0x198] sm:$0xff] %vm2402_vm6, %v2313_v30  ;;  %v9254_v30 = vld [vmem:[%s16661_s0 + $0x2f1] sm:$0xff] }
 0x43a   :  { %2639 = vrot.lane.b32.xlu1 %v9221_v18, %s9558_s24  ;;  %2637 = vrot.lane.b32.xlu0 %v9220_v19, %s9558_s24 }
 0x43b   :  { %2641 = vrot.lane.b32.xlu2 %v9222_v40, %s9558_s24  ;;  %v9253_v40 = vld [vmem:[%s16661_s0 + $0x2e9] sm:$0xff] }
 0x43c   :  { %v2299_v41 = vpop.permute.xlu1 %2298  ;;  %v2297_v60 = vpop.permute.xlu0 %2296 }
 0x43d   :  { %2447 = vst.msk [vmem:[#allocation3 + $0x160] sm:$0xff] %vm2402_vm6, %v2299_v41  ;;  %v2319_v23 = vpop.permute.xlu2 %2318 }
 0x43e   :  { %2446 = vst.msk [vmem:[#allocation3 + $0x158] sm:$0xff] %vm2402_vm6, %v2297_v60  ;;  %v9255_v60 = vld [vmem:[%s16661_s0 + $0x301] sm:$0xff] }
 0x43f   :  { %2457 = vst.msk [vmem:[#allocation3 + $0x1b0] sm:$0xff] %vm2402_vm6, %v2319_v23  ;;  %v9257_v23 = vld [vmem:[%s16661_s0 + $0x319] sm:$0xff] }
 0x442   :  { %2645 = vrot.lane.b32.xlu1 %v9224_v6, %s9558_s24  ;;  %2643 = vrot.lane.b32.xlu0 %v9223_v9, %s9558_s24 }
 0x443   :  { %2647 = vrot.lane.b32.xlu2 %v9225_v32, %s9558_s24  ;;  %v9256_v32 = vld [vmem:[%s16661_s0 + $0x309] sm:$0xff] }
 0x444   :  { %v2305_v33 = vpop.permute.xlu1 %2304  ;;  %v2303_v61 = vpop.permute.xlu0 %2302 }
 0x445   :  { %2450 = vst.msk [vmem:[#allocation3 + $0x178] sm:$0xff] %vm2402_vm6, %v2305_v33  ;;  %v2325_v15 = vpop.permute.xlu2 %2324 }
 0x446   :  { %2449 = vst.msk [vmem:[#allocation3 + $0x170] sm:$0xff] %vm2402_vm6, %v2303_v61  ;;  %v9258_v61 = vld [vmem:[%s16661_s0 + $0x321] sm:$0xff] }
 0x447   :  { %2460 = vst.msk [vmem:[#allocation3 + $0x1c8] sm:$0xff] %vm2402_vm6, %v2325_v15  ;;  %v9260_v15 = vld [vmem:[%s16661_s0 + $0x339] sm:$0xff] }
 0x44a   :  { %2651 = vrot.lane.b32.xlu1 %v9227_v14, %s9558_s24  ;;  %2649 = vrot.lane.b32.xlu0 %v9226_v48, %s9558_s24 }
 0x44b   :  { %2653 = vrot.lane.b32.xlu2 %v9228_v29, %s9558_s24  ;;  %v9259_v29 = vld [vmem:[%s16661_s0 + $0x331] sm:$0xff] }
 0x44c   :  { %v2311_v51 = vpop.permute.xlu1 %2310  ;;  %v2309_v10 = vpop.permute.xlu0 %2308 }
 0x44d   :  { %2453 = vst.msk [vmem:[#allocation3 + $0x190] sm:$0xff] %vm2402_vm6, %v2311_v51  ;;  %v2331_v38 = vpop.permute.xlu2 %2330 }
 0x44e   :  { %2452 = vst.msk [vmem:[#allocation3 + $0x188] sm:$0xff] %vm2402_vm6, %v2309_v10  ;;  %v9261_v10 = vld [vmem:[%s16661_s0 + $0x349] sm:$0xff] }
 0x44f   :  { %2463 = vst.msk [vmem:[#allocation3 + $0x1e0] sm:$0xff] %vm2402_vm6, %v2331_v38  ;;  %v9263_v38 = vld [vmem:[%s16661_s0 + $0x32] sm:$0xff] }
 0x452   :  { %2657 = vrot.lane.b32.xlu1 %v9230_v5, %s9558_s24  ;;  %2655 = vrot.lane.b32.xlu0 %v9229_v34, %s9558_s24 }
 0x453   :  { %2659 = vrot.lane.b32.xlu2 %v9231_v39, %s9558_s24  ;;  %v9262_v39 = vld [vmem:[%s16661_s0 + $0x351] sm:$0xff] }
 0x454   :  { %v2317_v45 = vpop.permute.xlu1 %2316  ;;  %v2315_v46 = vpop.permute.xlu0 %2314 }
 0x455   :  { %2456 = vst.msk [vmem:[#allocation3 + $0x1a8] sm:$0xff] %vm2402_vm6, %v2317_v45  ;;  %v2337_v53 = vpop.permute.xlu2 %2336 }
 0x456   :  { %2455 = vst.msk [vmem:[#allocation3 + $0x1a0] sm:$0xff] %vm2402_vm6, %v2315_v46  ;;  %v9264_v46 = vld [vmem:[%s16661_s0 + $0x3a] sm:$0xff] }
 0x457   :  { %2466 = vst.msk [vmem:[#allocation3 + $0x1f8] sm:$0xff] %vm2402_vm6, %v2337_v53  ;;  %v9265_v53 = vld [vmem:[%s16661_s0 + $0x4a] sm:$0xff] }
 0x45a   :  { %2663 = vrot.lane.b32.xlu1 %v9233_v47, %s9558_s24  ;;  %2661 = vrot.lane.b32.xlu0 %v9232_v52, %s9558_s24 }
 0x45b   :  { %2665 = vrot.lane.b32.xlu2 %v9234_v54, %s9558_s24  ;;  %v9266_v54 = vld [vmem:[%s16661_s0 + $0x52] sm:$0xff] }
 0x45c   :  { %v2323_v59 = vpop.permute.xlu1 %2322  ;;  %v2321_v62 = vpop.permute.xlu0 %2320 }
 0x45d   :  { %2459 = vst.msk [vmem:[#allocation3 + $0x1c0] sm:$0xff] %vm2402_vm6, %v2323_v59  ;;  %v2600_v7 = vpop.permute.xlu2 %2599 }
 0x45e   :  { %2458 = vst.msk [vmem:[#allocation3 + $0x1b8] sm:$0xff] %vm2402_vm6, %v2321_v62 }
 0x45f   :  { %2790 = vst.msk [vmem:[#allocation3 + $0x10] sm:$0xff] %vm2787_vm7, %v2600_v7  ;;  %v9268_v7 = vld [vmem:[%s16661_s0 + $0x6a] sm:$0xff] }
 0x462   :  { %2669 = vrot.lane.b32.xlu1 %v9236_v63, %s9558_s24  ;;  %2667 = vrot.lane.b32.xlu0 %v9235_v4, %s9558_s24  ;;  %v9267_v4 = vld [vmem:[%s16661_s0 + $0x62] sm:$0xff] }
 0x463   :  { %2671 = vrot.lane.b32.xlu2 %v9237_v8, %s9558_s24  ;;  %v9269_v8 = vld [vmem:[%s16661_s0 + $0x7a] sm:$0xff] }
 0x464   :  { %v2329_v13 = vpop.permute.xlu1 %2328  ;;  %v2327_v16 = vpop.permute.xlu0 %2326 }
 0x465   :  { %2462 = vst.msk [vmem:[#allocation3 + $0x1d8] sm:$0xff] %vm2402_vm6, %v2329_v13  ;;  %v2606_v25 = vpop.permute.xlu2 %2605 }
 0x466   :  { %2461 = vst.msk [vmem:[#allocation3 + $0x1d0] sm:$0xff] %vm2402_vm6, %v2327_v16 }
 0x467   :  { %2793 = vst.msk [vmem:[#allocation3 + $0x28] sm:$0xff] %vm2787_vm7, %v2606_v25  ;;  %v9271_v25 = vld [vmem:[%s16661_s0 + $0x92] sm:$0xff] }
 0x46a   :  { %2675 = vrot.lane.b32.xlu1 %v9239_v17, %s9558_s24  ;;  %2673 = vrot.lane.b32.xlu0 %v9238_v22, %s9558_s24  ;;  %v9270_v22 = vld [vmem:[%s16661_s0 + $0x82] sm:$0xff] }
 0x46b   :  { %2677 = vrot.lane.b32.xlu2 %v9240_v26, %s9558_s24  ;;  %v9272_v26 = vld [vmem:[%s16661_s0 + $0x9a] sm:$0xff] }
 0x46c   :  { %v2335_v31 = vpop.permute.xlu1 %2334  ;;  %v2333_v35 = vpop.permute.xlu0 %2332 }
 0x46d   :  { %2465 = vst.msk [vmem:[#allocation3 + $0x1f0] sm:$0xff] %vm2402_vm6, %v2335_v31  ;;  %v2612_v49 = vpop.permute.xlu2 %2611 }
 0x46e   :  { %2464 = vst.msk [vmem:[#allocation3 + $0x1e8] sm:$0xff] %vm2402_vm6, %v2333_v35 }
 0x46f   :  { %2796 = vst.msk [vmem:[#allocation3 + $0x40] sm:$0xff] %vm2787_vm7, %v2612_v49  ;;  %v9274_v49 = vld [vmem:[%s16661_s0 + $0xb2] sm:$0xff] }
 0x472   :  { %2681 = vrot.lane.b32.xlu1 %v9242_v36, %s9558_s24  ;;  %2679 = vrot.lane.b32.xlu0 %v9241_v43, %s9558_s24  ;;  %v9273_v43 = vld [vmem:[%s16661_s0 + $0xaa] sm:$0xff] }
 0x473   :  { %2683 = vrot.lane.b32.xlu2 %v9243_v50, %s9558_s24  ;;  %v9275_v50 = vld [vmem:[%s16661_s0 + $0xc2] sm:$0xff] }
 0x474   :  { %v2598_v20 = vpop.permute.xlu1 %2597  ;;  %v2596_v58 = vpop.permute.xlu0 %2595 }
 0x475   :  { %2789 = vst.msk [vmem:[#allocation3 + $0x8] sm:$0xff] %vm2787_vm7, %v2598_v20  ;;  %v2618_v55 = vpop.permute.xlu2 %2617 }
 0x476   :  { %2788 = vst.msk [vmem:[#allocation3] sm:$0xff] %vm2787_vm7, %v2596_v58 }
 0x477   :  { %2799 = vst.msk [vmem:[#allocation3 + $0x58] sm:$0xff] %vm2787_vm7, %v2618_v55  ;;  %v9277_v55 = vld [vmem:[%s16661_s0 + $0xda] sm:$0xff] }
 0x47a   :  { %2687 = vrot.lane.b32.xlu1 %v9245_v0, %s9558_s24  ;;  %2685 = vrot.lane.b32.xlu0 %v9244_v1, %s9558_s24  ;;  %v9276_v1 = vld [vmem:[%s16661_s0 + $0xca] sm:$0xff] }
 0x47b   :  { %2689 = vrot.lane.b32.xlu2 %v9246_v24, %s9558_s24  ;;  %v9278_v24 = vld [vmem:[%s16661_s0 + $0xe2] sm:$0xff] }
 0x47c   :  { %v2604_v12 = vpop.permute.xlu1 %2603  ;;  %v2602_v56 = vpop.permute.xlu0 %2601 }
 0x47d   :  { %2792 = vst.msk [vmem:[#allocation3 + $0x20] sm:$0xff] %vm2787_vm7, %v2604_v12  ;;  %v2624_v28 = vpop.permute.xlu2 %2623 }
 0x47e   :  { %2791 = vst.msk [vmem:[#allocation3 + $0x18] sm:$0xff] %vm2787_vm7, %v2602_v56 }
 0x47f   :  { %2802 = vst.msk [vmem:[#allocation3 + $0x70] sm:$0xff] %vm2787_vm7, %v2624_v28  ;;  %v9280_v28 = vld [vmem:[%s16661_s0 + $0xfa] sm:$0xff] }
 0x482   :  { %2693 = vrot.lane.b32.xlu1 %v9248_v21, %s9558_s24  ;;  %2691 = vrot.lane.b32.xlu0 %v9247_v27, %s9558_s24  ;;  %v9279_v27 = vld [vmem:[%s16661_s0 + $0xf2] sm:$0xff] }
 0x483   :  { %2695 = vrot.lane.b32.xlu2 %v9249_v37, %s9558_s24  ;;  %v9281_v37 = vld [vmem:[%s16661_s0 + $0x10a] sm:$0xff] }
 0x484   :  { %v2610_v42 = vpop.permute.xlu1 %2609  ;;  %v2608_v44 = vpop.permute.xlu0 %2607 }
 0x485   :  { %2795 = vst.msk [vmem:[#allocation3 + $0x38] sm:$0xff] %vm2787_vm7, %v2610_v42  ;;  %v2630_v3 = vpop.permute.xlu2 %2629 }
 0x486   :  { %2794 = vst.msk [vmem:[#allocation3 + $0x30] sm:$0xff] %vm2787_vm7, %v2608_v44 }
 0x487   :  { %2805 = vst.msk [vmem:[#allocation3 + $0x88] sm:$0xff] %vm2787_vm7, %v2630_v3  ;;  %v9283_v3 = vld [vmem:[%s16661_s0 + $0x122] sm:$0xff] }
 0x48a   :  { %2699 = vrot.lane.b32.xlu1 %v9251_v57, %s9558_s24  ;;  %2697 = vrot.lane.b32.xlu0 %v9250_v2, %s9558_s24  ;;  %v9282_v2 = vld [vmem:[%s16661_s0 + $0x112] sm:$0xff] }
 0x48b   :  { %2701 = vrot.lane.b32.xlu2 %v9252_v11, %s9558_s24  ;;  %v9284_v11 = vld [vmem:[%s16661_s0 + $0x12a] sm:$0xff] }
 0x48c   :  { %v2616_v18 = vpop.permute.xlu1 %2615  ;;  %v2614_v19 = vpop.permute.xlu0 %2613 }
 0x48d   :  { %2798 = vst.msk [vmem:[#allocation3 + $0x50] sm:$0xff] %vm2787_vm7, %v2616_v18  ;;  %v2636_v41 = vpop.permute.xlu2 %2635 }
 0x48e   :  { %2797 = vst.msk [vmem:[#allocation3 + $0x48] sm:$0xff] %vm2787_vm7, %v2614_v19 }
 0x48f   :  { %2808 = vst.msk [vmem:[#allocation3 + $0xa0] sm:$0xff] %vm2787_vm7, %v2636_v41  ;;  %v9286_v41 = vld [vmem:[%s16661_s0 + $0x142] sm:$0xff] }
 0x492   :  { %2705 = vrot.lane.b32.xlu1 %v9254_v30, %s9558_s24  ;;  %2703 = vrot.lane.b32.xlu0 %v9253_v40, %s9558_s24  ;;  %v9285_v40 = vld [vmem:[%s16661_s0 + $0x13a] sm:$0xff] }
 0x493   :  { %2707 = vrot.lane.b32.xlu2 %v9255_v60, %s9558_s24  ;;  %v9287_v60 = vld [vmem:[%s16661_s0 + $0x152] sm:$0xff] }
 0x494   :  { %v2622_v6 = vpop.permute.xlu1 %2621  ;;  %v2620_v9 = vpop.permute.xlu0 %2619 }
 0x495   :  { %2801 = vst.msk [vmem:[#allocation3 + $0x68] sm:$0xff] %vm2787_vm7, %v2622_v6  ;;  %v2642_v33 = vpop.permute.xlu2 %2641 }
 0x496   :  { %2800 = vst.msk [vmem:[#allocation3 + $0x60] sm:$0xff] %vm2787_vm7, %v2620_v9 }
 0x497   :  { %2811 = vst.msk [vmem:[#allocation3 + $0xb8] sm:$0xff] %vm2787_vm7, %v2642_v33  ;;  %v3309_v33 = vld [vmem:[%s16662_s1 + $0x40] sm:$0xff] }
 0x498   :  { %3510 = vmatpush.msra.mxu0 %v3309_v33  ;;  %9519 = vmatpush.msra.mxu2 %v3309_v33 }
 0x49a   :  { %2711 = vrot.lane.b32.xlu1 %v9257_v23, %s9558_s24  ;;  %2709 = vrot.lane.b32.xlu0 %v9256_v32, %s9558_s24  ;;  %v9288_v32 = vld [vmem:[%s16661_s0 + $0x15a] sm:$0xff] }
 0x49b   :  { %2713 = vrot.lane.b32.xlu2 %v9258_v61, %s9558_s24  ;;  %v9289_v61 = vld [vmem:[%s16661_s0 + $0x16a] sm:$0xff] }
 0x49c   :  { %v2628_v14 = vpop.permute.xlu1 %2627  ;;  %v2626_v48 = vpop.permute.xlu0 %2625 }
 0x49d   :  { %2804 = vst.msk [vmem:[#allocation3 + $0x80] sm:$0xff] %vm2787_vm7, %v2628_v14  ;;  %v2648_v51 = vpop.permute.xlu2 %2647  ;;  %v9290_v14 = vld [vmem:[%s16661_s0 + $0x172] sm:$0xff] }
 0x49e   :  { %2803 = vst.msk [vmem:[#allocation3 + $0x78] sm:$0xff] %vm2787_vm7, %v2626_v48 }
 0x49f   :  { %2814 = vst.msk [vmem:[#allocation3 + $0xd0] sm:$0xff] %vm2787_vm7, %v2648_v51  ;;  %v3308_v51 = vld [vmem:[%s16662_s1 + $0x38] sm:$0xff] }
 0x4a0   :  { %3511 = vmatpush.msra.mxu0 %v3308_v51  ;;  %9520 = vmatpush.msra.mxu2 %v3308_v51  ;;  %v9306_v51 = vld [vmem:[%s16661_s0 + $0x262] sm:$0xff] }
 0x4a2   :  { %2717 = vrot.lane.b32.xlu1 %v9260_v15, %s9558_s24  ;;  %2715 = vrot.lane.b32.xlu0 %v9259_v29, %s9558_s24 }
 0x4a3   :  { %2719 = vrot.lane.b32.xlu2 %v9261_v10, %s9558_s24  ;;  %v3307_v10 = vld [vmem:[%s16662_s1 + $0x30] sm:$0xff] }
 0x4a4   :  { %v2634_v5 = vpop.permute.xlu1 %2633  ;;  %v2632_v34 = vpop.permute.xlu0 %2631  ;;  %3512 = vmatpush.msra.mxu0 %v3307_v10  ;;  %9521 = vmatpush.msra.mxu2 %v3307_v10 }
 0x4a5   :  { %2807 = vst.msk [vmem:[#allocation3 + $0x98] sm:$0xff] %vm2787_vm7, %v2634_v5  ;;  %v2654_v45 = vpop.permute.xlu2 %2653  ;;  %v9292_v5 = vld [vmem:[%s16661_s0 + $0x18a] sm:$0xff] }
 0x4a6   :  { %2806 = vst.msk [vmem:[#allocation3 + $0x90] sm:$0xff] %vm2787_vm7, %v2632_v34  ;;  %v9293_v34 = vld [vmem:[%s16661_s0 + $0x19a] sm:$0xff] }
 0x4a7   :  { %2817 = vst.msk [vmem:[#allocation3 + $0xe8] sm:$0xff] %vm2787_vm7, %v2654_v45  ;;  %v3306_v45 = vld [vmem:[%s16662_s1 + $0x28] sm:$0xff] }
 0x4a8   :  { %3513 = vmatpush.msra.mxu0 %v3306_v45  ;;  %9522 = vmatpush.msra.mxu2 %v3306_v45 }
 0x4aa   :  { %2980 = vrot.lane.b32.xlu1 %v9263_v38, %s9559_s21  ;;  %2721 = vrot.lane.b32.xlu0 %v9262_v39, %s9558_s24  ;;  %v9291_v39 = vld [vmem:[%s16661_s0 + $0x182] sm:$0xff] }
 0x4ab   :  { %2982 = vrot.lane.b32.xlu2 %v9264_v46, %s9559_s21  ;;  %v3305_v46 = vld [vmem:[%s16662_s1 + $0x20] sm:$0xff] }
 0x4ac   :  { %v2640_v47 = vpop.permute.xlu1 %2639  ;;  %v2638_v52 = vpop.permute.xlu0 %2637  ;;  %3514 = vmatpush.msra.mxu0 %v3305_v46  ;;  %9523 = vmatpush.msra.mxu2 %v3305_v46 }
 0x4ad   :  { %2810 = vst.msk [vmem:[#allocation3 + $0xb0] sm:$0xff] %vm2787_vm7, %v2640_v47  ;;  %v2660_v59 = vpop.permute.xlu2 %2659 }
 0x4ae   :  { %2809 = vst.msk [vmem:[#allocation3 + $0xa8] sm:$0xff] %vm2787_vm7, %v2638_v52 }
 0x4af   :  { %2820 = vst.msk [vmem:[#allocation3 + $0x100] sm:$0xff] %vm2787_vm7, %v2660_v59  ;;  %v9295_v59 = vld [vmem:[%s16661_s0 + $0x1e2] sm:$0xff] }
 0x4b2   :  { %2984 = vrot.lane.b32.xlu0 %v9265_v53, %s9559_s21  ;;  %2986 = vrot.lane.b32.xlu1 %v9266_v54, %s9559_s21  ;;  %v3304_v53 = vld [vmem:[%s16662_s1 + $0x18] sm:$0xff]  ;;  %v3303_v54 = vld [vmem:[%s16662_s1 + $0x10] sm:$0xff] }
 0x4b3   :  { %2988 = vrot.lane.b32.xlu2 %v9267_v4, %s9559_s21  ;;  %3515 = vmatpush.msra.mxu0 %v3304_v53  ;;  %v9294_v4 = vld [vmem:[%s16661_s0 + $0x1a2] sm:$0xff] }
 0x4b4   :  { %v2646_v62 = vpop.permute.xlu1 %2645  ;;  %v2644_v63 = vpop.permute.xlu0 %2643  ;;  %9524 = vmatpush.msra.mxu2 %v3304_v53  ;;  %v9311_v53 = vld [vmem:[%s16661_s0 + $0x2a2] sm:$0xff] }
 0x4b5   :  { %2813 = vst.msk [vmem:[#allocation3 + $0xc8] sm:$0xff] %vm2787_vm7, %v2646_v62  ;;  %v2666_v13 = vpop.permute.xlu2 %2665  ;;  %v9296_v62 = vld [vmem:[%s16661_s0 + $0x1ea] sm:$0xff]  ;;  %3516 = vmatpush.msra.mxu0 %v3303_v54 }
 0x4b6   :  { %2812 = vst.msk [vmem:[#allocation3 + $0xc0] sm:$0xff] %vm2787_vm7, %v2644_v63  ;;  %9525 = vmatpush.msra.mxu2 %v3303_v54 }
 0x4b7   :  { %2823 = vst.msk [vmem:[#allocation3 + $0x118] sm:$0xff] %vm2787_vm7, %v2666_v13 }
 0x4ba   :  { %2990 = vrot.lane.b32.xlu0 %v9268_v7, %s9559_s21  ;;  %2992 = vrot.lane.b32.xlu1 %v9269_v8, %s9559_s21  ;;  %v3302_v7 = vld [vmem:[%s16662_s1 + $0x8] sm:$0xff]  ;;  %v3301_v8 = vld [vmem:[%s16662_s1] sm:$0xff] }
 0x4bb   :  { %2994 = vrot.lane.b32.xlu2 %v9270_v22, %s9559_s21  ;;  %3517 = vmatpush.msra.mxu0 %v3302_v7  ;;  %v9298_v22 = vld [vmem:[%s16661_s0 + $0x202] sm:$0xff] }
 0x4bc   :  { %v2652_v16 = vpop.permute.xlu1 %2651  ;;  %v2650_v17 = vpop.permute.xlu0 %2649  ;;  %9526 = vmatpush.msra.mxu2 %v3302_v7 }
 0x4bd   :  { %2816 = vst.msk [vmem:[#allocation3 + $0xe0] sm:$0xff] %vm2787_vm7, %v2652_v16  ;;  %v2672_v31 = vpop.permute.xlu2 %2671  ;;  %3518 = vmatpush.msra.mxu0 %v3301_v8 }
 0x4be   :  { %2815 = vst.msk [vmem:[#allocation3 + $0xd8] sm:$0xff] %vm2787_vm7, %v2650_v17  ;;  %v9297_v17 = vld [vmem:[%s16661_s0 + $0x1fa] sm:$0xff]  ;;  %9527 = vmatpush.msra.mxu2 %v3301_v8 }
 0x4bf   :  { %2826 = vst.msk [vmem:[#allocation3 + $0x130] sm:$0xff] %vm2787_vm7, %v2672_v31 }
 0x4c2   :  { %2996 = vrot.lane.b32.xlu0 %v9271_v25, %s9559_s21  ;;  %2998 = vrot.lane.b32.xlu1 %v9272_v26, %s9559_s21  ;;  %v9299_v25 = vld [vmem:[%s16661_s0 + $0x212] sm:$0xff] }
 0x4c3   :  { %3000 = vrot.lane.b32.xlu2 %v9273_v43, %s9559_s21 }
 0x4c4   :  { %v2658_v35 = vpop.permute.xlu1 %2657  ;;  %v2656_v36 = vpop.permute.xlu0 %2655 }
 0x4c5   :  { %2819 = vst.msk [vmem:[#allocation3 + $0xf8] sm:$0xff] %vm2787_vm7, %v2658_v35  ;;  %v2678_v20 = vpop.permute.xlu2 %2677 }
 0x4c6   :  { %2818 = vst.msk [vmem:[#allocation3 + $0xf0] sm:$0xff] %vm2787_vm7, %v2656_v36  ;;  %v9301_v36 = vld [vmem:[%s16661_s0 + $0x22a] sm:$0xff] }
 0x4c7   :  { %2829 = vst.msk [vmem:[#allocation3 + $0x148] sm:$0xff] %vm2787_vm7, %v2678_v20  ;;  %v9302_v20 = vld [vmem:[%s16661_s0 + $0x232] sm:$0xff] }
 0x4ca   :  { %3002 = vrot.lane.b32.xlu0 %v9274_v49, %s9559_s21  ;;  %3004 = vrot.lane.b32.xlu1 %v9275_v50, %s9559_s21 }
 0x4cb   :  { %3006 = vrot.lane.b32.xlu2 %v9276_v1, %s9559_s21 }
 0x4cc   :  { %v2664_v58 = vpop.permute.xlu1 %2663  ;;  %v2662_v0 = vpop.permute.xlu0 %2661 }
 0x4cd   :  { %2822 = vst.msk [vmem:[#allocation3 + $0x110] sm:$0xff] %vm2787_vm7, %v2664_v58  ;;  %v2684_v12 = vpop.permute.xlu2 %2683 }
 0x4ce   :  { %2821 = vst.msk [vmem:[#allocation3 + $0x108] sm:$0xff] %vm2787_vm7, %v2662_v0 }
 0x4cf   :  { %2832 = vst.msk [vmem:[#allocation3 + $0x160] sm:$0xff] %vm2787_vm7, %v2684_v12 }
 0x4d2   :  { %3008 = vrot.lane.b32.xlu0 %v9277_v55, %s9559_s21  ;;  %3010 = vrot.lane.b32.xlu1 %v9278_v24, %s9559_s21  ;;  %v9300_v55 = vld [vmem:[%s16661_s0 + $0x21a] sm:$0xff] }
 0x4d3   :  { %3012 = vrot.lane.b32.xlu2 %v9279_v27, %s9559_s21  ;;  %v9304_v27 = vld [vmem:[%s16661_s0 + $0x24a] sm:$0xff] }
 0x4d4   :  { %v2670_v56 = vpop.permute.xlu1 %2669  ;;  %v2668_v21 = vpop.permute.xlu0 %2667 }
 0x4d5   :  { %2825 = vst.msk [vmem:[#allocation3 + $0x128] sm:$0xff] %vm2787_vm7, %v2670_v56  ;;  %v2690_v42 = vpop.permute.xlu2 %2689 }
 0x4d6   :  { %2824 = vst.msk [vmem:[#allocation3 + $0x120] sm:$0xff] %vm2787_vm7, %v2668_v21 }
 0x4d7   :  { %2835 = vst.msk [vmem:[#allocation3 + $0x178] sm:$0xff] %vm2787_vm7, %v2690_v42 }
 0x4da   :  { %3014 = vrot.lane.b32.xlu0 %v9280_v28, %s9559_s21  ;;  %3016 = vrot.lane.b32.xlu1 %v9281_v37, %s9559_s21 }
 0x4db   :  { %3018 = vrot.lane.b32.xlu2 %v9282_v2, %s9559_s21 }
 0x4dc   :  { %v2676_v44 = vpop.permute.xlu1 %2675  ;;  %v2674_v57 = vpop.permute.xlu0 %2673 }
 0x4dd   :  { %2828 = vst.msk [vmem:[#allocation3 + $0x140] sm:$0xff] %vm2787_vm7, %v2676_v44  ;;  %v2696_v18 = vpop.permute.xlu2 %2695 }
 0x4de   :  { %2827 = vst.msk [vmem:[#allocation3 + $0x138] sm:$0xff] %vm2787_vm7, %v2674_v57  ;;  %v9305_v57 = vld [vmem:[%s16661_s0 + $0x25a] sm:$0xff] }
 0x4df   :  { %2838 = vst.msk [vmem:[#allocation3 + $0x190] sm:$0xff] %vm2787_vm7, %v2696_v18 }
 0x4e2   :  { %3020 = vrot.lane.b32.xlu0 %v9283_v3, %s9559_s21  ;;  %3022 = vrot.lane.b32.xlu1 %v9284_v11, %s9559_s21 }
 0x4e3   :  { %3024 = vrot.lane.b32.xlu2 %v9285_v40, %s9559_s21 }
 0x4e4   :  { %v2682_v19 = vpop.permute.xlu1 %2681  ;;  %v2680_v30 = vpop.permute.xlu0 %2679 }
 0x4e5   :  { %2831 = vst.msk [vmem:[#allocation3 + $0x158] sm:$0xff] %vm2787_vm7, %v2682_v19  ;;  %v2702_v6 = vpop.permute.xlu2 %2701  ;;  %v9303_v19 = vld [vmem:[%s16661_s0 + $0x242] sm:$0xff] }
 0x4e6   :  { %2830 = vst.msk [vmem:[#allocation3 + $0x150] sm:$0xff] %vm2787_vm7, %v2680_v30 }
 0x4e7   :  { %2841 = vst.msk [vmem:[#allocation3 + $0x1a8] sm:$0xff] %vm2787_vm7, %v2702_v6  ;;  %v9307_v6 = vld [vmem:[%s16661_s0 + $0x272] sm:$0xff] }
 0x4ea   :  { %3026 = vrot.lane.b32.xlu0 %v9286_v41, %s9559_s21  ;;  %3028 = vrot.lane.b32.xlu1 %v9287_v60, %s9559_s21 }
 0x4eb   :  { %3030 = vrot.lane.b32.xlu2 %v9288_v32, %s9559_s21 }
 0x4ec   :  { %v2688_v9 = vpop.permute.xlu1 %2687  ;;  %v2686_v23 = vpop.permute.xlu0 %2685 }
 0x4ed   :  { %2834 = vst.msk [vmem:[#allocation3 + $0x170] sm:$0xff] %vm2787_vm7, %v2688_v9  ;;  %v2708_v48 = vpop.permute.xlu2 %2707 }
 0x4ee   :  { %2833 = vst.msk [vmem:[#allocation3 + $0x168] sm:$0xff] %vm2787_vm7, %v2686_v23 }
 0x4ef   :  { %2844 = vst.msk [vmem:[#allocation3 + $0x1c0] sm:$0xff] %vm2787_vm7, %v2708_v48 }
 0x4f2   :  { %3032 = vrot.lane.b32.xlu0 %v9289_v61, %s9559_s21  ;;  %3034 = vrot.lane.b32.xlu1 %v9290_v14, %s9559_s21  ;;  %v9308_v61 = vld [vmem:[%s16661_s0 + $0x27a] sm:$0xff] }
 0x4f3   :  { %3036 = vrot.lane.b32.xlu2 %v9291_v39, %s9559_s21  ;;  %v9310_v39 = vld [vmem:[%s16661_s0 + $0x292] sm:$0xff] }
 0x4f4   :  { %v2694_v15 = vpop.permute.xlu1 %2693  ;;  %v2692_v29 = vpop.permute.xlu0 %2691 }
 0x4f5   :  { %2837 = vst.msk [vmem:[#allocation3 + $0x188] sm:$0xff] %vm2787_vm7, %v2694_v15  ;;  %v2714_v38 = vpop.permute.xlu2 %2713 }
 0x4f6   :  { %2836 = vst.msk [vmem:[#allocation3 + $0x180] sm:$0xff] %vm2787_vm7, %v2692_v29 }
 0x4f7   :  { %2847 = vst.msk [vmem:[#allocation3 + $0x1d8] sm:$0xff] %vm2787_vm7, %v2714_v38 }
 0x4fa   :  { %3038 = vrot.lane.b32.xlu0 %v9292_v5, %s9559_s21  ;;  %3040 = vrot.lane.b32.xlu1 %v9293_v34, %s9559_s21 }
 0x4fb   :  { %3042 = vrot.lane.b32.xlu2 %v9294_v4, %s9559_s21  ;;  %v9309_v4 = vld [vmem:[%s16661_s0 + $0x28a] sm:$0xff] }
 0x4fc   :  { %v2700_v47 = vpop.permute.xlu1 %2699  ;;  %v2698_v52 = vpop.permute.xlu0 %2697 }
 0x4fd   :  { %2840 = vst.msk [vmem:[#allocation3 + $0x1a0] sm:$0xff] %vm2787_vm7, %v2700_v47  ;;  %v2720_v63 = vpop.permute.xlu2 %2719 }
 0x4fe   :  { %2839 = vst.msk [vmem:[#allocation3 + $0x198] sm:$0xff] %vm2787_vm7, %v2698_v52 }
 0x4ff   :  { %2850 = vst.msk [vmem:[#allocation3 + $0x1f0] sm:$0xff] %vm2787_vm7, %v2720_v63 }
 0x502   :  { %3044 = vrot.lane.b32.xlu0 %v9295_v59, %s9559_s21  ;;  %3046 = vrot.lane.b32.xlu1 %v9296_v62, %s9559_s21 }
 0x503   :  { %3048 = vrot.lane.b32.xlu2 %v9297_v17, %s9559_s21 }
 0x504   :  { %v2706_v13 = vpop.permute.xlu1 %2705  ;;  %v2704_v16 = vpop.permute.xlu0 %2703 }
 0x505   :  { %2843 = vst.msk [vmem:[#allocation3 + $0x1b8] sm:$0xff] %vm2787_vm7, %v2706_v13  ;;  %v2983_v26 = vpop.permute.xlu2 %2982 }
 0x506   :  { %2842 = vst.msk [vmem:[#allocation3 + $0x1b0] sm:$0xff] %vm2787_vm7, %v2704_v16  ;;  %v9313_v16 = vld [vmem:[%s16661_s0 + $0x2ba] sm:$0xff] }
 0x507   :  { %3174 = vst.msk [vmem:[#allocation3 + $0x8] sm:$0xff] %vm3172_vm8, %v2983_v26  ;;  %v9314_v26 = vld [vmem:[%s16661_s0 + $0x2c2] sm:$0xff] }
 0x50a   :  { %3050 = vrot.lane.b32.xlu0 %v9298_v22, %s9559_s21  ;;  %3052 = vrot.lane.b32.xlu1 %v9299_v25, %s9559_s21 }
 0x50b   :  { %3054 = vrot.lane.b32.xlu2 %v9300_v55, %s9559_s21 }
 0x50c   :  { %v2712_v31 = vpop.permute.xlu1 %2711  ;;  %v2710_v35 = vpop.permute.xlu0 %2709 }
 0x50d   :  { %2846 = vst.msk [vmem:[#allocation3 + $0x1d0] sm:$0xff] %vm2787_vm7, %v2712_v31  ;;  %v2989_v43 = vpop.permute.xlu2 %2988 }
 0x50e   :  { %2845 = vst.msk [vmem:[#allocation3 + $0x1c8] sm:$0xff] %vm2787_vm7, %v2710_v35  ;;  %v3238_v37 = vld [vmem:[#allocation3 + $0x8] sm:$0xff] }
 0x50f   :  { %3177 = vst.msk [vmem:[#allocation3 + $0x20] sm:$0xff] %vm3172_vm8, %v2989_v43 }
 0x512   :  { %3056 = vrot.lane.b32.xlu0 %v9301_v36, %s9559_s21  ;;  %3058 = vrot.lane.b32.xlu1 %v9302_v20, %s9559_s21 }
 0x513   :  { %3060 = vrot.lane.b32.xlu2 %v9303_v19, %s9559_s21 }
 0x514   :  { %v2718_v49 = vpop.permute.xlu1 %2717  ;;  %v2716_v50 = vpop.permute.xlu0 %2715 }
 0x515   :  { %2849 = vst.msk [vmem:[#allocation3 + $0x1e8] sm:$0xff] %vm2787_vm7, %v2718_v49  ;;  %v2995_v58 = vpop.permute.xlu2 %2994 }
 0x516   :  { %2848 = vst.msk [vmem:[#allocation3 + $0x1e0] sm:$0xff] %vm2787_vm7, %v2716_v50  ;;  %v3241_v32 = vld [vmem:[#allocation3 + $0x20] sm:$0xff]  ;;  %v9312_v50 = vld [vmem:[%s16661_s0 + $0x2aa] sm:$0xff] }
 0x517   :  { %3180 = vst.msk [vmem:[#allocation3 + $0x38] sm:$0xff] %vm3172_vm8, %v2995_v58 }
 0x51a   :  { %3062 = vrot.lane.b32.xlu0 %v9304_v27, %s9559_s21  ;;  %3064 = vrot.lane.b32.xlu1 %v9305_v57, %s9559_s21 }
 0x51b   :  { %3066 = vrot.lane.b32.xlu2 %v9306_v51, %s9559_s21 }
 0x51c   :  { %v2981_v0 = vpop.permute.xlu1 %2980  ;;  %v2722_v1 = vpop.permute.xlu0 %2721 }
 0x51d   :  { %3173 = vst.msk [vmem:[#allocation3] sm:$0xff] %vm3172_vm8, %v2981_v0  ;;  %v3001_v24 = vpop.permute.xlu2 %3000 }
 0x51e   :  { %2851 = vst.msk [vmem:[#allocation3 + $0x1f8] sm:$0xff] %vm2787_vm7, %v2722_v1  ;;  %v3244_v47 = vld [vmem:[#allocation3 + $0x38] sm:$0xff] }
 0x51f   :  { %3183 = vst.msk [vmem:[#allocation3 + $0x50] sm:$0xff] %vm3172_vm8, %v3001_v24  ;;  %v9316_v1 = vld [vmem:[%s16661_s0 + $0x2da] sm:$0xff] }
 0x522   :  { %3068 = vrot.lane.b32.xlu0 %v9307_v6, %s9559_s21  ;;  %3070 = vrot.lane.b32.xlu1 %v9308_v61, %s9559_s21 }
 0x523   :  { %3072 = vrot.lane.b32.xlu2 %v9309_v4, %s9559_s21 }
 0x524   :  { %v2985_v12 = vpop.permute.xlu0 %2984  ;;  %v3237_v56 = vld [vmem:[#allocation3] sm:$0xff]  ;;  %v2987_v21 = vpop.permute.xlu1 %2986 }
 0x525   :  { %3175 = vst.msk [vmem:[#allocation3 + $0x10] sm:$0xff] %vm3172_vm8, %v2985_v12  ;;  %9327 = vmatmul.msk.f32.vlgmr.msra.gmra.mxu0 %vm3310_vm9, %v3237_v56  ;;  %v3007_v28 = vpop.permute.xlu2 %3006  ;;  %v9317_v56 = vld [vmem:[%s16661_s0 + $0x2ea] sm:$0xff] }
 0x526   :  { %3176 = vst.msk [vmem:[#allocation3 + $0x18] sm:$0xff] %vm3172_vm8, %v2987_v21  ;;  %v3247_v22 = vld [vmem:[#allocation3 + $0x50] sm:$0xff] }
 0x527   :  { %3186 = vst.msk [vmem:[#allocation3 + $0x68] sm:$0xff] %vm3172_vm8, %v3007_v28 }
 0x52a   :  { %3074 = vrot.lane.b32.xlu0 %v9310_v39, %s9559_s21  ;;  %3076 = vrot.lane.b32.xlu1 %v9311_v53, %s9559_s21 }
 0x52b   :  { %3078 = vrot.lane.b32.xlu2 %v9312_v50, %s9559_s21 }
 0x52c   :  { %v2991_v42 = vpop.permute.xlu0 %2990  ;;  %v2993_v44 = vpop.permute.xlu1 %2992  ;;  %v3239_v11 = vld [vmem:[#allocation3 + $0x10] sm:$0xff] }
 0x52d   :  { %3178 = vst.msk [vmem:[#allocation3 + $0x28] sm:$0xff] %vm3172_vm8, %v2991_v42  ;;  %9328 = vmatmul.msk.f32.gmra.mxu0 %vm3310_vm9, %v3238_v37  ;;  %v3013_v2 = vpop.permute.xlu2 %3012  ;;  %v3240_v41 = vld [vmem:[#allocation3 + $0x18] sm:$0xff] }
 0x52e   :  { %3179 = vst.msk [vmem:[#allocation3 + $0x30] sm:$0xff] %vm3172_vm8, %v2993_v44  ;;  %v3250_v24 = vld [vmem:[#allocation3 + $0x68] sm:$0xff]  ;;  %v9315_v37 = vld [vmem:[%s16661_s0 + $0x2d2] sm:$0xff] }
 0x52f   :  { %3189 = vst.msk [vmem:[#allocation3 + $0x80] sm:$0xff] %vm3172_vm8, %v3013_v2  ;;  %v9319_v2 = vld [vmem:[%s16661_s0 + $0x302] sm:$0xff] }
 0x532   :  { %3080 = vrot.lane.b32.xlu0 %v9313_v16, %s9559_s21  ;;  %3082 = vrot.lane.b32.xlu1 %v9314_v26, %s9559_s21 }
 0x533   :  { %3084 = vrot.lane.b32.xlu2 %v9315_v37, %s9559_s21 }
 0x534   :  { %v2997_v3 = vpop.permute.xlu0 %2996  ;;  %v2999_v18 = vpop.permute.xlu1 %2998  ;;  %v3242_v15 = vld [vmem:[#allocation3 + $0x28] sm:$0xff] }
 0x535   :  { %3181 = vst.msk [vmem:[#allocation3 + $0x40] sm:$0xff] %vm3172_vm8, %v2997_v3  ;;  %9329 = vmatmul.msk.f32.gmra.mxu0 %vm3310_vm9, %v3239_v11  ;;  %v3019_v30 = vpop.permute.xlu2 %3018  ;;  %v3243_v34 = vld [vmem:[#allocation3 + $0x30] sm:$0xff] }
 0x536   :  { %3182 = vst.msk [vmem:[#allocation3 + $0x48] sm:$0xff] %vm3172_vm8, %v2999_v18  ;;  %v3253_v18 = vld [vmem:[#allocation3 + $0x80] sm:$0xff] }
 0x537   :  { %3192 = vst.msk [vmem:[#allocation3 + $0x98] sm:$0xff] %vm3172_vm8, %v3019_v30  ;;  %v9320_v30 = vld [vmem:[%s16661_s0 + $0x30a] sm:$0xff] }
 0x53a   :  { %3086 = vrot.lane.b32.xlu0 %v9316_v1, %s9559_s21  ;;  %3088 = vrot.lane.b32.xlu1 %v9317_v56, %s9559_s21 }
 0x53c   :  { %v3003_v40 = vpop.permute.xlu0 %3002  ;;  %v3005_v60 = vpop.permute.xlu1 %3004  ;;  %v3245_v62 = vld [vmem:[#allocation3 + $0x40] sm:$0xff] }
 0x53d   :  { %3184 = vst.msk [vmem:[#allocation3 + $0x58] sm:$0xff] %vm3172_vm8, %v3003_v40  ;;  %9330 = vmatmul.msk.f32.gmra.mxu0 %vm3310_vm9, %v3240_v41  ;;  %v3025_v9 = vpop.permute.xlu2 %3024  ;;  %v3246_v8 = vld [vmem:[#allocation3 + $0x48] sm:$0xff] }
 0x53e   :  { %3185 = vst.msk [vmem:[#allocation3 + $0x60] sm:$0xff] %vm3172_vm8, %v3005_v60 }
 0x53f   :  { %3195 = vst.msk [vmem:[#allocation3 + $0xb0] sm:$0xff] %vm3172_vm8, %v3025_v9  ;;  %v9318_v9 = vld [vmem:[%s16661_s0 + $0x2f2] sm:$0xff] }
 0x540   :  { %3090 = vrot.lane.b32.xlu2 %v9318_v9, %s9559_s21 }
 0x542   :  { %3092 = vrot.lane.b32.xlu0 %v9319_v2, %s9559_s21  ;;  %3094 = vrot.lane.b32.xlu1 %v9320_v30, %s9559_s21 }
 0x544   :  { %v3009_v23 = vpop.permute.xlu0 %3008  ;;  %v3011_v33 = vpop.permute.xlu1 %3010  ;;  %v3248_v35 = vld [vmem:[#allocation3 + $0x58] sm:$0xff] }
 0x545   :  { %3187 = vst.msk [vmem:[#allocation3 + $0x70] sm:$0xff] %vm3172_vm8, %v3009_v23  ;;  %9331 = vmatmul.msk.f32.gmra.mxu0 %vm3310_vm9, %v3241_v32  ;;  %v3031_v14 = vpop.permute.xlu2 %3030  ;;  %v3249_v58 = vld [vmem:[#allocation3 + $0x60] sm:$0xff] }
 0x546   :  { %3188 = vst.msk [vmem:[#allocation3 + $0x78] sm:$0xff] %vm3172_vm8, %v3011_v33 }
 0x547   :  { %3198 = vst.msk [vmem:[#allocation3 + $0xc8] sm:$0xff] %vm3172_vm8, %v3031_v14  ;;  %v9322_v14 = vld [vmem:[%s16661_s0 + $0x322] sm:$0xff] }
 0x54a   :  { %3098 = vrot.lane.b32.xlu0 %v9322_v14, %s9559_s21 }
 0x54c   :  { %v3015_v48 = vpop.permute.xlu0 %3014  ;;  %v3017_v29 = vpop.permute.xlu1 %3016  ;;  %v3251_v27 = vld [vmem:[#allocation3 + $0x70] sm:$0xff] }
 0x54d   :  { %3190 = vst.msk [vmem:[#allocation3 + $0x88] sm:$0xff] %vm3172_vm8, %v3015_v48  ;;  %9332 = vmatmul.msk.f32.gmra.mxu0 %vm3310_vm9, %v3242_v15  ;;  %v3037_v10 = vpop.permute.xlu2 %3036  ;;  %v3252_v44 = vld [vmem:[#allocation3 + $0x78] sm:$0xff] }
 0x54e   :  { %3191 = vst.msk [vmem:[#allocation3 + $0x90] sm:$0xff] %vm3172_vm8, %v3017_v29  ;;  %v3256_v29 = vld [vmem:[#allocation3 + $0x98] sm:$0xff] }
 0x54f   :  { %3201 = vst.msk [vmem:[#allocation3 + $0xe0] sm:$0xff] %vm3172_vm8, %v3037_v10  ;;  %v9323_v10 = vld [vmem:[%s16661_s0 + $0x332] sm:$0xff] }
 0x550   :  { %3100 = vrot.lane.b32.xlu1 %v9323_v10, %s9559_s21 }
 0x554   :  { %v3021_v5 = vpop.permute.xlu0 %3020  ;;  %v3023_v38 = vpop.permute.xlu1 %3022  ;;  %v3254_v60 = vld [vmem:[#allocation3 + $0x88] sm:$0xff] }
 0x555   :  { %3193 = vst.msk [vmem:[#allocation3 + $0xa0] sm:$0xff] %vm3172_vm8, %v3021_v5  ;;  %9333 = vmatmul.msk.f32.gmra.mxu0 %vm3310_vm9, %v3243_v34  ;;  %v3043_v45 = vpop.permute.xlu2 %3042  ;;  %v3255_v33 = vld [vmem:[#allocation3 + $0x90] sm:$0xff] }
 0x556   :  { %3194 = vst.msk [vmem:[#allocation3 + $0xa8] sm:$0xff] %vm3172_vm8, %v3023_v38  ;;  %v3265_v37 = vld [vmem:[#allocation3 + $0xe0] sm:$0xff] }
 0x557   :  { %3204 = vst.msk [vmem:[#allocation3 + $0xf8] sm:$0xff] %vm3172_vm8, %v3043_v45  ;;  %v9321_v45 = vld [vmem:[%s16661_s0 + $0x31a] sm:$0xff] }
 0x558   :  { %3096 = vrot.lane.b32.xlu2 %v9321_v45, %s9559_s21 }
 0x55c   :  { %v3027_v46 = vpop.permute.xlu0 %3026  ;;  %v3029_v52 = vpop.permute.xlu1 %3028  ;;  %v3257_v38 = vld [vmem:[#allocation3 + $0xa0] sm:$0xff] }
 0x55d   :  { %3196 = vst.msk [vmem:[#allocation3 + $0xb8] sm:$0xff] %vm3172_vm8, %v3027_v46  ;;  %9334 = vmatmul.msk.f32.gmra.mxu0 %vm3310_vm9, %v3244_v47  ;;  %v3049_v54 = vpop.permute.xlu2 %3048 }
 0x55e   :  { %3197 = vst.msk [vmem:[#allocation3 + $0xc0] sm:$0xff] %vm3172_vm8, %v3029_v52  ;;  %v3258_v52 = vld [vmem:[#allocation3 + $0xa8] sm:$0xff] }
 0x55f   :  { %3207 = vst.msk [vmem:[#allocation3 + $0x110] sm:$0xff] %vm3172_vm8, %v3049_v54  ;;  %v9325_v54 = vld [vmem:[%s16661_s0 + $0x34a] sm:$0xff] }
 0x560   :  { %3104 = vrot.lane.b32.xlu0 %v9325_v54, %s9559_s21 }
 0x564   :  { %v3033_v59 = vpop.permute.xlu0 %3032  ;;  %v3035_v63 = vpop.permute.xlu1 %3034  ;;  %v3260_v16 = vld [vmem:[#allocation3 + $0xb8] sm:$0xff] }
 0x565   :  { %3199 = vst.msk [vmem:[#allocation3 + $0xd0] sm:$0xff] %vm3172_vm8, %v3033_v59  ;;  %9335 = vmatmul.msk.f32.gmra.mxu0 %vm3310_vm9, %v3245_v62  ;;  %v3055_v31 = vpop.permute.xlu2 %3054 }
 0x566   :  { %3200 = vst.msk [vmem:[#allocation3 + $0xd8] sm:$0xff] %vm3172_vm8, %v3035_v63  ;;  %v3271_v55 = vld [vmem:[#allocation3 + $0x110] sm:$0xff] }
 0x567   :  { %3210 = vst.msk [vmem:[#allocation3 + $0x128] sm:$0xff] %vm3172_vm8, %v3055_v31  ;;  %v3259_v63 = vld [vmem:[#allocation3 + $0xb0] sm:$0xff]  ;;  %v3261_v31 = vld [vmem:[#allocation3 + $0xc0] sm:$0xff] }
 0x56c   :  { %v3039_v7 = vpop.permute.xlu0 %3038  ;;  %v3041_v13 = vpop.permute.xlu1 %3040 }
 0x56d   :  { %3202 = vst.msk [vmem:[#allocation3 + $0xe8] sm:$0xff] %vm3172_vm8, %v3039_v7  ;;  %9336 = vmatmul.msk.f32.gmra.mxu0 %vm3310_vm9, %v3246_v8  ;;  %v3061_v28 = vpop.permute.xlu2 %3060  ;;  %v9326_v7 = vld [vmem:[%s16661_s0 + $0x352] sm:$0xff] }
 0x56e   :  { %3203 = vst.msk [vmem:[#allocation3 + $0xf0] sm:$0xff] %vm3172_vm8, %v3041_v13  ;;  %v3274_v11 = vld [vmem:[#allocation3 + $0x128] sm:$0xff]  ;;  %3106 = vrot.lane.b32.xlu1 %v9326_v7, %s9559_s21 }
 0x56f   :  { %3213 = vst.msk [vmem:[#allocation3 + $0x140] sm:$0xff] %vm3172_vm8, %v3061_v28 }
 0x574   :  { %v3045_v17 = vpop.permute.xlu0 %3044  ;;  %v3047_v25 = vpop.permute.xlu1 %3046 }
 0x575   :  { %3205 = vst.msk [vmem:[#allocation3 + $0x100] sm:$0xff] %vm3172_vm8, %v3045_v17  ;;  %9337 = vmatmul.msk.f32.gmra.mxu0 %vm3310_vm9, %v3247_v22  ;;  %v3067_v6 = vpop.permute.xlu2 %3066  ;;  %v9324_v22 = vld [vmem:[%s16661_s0 + $0x33a] sm:$0xff] }
 0x576   :  { %3206 = vst.msk [vmem:[#allocation3 + $0x108] sm:$0xff] %vm3172_vm8, %v3047_v25  ;;  %v3277_v15 = vld [vmem:[#allocation3 + $0x140] sm:$0xff]  ;;  %3102 = vrot.lane.b32.xlu2 %v9324_v22, %s9559_s21 }
 0x577   :  { %3216 = vst.msk [vmem:[#allocation3 + $0x158] sm:$0xff] %vm3172_vm8, %v3067_v6 }
 0x57c   :  { %v3269_v36 = vld [vmem:[#allocation3 + $0x100] sm:$0xff]  ;;  %v3051_v43 = vpop.permute.xlu0 %3050  ;;  %v3053_v49 = vpop.permute.xlu1 %3052 }
 0x57d   :  { %9338 = vmatmul.msk.f32.gmra.mxu0 %vm3310_vm9, %v3248_v35  ;;  %9359 = vmatmul.msk.f32.vlgmr.msra.gmra.mxu2 %vm3310_vm9, %v3269_v36  ;;  %3208 = vst.msk [vmem:[#allocation3 + $0x118] sm:$0xff] %vm3172_vm8, %v3051_v43  ;;  %v3270_v20 = vld [vmem:[#allocation3 + $0x108] sm:$0xff]  ;;  %v3073_v39 = vpop.permute.xlu2 %3072 }
 0x57e   :  { %3209 = vst.msk [vmem:[#allocation3 + $0x120] sm:$0xff] %vm3172_vm8, %v3053_v49  ;;  %v3280_v62 = vld [vmem:[#allocation3 + $0x158] sm:$0xff]  ;;  %v3262_v49 = vld [vmem:[#allocation3 + $0xc8] sm:$0xff] }
 0x57f   :  { %3219 = vst.msk [vmem:[#allocation3 + $0x170] sm:$0xff] %vm3172_vm8, %v3073_v39 }
 0x584   :  { %v3057_v0 = vpop.permute.xlu0 %3056  ;;  %v3059_v12 = vpop.permute.xlu1 %3058  ;;  %v3272_v21 = vld [vmem:[#allocation3 + $0x118] sm:$0xff] }
 0x585   :  { %9339 = vmatmul.msk.f32.gmra.mxu0 %vm3310_vm9, %v3249_v58  ;;  %9360 = vmatmul.msk.f32.gmra.mxu2 %vm3310_vm9, %v3270_v20  ;;  %3211 = vst.msk [vmem:[#allocation3 + $0x130] sm:$0xff] %vm3172_vm8, %v3057_v0  ;;  %v3273_v42 = vld [vmem:[#allocation3 + $0x120] sm:$0xff]  ;;  %v3079_v17 = vpop.permute.xlu2 %3078  ;;  %v3263_v0 = vld [vmem:[#allocation3 + $0xd0] sm:$0xff] }
 0x586   :  { %3212 = vst.msk [vmem:[#allocation3 + $0x138] sm:$0xff] %vm3172_vm8, %v3059_v12  ;;  %v3283_v43 = vld [vmem:[#allocation3 + $0x170] sm:$0xff]  ;;  %v3264_v12 = vld [vmem:[#allocation3 + $0xd8] sm:$0xff] }
 0x587   :  { %3222 = vst.msk [vmem:[#allocation3 + $0x188] sm:$0xff] %vm3172_vm8, %v3079_v17 }
 0x58c   :  { %v3063_v57 = vpop.permute.xlu0 %3062  ;;  %v3065_v19 = vpop.permute.xlu1 %3064  ;;  %v3275_v41 = vld [vmem:[#allocation3 + $0x130] sm:$0xff] }
 0x58d   :  { %9340 = vmatmul.msk.f32.gmra.mxu0 %vm3310_vm9, %v3250_v24  ;;  %9361 = vmatmul.msk.f32.gmra.mxu2 %vm3310_vm9, %v3271_v55  ;;  %3214 = vst.msk [vmem:[#allocation3 + $0x148] sm:$0xff] %vm3172_vm8, %v3063_v57  ;;  %v3276_v32 = vld [vmem:[#allocation3 + $0x138] sm:$0xff]  ;;  %v3085_v1 = vpop.permute.xlu2 %3084 }
 0x58e   :  { %3215 = vst.msk [vmem:[#allocation3 + $0x150] sm:$0xff] %vm3172_vm8, %v3065_v19  ;;  %v3286_v28 = vld [vmem:[#allocation3 + $0x188] sm:$0xff] }
 0x58f   :  { %3225 = vst.msk [vmem:[#allocation3 + $0x1a0] sm:$0xff] %vm3172_vm8, %v3085_v1 }
 0x594   :  { %v3069_v61 = vpop.permute.xlu0 %3068  ;;  %v3071_v51 = vpop.permute.xlu1 %3070  ;;  %v3278_v34 = vld [vmem:[#allocation3 + $0x148] sm:$0xff] }
 0x595   :  { %9341 = vmatmul.msk.f32.gmra.mxu0 %vm3310_vm9, %v3251_v27  ;;  %9362 = vmatmul.msk.f32.gmra.mxu2 %vm3310_vm9, %v3272_v21  ;;  %3217 = vst.msk [vmem:[#allocation3 + $0x160] sm:$0xff] %vm3172_vm8, %v3069_v61  ;;  %v3279_v47 = vld [vmem:[#allocation3 + $0x150] sm:$0xff]  ;;  %v3268_v61 = vld [vmem:[#allocation3 + $0xf8] sm:$0xff] }
 0x596   :  { %3218 = vst.msk [vmem:[#allocation3 + $0x168] sm:$0xff] %vm3172_vm8, %v3071_v51 }
 0x59c   :  { %v3075_v53 = vpop.permute.xlu0 %3074  ;;  %v3077_v4 = vpop.permute.xlu1 %3076  ;;  %v3281_v13 = vld [vmem:[#allocation3 + $0x160] sm:$0xff] }
 0x59d   :  { %9342 = vmatmul.msk.f32.gmra.mxu0 %vm3310_vm9, %v3252_v44  ;;  %9363 = vmatmul.msk.f32.gmra.mxu2 %vm3310_vm9, %v3273_v42  ;;  %3220 = vst.msk [vmem:[#allocation3 + $0x178] sm:$0xff] %vm3172_vm8, %v3075_v53  ;;  %v3282_v26 = vld [vmem:[#allocation3 + $0x168] sm:$0xff] }
 0x59e   :  { %3221 = vst.msk [vmem:[#allocation3 + $0x180] sm:$0xff] %vm3172_vm8, %v3077_v4 }
 0x5a2   :  { %v12471_v3 = vpop.f32.mrf.mxu0 }
 0x5a4   :  { %v3081_v35 = vpop.permute.xlu0 %3080  ;;  %v3083_v50 = vpop.permute.xlu1 %3082  ;;  %v3284_v58 = vld [vmem:[#allocation3 + $0x178] sm:$0xff] }
 0x5a5   :  { %9343 = vmatmul.msk.f32.gmra.mxu0 %vm3310_vm9, %v3253_v18  ;;  %9364 = vmatmul.msk.f32.gmra.mxu2 %vm3310_vm9, %v3274_v11  ;;  %3223 = vst.msk [vmem:[#allocation3 + $0x190] sm:$0xff] %vm3172_vm8, %v3081_v35  ;;  %v3285_v24 = vld [vmem:[#allocation3 + $0x180] sm:$0xff]  ;;  %v3266_v11 = vld [vmem:[#allocation3 + $0xe8] sm:$0xff]  ;;  %v3091_v18 = vpop.permute.xlu2 %3090 }
 0x5a6   :  { %3224 = vst.msk [vmem:[#allocation3 + $0x198] sm:$0xff] %vm3172_vm8, %v3083_v50 }
 0x5a7   :  { %3228 = vst.msk [vmem:[#allocation3 + $0x1b8] sm:$0xff] %vm3172_vm8, %v3091_v18 }
 0x5aa   :  { %v12480_v40 = vpop.f32.mrf.mxu0 }
 0x5ac   :  { %v3087_v56 = vpop.permute.xlu0 %3086  ;;  %v3089_v42 = vpop.permute.xlu1 %3088  ;;  %v3287_v2 = vld [vmem:[#allocation3 + $0x190] sm:$0xff] }
 0x5ad   :  { %9344 = vmatmul.msk.f32.gmra.mxu0 %vm3310_vm9, %v3254_v60  ;;  %9365 = vmatmul.msk.f32.gmra.mxu2 %vm3310_vm9, %v3275_v41  ;;  %3226 = vst.msk [vmem:[#allocation3 + $0x1a8] sm:$0xff] %vm3172_vm8, %v3087_v56  ;;  %v3288_v41 = vld [vmem:[#allocation3 + $0x198] sm:$0xff]  ;;  %v3267_v60 = vld [vmem:[#allocation3 + $0xf0] sm:$0xff]  ;;  %v3715_v56 = vsel %vm90_vm0, %v12480_v40, 0.0 }
 0x5ae   :  { %3227 = vst.msk [vmem:[#allocation3 + $0x1b0] sm:$0xff] %vm3172_vm8, %v3089_v42  ;;  %v3292_v53 = vld [vmem:[#allocation3 + $0x1b8] sm:$0xff] }
 0x5b2   :  { %v12489_v23 = vpop.f32.mrf.mxu0  ;;  %v3097_v10 = vpop.permute.xlu2 %3096 }
 0x5b3   :  { %3231 = vst.msk [vmem:[#allocation3 + $0x1d0] sm:$0xff] %vm3172_vm8, %v3097_v10 }
 0x5b4   :  { %v3093_v6 = vpop.permute.xlu0 %3092  ;;  %v3095_v14 = vpop.permute.xlu1 %3094  ;;  %v3290_v51 = vld [vmem:[#allocation3 + $0x1a8] sm:$0xff] }
 0x5b5   :  { %9345 = vmatmul.msk.f32.gmra.mxu0 %vm3310_vm9, %v3255_v33  ;;  %9366 = vmatmul.msk.f32.gmra.mxu2 %vm3310_vm9, %v3276_v32  ;;  %3229 = vst.msk [vmem:[#allocation3 + $0x1c0] sm:$0xff] %vm3172_vm8, %v3093_v6  ;;  %v3289_v33 = vld [vmem:[#allocation3 + $0x1a0] sm:$0xff]  ;;  %v3291_v39 = vld [vmem:[#allocation3 + $0x1b0] sm:$0xff] }
 0x5b6   :  { %3230 = vst.msk [vmem:[#allocation3 + $0x1c8] sm:$0xff] %vm3172_vm8, %v3095_v14 }
 0x5ba   :  { %v12498_v48 = vpop.f32.mrf.mxu0  ;;  %v3295_v35 = vld [vmem:[#allocation3 + $0x1d0] sm:$0xff] }
 0x5bc   :  { %v3099_v45 = vpop.permute.xlu0 %3098  ;;  %v3293_v4 = vld [vmem:[#allocation3 + $0x1c0] sm:$0xff] }
 0x5bd   :  { %9346 = vmatmul.msk.f32.gmra.mxu0 %vm3310_vm9, %v3256_v29  ;;  %9367 = vmatmul.msk.f32.gmra.mxu2 %vm3310_vm9, %v3277_v15  ;;  %3232 = vst.msk [vmem:[#allocation3 + $0x1d8] sm:$0xff] %vm3172_vm8, %v3099_v45  ;;  %v3294_v17 = vld [vmem:[#allocation3 + $0x1c8] sm:$0xff] }
 0x5c2   :  { %v12507_v5 = vpop.f32.mrf.mxu0  ;;  %v3101_v54 = vpop.permute.xlu1 %3100 }
 0x5c3   :  { %3233 = vst.msk [vmem:[#allocation3 + $0x1e0] sm:$0xff] %vm3172_vm8, %v3101_v54 }
 0x5c5   :  { %9347 = vmatmul.msk.f32.gmra.mxu0 %vm3310_vm9, %v3257_v38  ;;  %9368 = vmatmul.msk.f32.gmra.mxu2 %vm3310_vm9, %v3278_v34 }
 0x5ca   :  { %v12516_v46 = vpop.f32.mrf.mxu0 }
 0x5cd   :  { %9348 = vmatmul.msk.f32.gmra.mxu0 %vm3310_vm9, %v3258_v52  ;;  %9369 = vmatmul.msk.f32.gmra.mxu2 %vm3310_vm9, %v3279_v47 }
 0x5d0   :  { %v3103_v7 = vpop.permute.xlu2 %3102 }
 0x5d1   :  { %3234 = vst.msk [vmem:[#allocation3 + $0x1e8] sm:$0xff] %vm3172_vm8, %v3103_v7 }
 0x5d2   :  { %v12525_v59 = vpop.f32.mrf.mxu0  ;;  %v3105_v22 = vpop.permute.xlu0 %3104 }
 0x5d3   :  { %3235 = vst.msk [vmem:[#allocation3 + $0x1f0] sm:$0xff] %vm3172_vm8, %v3105_v22  ;;  %v3725_v14 = vsel %vm90_vm0, %v12525_v59, 0.0 }
 0x5d5   :  { %9349 = vmatmul.msk.f32.gmra.mxu0 %vm3310_vm9, %v3259_v63  ;;  %9370 = vmatmul.msk.f32.gmra.mxu2 %vm3310_vm9, %v3280_v62 }
 0x5da   :  { %v12534_v8 = vpop.f32.mrf.mxu0  ;;  %v3299_v54 = vld [vmem:[#allocation3 + $0x1f0] sm:$0xff] }
 0x5dd   :  { %9350 = vmatmul.msk.f32.gmra.mxu0 %vm3310_vm9, %v3260_v16  ;;  %9371 = vmatmul.msk.f32.gmra.mxu2 %vm3310_vm9, %v3281_v13 }
 0x5e2   :  { %v12542_v25 = vpop.f32.mrf.mxu0 }
 0x5e5   :  { %9351 = vmatmul.msk.f32.gmra.mxu0 %vm3310_vm9, %v3261_v31  ;;  %9372 = vmatmul.msk.f32.gmra.mxu2 %vm3310_vm9, %v3282_v26 }
 0x5ea   :  { %v12548_v36 = vpop.f32.mrf.mxu0 }
 0x5ed   :  { %9352 = vmatmul.msk.f32.gmra.mxu0 %vm3310_vm9, %v3262_v49  ;;  %9373 = vmatmul.msk.f32.gmra.mxu2 %vm3310_vm9, %v3283_v43  ;;  %v3107_v43 = vpop.permute.xlu1 %3106 }
 0x5ee   :  { %3236 = vst.msk [vmem:[#allocation3 + $0x1f8] sm:$0xff] %vm3172_vm8, %v3107_v43 }
 0x5f2   :  { %v12553_v20 = vpop.f32.mrf.mxu0 }
 0x5f5   :  { %9353 = vmatmul.msk.f32.gmra.mxu0 %vm3310_vm9, %v3263_v0  ;;  %9374 = vmatmul.msk.f32.gmra.mxu2 %vm3310_vm9, %v3284_v58  ;;  %v3296_v58 = vld [vmem:[#allocation3 + $0x1d8] sm:$0xff] }
 0x5fa   :  { %v12558_v55 = vpop.f32.mrf.mxu0 }
 0x5fd   :  { %9354 = vmatmul.msk.f32.gmra.mxu0 %vm3310_vm9, %v3264_v12  ;;  %9375 = vmatmul.msk.f32.gmra.mxu2 %vm3310_vm9, %v3285_v24  ;;  %v3297_v24 = vld [vmem:[#allocation3 + $0x1e0] sm:$0xff]  ;;  %v3714_v12 = vsel %vm90_vm0, %v12471_v3, 0.0 }
 0x600   :  { %v12563_v21 = vpop.f32.mrf.mxu2 }
 0x602   :  { %v12565_v27 = vpop.f32.mrf.mxu0 }
 0x605   :  { %9355 = vmatmul.msk.f32.gmra.mxu0 %vm3310_vm9, %v3265_v37  ;;  %9376 = vmatmul.msk.f32.gmra.mxu2 %vm3310_vm9, %v3286_v28  ;;  %v3717_v28 = vsel %vm90_vm0, %v12489_v23, 0.0  ;;  %v3716_v37 = vadd.f32 %v3715_v56, %v3714_v12 }
 0x608   :  { %v12570_v44 = vpop.f32.mrf.mxu2 }
 0x609   :  { %16757 = vst [vmem:[#allocation4_spill] sm:$0xff] %v12570_v44 }
 0x60a   :  { %v12572_v57 = vpop.f32.mrf.mxu0 }
 0x60d   :  { %9356 = vmatmul.msk.f32.gmra.mxu0 %vm3310_vm9, %v3266_v11  ;;  %9377 = vmatmul.msk.f32.gmra.mxu2 %vm3310_vm9, %v3287_v2  ;;  %v3719_v2 = vsel %vm90_vm0, %v12498_v48, 0.0  ;;  %v3718_v11 = vadd.f32 %v3717_v28, %v3716_v37  ;;  %v3300_v28 = vld [vmem:[#allocation3 + $0x1f8] sm:$0xff]  ;;  %v3737_v37 = vsel %vm90_vm0, %v12565_v27, 0.0 }
 0x60f   :  { %v3720_v6 = vadd.f32 %v3719_v2, %v3718_v11  ;;  %v3739_v11 = vsel %vm90_vm0, %v12572_v57, 0.0 }
 0x610   :  { %v12577_v19 = vpop.f32.mrf.mxu2 }
 0x612   :  { %v12579_v30 = vpop.f32.mrf.mxu0 }
 0x615   :  { %9357 = vmatmul.msk.f32.gmra.mxu0 %vm3310_vm9, %v3267_v60  ;;  %9378 = vmatmul.msk.f32.gmra.mxu2 %vm3310_vm9, %v3288_v41  ;;  %v3298_v41 = vld [vmem:[#allocation3 + $0x1e8] sm:$0xff]  ;;  %v3721_v60 = vsel %vm90_vm0, %v12507_v5, 0.0 }
 0x618   :  { %v12584_v9 = vpop.f32.mrf.mxu2 }
 0x61a   :  { %v12586_v32 = vpop.f32.mrf.mxu0 }
 0x61d   :  { %9358 = vmatmul.msk.f32.gmra.mxu0 %vm3310_vm9, %v3268_v61  ;;  %9379 = vmatmul.msk.f32.gmra.mxu2 %vm3310_vm9, %v3289_v33  ;;  %v3723_v33 = vsel %vm90_vm0, %v12516_v46, 0.0  ;;  %v3722_v61 = vadd.f32 %v3721_v60, %v3720_v6  ;;  %v3741_v60 = vsel %vm90_vm0, %v12579_v30, 0.0 }
 0x620   :  { %v12591_v15 = vpop.f32.mrf.mxu2 }
 0x622   :  { %v12593_v29 = vpop.f32.mrf.mxu0 }
 0x625   :  { %9380 = vmatmul.msk.f32.gmra.mxu2 %vm3310_vm9, %v3290_v51  ;;  %v3724_v51 = vadd.f32 %v3723_v33, %v3722_v61  ;;  %v3743_v61 = vsel %vm90_vm0, %v12586_v32, 0.0 }
 0x627   :  { %v3726_v45 = vadd.f32 %v3725_v14, %v3724_v51 }
 0x628   :  { %v12597_v34 = vpop.f32.mrf.mxu2 }
 0x629   :  { %16758 = vst [vmem:[#allocation5_spill] sm:$0xff] %v12597_v34 }
 0x62a   :  { %v12599_v38 = vpop.f32.mrf.mxu0 }
 0x62d   :  { %9381 = vmatmul.msk.f32.gmra.mxu2 %vm3310_vm9, %v3291_v39  ;;  %v3727_v39 = vsel %vm90_vm0, %v12534_v8, 0.0 }
 0x62e   :  { %v3728_v7 = vadd.f32 %v3727_v39, %v3726_v45  ;;  %v3745_v39 = vsel %vm90_vm0, %v12593_v29, 0.0 }
 0x630   :  { %v12603_v47 = vpop.f32.mrf.mxu2 }
 0x632   :  { %v12605_v52 = vpop.f32.mrf.mxu0 }
 0x635   :  { %9382 = vmatmul.msk.f32.gmra.mxu2 %vm3310_vm9, %v3292_v53 }
 0x638   :  { %v12609_v62 = vpop.f32.mrf.mxu2 }
 0x63a   :  { %v12611_v63 = vpop.f32.mrf.mxu0 }
 0x63d   :  { %9383 = vmatmul.msk.f32.gmra.mxu2 %vm3310_vm9, %v3293_v4  ;;  %v3729_v4 = vsel %vm90_vm0, %v12542_v25, 0.0 }
 0x63e   :  { %v3730_v22 = vadd.f32 %v3729_v4, %v3728_v7  ;;  %v3749_v7 = vsel %vm90_vm0, %v12605_v52, 0.0 }
 0x640   :  { %v12615_v13 = vpop.f32.mrf.mxu2 }
 0x641   :  { %16759 = vst [vmem:[#allocation6_spill] sm:$0xff] %v12615_v13 }
 0x642   :  { %v12617_v16 = vpop.f32.mrf.mxu0 }
 0x645   :  { %9384 = vmatmul.msk.f32.gmra.mxu2 %vm3310_vm9, %v3294_v17  ;;  %v3731_v17 = vsel %vm90_vm0, %v12548_v36, 0.0 }
 0x646   :  { %v3732_v43 = vadd.f32 %v3731_v17, %v3730_v22 }
 0x648   :  { %v12621_v26 = vpop.f32.mrf.mxu2 }
 0x64a   :  { %v12623_v31 = vpop.f32.mrf.mxu0 }
 0x64d   :  { %9385 = vmatmul.msk.f32.gmra.mxu2 %vm3310_vm9, %v3295_v35  ;;  %v3733_v35 = vsel %vm90_vm0, %v12553_v20, 0.0 }
 0x64e   :  { %v3734_v12 = vadd.f32 %v3733_v35, %v3732_v43  ;;  %v3751_v35 = vsel %vm90_vm0, %v12611_v63, 0.0 }
 0x650   :  { %v12627_v49 = vpop.f32.mrf.mxu2 }
 0x651   :  { %16760 = vst [vmem:[#allocation7_spill] sm:$0xff] %v12627_v49 }
 0x652   :  { %v12629_v50 = vpop.f32.mrf.mxu0 }
 0x655   :  { %9386 = vmatmul.msk.f32.gmra.mxu2 %vm3310_vm9, %v3296_v58 }
 0x658   :  { %v12632_v0 = vpop.f32.mrf.mxu2 }
 0x65a   :  { %v12634_v1 = vpop.f32.mrf.mxu0 }
 0x65d   :  { %9387 = vmatmul.msk.f32.gmra.mxu2 %vm3310_vm9, %v3297_v24  ;;  %v3735_v24 = vsel %vm90_vm0, %v12558_v55, 0.0 }
 0x65e   :  { %v3736_v2 = vadd.f32 %v3735_v24, %v3734_v12  ;;  %v3753_v12 = vsel %vm90_vm0, %v12617_v16, 0.0 }
 0x660   :  { %v12643_v42 = vpop.f32.mrf.mxu2 }
 0x662   :  { %v12647_v18 = vpop.f32.mrf.mxu0 }
 0x665   :  { %9388 = vmatmul.msk.f32.gmra.mxu2 %vm3310_vm9, %v3298_v41  ;;  %v3738_v41 = vadd.f32 %v3737_v37, %v3736_v2  ;;  %v3755_v37 = vsel %vm90_vm0, %v12623_v31, 0.0 }
 0x667   :  { %v3740_v6 = vadd.f32 %v3739_v11, %v3738_v41  ;;  %v3757_v11 = vsel %vm90_vm0, %v12629_v50, 0.0 }
 0x668   :  { %v12656_v10 = vpop.f32.mrf.mxu2 }
 0x669   :  { %16761 = vst [vmem:[#allocation8_spill] sm:$0xff] %v12656_v10  ;;  %v3742_v14 = vadd.f32 %v3741_v60, %v3740_v6  ;;  %v3759_v6 = vsel %vm90_vm0, %v12634_v1, 0.0 }
 0x66a   :  { %v12660_v53 = vpop.f32.mrf.mxu0 }
 0x66b   :  { %v3744_v45 = vadd.f32 %v3743_v61, %v3742_v14 }
 0x66d   :  { %9389 = vmatmul.msk.f32.gmra.mxu2 %vm3310_vm9, %v3299_v54  ;;  %v3747_v54 = vsel %vm90_vm0, %v12599_v38, 0.0  ;;  %v3746_v4 = vadd.f32 %v3745_v39, %v3744_v45  ;;  %v3761_v39 = vsel %vm90_vm0, %v12647_v18, 0.0 }
 0x66f   :  { %v3748_v17 = vadd.f32 %v3747_v54, %v3746_v4  ;;  %v3763_v54 = vsel %vm90_vm0, %v12660_v53, 0.0 }
 0x670   :  { %v12669_v58 = vpop.f32.mrf.mxu2 }
 0x671   :  { %16762 = vst [vmem:[#allocation9_spill] sm:$0xff] %v12669_v58  ;;  %v3750_v43 = vadd.f32 %v3749_v7, %v3748_v17 }
 0x672   :  { %v12673_v56 = vpop.f32.mrf.mxu0 }
 0x673   :  { %v3765_v7 = vsel %vm90_vm0, %v12673_v56, 0.0 }
 0x675   :  { %9390 = vmatmul.msk.f32.gmra.mxu2 %vm3310_vm9, %v3300_v28  ;;  %v3752_v28 = vadd.f32 %v3751_v35, %v3750_v43 }
 0x677   :  { %v3754_v2 = vadd.f32 %v3753_v12, %v3752_v28 }
 0x678   :  { %v12682_v33 = vpop.f32.mrf.mxu2 }
 0x679   :  { %16763 = vst [vmem:[#allocation10_spill] sm:$0xff] %v12682_v33  ;;  %v3756_v41 = vadd.f32 %v3755_v37, %v3754_v2 }
 0x67a   :  { %v12686_v51 = vpop.f32.mrf.mxu0 }
 0x67b   :  { %v3758_v61 = vadd.f32 %v3757_v11, %v3756_v41  ;;  %v3767_v43 = vsel %vm90_vm0, %v12686_v51, 0.0 }
 0x67d   :  { %v3760_v45 = vadd.f32 %v3759_v6, %v3758_v61 }
 0x67f   :  { %v3762_v4 = vadd.f32 %v3761_v39, %v3760_v45 }
 0x680   :  { %v12694_v22 = vpop.f32.mrf.mxu2 }
 0x681   :  { %16764 = vst [vmem:[#allocation11_spill] sm:$0xff] %v12694_v22  ;;  %v3764_v17 = vadd.f32 %v3763_v54, %v3762_v4 }
 0x682   :  { %v12698_v24 = vpop.f32.mrf.mxu0 }
 0x683   :  { %v3766_v12 = vadd.f32 %v3765_v7, %v3764_v17  ;;  %v3769_v37 = vsel %vm90_vm0, %v12698_v24, 0.0  ;;  %v3777_v17 = vsel %vm90_vm0, %v12563_v21, 0.0 }
 0x685   :  { %v3768_v2 = vadd.f32 %v3767_v43, %v3766_v12  ;;  %v3779_v12 = vsel %vm90_vm0, %v12570_v44, 0.0 }
 0x687   :  { %v3770_v41 = vadd.f32 %v3769_v37, %v3768_v2 }
 0x688   :  { %v12706_v60 = vpop.f32.mrf.mxu2 }
 0x689   :  { %16765 = vst [vmem:[#allocation12_spill] sm:$0xff] %v12706_v60 }
 0x68a   :  { %v12710_v14 = vpop.f32.mrf.mxu0 }
 0x68b   :  { %v3771_v11 = vsel %vm90_vm0, %v12710_v14, 0.0 }
 0x68c   :  { %v3772_v61 = vadd.f32 %v3771_v11, %v3770_v41  ;;  %v3781_v11 = vsel %vm90_vm0, %v12577_v19, 0.0 }
 0x690   :  { %v12718_v35 = vpop.f32.mrf.mxu2 }
 0x691   :  { %16766 = vst [vmem:[#allocation13_spill] sm:$0xff] %v12718_v35 }
 0x692   :  { %v12722_v28 = vpop.f32.mrf.mxu0 }
 0x693   :  { %v3773_v6 = vsel %vm90_vm0, %v12722_v28, 0.0 }
 0x694   :  { %v3774_v45 = vadd.f32 %v3773_v6, %v3772_v61  ;;  %v3783_v6 = vsel %vm90_vm0, %v12584_v9, 0.0 }
 0x698   :  { %v12730_v39 = vpop.f32.mrf.mxu2 }
 0x699   :  { %16767 = vst [vmem:[#allocation14_spill] sm:$0xff] %v12730_v39 }
 0x69a   :  { %v12732_v54 = vpop.f32.mrf.mxu0 }
 0x69b   :  { %v3775_v4 = vsel %vm90_vm0, %v12732_v54, 0.0 }
 0x69c   :  { %v3776_v7 = vadd.f32 %v3775_v4, %v3774_v45  ;;  %v3785_v45 = vsel %vm90_vm0, %v12591_v15, 0.0 }
 0x69e   :  { %v3778_v43 = vadd.f32 %v3777_v17, %v3776_v7  ;;  %v3787_v7 = vsel %vm90_vm0, %v12597_v34, 0.0 }
 0x6a0   :  { %v3780_v37 = vadd.f32 %v3779_v12, %v3778_v43  ;;  %v12740_v2 = vpop.f32.mrf.mxu2  ;;  %v3789_v43 = vsel %vm90_vm0, %v12603_v47, 0.0 }
 0x6a1   :  { %16768 = vst [vmem:[#allocation15_spill] sm:$0xff] %v12740_v2 }
 0x6a2   :  { %v3782_v41 = vadd.f32 %v3781_v11, %v3780_v37  ;;  %v3791_v37 = vsel %vm90_vm0, %v12609_v62, 0.0 }
 0x6a4   :  { %v3784_v61 = vadd.f32 %v3783_v6, %v3782_v41  ;;  %v3793_v41 = vsel %vm90_vm0, %v12615_v13, 0.0 }
 0x6a6   :  { %v3786_v4 = vadd.f32 %v3785_v45, %v3784_v61  ;;  %v3795_v61 = vsel %vm90_vm0, %v12621_v26, 0.0 }
 0x6a8   :  { %v3788_v17 = vadd.f32 %v3787_v7, %v3786_v4  ;;  %v12750_v44 = vpop.f32.mrf.mxu2  ;;  %v3797_v4 = vsel %vm90_vm0, %v12627_v49, 0.0 }
 0x6a9   :  { %16769 = vst [vmem:[#allocation16_spill] sm:$0xff] %v12750_v44 }
 0x6aa   :  { %v3790_v12 = vadd.f32 %v3789_v43, %v3788_v17  ;;  %v3799_v17 = vsel %vm90_vm0, %v12632_v0, 0.0 }
 0x6ac   :  { %v3792_v11 = vadd.f32 %v3791_v37, %v3790_v12  ;;  %v3801_v12 = vsel %vm90_vm0, %v12643_v42, 0.0 }
 0x6ae   :  { %v3794_v6 = vadd.f32 %v3793_v41, %v3792_v11  ;;  %v3803_v11 = vsel %vm90_vm0, %v12656_v10, 0.0 }
 0x6b0   :  { %v3796_v45 = vadd.f32 %v3795_v61, %v3794_v6  ;;  %v12760_v34 = vpop.f32.mrf.mxu2  ;;  %v3805_v6 = vsel %vm90_vm0, %v12669_v58, 0.0 }
 0x6b1   :  { %16770 = vst [vmem:[#allocation17_spill] sm:$0xff] %v12760_v34 }
 0x6b2   :  { %v3798_v7 = vadd.f32 %v3797_v4, %v3796_v45  ;;  %v3807_v45 = vsel %vm90_vm0, %v12682_v33, 0.0  ;;  %v3815_v33 = vsel %vm90_vm0, %v12730_v39, 0.0 }
 0x6b4   :  { %v3800_v43 = vadd.f32 %v3799_v17, %v3798_v7  ;;  %v3809_v7 = vsel %vm90_vm0, %v12694_v22, 0.0  ;;  %v3819_v22 = vsel %vm90_vm0, %v12750_v44, 0.0 }
 0x6b6   :  { %v3802_v37 = vadd.f32 %v3801_v12, %v3800_v43  ;;  %v3811_v12 = vsel %vm90_vm0, %v12706_v60, 0.0 }
 0x6b8   :  { %v12768_v13 = vpop.f32.mrf.mxu2  ;;  %v3804_v41 = vadd.f32 %v3803_v11, %v3802_v37  ;;  %v3813_v11 = vsel %vm90_vm0, %v12718_v35, 0.0 }
 0x6b9   :  { %16771 = vst [vmem:[#allocation18_spill] sm:$0xff] %v12768_v13 }
 0x6ba   :  { %v3806_v61 = vadd.f32 %v3805_v6, %v3804_v41 }
 0x6bc   :  { %v3808_v4 = vadd.f32 %v3807_v45, %v3806_v61  ;;  %v3817_v45 = vsel %vm90_vm0, %v12740_v2, 0.0 }
 0x6be   :  { %v3810_v17 = vadd.f32 %v3809_v7, %v3808_v4 }
 0x6c0   :  { %v12774_v49 = vpop.f32.mrf.mxu2  ;;  %v3812_v37 = vadd.f32 %v3811_v12, %v3810_v17  ;;  %v3821_v17 = vsel %vm90_vm0, %v12760_v34, 0.0 }
 0x6c1   :  { %16772 = vst [vmem:[#allocation19_spill] sm:$0xff] %v12774_v49 }
 0x6c2   :  { %v3814_v41 = vadd.f32 %v3813_v11, %v3812_v37  ;;  %v3823_v11 = vsel %vm90_vm0, %v12768_v13, 0.0 }
 0x6c4   :  { %v3816_v61 = vadd.f32 %v3815_v33, %v3814_v41  ;;  %v3825_v33 = vsel %vm90_vm0, %v12774_v49, 0.0 }
 0x6c6   :  { %v3818_v4 = vadd.f32 %v3817_v45, %v3816_v61 }
 0x6c8   :  { %v12780_v43 = vpop.f32.mrf.mxu2  ;;  %v3820_v60 = vadd.f32 %v3819_v22, %v3818_v4 }
 0x6c9   :  { %16773 = vst [vmem:[#allocation20_spill] sm:$0xff] %v12780_v43  ;;  %v3827_v61 = vsel %vm90_vm0, %v12780_v43, 0.0 }
 0x6ca   :  { %v3822_v12 = vadd.f32 %v3821_v17, %v3820_v60 }
 0x6cc   :  { %v3824_v35 = vadd.f32 %v3823_v11, %v3822_v12 }
 0x6ce   :  { %v3826_v41 = vadd.f32 %v3825_v33, %v3824_v35 }
 0x6d0   :  { %v12786_v6 = vpop.f32.mrf.mxu2  ;;  %v3828_v45 = vadd.f32 %v3827_v61, %v3826_v41 }
 0x6d1   :  { %16774 = vst [vmem:[#allocation21_spill] sm:$0xff] %v12786_v6  ;;  %v3829_v22 = vsel %vm90_vm0, %v12786_v6, 0.0 }
 0x6d2   :  { %v3830_v60 = vadd.f32 %v3829_v22, %v3828_v45 }
 0x6d8   :  { %v3697_v7 = vpop.f32.mrf.mxu2 }
 0x6d9   :  { %v3831_v4 = vsel %vm90_vm0, %v3697_v7, 0.0 }
 0x6da   :  { %v3832_v13 = vadd.f32 %v3831_v4, %v3830_v60 }
 0x6e0   :  { %v3700_v37 = vpop.f32.mrf.mxu2 }
 0x6e1   :  { %v3833_v34 = vsel %vm90_vm0, %v3700_v37, 0.0 }
 0x6e2   :  { %v3834_v11 = vadd.f32 %v3833_v34, %v3832_v13 }
 0x6e8   :  { %v3703_v2 = vpop.f32.mrf.mxu2 }
 0x6e9   :  { %v3835_v12 = vsel %vm90_vm0, %v3703_v2, 0.0 }
 0x6ea   :  { %v3836_v33 = vadd.f32 %v3835_v12, %v3834_v11 }
 0x6f0   :  { %v3706_v17 = vpop.f32.mrf.mxu2 }
 0x6f1   :  { %v3837_v35 = vsel %vm90_vm0, %v3706_v17, 0.0 }
 0x6f2   :  { %v3838_v49 = vadd.f32 %v3837_v35, %v3836_v33 }
 0x6f8   :  { %v3709_v44 = vpop.f32.mrf.mxu2 }
 0x6f9   :  { %v3839_v41 = vsel %vm90_vm0, %v3709_v44, 0.0 }
 0x6fa   :  { %v3840_v61 = vadd.f32 %v3839_v41, %v3838_v49 }
 0x6fc   :  { %v3841_v43 = vrot.slane %v3840_v61, 4 }
 0x6fe   :  { %v3842_v6 = vadd.f32 %v3841_v43, %v3840_v61 }
 0x700   :  { %v3843_v39 = vrot.slane %v3842_v6, 2 }
 0x702   :  { %v3844_v58 = vadd.f32 %v3843_v39, %v3842_v6 }
 0x704   :  { %v3845_v45 = vrot.slane %v3844_v58, 1 }
 0x706   :  { %v3846_v22 = vadd.f32 %v3845_v45, %v3844_v58 }
 0x708   :  { %v12809_v10 = vmul.f32 0.001953125, %v3846_v22 }
 0x70a   :  { %v12812_v4 = vsub.f32 %v3697_v7, %v12809_v10  ;;  %v12815_v34 = vsub.f32 %v3700_v37, %v12809_v10  ;;  %v12818_v13 = vsub.f32 %v3703_v2, %v12809_v10  ;;  %v12821_v60 = vsub.f32 %v3706_v17, %v12809_v10 }
 0x70b   :  { %v12824_v49 = vsub.f32 %v3709_v44, %v12809_v10  ;;  %v12828_v58 = vsub.f32 %v12471_v3, %v12809_v10  ;;  %v12832_v39 = vsub.f32 %v12480_v40, %v12809_v10  ;;  %v12836_v43 = vsub.f32 %v12489_v23, %v12809_v10 }
 0x70c   :  { %v12840_v2 = vsub.f32 %v12498_v48, %v12809_v10  ;;  %v12848_v3 = vsub.f32 %v12507_v5, %v12809_v10  ;;  %v12854_v23 = vsub.f32 %v12516_v46, %v12809_v10  ;;  %v12862_v12 = vsub.f32 %v12525_v59, %v12809_v10 }
 0x70d   :  { %v3912_v44 = vmul.f32 %v12828_v58, %v12828_v58  ;;  %v3913_v6 = vmul.f32 %v12832_v39, %v12832_v39  ;;  %v3914_v40 = vmul.f32 %v12836_v43, %v12836_v43  ;;  %v12869_v46 = vsub.f32 %v12534_v8, %v12809_v10 }
 0x70e   :  { %v3915_v48 = vmul.f32 %v12840_v2, %v12840_v2  ;;  %v3916_v5 = vmul.f32 %v12848_v3, %v12848_v3  ;;  %v3917_v33 = vmul.f32 %v12854_v23, %v12854_v23  ;;  %v12876_v59 = vsub.f32 %v12542_v25, %v12809_v10 }
 0x70f   :  { %v3976_v7 = vsel %vm90_vm0, %v3912_v44, 0.0  ;;  %v3977_v37 = vsel %vm90_vm0, %v3913_v6, 0.0  ;;  %v3979_v11 = vsel %vm90_vm0, %v3914_v40, 0.0  ;;  %v3918_v45 = vmul.f32 %v12862_v12, %v12862_v12 }
 0x710   :  { %v3978_v17 = vadd.f32 %v3977_v37, %v3976_v7  ;;  %v3981_v41 = vsel %vm90_vm0, %v3915_v48, 0.0  ;;  %v3983_v22 = vsel %vm90_vm0, %v3916_v5, 0.0  ;;  %v12883_v8 = vsub.f32 %v12548_v36, %v12809_v10 }
 0x711   :  { %v3919_v6 = vmul.f32 %v12869_v46, %v12869_v46  ;;  %v3985_v40 = vsel %vm90_vm0, %v3917_v33, 0.0  ;;  %v12890_v25 = vsub.f32 %v12553_v20, %v12809_v10  ;;  %v3920_v7 = vmul.f32 %v12876_v59, %v12876_v59 }
 0x712   :  { %v3980_v35 = vadd.f32 %v3979_v11, %v3978_v17  ;;  %v3987_v37 = vsel %vm90_vm0, %v3918_v45, 0.0  ;;  %v12897_v36 = vsub.f32 %v12558_v55, %v12809_v10  ;;  %v3921_v5 = vmul.f32 %v12883_v8, %v12883_v8 }
 0x713   :  { %v3989_v11 = vsel %vm90_vm0, %v3919_v6, 0.0  ;;  %v12904_v20 = vsub.f32 %v12565_v27, %v12809_v10  ;;  %v3922_v33 = vmul.f32 %v12890_v25, %v12890_v25  ;;  %v12911_v55 = vsub.f32 %v12572_v57, %v12809_v10 }
 0x714   :  { %v3982_v61 = vadd.f32 %v3981_v41, %v3980_v35  ;;  %v3991_v41 = vsel %vm90_vm0, %v3920_v7, 0.0  ;;  %v3923_v45 = vmul.f32 %v12897_v36, %v12897_v36  ;;  %v12918_v27 = vsub.f32 %v12579_v30, %v12809_v10 }
 0x715   :  { %v3924_v6 = vmul.f32 %v12904_v20, %v12904_v20  ;;  %v12925_v57 = vsub.f32 %v12586_v32, %v12809_v10  ;;  %v3925_v7 = vmul.f32 %v12911_v55, %v12911_v55  ;;  %v12932_v30 = vsub.f32 %v12593_v29, %v12809_v10 }
 0x716   :  { %v3984_v44 = vadd.f32 %v3983_v22, %v3982_v61  ;;  %v3993_v22 = vsel %vm90_vm0, %v3921_v5, 0.0  ;;  %v3926_v5 = vmul.f32 %v12918_v27, %v12918_v27  ;;  %v12939_v32 = vsub.f32 %v12599_v38, %v12809_v10 }
 0x717   :  { %16775 = vst [vmem:[#allocation22_spill] sm:$0xff] %v12925_v57  ;;  %v12946_v29 = vsub.f32 %v12605_v52, %v12809_v10  ;;  %v12953_v38 = vsub.f32 %v12611_v63, %v12809_v10  ;;  %v12960_v52 = vsub.f32 %v12617_v16, %v12809_v10  ;;  %v12967_v63 = vsub.f32 %v12623_v31, %v12809_v10 }
 0x718   :  { %v3986_v48 = vadd.f32 %v3985_v40, %v3984_v44  ;;  %v3995_v40 = vsel %vm90_vm0, %v3922_v33, 0.0  ;;  %16776 = vst [vmem:[#allocation23_spill] sm:$0xff] %v12932_v30  ;;  %v3927_v33 = vmul.f32 %v12925_v57, %v12925_v57  ;;  %v12974_v16 = vsub.f32 %v12629_v50, %v12809_v10 }
 0x719   :  { %16777 = vst [vmem:[#allocation24_spill] sm:$0xff] %v12939_v32  ;;  %v12981_v31 = vsub.f32 %v12634_v1, %v12809_v10  ;;  %v12988_v50 = vsub.f32 %v12647_v18, %v12809_v10  ;;  %v12995_v1 = vsub.f32 %v12660_v53, %v12809_v10  ;;  %v13002_v18 = vsub.f32 %v12673_v56, %v12809_v10 }
 0x71a   :  { %v3988_v17 = vadd.f32 %v3987_v37, %v3986_v48  ;;  %v3997_v37 = vsel %vm90_vm0, %v3923_v45, 0.0  ;;  %16778 = vst [vmem:[#allocation25_spill] sm:$0xff] %v12946_v29  ;;  %v3928_v45 = vmul.f32 %v12932_v30, %v12932_v30  ;;  %v13009_v53 = vsub.f32 %v12686_v51, %v12809_v10 }
 0x71b   :  { %16779 = vst [vmem:[#allocation26_spill] sm:$0xff] %v12953_v38  ;;  %v13016_v56 = vsub.f32 %v12698_v24, %v12809_v10  ;;  %v13023_v51 = vsub.f32 %v12710_v14, %v12809_v10  ;;  %v13030_v24 = vsub.f32 %v12722_v28, %v12809_v10  ;;  %v13037_v14 = vsub.f32 %v12732_v54, %v12809_v10 }
 0x71c   :  { %v3990_v35 = vadd.f32 %v3989_v11, %v3988_v17  ;;  %v3999_v11 = vsel %vm90_vm0, %v3924_v6, 0.0  ;;  %v3929_v6 = vmul.f32 %v12939_v32, %v12939_v32  ;;  %16780 = vst [vmem:[#allocation27_spill] sm:$0xff] %v12960_v52  ;;  %v13044_v28 = vsub.f32 %v12563_v21, %v12809_v10 }
 0x71d   :  { %16781 = vst [vmem:[#allocation28_spill] sm:$0xff] %v12967_v63  ;;  %v13058_v21 = vsub.f32 %v12577_v19, %v12809_v10  ;;  %v13072_v19 = vsub.f32 %v12591_v15, %v12809_v10  ;;  %v13086_v15 = vsub.f32 %v12603_v47, %v12809_v10  ;;  %v9560_v57 = vmov 0.0  }
 0x71e   :  { %v3992_v61 = vadd.f32 %v3991_v41, %v3990_v35  ;;  %v4001_v41 = vsel %vm90_vm0, %v3925_v7, 0.0  ;;  %v3930_v7 = vmul.f32 %v12946_v29, %v12946_v29  ;;  %16782 = vst [vmem:[#allocation29_spill] sm:$0xff] %v12974_v16 }
 0x71f   :  { %16783 = vst [vmem:[#allocation30_spill] sm:$0xff] %v12981_v31 }
 0x720   :  { %v3994_v44 = vadd.f32 %v3993_v22, %v3992_v61  ;;  %v4003_v22 = vsel %vm90_vm0, %v3926_v5, 0.0  ;;  %v3931_v5 = vmul.f32 %v12953_v38, %v12953_v38  ;;  %16784 = vst [vmem:[#allocation31_spill] sm:$0xff] %v12988_v50 }
 0x721   :  { %16785 = vst [vmem:[#allocation32_spill] sm:$0xff] %v12995_v1 }
 0x722   :  { %v3996_v48 = vadd.f32 %v3995_v40, %v3994_v44  ;;  %v4005_v40 = vsel %vm90_vm0, %v3927_v33, 0.0  ;;  %v3932_v33 = vmul.f32 %v12960_v52, %v12960_v52  ;;  %16786 = vst [vmem:[#allocation33_spill] sm:$0xff] %v13002_v18 }
 0x723   :  { %16787 = vst [vmem:[#allocation34_spill] sm:$0xff] %v13009_v53 }
 0x724   :  { %v3998_v17 = vadd.f32 %v3997_v37, %v3996_v48  ;;  %v4007_v37 = vsel %vm90_vm0, %v3928_v45, 0.0  ;;  %v3933_v45 = vmul.f32 %v12967_v63, %v12967_v63  ;;  %16788 = vst [vmem:[#allocation35_spill] sm:$0xff] %v13016_v56 }
 0x725   :  { %16789 = vst [vmem:[#allocation36_spill] sm:$0xff] %v13023_v51 }
 0x726   :  { %v4000_v35 = vadd.f32 %v3999_v11, %v3998_v17  ;;  %v4009_v11 = vsel %vm90_vm0, %v3929_v6, 0.0  ;;  %v3934_v6 = vmul.f32 %v12974_v16, %v12974_v16  ;;  %16790 = vst [vmem:[#allocation37_spill] sm:$0xff] %v13030_v24 }
 0x727   :  { %16791 = vst [vmem:[#allocation38_spill] sm:$0xff] %v13037_v14 }
 0x728   :  { %v4002_v61 = vadd.f32 %v4001_v41, %v4000_v35  ;;  %v4011_v41 = vsel %vm90_vm0, %v3930_v7, 0.0  ;;  %v3935_v7 = vmul.f32 %v12981_v31, %v12981_v31  ;;  %16792 = vst [vmem:[#allocation39_spill] sm:$0xff] %v13044_v28 }
 0x729   :  { %16795 = vst [vmem:[#allocation40_spill] sm:$0xff] %v13058_v21 }
 0x72a   :  { %v4004_v44 = vadd.f32 %v4003_v22, %v4002_v61  ;;  %v4013_v22 = vsel %vm90_vm0, %v3931_v5, 0.0  ;;  %v3936_v5 = vmul.f32 %v12988_v50, %v12988_v50  ;;  %4385 = vst.msk [vmem:[#allocation2] sm:$0xff] %vm90_vm0, %v9560_v57 }
 0x72b   :  { %4386 = vst.msk [vmem:[#allocation2 + $0x8] sm:$0xff] %vm90_vm0, %v9560_v57 }
 0x72c   :  { %v4006_v48 = vadd.f32 %v4005_v40, %v4004_v44  ;;  %v4015_v40 = vsel %vm90_vm0, %v3932_v33, 0.0  ;;  %v3937_v33 = vmul.f32 %v12995_v1, %v12995_v1  ;;  %4389 = vst.msk [vmem:[#allocation2 + $0x1b0] sm:$0xff] %vm90_vm0, %v9560_v57 }
 0x72d   :  { %4390 = vst.msk [vmem:[#allocation2 + $0x1b8] sm:$0xff] %vm90_vm0, %v9560_v57 }
 0x72e   :  { %v4008_v17 = vadd.f32 %v4007_v37, %v4006_v48  ;;  %v4017_v37 = vsel %vm90_vm0, %v3933_v45, 0.0  ;;  %v3938_v45 = vmul.f32 %v13002_v18, %v13002_v18  ;;  %4393 = vst.msk [vmem:[#allocation2 + $0x198] sm:$0xff] %vm90_vm0, %v9560_v57 }
 0x72f   :  { %4394 = vst.msk [vmem:[#allocation2 + $0x1a0] sm:$0xff] %vm90_vm0, %v9560_v57 }
 0x730   :  { %v4010_v35 = vadd.f32 %v4009_v11, %v4008_v17  ;;  %v4019_v11 = vsel %vm90_vm0, %v3934_v6, 0.0  ;;  %v3939_v6 = vmul.f32 %v13009_v53, %v13009_v53  ;;  %4396 = vst.msk [vmem:[#allocation2 + $0x348] sm:$0xff] %vm90_vm0, %v9560_v57 }
 0x731   :  { %4397 = vst.msk [vmem:[#allocation2 + $0x350] sm:$0xff] %vm90_vm0, %v9560_v57 }
 0x732   :  { %v4012_v61 = vadd.f32 %v4011_v41, %v4010_v35  ;;  %v4021_v41 = vsel %vm90_vm0, %v3935_v7, 0.0  ;;  %v3940_v7 = vmul.f32 %v13016_v56, %v13016_v56  ;;  %4388 = vst.msk [vmem:[#allocation2 + $0x10] sm:$0x3] %vm4387_vm13, %v9560_v57 }
 0x733   :  { %4391 = vst.msk [vmem:[#allocation2 + $0x1c0] sm:$0x3] %vm4387_vm13, %v9560_v57 }
 0x734   :  { %v4014_v44 = vadd.f32 %v4013_v22, %v4012_v61  ;;  %v4023_v22 = vsel %vm90_vm0, %v3936_v5, 0.0  ;;  %v3941_v5 = vmul.f32 %v13023_v51, %v13023_v51  ;;  %4395 = vst.msk [vmem:[#allocation2 + $0x1a8] sm:$0x3] %vm4387_vm13, %v9560_v57 }
 0x735   :  { %4398 = vst.msk [vmem:[#allocation2 + $0x358] sm:$0x3] %vm4387_vm13, %v9560_v57 }
 0x736   :  { %v4016_v48 = vadd.f32 %v4015_v40, %v4014_v44  ;;  %v4025_v40 = vsel %vm90_vm0, %v3937_v33, 0.0  ;;  %v3942_v33 = vmul.f32 %v13030_v24, %v13030_v24  ;;  %4402 = vst.msk [vmem:[#allocation2 + $0x48] sm:$0x1] %vm4399_vm14, %v9560_v57 }
 0x737   :  { %4400 = vst.msk [vmem:[#allocation2 + $0x18] sm:$0x1] %vm4399_vm14, %v9560_v57 }
 0x738   :  { %v4018_v17 = vadd.f32 %v4017_v37, %v4016_v48  ;;  %v4027_v37 = vsel %vm90_vm0, %v3938_v45, 0.0  ;;  %v16793_v45 = vld [vmem:[#allocation4_spill] sm:$0xff]  ;;  %4401 = vst.msk [vmem:[#allocation2 + $0x30] sm:$0x1] %vm4399_vm14, %v9560_v57 }
 0x739   :  { %v13051_v54 = vsub.f32 %v16793_v45, %v12809_v10  ;;  %4403 = vst.msk [vmem:[#allocation2 + $0x60] sm:$0x1] %vm4399_vm14, %v9560_v57 }
 0x73a   :  { %v4020_v35 = vadd.f32 %v4019_v11, %v4018_v17  ;;  %v4029_v11 = vsel %vm90_vm0, %v3939_v6, 0.0  ;;  %4404 = vst.msk [vmem:[#allocation2 + $0x78] sm:$0x1] %vm4399_vm14, %v9560_v57 }
 0x73b   :  { %16794 = vst [vmem:[#allocation4_spill] sm:$0xff] %v13051_v54 }
 0x73c   :  { %v4022_v61 = vadd.f32 %v4021_v41, %v4020_v35  ;;  %v4031_v41 = vsel %vm90_vm0, %v3940_v7, 0.0  ;;  %4405 = vst.msk [vmem:[#allocation2 + $0x90] sm:$0x1] %vm4399_vm14, %v9560_v57 }
 0x73d   :  { %4406 = vst.msk [vmem:[#allocation2 + $0xa8] sm:$0x1] %vm4399_vm14, %v9560_v57 }
 0x73e   :  { %v4024_v44 = vadd.f32 %v4023_v22, %v4022_v61  ;;  %v3943_v22 = vmul.f32 %v13037_v14, %v13037_v14  ;;  %4407 = vst.msk [vmem:[#allocation2 + $0xc0] sm:$0x1] %vm4399_vm14, %v9560_v57 }
 0x73f   :  { %4408 = vst.msk [vmem:[#allocation2 + $0xd8] sm:$0x1] %vm4399_vm14, %v9560_v57 }
 0x740   :  { %v4026_v48 = vadd.f32 %v4025_v40, %v4024_v44  ;;  %v4033_v44 = vsel %vm90_vm0, %v3941_v5, 0.0  ;;  %v3944_v40 = vmul.f32 %v13044_v28, %v13044_v28  ;;  %v4037_v5 = vsel %vm90_vm0, %v3943_v22, 0.0  ;;  %4409 = vst.msk [vmem:[#allocation2 + $0xf0] sm:$0x1] %vm4399_vm14, %v9560_v57 }
 0x741   :  { %4410 = vst.msk [vmem:[#allocation2 + $0x108] sm:$0x1] %vm4399_vm14, %v9560_v57 }
 0x742   :  { %v4028_v17 = vadd.f32 %v4027_v37, %v4026_v48  ;;  %v4035_v48 = vsel %vm90_vm0, %v3942_v33, 0.0  ;;  %v13065_v37 = vsub.f32 %v12584_v9, %v12809_v10  ;;  %v4039_v33 = vsel %vm90_vm0, %v3944_v40, 0.0  ;;  %4411 = vst.msk [vmem:[#allocation2 + $0x120] sm:$0x1] %vm4399_vm14, %v9560_v57 }
 0x743   :  { %4412 = vst.msk [vmem:[#allocation2 + $0x138] sm:$0x1] %vm4399_vm14, %v9560_v57 }
 0x744   :  { %v4030_v35 = vadd.f32 %v4029_v11, %v4028_v17  ;;  %v3945_v17 = vmul.f32 %v13051_v54, %v13051_v54  ;;  %v3947_v45 = vmul.f32 %v13065_v37, %v13065_v37  ;;  %4413 = vst.msk [vmem:[#allocation2 + $0x150] sm:$0x1] %vm4399_vm14, %v9560_v57 }
 0x745   :  { %4414 = vst.msk [vmem:[#allocation2 + $0x168] sm:$0x1] %vm4399_vm14, %v9560_v57 }
 0x746   :  { %v4032_v61 = vadd.f32 %v4031_v41, %v4030_v35  ;;  %v3946_v35 = vmul.f32 %v13058_v21, %v13058_v21  ;;  %v4041_v22 = vsel %vm90_vm0, %v3945_v17, 0.0  ;;  %v4045_v17 = vsel %vm90_vm0, %v3947_v45, 0.0  ;;  %4415 = vst.msk [vmem:[#allocation2 + $0x180] sm:$0x1] %vm4399_vm14, %v9560_v57 }
 0x747   :  { %4416 = vst.msk [vmem:[#allocation2 + $0x1c8] sm:$0x1] %vm4399_vm14, %v9560_v57 }
 0x748   :  { %v4034_v6 = vadd.f32 %v4033_v44, %v4032_v61  ;;  %v16796_v61 = vld [vmem:[#allocation5_spill] sm:$0xff]  ;;  %v4043_v40 = vsel %vm90_vm0, %v3946_v35, 0.0  ;;  %4417 = vst.msk [vmem:[#allocation2 + $0x1e0] sm:$0x1] %vm4399_vm14, %v9560_v57 }
 0x749   :  { %v13079_v9 = vsub.f32 %v16796_v61, %v12809_v10  ;;  %4418 = vst.msk [vmem:[#allocation2 + $0x1f8] sm:$0x1] %vm4399_vm14, %v9560_v57 }
 0x74a   :  { %v4036_v7 = vadd.f32 %v4035_v48, %v4034_v6  ;;  %v3948_v6 = vmul.f32 %v13072_v19, %v13072_v19  ;;  %4419 = vst.msk [vmem:[#allocation2 + $0x210] sm:$0x1] %vm4399_vm14, %v9560_v57 }
 0x74b   :  { %4420 = vst.msk [vmem:[#allocation2 + $0x228] sm:$0x1] %vm4399_vm14, %v9560_v57 }
 0x74c   :  { %v4038_v11 = vadd.f32 %v4037_v5, %v4036_v7  ;;  %v13093_v7 = vsub.f32 %v12609_v62, %v12809_v10  ;;  %v3949_v5 = vmul.f32 %v13079_v9, %v13079_v9  ;;  %v4047_v35 = vsel %vm90_vm0, %v3948_v6, 0.0  ;;  %4421 = vst.msk [vmem:[#allocation2 + $0x240] sm:$0x1] %vm4399_vm14, %v9560_v57 }
 0x74d   :  { %v13107_v62 = vsub.f32 %v12621_v26, %v12809_v10  ;;  %v13121_v26 = vsub.f32 %v12632_v0, %v12809_v10  ;;  %4422 = vst.msk [vmem:[#allocation2 + $0x258] sm:$0x1] %vm4399_vm14, %v9560_v57 }
 0x74e   :  { %v4040_v41 = vadd.f32 %v4039_v33, %v4038_v11  ;;  %v16797_v33 = vld [vmem:[#allocation6_spill] sm:$0xff]  ;;  %v4049_v45 = vsel %vm90_vm0, %v3949_v5, 0.0  ;;  %4423 = vst.msk [vmem:[#allocation2 + $0x270] sm:$0x1] %vm4399_vm14, %v9560_v57 }
 0x74f   :  { %v13100_v47 = vsub.f32 %v16797_v33, %v12809_v10  ;;  %v3953_v33 = vmul.f32 %v13107_v62, %v13107_v62  ;;  %4424 = vst.msk [vmem:[#allocation2 + $0x288] sm:$0x1] %vm4399_vm14, %v9560_v57 }
 0x750   :  { %v4042_v44 = vadd.f32 %v4041_v22, %v4040_v41  ;;  %v3950_v41 = vmul.f32 %v13086_v15, %v13086_v15  ;;  %v3951_v22 = vmul.f32 %v13093_v7, %v13093_v7  ;;  %4425 = vst.msk [vmem:[#allocation2 + $0x2a0] sm:$0x1] %vm4399_vm14, %v9560_v57 }
 0x751   :  { %4426 = vst.msk [vmem:[#allocation2 + $0x2b8] sm:$0x1] %vm4399_vm14, %v9560_v57 }
 0x752   :  { %v4044_v48 = vadd.f32 %v4043_v40, %v4042_v44  ;;  %v16798_v40 = vld [vmem:[#allocation7_spill] sm:$0xff]  ;;  %v4051_v6 = vsel %vm90_vm0, %v3950_v41, 0.0  ;;  %v4053_v5 = vsel %vm90_vm0, %v3951_v22, 0.0  ;;  %v4057_v22 = vsel %vm90_vm0, %v3953_v33, 0.0  ;;  %4427 = vst.msk [vmem:[#allocation2 + $0x2d0] sm:$0x1] %vm4399_vm14, %v9560_v57 }
 0x753   :  { %4428 = vst.msk [vmem:[#allocation2 + $0x2e8] sm:$0x1] %vm4399_vm14, %v9560_v57 }
 0x754   :  { %v4046_v11 = vadd.f32 %v4045_v17, %v4044_v48  ;;  %v13114_v48 = vsub.f32 %v16798_v40, %v12809_v10  ;;  %v3952_v17 = vmul.f32 %v13100_v47, %v13100_v47  ;;  %v16799_v40 = vld [vmem:[#allocation8_spill] sm:$0xff]  ;;  %4429 = vst.msk [vmem:[#allocation2 + $0x300] sm:$0x1] %vm4399_vm14, %v9560_v57 }
 0x755   :  { %v13135_v0 = vsub.f32 %v16799_v40, %v12809_v10  ;;  %4430 = vst.msk [vmem:[#allocation2 + $0x318] sm:$0x1] %vm4399_vm14, %v9560_v57 }
 0x756   :  { %v4048_v61 = vadd.f32 %v4047_v35, %v4046_v11  ;;  %v4055_v41 = vsel %vm90_vm0, %v3952_v17, 0.0  ;;  %4431 = vst.msk [vmem:[#allocation2 + $0x330] sm:$0x1] %vm4399_vm14, %v9560_v57 }
 0x757   :  { %v3957_v54 = vmul.f32 %v13135_v0, %v13135_v0  ;;  %4432 = vst.msk [vmem:[#allocation2 + $0x29] sm:$0x1] %vm4399_vm14, %v9560_v57 }
 0x758   :  { %v4050_v44 = vadd.f32 %v4049_v45, %v4048_v61  ;;  %v13128_v61 = vsub.f32 %v12643_v42, %v12809_v10  ;;  %v3954_v45 = vmul.f32 %v13114_v48, %v13114_v48  ;;  %4433 = vst.msk [vmem:[#allocation2 + $0x41] sm:$0x1] %vm4399_vm14, %v9560_v57 }
 0x759   :  { %4434 = vst.msk [vmem:[#allocation2 + $0x59] sm:$0x1] %vm4399_vm14, %v9560_v57 }
 0x75a   :  { %v4052_v11 = vadd.f32 %v4051_v6, %v4050_v44  ;;  %v3955_v6 = vmul.f32 %v13121_v26, %v13121_v26  ;;  %v3956_v21 = vmul.f32 %v13128_v61, %v13128_v61  ;;  %v4059_v17 = vsel %vm90_vm0, %v3954_v45, 0.0  ;;  %4435 = vst.msk [vmem:[#allocation2 + $0x71] sm:$0x1] %vm4399_vm14, %v9560_v57 }
 0x75b   :  { %4436 = vst.msk [vmem:[#allocation2 + $0x89] sm:$0x1] %vm4399_vm14, %v9560_v57 }
 0x75c   :  { %v4054_v35 = vadd.f32 %v4053_v5, %v4052_v11  ;;  %v16800_v5 = vld [vmem:[#allocation9_spill] sm:$0xff]  ;;  %v4061_v33 = vsel %vm90_vm0, %v3955_v6, 0.0  ;;  %v4063_v45 = vsel %vm90_vm0, %v3956_v21, 0.0  ;;  %v4065_v6 = vsel %vm90_vm0, %v3957_v54, 0.0  ;;  %4437 = vst.msk [vmem:[#allocation2 + $0xa1] sm:$0x1] %vm4399_vm14, %v9560_v57 }
 0x75d   :  { %v13142_v42 = vsub.f32 %v16800_v5, %v12809_v10  ;;  %4438 = vst.msk [vmem:[#allocation2 + $0xb9] sm:$0x1] %vm4399_vm14, %v9560_v57 }
 0x75e   :  { %v4056_v44 = vadd.f32 %v4055_v41, %v4054_v35  ;;  %v16801_v41 = vld [vmem:[#allocation10_spill] sm:$0xff]  ;;  %4439 = vst.msk [vmem:[#allocation2 + $0xd1] sm:$0x1] %vm4399_vm14, %v9560_v57 }
 0x75f   :  { %v13149_v40 = vsub.f32 %v16801_v41, %v12809_v10  ;;  %v3958_v28 = vmul.f32 %v13142_v42, %v13142_v42  ;;  %4440 = vst.msk [vmem:[#allocation2 + $0xe9] sm:$0x1] %vm4399_vm14, %v9560_v57 }
 0x760   :  { %v4058_v11 = vadd.f32 %v4057_v22, %v4056_v44  ;;  %v16802_v22 = vld [vmem:[#allocation11_spill] sm:$0xff]  ;;  %4441 = vst.msk [vmem:[#allocation2 + $0x101] sm:$0x1] %vm4399_vm14, %v9560_v57 }
 0x761   :  { %v13156_v5 = vsub.f32 %v16802_v22, %v12809_v10  ;;  %v3959_v14 = vmul.f32 %v13149_v40, %v13149_v40  ;;  %v4067_v21 = vsel %vm90_vm0, %v3958_v28, 0.0  ;;  %4442 = vst.msk [vmem:[#allocation2 + $0x119] sm:$0x1] %vm4399_vm14, %v9560_v57 }
 0x762   :  { %v4060_v35 = vadd.f32 %v4059_v17, %v4058_v11  ;;  %v16803_v17 = vld [vmem:[#allocation12_spill] sm:$0xff]  ;;  %4443 = vst.msk [vmem:[#allocation2 + $0x131] sm:$0x1] %vm4399_vm14, %v9560_v57 }
 0x763   :  { %v13163_v41 = vsub.f32 %v16803_v17, %v12809_v10  ;;  %v3960_v24 = vmul.f32 %v13156_v5, %v13156_v5  ;;  %v4069_v54 = vsel %vm90_vm0, %v3959_v14, 0.0  ;;  %4444 = vst.msk [vmem:[#allocation2 + $0x149] sm:$0x1] %vm4399_vm14, %v9560_v57 }
 0x764   :  { %v4062_v44 = vadd.f32 %v4061_v33, %v4060_v35  ;;  %v16804_v33 = vld [vmem:[#allocation13_spill] sm:$0xff]  ;;  %4445 = vst.msk [vmem:[#allocation2 + $0x161] sm:$0x1] %vm4399_vm14, %v9560_v57 }
 0x765   :  { %v13170_v22 = vsub.f32 %v16804_v33, %v12809_v10  ;;  %v3961_v51 = vmul.f32 %v13163_v41, %v13163_v41  ;;  %v4071_v28 = vsel %vm90_vm0, %v3960_v24, 0.0  ;;  %4446 = vst.msk [vmem:[#allocation2 + $0x179] sm:$0x1] %vm4399_vm14, %v9560_v57 }
 0x766   :  { %v4064_v11 = vadd.f32 %v4063_v45, %v4062_v44  ;;  %v16805_v45 = vld [vmem:[#allocation14_spill] sm:$0xff]  ;;  %4447 = vst.msk [vmem:[#allocation2 + $0x191] sm:$0x1] %vm4399_vm14, %v9560_v57 }
 0x767   :  { %v13177_v17 = vsub.f32 %v16805_v45, %v12809_v10  ;;  %v3962_v56 = vmul.f32 %v13170_v22, %v13170_v22  ;;  %v4073_v14 = vsel %vm90_vm0, %v3961_v51, 0.0  ;;  %4448 = vst.msk [vmem:[#allocation2 + $0x1d9] sm:$0x1] %vm4399_vm14, %v9560_v57 }
 0x768   :  { %v4066_v35 = vadd.f32 %v4065_v6, %v4064_v11  ;;  %v16806_v6 = vld [vmem:[#allocation15_spill] sm:$0xff]  ;;  %4449 = vst.msk [vmem:[#allocation2 + $0x1f1] sm:$0x1] %vm4399_vm14, %v9560_v57 }
 0x769   :  { %v13184_v33 = vsub.f32 %v16806_v6, %v12809_v10  ;;  %v3963_v53 = vmul.f32 %v13177_v17, %v13177_v17  ;;  %v4075_v24 = vsel %vm90_vm0, %v3962_v56, 0.0  ;;  %4450 = vst.msk [vmem:[#allocation2 + $0x209] sm:$0x1] %vm4399_vm14, %v9560_v57 }
 0x76a   :  { %v4068_v44 = vadd.f32 %v4067_v21, %v4066_v35  ;;  %v16807_v21 = vld [vmem:[#allocation16_spill] sm:$0xff]  ;;  %4451 = vst.msk [vmem:[#allocation2 + $0x221] sm:$0x1] %vm4399_vm14, %v9560_v57 }
 0x76b   :  { %v13191_v45 = vsub.f32 %v16807_v21, %v12809_v10  ;;  %v3964_v18 = vmul.f32 %v13184_v33, %v13184_v33  ;;  %v4077_v51 = vsel %vm90_vm0, %v3963_v53, 0.0  ;;  %4452 = vst.msk [vmem:[#allocation2 + $0x239] sm:$0x1] %vm4399_vm14, %v9560_v57 }
 0x76c   :  { %v4070_v11 = vadd.f32 %v4069_v54, %v4068_v44  ;;  %v16808_v54 = vld [vmem:[#allocation17_spill] sm:$0xff]  ;;  %4453 = vst.msk [vmem:[#allocation2 + $0x251] sm:$0x1] %vm4399_vm14, %v9560_v57 }
 0x76d   :  { %v13198_v6 = vsub.f32 %v16808_v54, %v12809_v10  ;;  %v3965_v1 = vmul.f32 %v13191_v45, %v13191_v45  ;;  %v4079_v56 = vsel %vm90_vm0, %v3964_v18, 0.0  ;;  %4454 = vst.msk [vmem:[#allocation2 + $0x269] sm:$0x1] %vm4399_vm14, %v9560_v57 }
 0x76e   :  { %v4072_v35 = vadd.f32 %v4071_v28, %v4070_v11  ;;  %v16809_v28 = vld [vmem:[#allocation18_spill] sm:$0xff]  ;;  %4455 = vst.msk [vmem:[#allocation2 + $0x281] sm:$0x1] %vm4399_vm14, %v9560_v57 }
 0x76f   :  { %v13205_v21 = vsub.f32 %v16809_v28, %v12809_v10  ;;  %v3966_v50 = vmul.f32 %v13198_v6, %v13198_v6  ;;  %v4081_v53 = vsel %vm90_vm0, %v3965_v1, 0.0  ;;  %4456 = vst.msk [vmem:[#allocation2 + $0x299] sm:$0x1] %vm4399_vm14, %v9560_v57 }
 0x770   :  { %v4074_v44 = vadd.f32 %v4073_v14, %v4072_v35  ;;  %v16810_v14 = vld [vmem:[#allocation19_spill] sm:$0xff]  ;;  %4457 = vst.msk [vmem:[#allocation2 + $0x2b1] sm:$0x1] %vm4399_vm14, %v9560_v57 }
 0x771   :  { %v13212_v54 = vsub.f32 %v16810_v14, %v12809_v10  ;;  %v3967_v31 = vmul.f32 %v13205_v21, %v13205_v21  ;;  %v4083_v18 = vsel %vm90_vm0, %v3966_v50, 0.0  ;;  %v3972_v50 = vmul.f32 %v12815_v34, %v12815_v34  ;;  %4458 = vst.msk [vmem:[#allocation2 + $0x2c9] sm:$0x1] %vm4399_vm14, %v9560_v57 }
 0x772   :  { %v4076_v11 = vadd.f32 %v4075_v24, %v4074_v44  ;;  %v16811_v24 = vld [vmem:[#allocation20_spill] sm:$0xff]  ;;  %4459 = vst.msk [vmem:[#allocation2 + $0x2e1] sm:$0x1] %vm4399_vm14, %v9560_v57 }
 0x773   :  { %v13219_v28 = vsub.f32 %v16811_v24, %v12809_v10  ;;  %v3968_v16 = vmul.f32 %v13212_v54, %v13212_v54  ;;  %v4085_v24 = vsel %vm90_vm0, %v3967_v31, 0.0  ;;  %v3973_v31 = vmul.f32 %v12818_v13, %v12818_v13  ;;  %4460 = vst.msk [vmem:[#allocation2 + $0x2f9] sm:$0x1] %vm4399_vm14, %v9560_v57 }
 0x774   :  { %v4078_v35 = vadd.f32 %v4077_v51, %v4076_v11  ;;  %v16812_v51 = vld [vmem:[#allocation21_spill] sm:$0xff]  ;;  %4461 = vst.msk [vmem:[#allocation2 + $0x311] sm:$0x1] %vm4399_vm14, %v9560_v57 }
 0x775   :  { %v13226_v14 = vsub.f32 %v16812_v51, %v12809_v10  ;;  %v3971_v10 = vmul.f32 %v12812_v4, %v12812_v4  ;;  %4462 = vst.msk [vmem:[#allocation2 + $0x329] sm:$0x1] %vm4399_vm14, %v9560_v57 }
 0x776   :  { %v4080_v44 = vadd.f32 %v4079_v56, %v4078_v35  ;;  %v3969_v56 = vmul.f32 %v13219_v28, %v13219_v28  ;;  %4463 = vst.msk [vmem:[#allocation2 + $0x341] sm:$0x1] %vm4399_vm14, %v9560_v57 }
 0x777   :  { %v3970_v1 = vmul.f32 %v13226_v14, %v13226_v14 }
 0x778   :  { %v4082_v11 = vadd.f32 %v4081_v53, %v4080_v44  ;;  %v4087_v44 = vsel %vm90_vm0, %v3968_v16, 0.0  ;;  %v4089_v51 = vsel %vm90_vm0, %v3969_v56, 0.0  ;;  %v4095_v16 = vsel %vm90_vm0, %v3972_v50, 0.0 }
 0x779   :  { %v3975_v56 = vmul.f32 %v12824_v49, %v12824_v49 }
 0x77a   :  { %v4084_v35 = vadd.f32 %v4083_v18, %v4082_v11  ;;  %v4091_v11 = vsel %vm90_vm0, %v3970_v1, 0.0 }
 0x77c   :  { %v4086_v63 = vadd.f32 %v4085_v24, %v4084_v35  ;;  %v4093_v35 = vsel %vm90_vm0, %v3971_v10, 0.0 }
 0x77e   :  { %v4088_v53 = vadd.f32 %v4087_v44, %v4086_v63  ;;  %v3974_v63 = vmul.f32 %v12821_v60, %v12821_v60 }
 0x780   :  { %v4090_v52 = vadd.f32 %v4089_v51, %v4088_v53  ;;  %v4097_v53 = vsel %vm90_vm0, %v3973_v31, 0.0 }
 0x782   :  { %v4092_v18 = vadd.f32 %v4091_v11, %v4090_v52  ;;  %v4099_v52 = vsel %vm90_vm0, %v3974_v63, 0.0  ;;  %v4101_v11 = vsel %vm90_vm0, %v3975_v56, 0.0  ;;  %v3712_v63 = vld [vmem:[%s16664_s3] sm:$0x1] }
 0x784   :  { %v4094_v24 = vadd.f32 %v4093_v35, %v4092_v18 }
 0x786   :  { %v4096_v44 = vadd.f32 %v4095_v16, %v4094_v24 }
 0x788   :  { %v4098_v51 = vadd.f32 %v4097_v53, %v4096_v44 }
 0x78a   :  { %v4100_v1 = vadd.f32 %v4099_v52, %v4098_v51  ;;  %v13279_v51 = vld [vmem:[%s16663_s4] ss:$0 sm:$0xff] }
 0x78c   :  { %v4102_v38 = vadd.f32 %v4101_v11, %v4100_v1 }
 0x78e   :  { %v4103_v10 = vrot.slane %v4102_v38, 4 }
 0x790   :  { %v4104_v18 = vadd.f32 %v4103_v10, %v4102_v38  ;;  %v4593_v10 = vld [vmem:[#allocation2 + $0x9] sm:$0xff] }
 0x791   :  { %4722 = vrot.lane.b32.xlu0 %v4593_v10, %s9552_s28 }
 0x792   :  { %v4105_v35 = vrot.slane %v4104_v18, 2 }
 0x794   :  { %v4106_v29 = vadd.f32 %v4105_v35, %v4104_v18 }
 0x796   :  { %v4107_v32 = vrot.slane %v4106_v29, 1 }
 0x798   :  { %v4108_v30 = vadd.f32 %v4107_v32, %v4106_v29  ;;  %v4592_v29 = vld [vmem:[#allocation2 + $0x1] sm:$0xff] }
 0x799   :  { %4720 = vrot.lane.b32.xlu2 %v4592_v29, %s9552_s28 }
 0x79a   :  { %v4109_v50 = vmul.f32 0.001953125, %v4108_v30 }
 0x79c   :  { %v4110_v24 = vadd.f32 1e-05, %v4109_v50 }
 0x79e   :  { %9548 = vrsqrt.f32 %v4110_v24  ;;  %vm4117_vm11 = vweird.f32 %v4110_v24 }
 0x7a4   :  { %v9549_v16 = vpop.eup %9548 }
 0x7a5   :  { %v4112_v31 = vmul.f32 %v9549_v16, %v4110_v24  ;;  %vm4118_vm10 = vweird.f32 %v9549_v16 }
 0x7a6   :  { %vm4119_vm12 = vmor %vm4117_vm11, %vm4118_vm10 }
 0x7a7   :  { %v4113_v38 = vmul.f32 %v9549_v16, %v4112_v31 }
 0x7a9   :  { %v4114_v30 = vmul.f32 0.5, %v4113_v38 }
 0x7ab   :  { %v4115_v32 = vsub.f32 1.5, %v4114_v30 }
 0x7ad   :  { %v4116_v44 = vmul.f32 %v9549_v16, %v4115_v32 }
 0x7af   :  { %v4120_v56 = vsel %vm4119_vm12, %v9549_v16, %v4116_v44 }
 0x7b0   :  { %v4121_v53 = vmul.f32 %v4120_v56, %v3712_v63 }
 0x7b2   :  { %v13281_v52 = vperm.slane %v4121_v53, 0 }
 0x7b4   :  { %v4188_v1 = vmul.f32 %v13281_v52, %v12824_v49  ;;  %v4125_v35 = vmul.f32 %v13281_v52, %v12828_v58  ;;  %v4126_v50 = vmul.f32 %v13281_v52, %v12832_v39  ;;  %v4127_v24 = vmul.f32 %v13281_v52, %v12836_v43 }
 0x7b5   :  { %v4128_v49 = vmul.f32 %v13281_v52, %v12840_v2  ;;  %v4129_v16 = vmul.f32 %v13281_v52, %v12848_v3  ;;  %v4130_v31 = vmul.f32 %v13281_v52, %v12854_v23  ;;  %v4131_v38 = vmul.f32 %v13281_v52, %v12862_v12 }
 0x7b6   :  { %v4255_v11 = vadd.f32 %v13279_v51, %v4188_v1  ;;  %v13306_v58 = vmul.f32 %v13281_v52, %v12869_v46  ;;  %v13310_v39 = vmul.f32 %v13281_v52, %v12876_v59  ;;  %v13314_v43 = vmul.f32 %v13281_v52, %v12883_v8 }
 0x7b7   :  { %v13318_v2 = vmul.f32 %v13281_v52, %v12890_v25  ;;  %v4160_v3 = vmul.f32 %v13281_v52, %v13065_v37  ;;  %v4161_v23 = vmul.f32 %v13281_v52, %v13072_v19  ;;  %v4162_v12 = vmul.f32 %v13281_v52, %v13079_v9 }
 0x7b8   :  { %v4319_v18 = vmax.f32 %v4255_v11, 0.0  ;;  %v4163_v46 = vmul.f32 %v13281_v52, %v13086_v15  ;;  %v4164_v59 = vmul.f32 %v13281_v52, %v13093_v7  ;;  %v4165_v8 = vmul.f32 %v13281_v52, %v13100_v47 }
 0x7b9   :  { %v4166_v25 = vmul.f32 %v13281_v52, %v13107_v62  ;;  %v4167_v37 = vmul.f32 %v13281_v52, %v13114_v48  ;;  %v4168_v19 = vmul.f32 %v13281_v52, %v13121_v26  ;;  %v4169_v9 = vmul.f32 %v13281_v52, %v13128_v61 }
 0x7ba   :  { %4384 = vst.msk [vmem:[#allocation2 + $0x339] sm:$0xff] %vm90_vm0, %v4319_v18  ;;  %v4170_v15 = vmul.f32 %v13281_v52, %v13135_v0  ;;  %v4171_v7 = vmul.f32 %v13281_v52, %v13142_v42  ;;  %v4172_v47 = vmul.f32 %v13281_v52, %v13149_v40  ;;  %v4173_v62 = vmul.f32 %v13281_v52, %v13156_v5 }
 0x7bb   :  { %v4174_v48 = vmul.f32 %v13281_v52, %v13163_v41  ;;  %v4175_v26 = vmul.f32 %v13281_v52, %v13170_v22  ;;  %v4176_v61 = vmul.f32 %v13281_v52, %v13177_v17  ;;  %v4177_v0 = vmul.f32 %v13281_v52, %v13184_v33 }
 0x7bc   :  { %v4178_v42 = vmul.f32 %v13281_v52, %v13191_v45  ;;  %v4179_v40 = vmul.f32 %v13281_v52, %v13198_v6  ;;  %v4180_v5 = vmul.f32 %v13281_v52, %v13205_v21  ;;  %v4181_v41 = vmul.f32 %v13281_v52, %v13212_v54 }
 0x7bd   :  { %v4182_v22 = vmul.f32 %v13281_v52, %v13219_v28  ;;  %v4183_v17 = vmul.f32 %v13281_v52, %v13226_v14  ;;  %v4184_v33 = vmul.f32 %v13281_v52, %v12812_v4  ;;  %v4185_v45 = vmul.f32 %v13281_v52, %v12815_v34 }
 0x7be   :  { %v4186_v6 = vmul.f32 %v13281_v52, %v12818_v13  ;;  %v4187_v21 = vmul.f32 %v13281_v52, %v12821_v60  ;;  %v4192_v54 = vadd.f32 %v13279_v51, %v4125_v35  ;;  %v4193_v30 = vadd.f32 %v13279_v51, %v4126_v50 }
 0x7bf   :  { %v4194_v28 = vadd.f32 %v13279_v51, %v4127_v24  ;;  %v4195_v14 = vadd.f32 %v13279_v51, %v4128_v49  ;;  %v4196_v32 = vadd.f32 %v13279_v51, %v4129_v16  ;;  %v4197_v4 = vadd.f32 %v13279_v51, %v4130_v31 }
 0x7c0   :  { %v13383_v34 = vadd.f32 %v13279_v51, %v4131_v38  ;;  %v13386_v13 = vadd.f32 %v13279_v51, %v4160_v3  ;;  %v13389_v60 = vadd.f32 %v13279_v51, %v4161_v23  ;;  %v13392_v29 = vadd.f32 %v13279_v51, %v4162_v12 }
 0x7c1   :  { %v13395_v63 = vadd.f32 %v13279_v51, %v4163_v46  ;;  %v13398_v44 = vadd.f32 %v13279_v51, %v4164_v59  ;;  %v13401_v56 = vadd.f32 %v13279_v51, %v4165_v8  ;;  %v13404_v53 = vadd.f32 %v13279_v51, %v4166_v25 }
 0x7c2   :  { %v13407_v1 = vadd.f32 %v13279_v51, %v4167_v37  ;;  %v13410_v11 = vadd.f32 %v13279_v51, %v4168_v19  ;;  %v13413_v10 = vadd.f32 %v13279_v51, %v4169_v9  ;;  %v13416_v18 = vadd.f32 %v13279_v51, %v4170_v15 }
 0x7c3   :  { %v13419_v35 = vadd.f32 %v13279_v51, %v4171_v7  ;;  %v13422_v50 = vadd.f32 %v13279_v51, %v4172_v47  ;;  %v13425_v24 = vadd.f32 %v13279_v51, %v4173_v62  ;;  %v13428_v49 = vadd.f32 %v13279_v51, %v4174_v48 }
 0x7c4   :  { %v13431_v16 = vadd.f32 %v13279_v51, %v4175_v26  ;;  %v13434_v31 = vadd.f32 %v13279_v51, %v4176_v61  ;;  %v13437_v38 = vadd.f32 %v13279_v51, %v4177_v0  ;;  %v13440_v3 = vadd.f32 %v13279_v51, %v4178_v42 }
 0x7c5   :  { %v13443_v23 = vadd.f32 %v13279_v51, %v4179_v40  ;;  %v13446_v12 = vadd.f32 %v13279_v51, %v4180_v5  ;;  %v13449_v46 = vadd.f32 %v13279_v51, %v4181_v41  ;;  %v13452_v59 = vadd.f32 %v13279_v51, %v4182_v22  ;;  %v16813_v41 = vld [vmem:[#allocation22_spill] sm:$0xff] }
 0x7c6   :  { %v13455_v8 = vadd.f32 %v13279_v51, %v4183_v17  ;;  %v13458_v25 = vadd.f32 %v13279_v51, %v4184_v33  ;;  %v13461_v37 = vadd.f32 %v13279_v51, %v4185_v45  ;;  %v13464_v19 = vadd.f32 %v13279_v51, %v4186_v6 }
 0x7c7   :  { %v13467_v9 = vadd.f32 %v13279_v51, %v4187_v21  ;;  %v4256_v15 = vmax.f32 %v4192_v54, 0.0  ;;  %v4257_v7 = vmax.f32 %v4193_v30, 0.0  ;;  %v4258_v47 = vmax.f32 %v4194_v28, 0.0  ;;  %v16816_v30 = vld [vmem:[#allocation25_spill] sm:$0xff] }
 0x7c8   :  { %v4136_v62 = vmul.f32 %v13281_v52, %v12897_v36  ;;  %v4199_v48 = vadd.f32 %v13279_v51, %v13306_v58  ;;  %v4259_v26 = vmax.f32 %v4195_v14, 0.0  ;;  %v4137_v61 = vmul.f32 %v13281_v52, %v12904_v20 }
 0x7c9   :  { %v4200_v0 = vadd.f32 %v13279_v51, %v13310_v39  ;;  %v4260_v42 = vmax.f32 %v4196_v32, 0.0  ;;  %4323 = vst.msk [vmem:[#allocation2 + $0x31] sm:$0xff] %vm90_vm0, %v4258_v47  ;;  %v4138_v40 = vmul.f32 %v13281_v52, %v12911_v55  ;;  %v4201_v5 = vadd.f32 %v13279_v51, %v13314_v43  ;;  %v16814_v43 = vld [vmem:[#allocation23_spill] sm:$0xff] }
 0x7ca   :  { %v4261_v36 = vmax.f32 %v4197_v4, 0.0  ;;  %4321 = vst.msk [vmem:[#allocation2 + $0x19] sm:$0xff] %vm90_vm0, %v4256_v15  ;;  %v4139_v58 = vmul.f32 %v13281_v52, %v12918_v27  ;;  %v4202_v20 = vadd.f32 %v13279_v51, %v13318_v2  ;;  %v4262_v39 = vmax.f32 %v13383_v34, 0.0  ;;  %v16815_v2 = vld [vmem:[#allocation24_spill] sm:$0xff]  ;;  %v16817_v4 = vld [vmem:[#allocation26_spill] sm:$0xff] }
 0x7cb   :  { %4322 = vst.msk [vmem:[#allocation2 + $0x21] sm:$0xff] %vm90_vm0, %v4257_v7  ;;  %v4140_v22 = vmul.f32 %v13281_v52, %v16813_v41  ;;  %v4203_v55 = vadd.f32 %v13279_v51, %v4136_v62  ;;  %v4263_v17 = vmax.f32 %v4199_v48, 0.0  ;;  %v4141_v33 = vmul.f32 %v13281_v52, %v16814_v43  ;;  %v16818_v62 = vld [vmem:[#allocation27_spill] sm:$0xff]  ;;  %v16821_v41 = vld [vmem:[#allocation30_spill] sm:$0xff] }
 0x7cc   :  { %4324 = vst.msk [vmem:[#allocation2 + $0x39] sm:$0xff] %vm90_vm0, %v4259_v26  ;;  %v4204_v27 = vadd.f32 %v13279_v51, %v4137_v61  ;;  %v4264_v45 = vmax.f32 %v4200_v0, 0.0  ;;  %v4142_v6 = vmul.f32 %v13281_v52, %v16815_v2  ;;  %v4205_v21 = vadd.f32 %v13279_v51, %v4138_v40  ;;  %v16819_v0 = vld [vmem:[#allocation28_spill] sm:$0xff]  ;;  %v16822_v43 = vld [vmem:[#allocation31_spill] sm:$0xff] }
 0x7cd   :  { %4325 = vst.msk [vmem:[#allocation2 + $0x49] sm:$0xff] %vm90_vm0, %v4260_v42  ;;  %v4265_v54 = vmax.f32 %v4201_v5, 0.0  ;;  %v4143_v28 = vmul.f32 %v13281_v52, %v16816_v30  ;;  %v4206_v14 = vadd.f32 %v13279_v51, %v4139_v58  ;;  %v4266_v32 = vmax.f32 %v4202_v20, 0.0  ;;  %v16823_v2 = vld [vmem:[#allocation32_spill] sm:$0xff]  ;;  %v16824_v30 = vld [vmem:[#allocation33_spill] sm:$0xff] }
 0x7ce   :  { %4326 = vst.msk [vmem:[#allocation2 + $0x51] sm:$0xff] %vm90_vm0, %v4261_v36  ;;  %v4144_v34 = vmul.f32 %v13281_v52, %v16817_v4  ;;  %v4207_v15 = vadd.f32 %v13279_v51, %v4140_v22  ;;  %v4267_v7 = vmax.f32 %v4203_v55, 0.0  ;;  %v4145_v48 = vmul.f32 %v13281_v52, %v16818_v62  ;;  %v16820_v36 = vld [vmem:[#allocation29_spill] sm:$0xff]  ;;  %v16825_v4 = vld [vmem:[#allocation34_spill] sm:$0xff] }
 0x7cf   :  { %4327 = vst.msk [vmem:[#allocation2 + $0x61] sm:$0xff] %vm90_vm0, %v4262_v39  ;;  %v4208_v26 = vadd.f32 %v13279_v51, %v4141_v33  ;;  %v4268_v61 = vmax.f32 %v4204_v27, 0.0  ;;  %v4146_v42 = vmul.f32 %v13281_v52, %v16819_v0  ;;  %v4209_v40 = vadd.f32 %v13279_v51, %v4142_v6 }
 0x7d0   :  { %v4596_v47 = vld [vmem:[#allocation2 + $0x31] sm:$0xff]  ;;  %4328 = vst.msk [vmem:[#allocation2 + $0x69] sm:$0xff] %vm90_vm0, %v4263_v17  ;;  %v4269_v5 = vmax.f32 %v4205_v21, 0.0  ;;  %v4147_v58 = vmul.f32 %v13281_v52, %v16820_v36  ;;  %v4210_v20 = vadd.f32 %v13279_v51, %v4143_v28  ;;  %v4270_v39 = vmax.f32 %v4206_v14, 0.0 }
 0x7d1   :  { %4728 = vrot.lane.b32.xlu0 %v4596_v47, %s9552_s28  ;;  %4329 = vst.msk [vmem:[#allocation2 + $0x79] sm:$0xff] %vm90_vm0, %v4264_v45  ;;  %v4148_v22 = vmul.f32 %v13281_v52, %v16821_v41  ;;  %v4211_v55 = vadd.f32 %v13279_v51, %v4144_v34  ;;  %v4271_v17 = vmax.f32 %v4207_v15, 0.0  ;;  %v4149_v33 = vmul.f32 %v13281_v52, %v16822_v43  ;;  %v16826_v47 = vld [vmem:[#allocation35_spill] sm:$0xff] }
 0x7d2   :  { %4330 = vst.msk [vmem:[#allocation2 + $0x81] sm:$0xff] %vm90_vm0, %v4265_v54  ;;  %v4212_v27 = vadd.f32 %v13279_v51, %v4145_v48  ;;  %v4272_v45 = vmax.f32 %v4208_v26, 0.0  ;;  %v4150_v6 = vmul.f32 %v13281_v52, %v16823_v2  ;;  %v4213_v21 = vadd.f32 %v13279_v51, %v4146_v42 }
 0x7d3   :  { %4331 = vst.msk [vmem:[#allocation2 + $0x91] sm:$0xff] %vm90_vm0, %v4266_v32  ;;  %v4273_v54 = vmax.f32 %v4209_v40, 0.0  ;;  %v4151_v28 = vmul.f32 %v13281_v52, %v16824_v30  ;;  %v4214_v14 = vadd.f32 %v13279_v51, %v4147_v58  ;;  %v4274_v32 = vmax.f32 %v4210_v20, 0.0 }
 0x7d4   :  { %4332 = vst.msk [vmem:[#allocation2 + $0x99] sm:$0xff] %vm90_vm0, %v4267_v7  ;;  %v4152_v34 = vmul.f32 %v13281_v52, %v16825_v4  ;;  %v4215_v15 = vadd.f32 %v13279_v51, %v4148_v22  ;;  %v4275_v7 = vmax.f32 %v4211_v55, 0.0  ;;  %v4153_v62 = vmul.f32 %v13281_v52, %v16826_v47 }
 0x7d5   :  { %4333 = vst.msk [vmem:[#allocation2 + $0xa9] sm:$0xff] %vm90_vm0, %v4268_v61  ;;  %v4216_v48 = vadd.f32 %v13279_v51, %v4149_v33  ;;  %v4276_v26 = vmax.f32 %v4212_v27, 0.0  ;;  %v16827_v61 = vld [vmem:[#allocation36_spill] sm:$0xff]  ;;  %v4217_v42 = vadd.f32 %v13279_v51, %v4150_v6  ;;  %v4277_v40 = vmax.f32 %v4213_v21, 0.0 }
 0x7d6   :  { %4334 = vst.msk [vmem:[#allocation2 + $0xb1] sm:$0xff] %vm90_vm0, %v4269_v5  ;;  %v4154_v0 = vmul.f32 %v13281_v52, %v16827_v61  ;;  %v16828_v5 = vld [vmem:[#allocation37_spill] sm:$0xff]  ;;  %v4218_v58 = vadd.f32 %v13279_v51, %v4151_v28  ;;  %v4278_v20 = vmax.f32 %v4214_v14, 0.0  ;;  %v4219_v22 = vadd.f32 %v13279_v51, %v4152_v34 }
 0x7d7   :  { %4335 = vst.msk [vmem:[#allocation2 + $0xc1] sm:$0xff] %vm90_vm0, %v4270_v39  ;;  %v4155_v36 = vmul.f32 %v13281_v52, %v16828_v5  ;;  %v16829_v39 = vld [vmem:[#allocation38_spill] sm:$0xff]  ;;  %v4279_v55 = vmax.f32 %v4215_v15, 0.0  ;;  %v4220_v33 = vadd.f32 %v13279_v51, %v4153_v62  ;;  %v4280_v27 = vmax.f32 %v4216_v48, 0.0 }
 0x7d8   :  { %4336 = vst.msk [vmem:[#allocation2 + $0xc9] sm:$0xff] %vm90_vm0, %v4271_v17  ;;  %v4156_v41 = vmul.f32 %v13281_v52, %v16829_v39  ;;  %v16830_v17 = vld [vmem:[#allocation39_spill] sm:$0xff]  ;;  %v4221_v6 = vadd.f32 %v13279_v51, %v4154_v0  ;;  %v4281_v21 = vmax.f32 %v4217_v42, 0.0  ;;  %v4282_v14 = vmax.f32 %v4218_v58, 0.0  ;;  %v4595_v42 = vld [vmem:[#allocation2 + $0x21] sm:$0xff] }
 0x7d9   :  { %4337 = vst.msk [vmem:[#allocation2 + $0xd9] sm:$0xff] %vm90_vm0, %v4272_v45  ;;  %v4157_v43 = vmul.f32 %v13281_v52, %v16830_v17  ;;  %v16831_v45 = vld [vmem:[#allocation4_spill] sm:$0xff]  ;;  %v4222_v28 = vadd.f32 %v13279_v51, %v4155_v36  ;;  %v4283_v4 = vmax.f32 %v4219_v22, 0.0  ;;  %v4284_v15 = vmax.f32 %v4220_v33, 0.0  ;;  %4726 = vrot.lane.b32.xlu2 %v4595_v42, %s9552_s28  ;;  %v4601_v17 = vld [vmem:[#allocation2 + $0x69] sm:$0xff]  ;;  %v4624_v42 = vld [vmem:[#allocation2 + $0x1b1] sm:$0xff] }
 0x7da   :  { %4338 = vst.msk [vmem:[#allocation2 + $0xe1] sm:$0xff] %vm90_vm0, %v4273_v54  ;;  %v4158_v2 = vmul.f32 %v13281_v52, %v16831_v45  ;;  %v16832_v54 = vld [vmem:[#allocation40_spill] sm:$0xff]  ;;  %v4285_v47 = vmax.f32 %v4221_v6, 0.0  ;;  %v4291_v5 = vmax.f32 %v13386_v13, 0.0  ;;  %v4292_v36 = vmax.f32 %v13389_v60, 0.0  ;;  %v13828_v57 = vld [vmem:[#allocation2 + $0x90] sm:$0xff] }
 0x7db   :  { %4339 = vst.msk [vmem:[#allocation2 + $0xf1] sm:$0xff] %vm90_vm0, %v4274_v32  ;;  %v4159_v30 = vmul.f32 %v13281_v52, %v16832_v54  ;;  %v4223_v32 = vadd.f32 %v13279_v51, %v4156_v41  ;;  %v4224_v34 = vadd.f32 %v13279_v51, %v4157_v43  ;;  %v4286_v62 = vmax.f32 %v4222_v28, 0.0  ;;  %v4598_v41 = vld [vmem:[#allocation2 + $0x49] sm:$0xff] }
 0x7dc   :  { %4340 = vst.msk [vmem:[#allocation2 + $0xf9] sm:$0xff] %vm90_vm0, %v4275_v7  ;;  %v4225_v7 = vadd.f32 %v13279_v51, %v4158_v2  ;;  %v4293_v58 = vmax.f32 %v13392_v29, 0.0  ;;  %v4295_v13 = vmax.f32 %v13398_v44, 0.0  ;;  %v4296_v39 = vmax.f32 %v13401_v56, 0.0  ;;  %v4602_v44 = vld [vmem:[#allocation2 + $0x79] sm:$0xff]  ;;  %v4606_v2 = vld [vmem:[#allocation2 + $0xa9] sm:$0xff] }
 0x7dd   :  { %4341 = vst.msk [vmem:[#allocation2 + $0x109] sm:$0xff] %vm90_vm0, %v4276_v26  ;;  %v4226_v52 = vadd.f32 %v13279_v51, %v4159_v30  ;;  %v4287_v48 = vmax.f32 %v4223_v32, 0.0  ;;  %v4288_v26 = vmax.f32 %v4224_v34, 0.0  ;;  %v4599_v51 = vld [vmem:[#allocation2 + $0x51] sm:$0xff]  ;;  %v4297_v60 = vmax.f32 %v13404_v53, 0.0  ;;  %v4470_v54 = vld [vmem:[#allocation2 + $0x48] sm:$0xff] }
 0x7de   :  { %4342 = vst.msk [vmem:[#allocation2 + $0x111] sm:$0xff] %vm90_vm0, %v4277_v40  ;;  %v4289_v61 = vmax.f32 %v4225_v7, 0.0  ;;  %v4594_v40 = vld [vmem:[#allocation2 + $0x19] sm:$0xff]  ;;  %4734 = vrot.lane.b32.xlu0 %v4599_v51, %s9552_s28  ;;  %v4298_v29 = vmax.f32 %v13407_v1, 0.0  ;;  %v4299_v22 = vmax.f32 %v13410_v11, 0.0  ;;  %v4300_v56 = vmax.f32 %v13413_v10, 0.0 }
 0x7df   :  { %4343 = vst.msk [vmem:[#allocation2 + $0x121] sm:$0xff] %vm90_vm0, %v4278_v20  ;;  %v4290_v0 = vmax.f32 %v4226_v52, 0.0  ;;  %4724 = vrot.lane.b32.xlu1 %v4594_v40, %s9552_s28  ;;  %v4294_v20 = vmax.f32 %v13395_v63, 0.0  ;;  %v4597_v63 = vld [vmem:[#allocation2 + $0x39] sm:$0xff]  ;;  %v4301_v53 = vmax.f32 %v13416_v18, 0.0  ;;  %v4302_v1 = vmax.f32 %v13419_v35, 0.0 }
 0x7e0   :  { %4344 = vst.msk [vmem:[#allocation2 + $0x129] sm:$0xff] %vm90_vm0, %v4279_v55  ;;  %v4303_v11 = vmax.f32 %v13422_v50, 0.0  ;;  %v4304_v55 = vmax.f32 %v13425_v24, 0.0  ;;  %v4305_v10 = vmax.f32 %v13428_v49, 0.0  ;;  %v4306_v18 = vmax.f32 %v13431_v16, 0.0  ;;  %v4600_v35 = vld [vmem:[#allocation2 + $0x61] sm:$0xff] }
 0x7e1   :  { %4345 = vst.msk [vmem:[#allocation2 + $0x139] sm:$0xff] %vm90_vm0, %v4280_v27  ;;  %4732 = vrot.lane.b32.xlu2 %v4598_v41, %s9552_s28  ;;  %v4307_v43 = vmax.f32 %v13434_v31, 0.0  ;;  %v4605_v50 = vld [vmem:[#allocation2 + $0x99] sm:$0xff]  ;;  %v4308_v24 = vmax.f32 %v13437_v38, 0.0  ;;  %v4309_v49 = vmax.f32 %v13440_v3, 0.0  ;;  %v4310_v16 = vmax.f32 %v13443_v23, 0.0 }
 0x7e2   :  { %4346 = vst.msk [vmem:[#allocation2 + $0x141] sm:$0xff] %vm90_vm0, %v4281_v21  ;;  %v4311_v31 = vmax.f32 %v13446_v12, 0.0  ;;  %v4312_v33 = vmax.f32 %v13449_v46, 0.0  ;;  %v4313_v38 = vmax.f32 %v13452_v59, 0.0  ;;  %v4314_v3 = vmax.f32 %v13455_v8, 0.0  ;;  %v4604_v27 = vld [vmem:[#allocation2 + $0x91] sm:$0xff] }
 0x7e3   :  { %4347 = vst.msk [vmem:[#allocation2 + $0x151] sm:$0xff] %vm90_vm0, %v4282_v14  ;;  %v4603_v23 = vld [vmem:[#allocation2 + $0x81] sm:$0xff]  ;;  %v4315_v45 = vmax.f32 %v13458_v25, 0.0  ;;  %v4316_v46 = vmax.f32 %v13461_v37, 0.0  ;;  %v4317_v59 = vmax.f32 %v13464_v19, 0.0  ;;  %v4318_v8 = vmax.f32 %v13467_v9, 0.0 }
 0x7e4   :  { %4348 = vst.msk [vmem:[#allocation2 + $0x159] sm:$0xff] %vm90_vm0, %v4283_v4  ;;  %v4608_v12 = vld [vmem:[#allocation2 + $0xc1] sm:$0xff]  ;;  %v4607_v37 = vld [vmem:[#allocation2 + $0xb1] sm:$0xff]  ;;  %v4610_v9 = vld [vmem:[#allocation2 + $0xd9] sm:$0xff] }
 0x7e5   :  { %4349 = vst.msk [vmem:[#allocation2 + $0x169] sm:$0xff] %vm90_vm0, %v4284_v15  ;;  %v4467_v25 = vld [vmem:[#allocation2 + $0x20] sm:$0xff]  ;;  %v4609_v6 = vld [vmem:[#allocation2 + $0xc9] sm:$0xff]  ;;  %v4612_v28 = vld [vmem:[#allocation2 + $0xf1] sm:$0xff] }
 0x7e6   :  { %4350 = vst.msk [vmem:[#allocation2 + $0x171] sm:$0xff] %vm90_vm0, %v4285_v47  ;;  %4740 = vrot.lane.b32.xlu0 %v4602_v44, %s9552_s28  ;;  %v4611_v19 = vld [vmem:[#allocation2 + $0xe1] sm:$0xff]  ;;  %v4614_v21 = vld [vmem:[#allocation2 + $0x109] sm:$0xff]  ;;  %v4613_v30 = vld [vmem:[#allocation2 + $0xf9] sm:$0xff] }
 0x7e7   :  { %4351 = vst.msk [vmem:[#allocation2 + $0x181] sm:$0xff] %vm90_vm0, %v4286_v62  ;;  %4730 = vrot.lane.b32.xlu1 %v4597_v63, %s9552_s28  ;;  %v4617_v14 = vld [vmem:[#allocation2 + $0x129] sm:$0xff]  ;;  %v4464_v32 = vld [vmem:[#allocation2] sm:$0xff]  ;;  %v4615_v15 = vld [vmem:[#allocation2 + $0x111] sm:$0xff] }
 0x7e8   :  { %4352 = vst.msk [vmem:[#allocation2 + $0x189] sm:$0xff] %vm90_vm0, %v4287_v48  ;;  %v4616_v34 = vld [vmem:[#allocation2 + $0x121] sm:$0xff]  ;;  %v4618_v52 = vld [vmem:[#allocation2 + $0x139] sm:$0xff] }
 0x7e9   :  { %4353 = vst.msk [vmem:[#allocation2 + $0x1c9] sm:$0xff] %vm90_vm0, %v4288_v26  ;;  %4738 = vrot.lane.b32.xlu2 %v4601_v17, %s9552_s28  ;;  %v4619_v47 = vld [vmem:[#allocation2 + $0x141] sm:$0xff]  ;;  %v13842_v17 = vld [vmem:[#allocation2 + $0x38] sm:$0xff] }
 0x7ea   :  { %4354 = vst.msk [vmem:[#allocation2 + $0x1d1] sm:$0xff] %vm90_vm0, %v4289_v61  ;;  %v4620_v7 = vld [vmem:[#allocation2 + $0x151] sm:$0xff]  ;;  %v4465_v41 = vld [vmem:[#allocation2 + $0x8] sm:$0xff] }
 0x7eb   :  { %4355 = vst.msk [vmem:[#allocation2 + $0x1e1] sm:$0xff] %vm90_vm0, %v4290_v0  ;;  %v4621_v26 = vld [vmem:[#allocation2 + $0x159] sm:$0xff]  ;;  %v13815_v63 = vld [vmem:[#allocation2 + $0x68] sm:$0xff] }
 0x7ec   :  { %4356 = vst.msk [vmem:[#allocation2 + $0x1e9] sm:$0xff] %vm90_vm0, %v4291_v5  ;;  %v4622_v48 = vld [vmem:[#allocation2 + $0x169] sm:$0xff]  ;;  %v4625_v0 = vld [vmem:[#allocation2 + $0x1b9] sm:$0xff] }
 0x7ed   :  { %4357 = vst.msk [vmem:[#allocation2 + $0x1f9] sm:$0xff] %vm90_vm0, %v4292_v36  ;;  %v4623_v62 = vld [vmem:[#allocation2 + $0x171] sm:$0xff] }
 0x7ee   :  { %4358 = vst.msk [vmem:[#allocation2 + $0x201] sm:$0xff] %vm90_vm0, %v4293_v58  ;;  %4746 = vrot.lane.b32.xlu0 %v4605_v50, %s9552_s28 }
 0x7ef   :  { %4359 = vst.msk [vmem:[#allocation2 + $0x211] sm:$0xff] %vm90_vm0, %v4294_v20  ;;  %4736 = vrot.lane.b32.xlu1 %v4600_v35, %s9552_s28  ;;  %v13846_v35 = vld [vmem:[#allocation2 + $0x78] sm:$0xff] }
 0x7f0   :  { %4360 = vst.msk [vmem:[#allocation2 + $0x219] sm:$0xff] %vm90_vm0, %v4295_v13  ;;  %v4626_v61 = vld [vmem:[#allocation2 + $0x1c9] sm:$0xff] }
 0x7f1   :  { %4361 = vst.msk [vmem:[#allocation2 + $0x229] sm:$0xff] %vm90_vm0, %v4296_v39  ;;  %4744 = vrot.lane.b32.xlu2 %v4604_v27, %s9552_s28  ;;  %v4627_v51 = vld [vmem:[#allocation2 + $0x1d1] sm:$0xff] }
 0x7f2   :  { %4362 = vst.msk [vmem:[#allocation2 + $0x231] sm:$0xff] %vm90_vm0, %v4297_v60  ;;  %v4628_v5 = vld [vmem:[#allocation2 + $0x1e1] sm:$0xff]  ;;  %v13868_v27 = vld [vmem:[#allocation2 + $0xf8] sm:$0xff] }
 0x7f3   :  { %4363 = vst.msk [vmem:[#allocation2 + $0x241] sm:$0xff] %vm90_vm0, %v4298_v29  ;;  %v4721_v4 = vpop.permute.xlu2 %4720  ;;  %v4629_v40 = vld [vmem:[#allocation2 + $0x1e9] sm:$0xff] }
 0x7f4   :  { %4364 = vst.msk [vmem:[#allocation2 + $0x249] sm:$0xff] %vm90_vm0, %v4299_v22  ;;  %v4630_v39 = vld [vmem:[#allocation2 + $0x1f9] sm:$0xff]  ;;  %v13818_v22 = vld [vmem:[#allocation2 + $0x30] sm:$0xff] }
 0x7f5   :  { %4365 = vst.msk [vmem:[#allocation2 + $0x259] sm:$0xff] %vm90_vm0, %v4300_v56  ;;  %v4631_v13 = vld [vmem:[#allocation2 + $0x201] sm:$0xff] }
 0x7f6   :  { %4366 = vst.msk [vmem:[#allocation2 + $0x261] sm:$0xff] %vm90_vm0, %v4301_v53  ;;  %4752 = vrot.lane.b32.xlu0 %v4608_v12, %s9552_s28  ;;  %v4632_v36 = vld [vmem:[#allocation2 + $0x211] sm:$0xff] }
 0x7f7   :  { %4367 = vst.msk [vmem:[#allocation2 + $0x271] sm:$0xff] %vm90_vm0, %v4302_v1  ;;  %4742 = vrot.lane.b32.xlu1 %v4603_v23, %s9552_s28  ;;  %v4633_v56 = vld [vmem:[#allocation2 + $0x219] sm:$0xff] }
 0x7f8   :  { %4368 = vst.msk [vmem:[#allocation2 + $0x279] sm:$0xff] %vm90_vm0, %v4303_v11  ;;  %v4634_v44 = vld [vmem:[#allocation2 + $0x229] sm:$0xff]  ;;  %v13872_v23 = vld [vmem:[#allocation2 + $0x80] sm:$0xff] }
 0x7f9   :  { %4369 = vst.msk [vmem:[#allocation2 + $0x289] sm:$0xff] %vm90_vm0, %v4304_v55  ;;  %4750 = vrot.lane.b32.xlu2 %v4607_v37, %s9552_s28  ;;  %v4635_v60 = vld [vmem:[#allocation2 + $0x231] sm:$0xff] }
 0x7fa   :  { %4370 = vst.msk [vmem:[#allocation2 + $0x291] sm:$0xff] %vm90_vm0, %v4305_v10  ;;  %v13831_v55 = vld [vmem:[#allocation2 + $0x18] sm:$0xff]  ;;  %v13834_v10 = vld [vmem:[#allocation2 + $0x50] sm:$0xff]  ;;  %v4636_v50 = vld [vmem:[#allocation2 + $0x241] sm:$0xff] }
 0x7fb   :  { %4371 = vst.msk [vmem:[#allocation2 + $0x2a1] sm:$0xff] %vm90_vm0, %v4306_v18  ;;  %v13838_v18 = vld [vmem:[#allocation2 + $0xb0] sm:$0xff] }
 0x7fc   :  { %4372 = vst.msk [vmem:[#allocation2 + $0x2a9] sm:$0xff] %vm90_vm0, %v4307_v43  ;;  %v4638_v1 = vld [vmem:[#allocation2 + $0x259] sm:$0xff]  ;;  %v4637_v43 = vld [vmem:[#allocation2 + $0x249] sm:$0xff] }
 0x7fd   :  { %4373 = vst.msk [vmem:[#allocation2 + $0x2b9] sm:$0xff] %vm90_vm0, %v4308_v24  ;;  %v13850_v24 = vld [vmem:[#allocation2 + $0xd8] sm:$0xff]  ;;  %v4639_v12 = vld [vmem:[#allocation2 + $0x261] sm:$0xff] }
 0x7fe   :  { %4374 = vst.msk [vmem:[#allocation2 + $0x2c1] sm:$0xff] %vm90_vm0, %v4309_v49  ;;  %4758 = vrot.lane.b32.xlu0 %v4611_v19, %s9552_s28  ;;  %v13891_v19 = vld [vmem:[#allocation2 + $0xa8] sm:$0xff] }
 0x7ff   :  { %4375 = vst.msk [vmem:[#allocation2 + $0x2d1] sm:$0xff] %vm90_vm0, %v4310_v16  ;;  %4748 = vrot.lane.b32.xlu1 %v4606_v2, %s9552_s28  ;;  %v4641_v49 = vld [vmem:[#allocation2 + $0x279] sm:$0xff] }
 0x800   :  { %4376 = vst.msk [vmem:[#allocation2 + $0x2d9] sm:$0xff] %vm90_vm0, %v4311_v31  ;;  %v13888_v2 = vld [vmem:[#allocation2 + $0x120] sm:$0xff] }
 0x801   :  { %4377 = vst.msk [vmem:[#allocation2 + $0x2e9] sm:$0xff] %vm90_vm0, %v4312_v33  ;;  %4756 = vrot.lane.b32.xlu2 %v4610_v9, %s9552_s28  ;;  %v13894_v9 = vld [vmem:[#allocation2 + $0xe0] sm:$0xff] }
 0x802   :  { %4378 = vst.msk [vmem:[#allocation2 + $0x2f1] sm:$0xff] %vm90_vm0, %v4313_v38  ;;  %v13862_v38 = vld [vmem:[#allocation2 + $0x60] sm:$0xff] }
 0x803   :  { %4379 = vst.msk [vmem:[#allocation2 + $0x301] sm:$0xff] %vm90_vm0, %v4314_v3  ;;  %v4723_v20 = vpop.permute.xlu0 %4722  ;;  %v13865_v3 = vld [vmem:[#allocation2 + $0x98] sm:$0xff] }
 0x804   :  { %4380 = vst.msk [vmem:[#allocation2 + $0x309] sm:$0xff] %vm90_vm0, %v4315_v45  ;;  %v4640_v45 = vld [vmem:[#allocation2 + $0x271] sm:$0xff] }
 0x805   :  { %4381 = vst.msk [vmem:[#allocation2 + $0x319] sm:$0xff] %vm90_vm0, %v4316_v46  ;;  %v13876_v46 = vld [vmem:[#allocation2 + $0xc0] sm:$0xff] }
 0x806   :  { %4382 = vst.msk [vmem:[#allocation2 + $0x321] sm:$0xff] %vm90_vm0, %v4317_v59  ;;  %4764 = vrot.lane.b32.xlu0 %v4614_v21, %s9552_s28  ;;  %v4644_v59 = vld [vmem:[#allocation2 + $0x2a1] sm:$0xff]  ;;  %v4643_v21 = vld [vmem:[#allocation2 + $0x291] sm:$0xff] }
 0x807   :  { %4383 = vst.msk [vmem:[#allocation2 + $0x331] sm:$0xff] %vm90_vm0, %v4318_v8  ;;  %4754 = vrot.lane.b32.xlu1 %v4609_v6, %s9552_s28  ;;  %v13898_v6 = vld [vmem:[#allocation2 + $0x140] sm:$0xff] }
 0x808   :  { %4531 = vst.msk [vmem:[#allocation3 + $0x18] sm:$0xff] %vm90_vm0, %v4467_v25 }
 0x809   :  { %4534 = vst.msk [vmem:[#allocation3 + $0x30] sm:$0xff] %vm90_vm0, %v4470_v54  ;;  %4762 = vrot.lane.b32.xlu2 %v4613_v30, %s9552_s28  ;;  %v4642_v54 = vld [vmem:[#allocation2 + $0x289] sm:$0xff] }
 0x80a   :  { %4528 = vst.msk [vmem:[#allocation3] sm:$0xff] %vm90_vm0, %v4464_v32  ;;  %v13902_v30 = vld [vmem:[#allocation2 + $0xc8] sm:$0xff] }
 0x80b   :  { %4912 = vst.msk [vmem:[#allocation3] sm:$0xff] %vm475_vm1, %v4721_v4 }
 0x80c   :  { %4529 = vst.msk [vmem:[#allocation3 + $0x8] sm:$0xff] %vm90_vm0, %v4465_v41 }
 0x80d   :  { %4913 = vst.msk [vmem:[#allocation3 + $0x8] sm:$0xff] %vm475_vm1, %v4723_v20  ;;  %v4648_v20 = vld [vmem:[#allocation2 + $0x2d1] sm:$0xff] }
 0x80e   :  { %4770 = vrot.lane.b32.xlu0 %v4617_v14, %s9552_s28  ;;  %4537 = vst.msk [vmem:[#allocation3 + $0x48] sm:$0xff] %vm90_vm0, %v13815_v63 }
 0x80f   :  { %4760 = vrot.lane.b32.xlu1 %v4612_v28, %s9552_s28  ;;  %4532 = vst.msk [vmem:[#allocation3 + $0x20] sm:$0xff] %vm90_vm0, %v13818_v22  ;;  %v4647_v28 = vld [vmem:[#allocation2 + $0x2c1] sm:$0xff] }
 0x810   :  { %4540 = vst.msk [vmem:[#allocation3 + $0x60] sm:$0xff] %vm90_vm0, %v13828_v57 }
 0x811   :  { %4768 = vrot.lane.b32.xlu2 %v4616_v34, %s9552_s28  ;;  %4530 = vst.msk [vmem:[#allocation3 + $0x10] sm:$0xff] %vm90_vm0, %v13831_v55  ;;  %v13914_v34 = vld [vmem:[#allocation2 + $0x108] sm:$0xff] }
 0x812   :  { %4535 = vst.msk [vmem:[#allocation3 + $0x38] sm:$0xff] %vm90_vm0, %v13834_v10 }
 0x813   :  { %4543 = vst.msk [vmem:[#allocation3 + $0x78] sm:$0xff] %vm90_vm0, %v13838_v18 }
 0x814   :  { %4533 = vst.msk [vmem:[#allocation3 + $0x28] sm:$0xff] %vm90_vm0, %v13842_v17 }
 0x815   :  { %4538 = vst.msk [vmem:[#allocation3 + $0x50] sm:$0xff] %vm90_vm0, %v13846_v35 }
 0x816   :  { %4776 = vrot.lane.b32.xlu0 %v4620_v7, %s9552_s28  ;;  %4546 = vst.msk [vmem:[#allocation3 + $0x90] sm:$0xff] %vm90_vm0, %v13850_v24  ;;  %v13920_v7 = vld [vmem:[#allocation2 + $0xf0] sm:$0xff] }
 0x817   :  { %4766 = vrot.lane.b32.xlu1 %v4615_v15, %s9552_s28  ;;  %4536 = vst.msk [vmem:[#allocation3 + $0x40] sm:$0xff] %vm90_vm0, %v13862_v38  ;;  %v13917_v15 = vld [vmem:[#allocation2 + $0x168] sm:$0xff] }
 0x818   :  { %4541 = vst.msk [vmem:[#allocation3 + $0x68] sm:$0xff] %vm90_vm0, %v13865_v3 }
 0x819   :  { %4774 = vrot.lane.b32.xlu2 %v4619_v47, %s9552_s28  ;;  %4549 = vst.msk [vmem:[#allocation3 + $0xa8] sm:$0xff] %vm90_vm0, %v13868_v27  ;;  %v13924_v47 = vld [vmem:[#allocation2 + $0x128] sm:$0xff] }
 0x81a   :  { %4539 = vst.msk [vmem:[#allocation3 + $0x58] sm:$0xff] %vm90_vm0, %v13872_v23 }
 0x81b   :  { %4544 = vst.msk [vmem:[#allocation3 + $0x80] sm:$0xff] %vm90_vm0, %v13876_v46 }
 0x81c   :  { %4552 = vst.msk [vmem:[#allocation3 + $0xc0] sm:$0xff] %vm90_vm0, %v13888_v2 }
 0x81d   :  { %4542 = vst.msk [vmem:[#allocation3 + $0x70] sm:$0xff] %vm90_vm0, %v13891_v19 }
 0x81e   :  { %4782 = vrot.lane.b32.xlu0 %v4623_v62, %s9552_s28  ;;  %4547 = vst.msk [vmem:[#allocation3 + $0x98] sm:$0xff] %vm90_vm0, %v13894_v9  ;;  %v4645_v62 = vld [vmem:[#allocation2 + $0x2a9] sm:$0xff] }
 0x81f   :  { %4772 = vrot.lane.b32.xlu1 %v4618_v52, %s9552_s28  ;;  %4555 = vst.msk [vmem:[#allocation3 + $0xd8] sm:$0xff] %vm90_vm0, %v13898_v6  ;;  %v4646_v52 = vld [vmem:[#allocation2 + $0x2b9] sm:$0xff] }
 0x820   :  { %4545 = vst.msk [vmem:[#allocation3 + $0x88] sm:$0xff] %vm90_vm0, %v13902_v30 }
 0x821   :  { %4780 = vrot.lane.b32.xlu2 %v4622_v48, %s9552_s28  ;;  %4550 = vst.msk [vmem:[#allocation3 + $0xb0] sm:$0xff] %vm90_vm0, %v13914_v34  ;;  %v4650_v48 = vld [vmem:[#allocation2 + $0x2e9] sm:$0xff] }
 0x822   :  { %4558 = vst.msk [vmem:[#allocation3 + $0xf0] sm:$0xff] %vm90_vm0, %v13917_v15 }
 0x823   :  { %4548 = vst.msk [vmem:[#allocation3 + $0xa0] sm:$0xff] %vm90_vm0, %v13920_v7 }
 0x824   :  { %4553 = vst.msk [vmem:[#allocation3 + $0xc8] sm:$0xff] %vm90_vm0, %v13924_v47 }
 0x826   :  { %4788 = vrot.lane.b32.xlu0 %v4626_v61, %s9552_s28 }
 0x827   :  { %4778 = vrot.lane.b32.xlu1 %v4621_v26, %s9552_s28  ;;  %v4497_v26 = vld [vmem:[#allocation2 + $0x1b8] sm:$0xff] }
 0x828   :  { %4561 = vst.msk [vmem:[#allocation3 + $0x108] sm:$0xff] %vm90_vm0, %v4497_v26  ;;  %v14022_v26 = vld [vmem:[#allocation2 + $0x218] sm:$0xff] }
 0x829   :  { %4786 = vrot.lane.b32.xlu2 %v4625_v0, %s9552_s28  ;;  %4569 = vst.msk [vmem:[#allocation3 + $0x148] sm:$0xff] %vm90_vm0, %v14022_v26 }
 0x82e   :  { %4794 = vrot.lane.b32.xlu0 %v4629_v40, %s9552_s28  ;;  %v13937_v40 = vld [vmem:[#allocation2 + $0x110] sm:$0xff] }
 0x82f   :  { %4784 = vrot.lane.b32.xlu1 %v4624_v42, %s9552_s28  ;;  %4551 = vst.msk [vmem:[#allocation3 + $0xb8] sm:$0xff] %vm90_vm0, %v13937_v40 }
 0x831   :  { %4792 = vrot.lane.b32.xlu2 %v4628_v5, %s9552_s28  ;;  %v13940_v5 = vld [vmem:[#allocation2 + $0x150] sm:$0xff] }
 0x832   :  { %4556 = vst.msk [vmem:[#allocation3 + $0xe0] sm:$0xff] %vm90_vm0, %v13940_v5 }
 0x833   :  { %v4727_v58 = vpop.permute.xlu2 %4726 }
 0x834   :  { %4915 = vst.msk [vmem:[#allocation3 + $0x18] sm:$0xff] %vm475_vm1, %v4727_v58  ;;  %v4649_v58 = vld [vmem:[#allocation2 + $0x2d9] sm:$0xff] }
 0x836   :  { %4800 = vrot.lane.b32.xlu0 %v4632_v36, %s9552_s28  ;;  %v13947_v36 = vld [vmem:[#allocation2 + $0x138] sm:$0xff] }
 0x837   :  { %4790 = vrot.lane.b32.xlu1 %v4627_v51, %s9552_s28  ;;  %v13943_v51 = vld [vmem:[#allocation2 + $0x1e0] sm:$0xff]  ;;  %4554 = vst.msk [vmem:[#allocation3 + $0xd0] sm:$0xff] %vm90_vm0, %v13947_v36 }
 0x838   :  { %4564 = vst.msk [vmem:[#allocation3 + $0x120] sm:$0xff] %vm90_vm0, %v13943_v51 }
 0x839   :  { %4798 = vrot.lane.b32.xlu2 %v4631_v13, %s9552_s28  ;;  %v13951_v13 = vld [vmem:[#allocation2 + $0x170] sm:$0xff] }
 0x83a   :  { %4559 = vst.msk [vmem:[#allocation3 + $0xf8] sm:$0xff] %vm90_vm0, %v13951_v13 }
 0x83b   :  { %v4733_v29 = vpop.permute.xlu2 %4732 }
 0x83c   :  { %4918 = vst.msk [vmem:[#allocation3 + $0x30] sm:$0xff] %vm475_vm1, %v4733_v29 }
 0x83e   :  { %4806 = vrot.lane.b32.xlu0 %v4635_v60, %s9552_s28 }
 0x83f   :  { %4796 = vrot.lane.b32.xlu1 %v4630_v39, %s9552_s28  ;;  %v4653_v39 = vld [vmem:[#allocation2 + $0x309] sm:$0xff] }
 0x841   :  { %4804 = vrot.lane.b32.xlu2 %v4634_v44, %s9552_s28  ;;  %v13963_v44 = vld [vmem:[#allocation2 + $0x200] sm:$0xff] }
 0x842   :  { %4567 = vst.msk [vmem:[#allocation3 + $0x138] sm:$0xff] %vm90_vm0, %v13963_v44 }
 0x843   :  { %v4729_v53 = vpop.permute.xlu0 %4728  ;;  %v4739_v11 = vpop.permute.xlu2 %4738 }
 0x844   :  { %4916 = vst.msk [vmem:[#allocation3 + $0x20] sm:$0xff] %vm475_vm1, %v4729_v53  ;;  %v13969_v53 = vld [vmem:[#allocation2 + $0x1c8] sm:$0xff] }
 0x845   :  { %4921 = vst.msk [vmem:[#allocation3 + $0x48] sm:$0xff] %vm475_vm1, %v4739_v11  ;;  %v13973_v11 = vld [vmem:[#allocation2 + $0x228] sm:$0xff] }
 0x846   :  { %4812 = vrot.lane.b32.xlu0 %v4638_v1, %s9552_s28  ;;  %v4976_v1 = vld [vmem:[#allocation2 + $0x2] sm:$0xff]  ;;  %4562 = vst.msk [vmem:[#allocation3 + $0x110] sm:$0xff] %vm90_vm0, %v13969_v53 }
 0x847   :  { %4802 = vrot.lane.b32.xlu1 %v4633_v56, %s9552_s28  ;;  %v13966_v56 = vld [vmem:[#allocation2 + $0x158] sm:$0xff]  ;;  %4570 = vst.msk [vmem:[#allocation3 + $0x150] sm:$0xff] %vm90_vm0, %v13973_v11 }
 0x848   :  { %4557 = vst.msk [vmem:[#allocation3 + $0xe8] sm:$0xff] %vm90_vm0, %v13966_v56 }
 0x849   :  { %4810 = vrot.lane.b32.xlu2 %v4637_v43, %s9552_s28  ;;  %v4652_v43 = vld [vmem:[#allocation2 + $0x301] sm:$0xff] }
 0x84b   :  { %v4745_v16 = vpop.permute.xlu2 %4744 }
 0x84c   :  { %4924 = vst.msk [vmem:[#allocation3 + $0x60] sm:$0xff] %vm475_vm1, %v4745_v16 }
 0x84e   :  { %4818 = vrot.lane.b32.xlu0 %v4641_v49, %s9552_s28  ;;  %v13977_v49 = vld [vmem:[#allocation2 + $0x1e8] sm:$0xff] }
 0x84f   :  { %4808 = vrot.lane.b32.xlu1 %v4636_v50, %s9552_s28  ;;  %v4651_v50 = vld [vmem:[#allocation2 + $0x2f1] sm:$0xff]  ;;  %4565 = vst.msk [vmem:[#allocation3 + $0x128] sm:$0xff] %vm90_vm0, %v13977_v49 }
 0x850   :  { %v4735_v33 = vpop.permute.xlu0 %4734 }
 0x851   :  { %v4725_v31 = vpop.permute.xlu1 %4724  ;;  %4919 = vst.msk [vmem:[#allocation3 + $0x38] sm:$0xff] %vm475_vm1, %v4735_v33  ;;  %4816 = vrot.lane.b32.xlu2 %v4640_v45, %s9552_s28  ;;  %v13989_v45 = vld [vmem:[#allocation2 + $0x248] sm:$0xff] }
 0x852   :  { %4914 = vst.msk [vmem:[#allocation3 + $0x10] sm:$0xff] %vm475_vm1, %v4725_v31 }
 0x853   :  { %v4751_v8 = vpop.permute.xlu2 %4750  ;;  %4573 = vst.msk [vmem:[#allocation3 + $0x168] sm:$0xff] %vm90_vm0, %v13989_v45 }
 0x854   :  { %4927 = vst.msk [vmem:[#allocation3 + $0x78] sm:$0xff] %vm475_vm1, %v4751_v8  ;;  %v13999_v8 = vld [vmem:[#allocation2 + $0x270] sm:$0xff] }
 0x855   :  { %4576 = vst.msk [vmem:[#allocation3 + $0x180] sm:$0xff] %vm90_vm0, %v13999_v8 }
 0x856   :  { %4824 = vrot.lane.b32.xlu0 %v4644_v59, %s9552_s28  ;;  %v13995_v59 = vld [vmem:[#allocation2 + $0x210] sm:$0xff] }
 0x857   :  { %4814 = vrot.lane.b32.xlu1 %v4639_v12, %s9552_s28  ;;  %v13992_v12 = vld [vmem:[#allocation2 + $0x1d0] sm:$0xff]  ;;  %4568 = vst.msk [vmem:[#allocation3 + $0x140] sm:$0xff] %vm90_vm0, %v13995_v59 }
 0x858   :  { %v4741_v37 = vpop.permute.xlu0 %4740  ;;  %4563 = vst.msk [vmem:[#allocation3 + $0x118] sm:$0xff] %vm90_vm0, %v13992_v12 }
 0x859   :  { %v4731_v25 = vpop.permute.xlu1 %4730  ;;  %4922 = vst.msk [vmem:[#allocation3 + $0x50] sm:$0xff] %vm475_vm1, %v4741_v37  ;;  %4822 = vrot.lane.b32.xlu2 %v4643_v21, %s9552_s28  ;;  %v4654_v37 = vld [vmem:[#allocation2 + $0x319] sm:$0xff] }
 0x85a   :  { %4917 = vst.msk [vmem:[#allocation3 + $0x28] sm:$0xff] %vm475_vm1, %v4731_v25  ;;  %v4655_v25 = vld [vmem:[#allocation2 + $0x321] sm:$0xff]  ;;  %v14003_v21 = vld [vmem:[#allocation2 + $0x1f8] sm:$0xff] }
 0x85b   :  { %v4757_v14 = vpop.permute.xlu2 %4756  ;;  %4566 = vst.msk [vmem:[#allocation3 + $0x130] sm:$0xff] %vm90_vm0, %v14003_v21 }
 0x85c   :  { %4930 = vst.msk [vmem:[#allocation3 + $0x90] sm:$0xff] %vm475_vm1, %v4757_v14 }
 0x85e   :  { %4830 = vrot.lane.b32.xlu0 %v4647_v28, %s9552_s28 }
 0x85f   :  { %4820 = vrot.lane.b32.xlu1 %v4642_v54, %s9552_s28  ;;  %v4979_v54 = vld [vmem:[#allocation2 + $0x22] sm:$0xff] }
 0x860   :  { %v4747_v4 = vpop.permute.xlu0 %4746 }
 0x861   :  { %v4737_v32 = vpop.permute.xlu1 %4736  ;;  %4925 = vst.msk [vmem:[#allocation3 + $0x68] sm:$0xff] %vm475_vm1, %v4747_v4  ;;  %4828 = vrot.lane.b32.xlu2 %v4646_v52, %s9552_s28  ;;  %v4496_v4 = vld [vmem:[#allocation2 + $0x1b0] sm:$0xff] }
 0x862   :  { %4920 = vst.msk [vmem:[#allocation3 + $0x40] sm:$0xff] %vm475_vm1, %v4737_v32  ;;  %v14016_v52 = vld [vmem:[#allocation2 + $0x230] sm:$0xff] }
 0x863   :  { %v4763_v61 = vpop.permute.xlu2 %4762  ;;  %4560 = vst.msk [vmem:[#allocation3 + $0x100] sm:$0xff] %vm90_vm0, %v4496_v4  ;;  %v4984_v4 = vld [vmem:[#allocation2 + $0x62] sm:$0xff] }
 0x864   :  { %4933 = vst.msk [vmem:[#allocation3 + $0xa8] sm:$0xff] %vm475_vm1, %v4763_v61  ;;  %v4978_v61 = vld [vmem:[#allocation2 + $0x1a] sm:$0xff] }
 0x865   :  { %4571 = vst.msk [vmem:[#allocation3 + $0x158] sm:$0xff] %vm90_vm0, %v14016_v52 }
 0x866   :  { %4836 = vrot.lane.b32.xlu0 %v4650_v48, %s9552_s28  ;;  %v14019_v48 = vld [vmem:[#allocation2 + $0x290] sm:$0xff] }
 0x867   :  { %4826 = vrot.lane.b32.xlu1 %v4645_v62, %s9552_s28  ;;  %v4977_v62 = vld [vmem:[#allocation2 + $0xa] sm:$0xff]  ;;  %4579 = vst.msk [vmem:[#allocation3 + $0x198] sm:$0xff] %vm90_vm0, %v14019_v48 }
 0x868   :  { %v4753_v42 = vpop.permute.xlu0 %4752 }
 0x869   :  { %v4743_v0 = vpop.permute.xlu1 %4742  ;;  %4928 = vst.msk [vmem:[#allocation3 + $0x80] sm:$0xff] %vm475_vm1, %v4753_v42  ;;  %4834 = vrot.lane.b32.xlu2 %v4649_v58, %s9552_s28  ;;  %v4982_v42 = vld [vmem:[#allocation2 + $0x4a] sm:$0xff] }
 0x86a   :  { %4923 = vst.msk [vmem:[#allocation3 + $0x58] sm:$0xff] %vm475_vm1, %v4743_v0  ;;  %v14026_v0 = vld [vmem:[#allocation2 + $0x258] sm:$0xff] }
 0x86b   :  { %v4769_v60 = vpop.permute.xlu2 %4768  ;;  %4574 = vst.msk [vmem:[#allocation3 + $0x170] sm:$0xff] %vm90_vm0, %v14026_v0 }
 0x86c   :  { %4936 = vst.msk [vmem:[#allocation3 + $0xc0] sm:$0xff] %vm475_vm1, %v4769_v60  ;;  %v14038_v60 = vld [vmem:[#allocation2 + $0x2b8] sm:$0xff] }
 0x86d   :  { %4582 = vst.msk [vmem:[#allocation3 + $0x1b0] sm:$0xff] %vm90_vm0, %v14038_v60 }
 0x86e   :  { %4842 = vrot.lane.b32.xlu0 %v4653_v39, %s9552_s28 }
 0x86f   :  { %4832 = vrot.lane.b32.xlu1 %v4648_v20, %s9552_s28 }
 0x870   :  { %v4759_v41 = vpop.permute.xlu0 %4758 }
 0x871   :  { %v4749_v29 = vpop.permute.xlu1 %4748  ;;  %4931 = vst.msk [vmem:[#allocation3 + $0x98] sm:$0xff] %vm475_vm1, %v4759_v41  ;;  %4840 = vrot.lane.b32.xlu2 %v4652_v43, %s9552_s28  ;;  %v14044_v41 = vld [vmem:[#allocation2 + $0x278] sm:$0xff] }
 0x872   :  { %4926 = vst.msk [vmem:[#allocation3 + $0x70] sm:$0xff] %vm475_vm1, %v4749_v29  ;;  %v14041_v29 = vld [vmem:[#allocation2 + $0x240] sm:$0xff] }
 0x873   :  { %v4775_v16 = vpop.permute.xlu2 %4774  ;;  %v4981_v43 = vld [vmem:[#allocation2 + $0x3a] sm:$0xff]  ;;  %4572 = vst.msk [vmem:[#allocation3 + $0x160] sm:$0xff] %vm90_vm0, %v14041_v29 }
 0x874   :  { %4939 = vst.msk [vmem:[#allocation3 + $0xd8] sm:$0xff] %vm475_vm1, %v4775_v16  ;;  %v14052_v16 = vld [vmem:[#allocation2 + $0x260] sm:$0xff] }
 0x875   :  { %4577 = vst.msk [vmem:[#allocation3 + $0x188] sm:$0xff] %vm90_vm0, %v14044_v41 }
 0x876   :  { %5104 = vrot.lane.b32.xlu0 %v4976_v1, %s9553_s20  ;;  %v14048_v1 = vld [vmem:[#allocation2 + $0x2d8] sm:$0xff]  ;;  %4575 = vst.msk [vmem:[#allocation3 + $0x178] sm:$0xff] %vm90_vm0, %v14052_v16 }
 0x877   :  { %4838 = vrot.lane.b32.xlu1 %v4651_v50, %s9552_s28  ;;  %v4980_v50 = vld [vmem:[#allocation2 + $0x32] sm:$0xff]  ;;  %4585 = vst.msk [vmem:[#allocation3 + $0x1c8] sm:$0xff] %vm90_vm0, %v14048_v1 }
 0x878   :  { %v4765_v33 = vpop.permute.xlu0 %4764 }
 0x879   :  { %v4755_v31 = vpop.permute.xlu1 %4754  ;;  %4934 = vst.msk [vmem:[#allocation3 + $0xb0] sm:$0xff] %vm475_vm1, %v4765_v33  ;;  %4846 = vrot.lane.b32.xlu2 %v4655_v25, %s9552_s28 }
 0x87a   :  { %4929 = vst.msk [vmem:[#allocation3 + $0x88] sm:$0xff] %vm475_vm1, %v4755_v31  ;;  %v4985_v31 = vld [vmem:[#allocation2 + $0x6a] sm:$0xff] }
 0x87b   :  { %v4781_v28 = vpop.permute.xlu2 %4780 }
 0x87c   :  { %4942 = vst.msk [vmem:[#allocation3 + $0xf0] sm:$0xff] %vm475_vm1, %v4781_v28  ;;  %v14067_v28 = vld [vmem:[#allocation2 + $0x300] sm:$0xff] }
 0x87d   :  { %4588 = vst.msk [vmem:[#allocation3 + $0x1e0] sm:$0xff] %vm90_vm0, %v14067_v28 }
 0x87e   :  { %5110 = vrot.lane.b32.xlu0 %v4979_v54, %s9553_s20  ;;  %v14064_v54 = vld [vmem:[#allocation2 + $0x2a0] sm:$0xff] }
 0x87f   :  { %4844 = vrot.lane.b32.xlu1 %v4654_v37, %s9552_s28  ;;  %4580 = vst.msk [vmem:[#allocation3 + $0x1a0] sm:$0xff] %vm90_vm0, %v14064_v54 }
 0x880   :  { %v4771_v32 = vpop.permute.xlu0 %4770 }
 0x881   :  { %v4761_v14 = vpop.permute.xlu1 %4760  ;;  %4937 = vst.msk [vmem:[#allocation3 + $0xc8] sm:$0xff] %vm475_vm1, %v4771_v32  ;;  %5108 = vrot.lane.b32.xlu2 %v4978_v61, %s9553_s20  ;;  %v14074_v32 = vld [vmem:[#allocation2 + $0x2c0] sm:$0xff] }
 0x882   :  { %4932 = vst.msk [vmem:[#allocation3 + $0xa0] sm:$0xff] %vm475_vm1, %v4761_v14  ;;  %v14070_v14 = vld [vmem:[#allocation2 + $0x288] sm:$0xff]  ;;  %v14078_v61 = vld [vmem:[#allocation2 + $0x320] sm:$0xff] }
 0x883   :  { %v4787_v58 = vpop.permute.xlu2 %4786  ;;  %16833 = vst [vmem:[#allocation5_spill] sm:$0xff] %v14078_v61 }
 0x884   :  { %4945 = vst.msk [vmem:[#allocation3 + $0x108] sm:$0xff] %vm475_vm1, %v4787_v58 }
 0x885   :  { %4578 = vst.msk [vmem:[#allocation3 + $0x190] sm:$0xff] %vm90_vm0, %v14070_v14 }
 0x886   :  { %5116 = vrot.lane.b32.xlu0 %v4982_v42, %s9553_s20  ;;  %v4988_v42 = vld [vmem:[#allocation2 + $0x92] sm:$0xff]  ;;  %4583 = vst.msk [vmem:[#allocation3 + $0x1b8] sm:$0xff] %vm90_vm0, %v14074_v32 }
 0x887   :  { %5106 = vrot.lane.b32.xlu1 %v4977_v62, %s9553_s20  ;;  %v4983_v62 = vld [vmem:[#allocation2 + $0x52] sm:$0xff]  ;;  %4591 = vst.msk [vmem:[#allocation3 + $0x1f8] sm:$0xff] %vm90_vm0, %v14078_v61 }
 0x888   :  { %v4777_v39 = vpop.permute.xlu0 %4776 }
 0x889   :  { %v4767_v20 = vpop.permute.xlu1 %4766  ;;  %4940 = vst.msk [vmem:[#allocation3 + $0xe0] sm:$0xff] %vm475_vm1, %v4777_v39  ;;  %5114 = vrot.lane.b32.xlu2 %v4981_v43, %s9553_s20  ;;  %v14090_v43 = vld [vmem:[#allocation2 + $0x2a8] sm:$0xff] }
 0x88a   :  { %4935 = vst.msk [vmem:[#allocation3 + $0xb8] sm:$0xff] %vm475_vm1, %v4767_v20 }
 0x88b   :  { %v4793_v33 = vpop.permute.xlu2 %4792  ;;  %4581 = vst.msk [vmem:[#allocation3 + $0x1a8] sm:$0xff] %vm90_vm0, %v14090_v43 }
 0x88c   :  { %4948 = vst.msk [vmem:[#allocation3 + $0x120] sm:$0xff] %vm475_vm1, %v4793_v33  ;;  %v14100_v33 = vld [vmem:[#allocation2 + $0x308] sm:$0xff] }
 0x88d   :  { %4589 = vst.msk [vmem:[#allocation3 + $0x1e8] sm:$0xff] %vm90_vm0, %v14100_v33 }
 0x88e   :  { %5122 = vrot.lane.b32.xlu0 %v4985_v31, %s9553_s20  ;;  %v14096_v31 = vld [vmem:[#allocation2 + $0x2d0] sm:$0xff] }
 0x88f   :  { %5112 = vrot.lane.b32.xlu1 %v4980_v50, %s9553_s20  ;;  %v14093_v50 = vld [vmem:[#allocation2 + $0x2e8] sm:$0xff]  ;;  %4584 = vst.msk [vmem:[#allocation3 + $0x1c0] sm:$0xff] %vm90_vm0, %v14096_v31 }
 0x890   :  { %v4783_v37 = vpop.permute.xlu0 %4782  ;;  %4586 = vst.msk [vmem:[#allocation3 + $0x1d0] sm:$0xff] %vm90_vm0, %v14093_v50 }
 0x891   :  { %v4773_v25 = vpop.permute.xlu1 %4772  ;;  %4943 = vst.msk [vmem:[#allocation3 + $0xf8] sm:$0xff] %vm475_vm1, %v4783_v37  ;;  %5120 = vrot.lane.b32.xlu2 %v4984_v4, %s9553_s20  ;;  %v4986_v37 = vld [vmem:[#allocation2 + $0x7a] sm:$0xff]  ;;  %v14104_v4 = vld [vmem:[#allocation2 + $0x2f0] sm:$0xff] }
 0x892   :  { %4938 = vst.msk [vmem:[#allocation3 + $0xd0] sm:$0xff] %vm475_vm1, %v4773_v25  ;;  %v4987_v25 = vld [vmem:[#allocation2 + $0x82] sm:$0xff] }
 0x893   :  { %v4799_v58 = vpop.permute.xlu2 %4798  ;;  %16834 = vst [vmem:[#allocation6_spill] sm:$0xff] %v14104_v4 }
 0x894   :  { %4951 = vst.msk [vmem:[#allocation3 + $0x138] sm:$0xff] %vm475_vm1, %v4799_v58 }
 0x895   :  { %4587 = vst.msk [vmem:[#allocation3 + $0x1d8] sm:$0xff] %vm90_vm0, %v14104_v4 }
 0x896   :  { %5128 = vrot.lane.b32.xlu0 %v4988_v42, %s9553_s20 }
 0x897   :  { %5118 = vrot.lane.b32.xlu1 %v4983_v62, %s9553_s20  ;;  %v4991_v62 = vld [vmem:[#allocation2 + $0xb2] sm:$0xff] }
 0x898   :  { %v4789_v39 = vpop.permute.xlu0 %4788 }
 0x899   :  { %v4779_v20 = vpop.permute.xlu1 %4778  ;;  %4946 = vst.msk [vmem:[#allocation3 + $0x110] sm:$0xff] %vm475_vm1, %v4789_v39  ;;  %5126 = vrot.lane.b32.xlu2 %v4987_v25, %s9553_s20  ;;  %v14116_v39 = vld [vmem:[#allocation2 + $0x318] sm:$0xff]  ;;  %v4990_v25 = vld [vmem:[#allocation2 + $0xaa] sm:$0xff] }
 0x89a   :  { %4941 = vst.msk [vmem:[#allocation3 + $0xe8] sm:$0xff] %vm475_vm1, %v4779_v20 }
 0x89b   :  { %v4805_v42 = vpop.permute.xlu2 %4804  ;;  %16835 = vst [vmem:[#allocation7_spill] sm:$0xff] %v14116_v39 }
 0x89c   :  { %4954 = vst.msk [vmem:[#allocation3 + $0x150] sm:$0xff] %vm475_vm1, %v4805_v42 }
 0x89d   :  { %4590 = vst.msk [vmem:[#allocation3 + $0x1f0] sm:$0xff] %vm90_vm0, %v14116_v39 }
 0x89e   :  { %5134 = vrot.lane.b32.xlu0 %v4991_v62, %s9553_s20  ;;  %v4994_v62 = vld [vmem:[#allocation2 + $0xda] sm:$0xff] }
 0x89f   :  { %5124 = vrot.lane.b32.xlu1 %v4986_v37, %s9553_s20  ;;  %v4989_v37 = vld [vmem:[#allocation2 + $0x9a] sm:$0xff] }
 0x8a0   :  { %v4795_v20 = vpop.permute.xlu0 %4794 }
 0x8a1   :  { %v4785_v58 = vpop.permute.xlu1 %4784  ;;  %4949 = vst.msk [vmem:[#allocation3 + $0x128] sm:$0xff] %vm475_vm1, %v4795_v20  ;;  %5132 = vrot.lane.b32.xlu2 %v4990_v25, %s9553_s20  ;;  %v4992_v20 = vld [vmem:[#allocation2 + $0xc2] sm:$0xff]  ;;  %v4997_v25 = vld [vmem:[#allocation2 + $0xfa] sm:$0xff] }
 0x8a2   :  { %4944 = vst.msk [vmem:[#allocation3 + $0x100] sm:$0xff] %vm475_vm1, %v4785_v58  ;;  %v4993_v58 = vld [vmem:[#allocation2 + $0xca] sm:$0xff] }
 0x8a3   :  { %v4811_v42 = vpop.permute.xlu2 %4810 }
 0x8a4   :  { %4957 = vst.msk [vmem:[#allocation3 + $0x168] sm:$0xff] %vm475_vm1, %v4811_v42  ;;  %v5000_v42 = vld [vmem:[#allocation2 + $0x122] sm:$0xff] }
 0x8a6   :  { %5140 = vrot.lane.b32.xlu0 %v4994_v62, %s9553_s20 }
 0x8a7   :  { %5130 = vrot.lane.b32.xlu1 %v4989_v37, %s9553_s20 }
 0x8a8   :  { %v4801_v4 = vpop.permute.xlu0 %4800 }
 0x8a9   :  { %v4791_v61 = vpop.permute.xlu1 %4790  ;;  %4952 = vst.msk [vmem:[#allocation3 + $0x140] sm:$0xff] %vm475_vm1, %v4801_v4  ;;  %5138 = vrot.lane.b32.xlu2 %v4993_v58, %s9553_s20  ;;  %v4995_v4 = vld [vmem:[#allocation2 + $0xe2] sm:$0xff] }
 0x8aa   :  { %4947 = vst.msk [vmem:[#allocation3 + $0x118] sm:$0xff] %vm475_vm1, %v4791_v61  ;;  %v4996_v61 = vld [vmem:[#allocation2 + $0xf2] sm:$0xff] }
 0x8ab   :  { %v4817_v37 = vpop.permute.xlu2 %4816 }
 0x8ac   :  { %4960 = vst.msk [vmem:[#allocation3 + $0x180] sm:$0xff] %vm475_vm1, %v4817_v37  ;;  %v4999_v37 = vld [vmem:[#allocation2 + $0x112] sm:$0xff] }
 0x8ae   :  { %5146 = vrot.lane.b32.xlu0 %v4997_v25, %s9553_s20 }
 0x8af   :  { %5136 = vrot.lane.b32.xlu1 %v4992_v20, %s9553_s20 }
 0x8b0   :  { %v4807_v39 = vpop.permute.xlu0 %4806 }
 0x8b1   :  { %v4797_v62 = vpop.permute.xlu1 %4796  ;;  %4955 = vst.msk [vmem:[#allocation3 + $0x158] sm:$0xff] %vm475_vm1, %v4807_v39  ;;  %5144 = vrot.lane.b32.xlu2 %v4996_v61, %s9553_s20  ;;  %v4998_v39 = vld [vmem:[#allocation2 + $0x10a] sm:$0xff] }
 0x8b2   :  { %4950 = vst.msk [vmem:[#allocation3 + $0x130] sm:$0xff] %vm475_vm1, %v4797_v62  ;;  %v5003_v62 = vld [vmem:[#allocation2 + $0x142] sm:$0xff] }
 0x8b3   :  { %v4823_v58 = vpop.permute.xlu2 %4822 }
 0x8b4   :  { %4963 = vst.msk [vmem:[#allocation3 + $0x198] sm:$0xff] %vm475_vm1, %v4823_v58  ;;  %v5002_v58 = vld [vmem:[#allocation2 + $0x13a] sm:$0xff] }
 0x8b6   :  { %5152 = vrot.lane.b32.xlu0 %v5000_v42, %s9553_s20 }
 0x8b7   :  { %5142 = vrot.lane.b32.xlu1 %v4995_v4, %s9553_s20 }
 0x8b8   :  { %v4813_v25 = vpop.permute.xlu0 %4812 }
 0x8b9   :  { %v4803_v20 = vpop.permute.xlu1 %4802  ;;  %4958 = vst.msk [vmem:[#allocation3 + $0x170] sm:$0xff] %vm475_vm1, %v4813_v25  ;;  %5150 = vrot.lane.b32.xlu2 %v4999_v37, %s9553_s20  ;;  %v5006_v25 = vld [vmem:[#allocation2 + $0x16a] sm:$0xff] }
 0x8ba   :  { %4953 = vst.msk [vmem:[#allocation3 + $0x148] sm:$0xff] %vm475_vm1, %v4803_v20  ;;  %v5001_v20 = vld [vmem:[#allocation2 + $0x12a] sm:$0xff] }
 0x8bb   :  { %v4829_v61 = vpop.permute.xlu2 %4828 }
 0x8bc   :  { %4966 = vst.msk [vmem:[#allocation3 + $0x1b0] sm:$0xff] %vm475_vm1, %v4829_v61  ;;  %v5009_v61 = vld [vmem:[#allocation2 + $0x1ba] sm:$0xff] }
 0x8be   :  { %5158 = vrot.lane.b32.xlu0 %v5003_v62, %s9553_s20 }
 0x8bf   :  { %5148 = vrot.lane.b32.xlu1 %v4998_v39, %s9553_s20 }
 0x8c0   :  { %v4819_v42 = vpop.permute.xlu0 %4818 }
 0x8c1   :  { %v4809_v4 = vpop.permute.xlu1 %4808  ;;  %4961 = vst.msk [vmem:[#allocation3 + $0x188] sm:$0xff] %vm475_vm1, %v4819_v42  ;;  %5156 = vrot.lane.b32.xlu2 %v5002_v58, %s9553_s20  ;;  %v5004_v42 = vld [vmem:[#allocation2 + $0x152] sm:$0xff] }
 0x8c2   :  { %4956 = vst.msk [vmem:[#allocation3 + $0x160] sm:$0xff] %vm475_vm1, %v4809_v4  ;;  %v5005_v4 = vld [vmem:[#allocation2 + $0x15a] sm:$0xff] }
 0x8c3   :  { %v4835_v37 = vpop.permute.xlu2 %4834 }
 0x8c4   :  { %4969 = vst.msk [vmem:[#allocation3 + $0x1c8] sm:$0xff] %vm475_vm1, %v4835_v37  ;;  %v5008_v37 = vld [vmem:[#allocation2 + $0x1b2] sm:$0xff] }
 0x8c6   :  { %5164 = vrot.lane.b32.xlu0 %v5006_v25, %s9553_s20 }
 0x8c7   :  { %5154 = vrot.lane.b32.xlu1 %v5001_v20, %s9553_s20 }
 0x8c8   :  { %v4825_v62 = vpop.permute.xlu0 %4824 }
 0x8c9   :  { %v4815_v39 = vpop.permute.xlu1 %4814  ;;  %4964 = vst.msk [vmem:[#allocation3 + $0x1a0] sm:$0xff] %vm475_vm1, %v4825_v62  ;;  %5162 = vrot.lane.b32.xlu2 %v5005_v4, %s9553_s20  ;;  %v5012_v62 = vld [vmem:[#allocation2 + $0x1e2] sm:$0xff] }
 0x8ca   :  { %4959 = vst.msk [vmem:[#allocation3 + $0x178] sm:$0xff] %vm475_vm1, %v4815_v39  ;;  %v5007_v39 = vld [vmem:[#allocation2 + $0x172] sm:$0xff] }
 0x8cb   :  { %v4841_v58 = vpop.permute.xlu2 %4840 }
 0x8cc   :  { %4972 = vst.msk [vmem:[#allocation3 + $0x1e0] sm:$0xff] %vm475_vm1, %v4841_v58  ;;  %v5011_v58 = vld [vmem:[#allocation2 + $0x1d2] sm:$0xff] }
 0x8ce   :  { %5170 = vrot.lane.b32.xlu0 %v5009_v61, %s9553_s20 }
 0x8cf   :  { %5160 = vrot.lane.b32.xlu1 %v5004_v42, %s9553_s20 }
 0x8d0   :  { %v4831_v25 = vpop.permute.xlu0 %4830 }
 0x8d1   :  { %v4821_v20 = vpop.permute.xlu1 %4820  ;;  %4967 = vst.msk [vmem:[#allocation3 + $0x1b8] sm:$0xff] %vm475_vm1, %v4831_v25  ;;  %5168 = vrot.lane.b32.xlu2 %v5008_v37, %s9553_s20  ;;  %v5015_v25 = vld [vmem:[#allocation2 + $0x202] sm:$0xff] }
 0x8d2   :  { %4962 = vst.msk [vmem:[#allocation3 + $0x190] sm:$0xff] %vm475_vm1, %v4821_v20  ;;  %v5010_v20 = vld [vmem:[#allocation2 + $0x1ca] sm:$0xff] }
 0x8d3   :  { %v4847_v4 = vpop.permute.xlu2 %4846 }
 0x8d4   :  { %4975 = vst.msk [vmem:[#allocation3 + $0x1f8] sm:$0xff] %vm475_vm1, %v4847_v4  ;;  %v5014_v4 = vld [vmem:[#allocation2 + $0x1fa] sm:$0xff] }
 0x8d6   :  { %5176 = vrot.lane.b32.xlu0 %v5012_v62, %s9553_s20 }
 0x8d7   :  { %5166 = vrot.lane.b32.xlu1 %v5007_v39, %s9553_s20 }
 0x8d8   :  { %v4837_v42 = vpop.permute.xlu0 %4836 }
 0x8d9   :  { %v4827_v61 = vpop.permute.xlu1 %4826  ;;  %4970 = vst.msk [vmem:[#allocation3 + $0x1d0] sm:$0xff] %vm475_vm1, %v4837_v42  ;;  %5174 = vrot.lane.b32.xlu2 %v5011_v58, %s9553_s20  ;;  %v5018_v42 = vld [vmem:[#allocation2 + $0x22a] sm:$0xff] }
 0x8da   :  { %4965 = vst.msk [vmem:[#allocation3 + $0x1a8] sm:$0xff] %vm475_vm1, %v4827_v61  ;;  %v5013_v61 = vld [vmem:[#allocation2 + $0x1ea] sm:$0xff] }
 0x8db   :  { %v5109_v37 = vpop.permute.xlu2 %5108 }
 0x8dc   :  { %5298 = vst.msk [vmem:[#allocation3 + $0x10] sm:$0xff] %vm860_vm2, %v5109_v37  ;;  %v5017_v37 = vld [vmem:[#allocation2 + $0x21a] sm:$0xff] }
 0x8de   :  { %5182 = vrot.lane.b32.xlu0 %v5015_v25, %s9553_s20 }
 0x8df   :  { %5172 = vrot.lane.b32.xlu1 %v5010_v20, %s9553_s20 }
 0x8e0   :  { %v4843_v62 = vpop.permute.xlu0 %4842 }
 0x8e1   :  { %v4833_v39 = vpop.permute.xlu1 %4832  ;;  %4973 = vst.msk [vmem:[#allocation3 + $0x1e8] sm:$0xff] %vm475_vm1, %v4843_v62  ;;  %5180 = vrot.lane.b32.xlu2 %v5014_v4, %s9553_s20  ;;  %v5021_v62 = vld [vmem:[#allocation2 + $0x24a] sm:$0xff] }
 0x8e2   :  { %4968 = vst.msk [vmem:[#allocation3 + $0x1c0] sm:$0xff] %vm475_vm1, %v4833_v39  ;;  %v5016_v39 = vld [vmem:[#allocation2 + $0x212] sm:$0xff] }
 0x8e3   :  { %v5115_v58 = vpop.permute.xlu2 %5114 }
 0x8e4   :  { %5301 = vst.msk [vmem:[#allocation3 + $0x28] sm:$0xff] %vm860_vm2, %v5115_v58  ;;  %v5020_v58 = vld [vmem:[#allocation2 + $0x242] sm:$0xff] }
 0x8e6   :  { %5188 = vrot.lane.b32.xlu0 %v5018_v42, %s9553_s20 }
 0x8e7   :  { %5178 = vrot.lane.b32.xlu1 %v5013_v61, %s9553_s20 }
 0x8e8   :  { %v5105_v25 = vpop.permute.xlu0 %5104 }
 0x8e9   :  { %v4839_v20 = vpop.permute.xlu1 %4838  ;;  %5296 = vst.msk [vmem:[#allocation3] sm:$0xff] %vm860_vm2, %v5105_v25  ;;  %5186 = vrot.lane.b32.xlu2 %v5017_v37, %s9553_s20  ;;  %v5024_v25 = vld [vmem:[#allocation2 + $0x272] sm:$0xff] }
 0x8ea   :  { %4971 = vst.msk [vmem:[#allocation3 + $0x1d8] sm:$0xff] %vm475_vm1, %v4839_v20  ;;  %v5019_v20 = vld [vmem:[#allocation2 + $0x232] sm:$0xff] }
 0x8eb   :  { %v5121_v4 = vpop.permute.xlu2 %5120 }
 0x8ec   :  { %5304 = vst.msk [vmem:[#allocation3 + $0x40] sm:$0xff] %vm860_vm2, %v5121_v4  ;;  %v5023_v4 = vld [vmem:[#allocation2 + $0x262] sm:$0xff] }
 0x8ee   :  { %5194 = vrot.lane.b32.xlu0 %v5021_v62, %s9553_s20 }
 0x8ef   :  { %5184 = vrot.lane.b32.xlu1 %v5016_v39, %s9553_s20 }
 0x8f0   :  { %v5111_v42 = vpop.permute.xlu0 %5110 }
 0x8f1   :  { %v4845_v61 = vpop.permute.xlu1 %4844  ;;  %5299 = vst.msk [vmem:[#allocation3 + $0x18] sm:$0xff] %vm860_vm2, %v5111_v42  ;;  %5192 = vrot.lane.b32.xlu2 %v5020_v58, %s9553_s20  ;;  %v5027_v42 = vld [vmem:[#allocation2 + $0x292] sm:$0xff] }
 0x8f2   :  { %4974 = vst.msk [vmem:[#allocation3 + $0x1f0] sm:$0xff] %vm475_vm1, %v4845_v61  ;;  %v5022_v61 = vld [vmem:[#allocation2 + $0x25a] sm:$0xff] }
 0x8f3   :  { %v5127_v37 = vpop.permute.xlu2 %5126 }
 0x8f4   :  { %5307 = vst.msk [vmem:[#allocation3 + $0x58] sm:$0xff] %vm860_vm2, %v5127_v37  ;;  %v5026_v37 = vld [vmem:[#allocation2 + $0x28a] sm:$0xff] }
 0x8f6   :  { %5200 = vrot.lane.b32.xlu0 %v5024_v25, %s9553_s20 }
 0x8f7   :  { %5190 = vrot.lane.b32.xlu1 %v5019_v20, %s9553_s20 }
 0x8f8   :  { %v5117_v62 = vpop.permute.xlu0 %5116 }
 0x8f9   :  { %v5107_v39 = vpop.permute.xlu1 %5106  ;;  %5302 = vst.msk [vmem:[#allocation3 + $0x30] sm:$0xff] %vm860_vm2, %v5117_v62  ;;  %5198 = vrot.lane.b32.xlu2 %v5023_v4, %s9553_s20  ;;  %v5030_v62 = vld [vmem:[#allocation2 + $0x2ba] sm:$0xff] }
 0x8fa   :  { %5297 = vst.msk [vmem:[#allocation3 + $0x8] sm:$0xff] %vm860_vm2, %v5107_v39  ;;  %v5025_v39 = vld [vmem:[#allocation2 + $0x27a] sm:$0xff] }
 0x8fb   :  { %v5133_v58 = vpop.permute.xlu2 %5132 }
 0x8fc   :  { %5310 = vst.msk [vmem:[#allocation3 + $0x70] sm:$0xff] %vm860_vm2, %v5133_v58  ;;  %v5029_v58 = vld [vmem:[#allocation2 + $0x2aa] sm:$0xff] }
 0x8fe   :  { %5206 = vrot.lane.b32.xlu0 %v5027_v42, %s9553_s20 }
 0x8ff   :  { %5196 = vrot.lane.b32.xlu1 %v5022_v61, %s9553_s20 }
 0x900   :  { %v5123_v25 = vpop.permute.xlu0 %5122 }
 0x901   :  { %v5113_v20 = vpop.permute.xlu1 %5112  ;;  %5305 = vst.msk [vmem:[#allocation3 + $0x48] sm:$0xff] %vm860_vm2, %v5123_v25  ;;  %5204 = vrot.lane.b32.xlu2 %v5026_v37, %s9553_s20  ;;  %v5033_v25 = vld [vmem:[#allocation2 + $0x2da] sm:$0xff] }
 0x902   :  { %5300 = vst.msk [vmem:[#allocation3 + $0x20] sm:$0xff] %vm860_vm2, %v5113_v20  ;;  %v5028_v20 = vld [vmem:[#allocation2 + $0x2a2] sm:$0xff] }
 0x903   :  { %v5139_v4 = vpop.permute.xlu2 %5138 }
 0x904   :  { %5313 = vst.msk [vmem:[#allocation3 + $0x88] sm:$0xff] %vm860_vm2, %v5139_v4  ;;  %v5032_v4 = vld [vmem:[#allocation2 + $0x2d2] sm:$0xff] }
 0x906   :  { %5212 = vrot.lane.b32.xlu0 %v5030_v62, %s9553_s20 }
 0x907   :  { %5202 = vrot.lane.b32.xlu1 %v5025_v39, %s9553_s20 }
 0x908   :  { %v5129_v42 = vpop.permute.xlu0 %5128 }
 0x909   :  { %v5119_v61 = vpop.permute.xlu1 %5118  ;;  %5308 = vst.msk [vmem:[#allocation3 + $0x60] sm:$0xff] %vm860_vm2, %v5129_v42  ;;  %5210 = vrot.lane.b32.xlu2 %v5029_v58, %s9553_s20  ;;  %v5036_v42 = vld [vmem:[#allocation2 + $0x302] sm:$0xff] }
 0x90a   :  { %5303 = vst.msk [vmem:[#allocation3 + $0x38] sm:$0xff] %vm860_vm2, %v5119_v61  ;;  %v5031_v61 = vld [vmem:[#allocation2 + $0x2c2] sm:$0xff] }
 0x90b   :  { %v5145_v37 = vpop.permute.xlu2 %5144 }
 0x90c   :  { %5316 = vst.msk [vmem:[#allocation3 + $0xa0] sm:$0xff] %vm860_vm2, %v5145_v37  ;;  %v5035_v37 = vld [vmem:[#allocation2 + $0x2f2] sm:$0xff] }
 0x90e   :  { %5218 = vrot.lane.b32.xlu0 %v5033_v25, %s9553_s20 }
 0x90f   :  { %5208 = vrot.lane.b32.xlu1 %v5028_v20, %s9553_s20 }
 0x910   :  { %v5135_v62 = vpop.permute.xlu0 %5134 }
 0x911   :  { %v5125_v39 = vpop.permute.xlu1 %5124  ;;  %5311 = vst.msk [vmem:[#allocation3 + $0x78] sm:$0xff] %vm860_vm2, %v5135_v62  ;;  %5216 = vrot.lane.b32.xlu2 %v5032_v4, %s9553_s20  ;;  %v5039_v62 = vld [vmem:[#allocation2 + $0x322] sm:$0xff] }
 0x912   :  { %5306 = vst.msk [vmem:[#allocation3 + $0x50] sm:$0xff] %vm860_vm2, %v5125_v39  ;;  %v5034_v39 = vld [vmem:[#allocation2 + $0x2ea] sm:$0xff] }
 0x913   :  { %v5151_v58 = vpop.permute.xlu2 %5150 }
 0x914   :  { %5319 = vst.msk [vmem:[#allocation3 + $0xb8] sm:$0xff] %vm860_vm2, %v5151_v58  ;;  %v5038_v58 = vld [vmem:[#allocation2 + $0x31a] sm:$0xff] }
 0x916   :  { %5224 = vrot.lane.b32.xlu0 %v5036_v42, %s9553_s20 }
 0x917   :  { %5214 = vrot.lane.b32.xlu1 %v5031_v61, %s9553_s20 }
 0x918   :  { %v5141_v25 = vpop.permute.xlu0 %5140 }
 0x919   :  { %v5131_v20 = vpop.permute.xlu1 %5130  ;;  %5314 = vst.msk [vmem:[#allocation3 + $0x90] sm:$0xff] %vm860_vm2, %v5141_v25  ;;  %5222 = vrot.lane.b32.xlu2 %v5035_v37, %s9553_s20 }
 0x91a   :  { %5309 = vst.msk [vmem:[#allocation3 + $0x68] sm:$0xff] %vm860_vm2, %v5131_v20  ;;  %v5037_v20 = vld [vmem:[#allocation2 + $0x30a] sm:$0xff] }
 0x91b   :  { %v5157_v4 = vpop.permute.xlu2 %5156 }
 0x91c   :  { %5322 = vst.msk [vmem:[#allocation3 + $0xd0] sm:$0xff] %vm860_vm2, %v5157_v4 }
 0x91e   :  { %5230 = vrot.lane.b32.xlu0 %v5039_v62, %s9553_s20  ;;  %v5361_v62 = vld [vmem:[#allocation2 + $0x20] sm:$0xff] }
 0x91f   :  { %5220 = vrot.lane.b32.xlu1 %v5034_v39, %s9553_s20 }
 0x920   :  { %v5147_v42 = vpop.permute.xlu0 %5146 }
 0x921   :  { %v5137_v61 = vpop.permute.xlu1 %5136  ;;  %5317 = vst.msk [vmem:[#allocation3 + $0xa8] sm:$0xff] %vm860_vm2, %v5147_v42  ;;  %5228 = vrot.lane.b32.xlu2 %v5038_v58, %s9553_s20  ;;  %v5364_v42 = vld [vmem:[#allocation2 + $0x48] sm:$0xff] }
 0x922   :  { %5312 = vst.msk [vmem:[#allocation3 + $0x80] sm:$0xff] %vm860_vm2, %v5137_v61 }
 0x923   :  { %v5163_v25 = vpop.permute.xlu2 %5162 }
 0x924   :  { %5325 = vst.msk [vmem:[#allocation3 + $0xe8] sm:$0xff] %vm860_vm2, %v5163_v25  ;;  %v5391_v25 = vld [vmem:[#allocation2 + $0x188] sm:$0xff] }
 0x926   :  { %5492 = vrot.lane.b32.xlu0 %v13818_v22, %s9554_s22 }
 0x927   :  { %5226 = vrot.lane.b32.xlu1 %v5037_v20, %s9553_s20 }
 0x928   :  { %v5153_v39 = vpop.permute.xlu0 %5152 }
 0x929   :  { %v5143_v37 = vpop.permute.xlu1 %5142  ;;  %5320 = vst.msk [vmem:[#allocation3 + $0xc0] sm:$0xff] %vm860_vm2, %v5153_v39  ;;  %5490 = vrot.lane.b32.xlu2 %v5361_v62, %s9554_s22 }
 0x92a   :  { %5315 = vst.msk [vmem:[#allocation3 + $0x98] sm:$0xff] %vm860_vm2, %v5143_v37  ;;  %v5390_v37 = vld [vmem:[#allocation2 + $0x180] sm:$0xff] }
 0x92b   :  { %v5169_v4 = vpop.permute.xlu2 %5168 }
 0x92c   :  { %5328 = vst.msk [vmem:[#allocation3 + $0x100] sm:$0xff] %vm860_vm2, %v5169_v4  ;;  %v5422_v4 = vld [vmem:[#allocation2 + $0x330] sm:$0xff] }
 0x92e   :  { %5498 = vrot.lane.b32.xlu0 %v13834_v10, %s9554_s22 }
 0x92f   :  { %5488 = vrot.lane.b32.xlu1 %v13831_v55, %s9554_s22 }
 0x930   :  { %v5159_v61 = vpop.permute.xlu0 %5158 }
 0x931   :  { %v5149_v22 = vpop.permute.xlu1 %5148  ;;  %5323 = vst.msk [vmem:[#allocation3 + $0xd8] sm:$0xff] %vm860_vm2, %v5159_v61  ;;  %5496 = vrot.lane.b32.xlu2 %v5364_v42, %s9554_s22  ;;  %v16837_v61 = vld [vmem:[#allocation5_spill] sm:$0xff] }
 0x932   :  { %5318 = vst.msk [vmem:[#allocation3 + $0xb0] sm:$0xff] %vm860_vm2, %v5149_v22  ;;  %v5745_v42 = vld [vmem:[#allocation2 + $0x21] sm:$0xff] }
 0x933   :  { %v5175_v55 = vpop.permute.xlu2 %5174 }
 0x934   :  { %5331 = vst.msk [vmem:[#allocation3 + $0x118] sm:$0xff] %vm860_vm2, %v5175_v55 }
 0x936   :  { %5504 = vrot.lane.b32.xlu0 %v13846_v35, %s9554_s22 }
 0x937   :  { %5494 = vrot.lane.b32.xlu1 %v13842_v17, %s9554_s22 }
 0x938   :  { %v5165_v58 = vpop.permute.xlu0 %5164 }
 0x939   :  { %v5155_v10 = vpop.permute.xlu1 %5154  ;;  %5326 = vst.msk [vmem:[#allocation3 + $0xf0] sm:$0xff] %vm860_vm2, %v5165_v58  ;;  %5502 = vrot.lane.b32.xlu2 %v13815_v63, %s9554_s22 }
 0x93a   :  { %5321 = vst.msk [vmem:[#allocation3 + $0xc8] sm:$0xff] %vm860_vm2, %v5155_v10 }
 0x93b   :  { %v5181_v17 = vpop.permute.xlu2 %5180 }
 0x93c   :  { %5334 = vst.msk [vmem:[#allocation3 + $0x130] sm:$0xff] %vm860_vm2, %v5181_v17  ;;  %v5744_v17 = vld [vmem:[#allocation2 + $0x19] sm:$0xff] }
 0x93e   :  { %5510 = vrot.lane.b32.xlu0 %v13865_v3, %s9554_s22 }
 0x93f   :  { %5500 = vrot.lane.b32.xlu1 %v13862_v38, %s9554_s22 }
 0x940   :  { %v5171_v20 = vpop.permute.xlu0 %5170 }
 0x941   :  { %v5161_v35 = vpop.permute.xlu1 %5160  ;;  %5329 = vst.msk [vmem:[#allocation3 + $0x108] sm:$0xff] %vm860_vm2, %v5171_v20  ;;  %5508 = vrot.lane.b32.xlu2 %v13828_v57, %s9554_s22  ;;  %v14410_v20 = vld [vmem:[#allocation2 + $0x49] sm:$0xff] }
 0x942   :  { %5324 = vst.msk [vmem:[#allocation3 + $0xe0] sm:$0xff] %vm860_vm2, %v5161_v35  ;;  %v5423_v35 = vld [vmem:[#allocation2 + $0x338] sm:$0xff] }
 0x943   :  { %v5187_v63 = vpop.permute.xlu2 %5186 }
 0x944   :  { %5337 = vst.msk [vmem:[#allocation3 + $0x148] sm:$0xff] %vm860_vm2, %v5187_v63 }
 0x946   :  { %5516 = vrot.lane.b32.xlu0 %v13876_v46, %s9554_s22 }
 0x947   :  { %5506 = vrot.lane.b32.xlu1 %v13872_v23, %s9554_s22 }
 0x948   :  { %v5177_v3 = vpop.permute.xlu0 %5176 }
 0x949   :  { %v5167_v38 = vpop.permute.xlu1 %5166  ;;  %5332 = vst.msk [vmem:[#allocation3 + $0x120] sm:$0xff] %vm860_vm2, %v5177_v3  ;;  %5514 = vrot.lane.b32.xlu2 %v13838_v18, %s9554_s22 }
 0x94a   :  { %5327 = vst.msk [vmem:[#allocation3 + $0xf8] sm:$0xff] %vm860_vm2, %v5167_v38 }
 0x94b   :  { %v5193_v57 = vpop.permute.xlu2 %5192 }
 0x94c   :  { %5340 = vst.msk [vmem:[#allocation3 + $0x160] sm:$0xff] %vm860_vm2, %v5193_v57  ;;  %v14417_v57 = vld [vmem:[#allocation2 + $0x39] sm:$0xff] }
 0x94e   :  { %5522 = vrot.lane.b32.xlu0 %v13894_v9, %s9554_s22 }
 0x94f   :  { %5512 = vrot.lane.b32.xlu1 %v13891_v19, %s9554_s22 }
 0x950   :  { %v5183_v46 = vpop.permute.xlu0 %5182 }
 0x951   :  { %v5173_v23 = vpop.permute.xlu1 %5172  ;;  %5335 = vst.msk [vmem:[#allocation3 + $0x138] sm:$0xff] %vm860_vm2, %v5183_v46  ;;  %5520 = vrot.lane.b32.xlu2 %v13850_v24, %s9554_s22  ;;  %v14425_v46 = vld [vmem:[#allocation2 + $0x69] sm:$0xff] }
 0x952   :  { %5330 = vst.msk [vmem:[#allocation3 + $0x110] sm:$0xff] %vm860_vm2, %v5173_v23  ;;  %v14419_v23 = vld [vmem:[#allocation2 + $0x31] sm:$0xff] }
 0x953   :  { %v5199_v18 = vpop.permute.xlu2 %5198 }
 0x954   :  { %5343 = vst.msk [vmem:[#allocation3 + $0x178] sm:$0xff] %vm860_vm2, %v5199_v18 }
 0x956   :  { %5528 = vrot.lane.b32.xlu0 %v13914_v34, %s9554_s22 }
 0x957   :  { %5518 = vrot.lane.b32.xlu1 %v13902_v30, %s9554_s22 }
 0x958   :  { %v5189_v9 = vpop.permute.xlu0 %5188 }
 0x959   :  { %v5179_v19 = vpop.permute.xlu1 %5178  ;;  %5338 = vst.msk [vmem:[#allocation3 + $0x150] sm:$0xff] %vm860_vm2, %v5189_v9  ;;  %5526 = vrot.lane.b32.xlu2 %v13868_v27, %s9554_s22 }
 0x95a   :  { %5333 = vst.msk [vmem:[#allocation3 + $0x128] sm:$0xff] %vm860_vm2, %v5179_v19 }
 0x95b   :  { %v5205_v24 = vpop.permute.xlu2 %5204 }
 0x95c   :  { %5346 = vst.msk [vmem:[#allocation3 + $0x190] sm:$0xff] %vm860_vm2, %v5205_v24  ;;  %v14432_v24 = vld [vmem:[#allocation2 + $0x61] sm:$0xff] }
 0x95e   :  { %5534 = vrot.lane.b32.xlu0 %v13924_v47, %s9554_s22 }
 0x95f   :  { %5524 = vrot.lane.b32.xlu1 %v13920_v7, %s9554_s22 }
 0x960   :  { %v5195_v34 = vpop.permute.xlu0 %5194 }
 0x961   :  { %v5185_v30 = vpop.permute.xlu1 %5184  ;;  %5341 = vst.msk [vmem:[#allocation3 + $0x168] sm:$0xff] %vm860_vm2, %v5195_v34  ;;  %5532 = vrot.lane.b32.xlu2 %v13888_v2, %s9554_s22  ;;  %v14440_v34 = vld [vmem:[#allocation2 + $0x91] sm:$0xff] }
 0x962   :  { %5336 = vst.msk [vmem:[#allocation3 + $0x140] sm:$0xff] %vm860_vm2, %v5185_v30  ;;  %v14434_v30 = vld [vmem:[#allocation2 + $0x51] sm:$0xff] }
 0x963   :  { %v5211_v27 = vpop.permute.xlu2 %5210 }
 0x964   :  { %5349 = vst.msk [vmem:[#allocation3 + $0x1a8] sm:$0xff] %vm860_vm2, %v5211_v27 }
 0x966   :  { %5540 = vrot.lane.b32.xlu0 %v13940_v5, %s9554_s22 }
 0x967   :  { %5530 = vrot.lane.b32.xlu1 %v13937_v40, %s9554_s22 }
 0x968   :  { %v5201_v47 = vpop.permute.xlu0 %5200 }
 0x969   :  { %v5191_v7 = vpop.permute.xlu1 %5190  ;;  %5344 = vst.msk [vmem:[#allocation3 + $0x180] sm:$0xff] %vm860_vm2, %v5201_v47  ;;  %5538 = vrot.lane.b32.xlu2 %v13898_v6, %s9554_s22 }
 0x96a   :  { %5339 = vst.msk [vmem:[#allocation3 + $0x158] sm:$0xff] %vm860_vm2, %v5191_v7 }
 0x96b   :  { %v5217_v2 = vpop.permute.xlu2 %5216 }
 0x96c   :  { %5352 = vst.msk [vmem:[#allocation3 + $0x1c0] sm:$0xff] %vm860_vm2, %v5217_v2  ;;  %v14447_v2 = vld [vmem:[#allocation2 + $0x81] sm:$0xff] }
 0x96e   :  { %5546 = vrot.lane.b32.xlu0 %v13951_v13, %s9554_s22 }
 0x96f   :  { %5536 = vrot.lane.b32.xlu1 %v13947_v36, %s9554_s22 }
 0x970   :  { %v5207_v5 = vpop.permute.xlu0 %5206 }
 0x971   :  { %v5197_v40 = vpop.permute.xlu1 %5196  ;;  %5347 = vst.msk [vmem:[#allocation3 + $0x198] sm:$0xff] %vm860_vm2, %v5207_v5  ;;  %5544 = vrot.lane.b32.xlu2 %v13917_v15, %s9554_s22  ;;  %v5757_v5 = vld [vmem:[#allocation2 + $0xb1] sm:$0xff] }
 0x972   :  { %5342 = vst.msk [vmem:[#allocation3 + $0x170] sm:$0xff] %vm860_vm2, %v5197_v40  ;;  %v14449_v40 = vld [vmem:[#allocation2 + $0x79] sm:$0xff] }
 0x973   :  { %v5223_v6 = vpop.permute.xlu2 %5222 }
 0x974   :  { %5355 = vst.msk [vmem:[#allocation3 + $0x1d8] sm:$0xff] %vm860_vm2, %v5223_v6 }
 0x976   :  { %5552 = vrot.lane.b32.xlu0 %v13969_v53, %s9554_s22 }
 0x977   :  { %5542 = vrot.lane.b32.xlu1 %v13966_v56, %s9554_s22 }
 0x978   :  { %v5213_v13 = vpop.permute.xlu0 %5212 }
 0x979   :  { %v5203_v36 = vpop.permute.xlu1 %5202  ;;  %5350 = vst.msk [vmem:[#allocation3 + $0x1b0] sm:$0xff] %vm860_vm2, %v5213_v13  ;;  %5550 = vrot.lane.b32.xlu2 %v5391_v25, %s9554_s22  ;;  %v5756_v25 = vld [vmem:[#allocation2 + $0xa9] sm:$0xff] }
 0x97a   :  { %5345 = vst.msk [vmem:[#allocation3 + $0x188] sm:$0xff] %vm860_vm2, %v5203_v36 }
 0x97b   :  { %v5229_v15 = vpop.permute.xlu2 %5228 }
 0x97c   :  { %5358 = vst.msk [vmem:[#allocation3 + $0x1f0] sm:$0xff] %vm860_vm2, %v5229_v15  ;;  %v5760_v15 = vld [vmem:[#allocation2 + $0xd9] sm:$0xff] }
 0x97e   :  { %5558 = vrot.lane.b32.xlu0 %v13977_v49, %s9554_s22 }
 0x97f   :  { %5548 = vrot.lane.b32.xlu1 %v5390_v37, %s9554_s22  ;;  %v14459_v37 = vld [vmem:[#allocation2 + $0x99] sm:$0xff] }
 0x980   :  { %v5219_v53 = vpop.permute.xlu0 %5218 }
 0x981   :  { %v5209_v56 = vpop.permute.xlu1 %5208  ;;  %5353 = vst.msk [vmem:[#allocation3 + $0x1c8] sm:$0xff] %vm860_vm2, %v5219_v53  ;;  %5556 = vrot.lane.b32.xlu2 %v13943_v51, %s9554_s22 }
 0x982   :  { %5348 = vst.msk [vmem:[#allocation3 + $0x1a0] sm:$0xff] %vm860_vm2, %v5209_v56 }
 0x983   :  { %v5491_v39 = vpop.permute.xlu2 %5490 }
 0x984   :  { %5681 = vst.msk [vmem:[#allocation3 + $0x8] sm:$0xff] %vm1246_vm3, %v5491_v39 }
 0x986   :  { %5564 = vrot.lane.b32.xlu0 %v13995_v59, %s9554_s22 }
 0x987   :  { %5554 = vrot.lane.b32.xlu1 %v13992_v12, %s9554_s22 }
 0x988   :  { %v5225_v62 = vpop.permute.xlu0 %5224 }
 0x989   :  { %v5215_v49 = vpop.permute.xlu1 %5214  ;;  %5356 = vst.msk [vmem:[#allocation3 + $0x1e0] sm:$0xff] %vm860_vm2, %v5225_v62  ;;  %5562 = vrot.lane.b32.xlu2 %v13963_v44, %s9554_s22  ;;  %v5758_v62 = vld [vmem:[#allocation2 + $0xc1] sm:$0xff] }
 0x98a   :  { %5351 = vst.msk [vmem:[#allocation3 + $0x1b8] sm:$0xff] %vm860_vm2, %v5215_v49  ;;  %v5759_v49 = vld [vmem:[#allocation2 + $0xc9] sm:$0xff] }
 0x98b   :  { %v5497_v51 = vpop.permute.xlu2 %5496 }
 0x98c   :  { %5684 = vst.msk [vmem:[#allocation3 + $0x20] sm:$0xff] %vm1246_vm3, %v5497_v51  ;;  %v5763_v51 = vld [vmem:[#allocation2 + $0xf9] sm:$0xff] }
 0x98e   :  { %5570 = vrot.lane.b32.xlu0 %v14016_v52, %s9554_s22 }
 0x98f   :  { %5560 = vrot.lane.b32.xlu1 %v14003_v21, %s9554_s22 }
 0x990   :  { %v5231_v59 = vpop.permute.xlu0 %5230 }
 0x991   :  { %v5221_v12 = vpop.permute.xlu1 %5220  ;;  %5359 = vst.msk [vmem:[#allocation3 + $0x1f8] sm:$0xff] %vm860_vm2, %v5231_v59  ;;  %5568 = vrot.lane.b32.xlu2 %v13973_v11, %s9554_s22 }
 0x992   :  { %5354 = vst.msk [vmem:[#allocation3 + $0x1d0] sm:$0xff] %vm860_vm2, %v5221_v12 }
 0x993   :  { %v5503_v44 = vpop.permute.xlu2 %5502 }
 0x994   :  { %5687 = vst.msk [vmem:[#allocation3 + $0x38] sm:$0xff] %vm1246_vm3, %v5503_v44 }
 0x996   :  { %5576 = vrot.lane.b32.xlu0 %v14026_v0, %s9554_s22 }
 0x997   :  { %5566 = vrot.lane.b32.xlu1 %v14022_v26, %s9554_s22 }
 0x998   :  { %v5493_v52 = vpop.permute.xlu0 %5492 }
 0x999   :  { %v5227_v21 = vpop.permute.xlu1 %5226  ;;  %5682 = vst.msk [vmem:[#allocation3 + $0x10] sm:$0xff] %vm1246_vm3, %v5493_v52  ;;  %5574 = vrot.lane.b32.xlu2 %v13989_v45, %s9554_s22  ;;  %v5761_v52 = vld [vmem:[#allocation2 + $0xe1] sm:$0xff] }
 0x99a   :  { %5357 = vst.msk [vmem:[#allocation3 + $0x1e8] sm:$0xff] %vm860_vm2, %v5227_v21  ;;  %v5762_v21 = vld [vmem:[#allocation2 + $0xf1] sm:$0xff] }
 0x99b   :  { %v5509_v11 = vpop.permute.xlu2 %5508 }
 0x99c   :  { %5690 = vst.msk [vmem:[#allocation3 + $0x50] sm:$0xff] %vm1246_vm3, %v5509_v11  ;;  %v5766_v11 = vld [vmem:[#allocation2 + $0x121] sm:$0xff] }
 0x99e   :  { %5582 = vrot.lane.b32.xlu0 %v14044_v41, %s9554_s22 }
 0x99f   :  { %5572 = vrot.lane.b32.xlu1 %v14041_v29, %s9554_s22 }
 0x9a0   :  { %v5499_v0 = vpop.permute.xlu0 %5498 }
 0x9a1   :  { %v5489_v26 = vpop.permute.xlu1 %5488  ;;  %5685 = vst.msk [vmem:[#allocation3 + $0x28] sm:$0xff] %vm1246_vm3, %v5499_v0  ;;  %5580 = vrot.lane.b32.xlu2 %v13999_v8, %s9554_s22 }
 0x9a2   :  { %5680 = vst.msk [vmem:[#allocation3] sm:$0xff] %vm1246_vm3, %v5489_v26 }
 0x9a3   :  { %v5515_v45 = vpop.permute.xlu2 %5514 }
 0x9a4   :  { %5693 = vst.msk [vmem:[#allocation3 + $0x68] sm:$0xff] %vm1246_vm3, %v5515_v45 }
 0x9a6   :  { %5588 = vrot.lane.b32.xlu0 %v14064_v54, %s9554_s22 }
 0x9a7   :  { %5578 = vrot.lane.b32.xlu1 %v14052_v16, %s9554_s22 }
 0x9a8   :  { %v5505_v41 = vpop.permute.xlu0 %5504 }
 0x9a9   :  { %v5495_v29 = vpop.permute.xlu1 %5494  ;;  %5688 = vst.msk [vmem:[#allocation3 + $0x40] sm:$0xff] %vm1246_vm3, %v5505_v41  ;;  %5586 = vrot.lane.b32.xlu2 %v14019_v48, %s9554_s22  ;;  %v5764_v41 = vld [vmem:[#allocation2 + $0x109] sm:$0xff] }
 0x9aa   :  { %5683 = vst.msk [vmem:[#allocation3 + $0x18] sm:$0xff] %vm1246_vm3, %v5495_v29  ;;  %v5765_v29 = vld [vmem:[#allocation2 + $0x111] sm:$0xff] }
 0x9ab   :  { %v5521_v8 = vpop.permute.xlu2 %5520 }
 0x9ac   :  { %5696 = vst.msk [vmem:[#allocation3 + $0x80] sm:$0xff] %vm1246_vm3, %v5521_v8  ;;  %v5769_v8 = vld [vmem:[#allocation2 + $0x141] sm:$0xff] }
 0x9ae   :  { %5594 = vrot.lane.b32.xlu0 %v14074_v32, %s9554_s22 }
 0x9af   :  { %5584 = vrot.lane.b32.xlu1 %v14070_v14, %s9554_s22 }
 0x9b0   :  { %v5511_v54 = vpop.permute.xlu0 %5510 }
 0x9b1   :  { %v5501_v16 = vpop.permute.xlu1 %5500  ;;  %5691 = vst.msk [vmem:[#allocation3 + $0x58] sm:$0xff] %vm1246_vm3, %v5511_v54  ;;  %5592 = vrot.lane.b32.xlu2 %v14038_v60, %s9554_s22 }
 0x9b2   :  { %5686 = vst.msk [vmem:[#allocation3 + $0x30] sm:$0xff] %vm1246_vm3, %v5501_v16 }
 0x9b3   :  { %v5527_v48 = vpop.permute.xlu2 %5526 }
 0x9b4   :  { %5699 = vst.msk [vmem:[#allocation3 + $0x98] sm:$0xff] %vm1246_vm3, %v5527_v48 }
 0x9b6   :  { %5600 = vrot.lane.b32.xlu0 %v14093_v50, %s9554_s22 }
 0x9b7   :  { %5590 = vrot.lane.b32.xlu1 %v14090_v43, %s9554_s22 }
 0x9b8   :  { %v5517_v32 = vpop.permute.xlu0 %5516 }
 0x9b9   :  { %v5507_v14 = vpop.permute.xlu1 %5506  ;;  %5694 = vst.msk [vmem:[#allocation3 + $0x70] sm:$0xff] %vm1246_vm3, %v5517_v32  ;;  %5598 = vrot.lane.b32.xlu2 %v14048_v1, %s9554_s22  ;;  %v16836_v1 = vld [vmem:[#allocation6_spill] sm:$0xff] }
 0x9ba   :  { %5689 = vst.msk [vmem:[#allocation3 + $0x48] sm:$0xff] %vm1246_vm3, %v5507_v14  ;;  %v5768_v14 = vld [vmem:[#allocation2 + $0x139] sm:$0xff]  ;;  %v5767_v32 = vld [vmem:[#allocation2 + $0x129] sm:$0xff] }
 0x9bb   :  { %v5533_v60 = vpop.permute.xlu2 %5532 }
 0x9bc   :  { %5702 = vst.msk [vmem:[#allocation3 + $0xb0] sm:$0xff] %vm1246_vm3, %v5533_v60  ;;  %v5772_v60 = vld [vmem:[#allocation2 + $0x169] sm:$0xff] }
 0x9be   :  { %5606 = vrot.lane.b32.xlu0 %v14100_v33, %s9554_s22 }
 0x9bf   :  { %5596 = vrot.lane.b32.xlu1 %v14096_v31, %s9554_s22 }
 0x9c0   :  { %v5523_v50 = vpop.permute.xlu0 %5522 }
 0x9c1   :  { %v5513_v43 = vpop.permute.xlu1 %5512  ;;  %5697 = vst.msk [vmem:[#allocation3 + $0x88] sm:$0xff] %vm1246_vm3, %v5523_v50  ;;  %5604 = vrot.lane.b32.xlu2 %v14067_v28, %s9554_s22  ;;  %v16838_v28 = vld [vmem:[#allocation7_spill] sm:$0xff] }
 0x9c2   :  { %5692 = vst.msk [vmem:[#allocation3 + $0x60] sm:$0xff] %vm1246_vm3, %v5513_v43 }
 0x9c3   :  { %v5539_v31 = vpop.permute.xlu2 %5538 }
 0x9c4   :  { %5705 = vst.msk [vmem:[#allocation3 + $0xc8] sm:$0xff] %vm1246_vm3, %v5539_v31  ;;  %v5770_v31 = vld [vmem:[#allocation2 + $0x151] sm:$0xff] }
 0x9c6   :  { %5612 = vrot.lane.b32.xlu0 %v5422_v4, %s9554_s22  ;;  %v5771_v4 = vld [vmem:[#allocation2 + $0x159] sm:$0xff] }
 0x9c7   :  { %5602 = vrot.lane.b32.xlu1 %v16836_v1, %s9554_s22 }
 0x9c8   :  { %v5529_v22 = vpop.permute.xlu0 %5528 }
 0x9c9   :  { %v5519_v33 = vpop.permute.xlu1 %5518  ;;  %5700 = vst.msk [vmem:[#allocation3 + $0xa0] sm:$0xff] %vm1246_vm3, %v5529_v22  ;;  %5610 = vrot.lane.b32.xlu2 %v16837_v61, %s9554_s22 }
 0x9ca   :  { %5695 = vst.msk [vmem:[#allocation3 + $0x78] sm:$0xff] %vm1246_vm3, %v5519_v33  ;;  %v5775_v33 = vld [vmem:[#allocation2 + $0x189] sm:$0xff] }
 0x9cb   :  { %v5545_v55 = vpop.permute.xlu2 %5544 }
 0x9cc   :  { %5708 = vst.msk [vmem:[#allocation3 + $0xe0] sm:$0xff] %vm1246_vm3, %v5545_v55  ;;  %v5773_v55 = vld [vmem:[#allocation2 + $0x171] sm:$0xff] }
 0x9ce   :  { %5874 = vrot.lane.b32.xlu0 %v5745_v42, %s9555_s13  ;;  %v5774_v42 = vld [vmem:[#allocation2 + $0x181] sm:$0xff] }
 0x9cf   :  { %5608 = vrot.lane.b32.xlu1 %v16838_v28, %s9554_s22 }
 0x9d0   :  { %v5535_v58 = vpop.permute.xlu0 %5534 }
 0x9d1   :  { %v5525_v10 = vpop.permute.xlu1 %5524  ;;  %5703 = vst.msk [vmem:[#allocation3 + $0xb8] sm:$0xff] %vm1246_vm3, %v5535_v58  ;;  %5872 = vrot.lane.b32.xlu2 %v5744_v17, %s9555_s13 }
 0x9d2   :  { %5698 = vst.msk [vmem:[#allocation3 + $0x90] sm:$0xff] %vm1246_vm3, %v5525_v10  ;;  %v14500_v10 = vld [vmem:[#allocation2 + $0x1e1] sm:$0xff] }
 0x9d3   :  { %v5551_v63 = vpop.permute.xlu2 %5550 }
 0x9d4   :  { %5711 = vst.msk [vmem:[#allocation3 + $0xf8] sm:$0xff] %vm1246_vm3, %v5551_v63  ;;  %v5777_v63 = vld [vmem:[#allocation2 + $0x1d1] sm:$0xff] }
 0x9d6   :  { %5880 = vrot.lane.b32.xlu0 %v14410_v20, %s9555_s13 }
 0x9d7   :  { %5614 = vrot.lane.b32.xlu1 %v5423_v35, %s9554_s22 }
 0x9d8   :  { %v5541_v3 = vpop.permute.xlu0 %5540 }
 0x9d9   :  { %v5531_v38 = vpop.permute.xlu1 %5530  ;;  %5706 = vst.msk [vmem:[#allocation3 + $0xd0] sm:$0xff] %vm1246_vm3, %v5541_v3  ;;  %5878 = vrot.lane.b32.xlu2 %v14417_v57, %s9555_s13  ;;  %v14509_v3 = vld [vmem:[#allocation2 + $0x201] sm:$0xff] }
 0x9da   :  { %5701 = vst.msk [vmem:[#allocation3 + $0xa8] sm:$0xff] %vm1246_vm3, %v5531_v38  ;;  %v5776_v38 = vld [vmem:[#allocation2 + $0x1c9] sm:$0xff] }
 0x9db   :  { %v5557_v18 = vpop.permute.xlu2 %5556 }
 0x9dc   :  { %5714 = vst.msk [vmem:[#allocation3 + $0x110] sm:$0xff] %vm1246_vm3, %v5557_v18 }
 0x9de   :  { %5886 = vrot.lane.b32.xlu0 %v14425_v46, %s9555_s13 }
 0x9df   :  { %5876 = vrot.lane.b32.xlu1 %v14419_v23, %s9555_s13 }
 0x9e0   :  { %v5547_v9 = vpop.permute.xlu0 %5546 }
 0x9e1   :  { %v5537_v19 = vpop.permute.xlu1 %5536  ;;  %5709 = vst.msk [vmem:[#allocation3 + $0xe8] sm:$0xff] %vm1246_vm3, %v5547_v9  ;;  %5884 = vrot.lane.b32.xlu2 %v14432_v24, %s9555_s13 }
 0x9e2   :  { %5704 = vst.msk [vmem:[#allocation3 + $0xc0] sm:$0xff] %vm1246_vm3, %v5537_v19 }
 0x9e3   :  { %v5563_v27 = vpop.permute.xlu2 %5562 }
 0x9e4   :  { %5717 = vst.msk [vmem:[#allocation3 + $0x128] sm:$0xff] %vm1246_vm3, %v5563_v27  ;;  %v14516_v27 = vld [vmem:[#allocation2 + $0x1f9] sm:$0xff] }
 0x9e6   :  { %5892 = vrot.lane.b32.xlu0 %v14440_v34, %s9555_s13 }
 0x9e7   :  { %5882 = vrot.lane.b32.xlu1 %v14434_v30, %s9555_s13 }
 0x9e8   :  { %v5553_v47 = vpop.permute.xlu0 %5552 }
 0x9e9   :  { %v5543_v7 = vpop.permute.xlu1 %5542  ;;  %5712 = vst.msk [vmem:[#allocation3 + $0x100] sm:$0xff] %vm1246_vm3, %v5553_v47  ;;  %5890 = vrot.lane.b32.xlu2 %v14447_v2, %s9555_s13  ;;  %v5784_v47 = vld [vmem:[#allocation2 + $0x229] sm:$0xff] }
 0x9ea   :  { %5707 = vst.msk [vmem:[#allocation3 + $0xd8] sm:$0xff] %vm1246_vm3, %v5543_v7  ;;  %v14518_v7 = vld [vmem:[#allocation2 + $0x1e9] sm:$0xff] }
 0x9eb   :  { %v5569_v6 = vpop.permute.xlu2 %5568 }
 0x9ec   :  { %5720 = vst.msk [vmem:[#allocation3 + $0x140] sm:$0xff] %vm1246_vm3, %v5569_v6 }
 0x9ee   :  { %5898 = vrot.lane.b32.xlu0 %v5757_v5, %s9555_s13 }
 0x9ef   :  { %5888 = vrot.lane.b32.xlu1 %v14449_v40, %s9555_s13 }
 0x9f0   :  { %v5559_v13 = vpop.permute.xlu0 %5558 }
 0x9f1   :  { %v5549_v36 = vpop.permute.xlu1 %5548  ;;  %5715 = vst.msk [vmem:[#allocation3 + $0x118] sm:$0xff] %vm1246_vm3, %v5559_v13  ;;  %5896 = vrot.lane.b32.xlu2 %v5756_v25, %s9555_s13  ;;  %v14528_v13 = vld [vmem:[#allocation2 + $0x219] sm:$0xff]  ;;  %v14530_v25 = vld [vmem:[#allocation2 + $0x211] sm:$0xff] }
 0x9f2   :  { %5710 = vst.msk [vmem:[#allocation3 + $0xf0] sm:$0xff] %vm1246_vm3, %v5549_v36 }
 0x9f3   :  { %v5575_v56 = vpop.permute.xlu2 %5574 }
 0x9f4   :  { %5723 = vst.msk [vmem:[#allocation3 + $0x158] sm:$0xff] %vm1246_vm3, %v5575_v56 }
 0x9f6   :  { %5904 = vrot.lane.b32.xlu0 %v5760_v15, %s9555_s13  ;;  %v5787_v15 = vld [vmem:[#allocation2 + $0x249] sm:$0xff] }
 0x9f7   :  { %5894 = vrot.lane.b32.xlu1 %v14459_v37, %s9555_s13 }
 0x9f8   :  { %v5565_v39 = vpop.permute.xlu0 %5564 }
 0x9f9   :  { %v5555_v53 = vpop.permute.xlu1 %5554  ;;  %5718 = vst.msk [vmem:[#allocation3 + $0x130] sm:$0xff] %vm1246_vm3, %v5565_v39  ;;  %5902 = vrot.lane.b32.xlu2 %v5759_v49, %s9555_s13  ;;  %v5786_v49 = vld [vmem:[#allocation2 + $0x241] sm:$0xff] }
 0x9fa   :  { %5713 = vst.msk [vmem:[#allocation3 + $0x108] sm:$0xff] %vm1246_vm3, %v5555_v53 }
 0x9fb   :  { %v5581_v12 = vpop.permute.xlu2 %5580 }
 0x9fc   :  { %5726 = vst.msk [vmem:[#allocation3 + $0x170] sm:$0xff] %vm1246_vm3, %v5581_v12 }
 0x9fe   :  { %5910 = vrot.lane.b32.xlu0 %v5763_v51, %s9555_s13  ;;  %v5790_v51 = vld [vmem:[#allocation2 + $0x271] sm:$0xff] }
 0x9ff   :  { %5900 = vrot.lane.b32.xlu1 %v5758_v62, %s9555_s13  ;;  %v5785_v62 = vld [vmem:[#allocation2 + $0x231] sm:$0xff] }
 0xa00   :  { %v5571_v44 = vpop.permute.xlu0 %5570 }
 0xa01   :  { %v5561_v59 = vpop.permute.xlu1 %5560  ;;  %5721 = vst.msk [vmem:[#allocation3 + $0x148] sm:$0xff] %vm1246_vm3, %v5571_v44  ;;  %5908 = vrot.lane.b32.xlu2 %v5762_v21, %s9555_s13  ;;  %v5789_v21 = vld [vmem:[#allocation2 + $0x261] sm:$0xff] }
 0xa02   :  { %5716 = vst.msk [vmem:[#allocation3 + $0x120] sm:$0xff] %vm1246_vm3, %v5561_v59 }
 0xa03   :  { %v5587_v26 = vpop.permute.xlu2 %5586 }
 0xa04   :  { %5729 = vst.msk [vmem:[#allocation3 + $0x188] sm:$0xff] %vm1246_vm3, %v5587_v26 }
 0xa06   :  { %5916 = vrot.lane.b32.xlu0 %v5766_v11, %s9555_s13  ;;  %v5793_v11 = vld [vmem:[#allocation2 + $0x291] sm:$0xff] }
 0xa07   :  { %5906 = vrot.lane.b32.xlu1 %v5761_v52, %s9555_s13  ;;  %v5788_v52 = vld [vmem:[#allocation2 + $0x259] sm:$0xff] }
 0xa08   :  { %v5577_v45 = vpop.permute.xlu0 %5576 }
 0xa09   :  { %v5567_v0 = vpop.permute.xlu1 %5566  ;;  %5724 = vst.msk [vmem:[#allocation3 + $0x160] sm:$0xff] %vm1246_vm3, %v5577_v45  ;;  %5914 = vrot.lane.b32.xlu2 %v5765_v29, %s9555_s13  ;;  %v5792_v29 = vld [vmem:[#allocation2 + $0x289] sm:$0xff] }
 0xa0a   :  { %5719 = vst.msk [vmem:[#allocation3 + $0x138] sm:$0xff] %vm1246_vm3, %v5567_v0 }
 0xa0b   :  { %v5593_v16 = vpop.permute.xlu2 %5592 }
 0xa0c   :  { %5732 = vst.msk [vmem:[#allocation3 + $0x1a0] sm:$0xff] %vm1246_vm3, %v5593_v16 }
 0xa0e   :  { %5922 = vrot.lane.b32.xlu0 %v5769_v8, %s9555_s13  ;;  %v5796_v8 = vld [vmem:[#allocation2 + $0x2b9] sm:$0xff] }
 0xa0f   :  { %5912 = vrot.lane.b32.xlu1 %v5764_v41, %s9555_s13  ;;  %v5791_v41 = vld [vmem:[#allocation2 + $0x279] sm:$0xff] }
 0xa10   :  { %v5583_v48 = vpop.permute.xlu0 %5582 }
 0xa11   :  { %v5573_v54 = vpop.permute.xlu1 %5572  ;;  %5727 = vst.msk [vmem:[#allocation3 + $0x178] sm:$0xff] %vm1246_vm3, %v5583_v48  ;;  %5920 = vrot.lane.b32.xlu2 %v5768_v14, %s9555_s13  ;;  %v5795_v14 = vld [vmem:[#allocation2 + $0x2a9] sm:$0xff] }
 0xa12   :  { %5722 = vst.msk [vmem:[#allocation3 + $0x150] sm:$0xff] %vm1246_vm3, %v5573_v54 }
 0xa13   :  { %v5599_v43 = vpop.permute.xlu2 %5598 }
 0xa14   :  { %5735 = vst.msk [vmem:[#allocation3 + $0x1b8] sm:$0xff] %vm1246_vm3, %v5599_v43 }
 0xa16   :  { %5928 = vrot.lane.b32.xlu0 %v5772_v60, %s9555_s13  ;;  %v5799_v60 = vld [vmem:[#allocation2 + $0x2d9] sm:$0xff] }
 0xa17   :  { %5918 = vrot.lane.b32.xlu1 %v5767_v32, %s9555_s13  ;;  %v5794_v32 = vld [vmem:[#allocation2 + $0x2a1] sm:$0xff] }
 0xa18   :  { %v5589_v1 = vpop.permute.xlu0 %5588 }
 0xa19   :  { %v5579_v50 = vpop.permute.xlu1 %5578  ;;  %5730 = vst.msk [vmem:[#allocation3 + $0x190] sm:$0xff] %vm1246_vm3, %v5589_v1  ;;  %5926 = vrot.lane.b32.xlu2 %v5771_v4, %s9555_s13  ;;  %v5798_v4 = vld [vmem:[#allocation2 + $0x2d1] sm:$0xff] }
 0xa1a   :  { %5725 = vst.msk [vmem:[#allocation3 + $0x168] sm:$0xff] %vm1246_vm3, %v5579_v50 }
 0xa1b   :  { %v5605_v22 = vpop.permute.xlu2 %5604 }
 0xa1c   :  { %5738 = vst.msk [vmem:[#allocation3 + $0x1d0] sm:$0xff] %vm1246_vm3, %v5605_v22 }
 0xa1e   :  { %5934 = vrot.lane.b32.xlu0 %v5775_v33, %s9555_s13  ;;  %v5802_v33 = vld [vmem:[#allocation2 + $0x301] sm:$0xff] }
 0xa1f   :  { %5924 = vrot.lane.b32.xlu1 %v5770_v31, %s9555_s13  ;;  %v5797_v31 = vld [vmem:[#allocation2 + $0x2c1] sm:$0xff] }
 0xa20   :  { %v5595_v28 = vpop.permute.xlu0 %5594 }
 0xa21   :  { %v5585_v61 = vpop.permute.xlu1 %5584  ;;  %5733 = vst.msk [vmem:[#allocation3 + $0x1a8] sm:$0xff] %vm1246_vm3, %v5595_v28  ;;  %5932 = vrot.lane.b32.xlu2 %v5774_v42, %s9555_s13  ;;  %v5801_v42 = vld [vmem:[#allocation2 + $0x2f1] sm:$0xff] }
 0xa22   :  { %5728 = vst.msk [vmem:[#allocation3 + $0x180] sm:$0xff] %vm1246_vm3, %v5585_v61 }
 0xa23   :  { %v5611_v58 = vpop.permute.xlu2 %5610 }
 0xa24   :  { %5741 = vst.msk [vmem:[#allocation3 + $0x1e8] sm:$0xff] %vm1246_vm3, %v5611_v58  ;;  %v5805_v58 = vld [vmem:[#allocation2 + $0x321] sm:$0xff] }
 0xa26   :  { %5940 = vrot.lane.b32.xlu0 %v14500_v10, %s9555_s13 }
 0xa27   :  { %5930 = vrot.lane.b32.xlu1 %v5773_v55, %s9555_s13  ;;  %v5800_v55 = vld [vmem:[#allocation2 + $0x2e9] sm:$0xff] }
 0xa28   :  { %v5601_v35 = vpop.permute.xlu0 %5600 }
 0xa29   :  { %v5591_v17 = vpop.permute.xlu1 %5590  ;;  %5736 = vst.msk [vmem:[#allocation3 + $0x1c0] sm:$0xff] %vm1246_vm3, %v5601_v35  ;;  %5938 = vrot.lane.b32.xlu2 %v5777_v63, %s9555_s13 }
 0xa2a   :  { %5731 = vst.msk [vmem:[#allocation3 + $0x198] sm:$0xff] %vm1246_vm3, %v5591_v17 }
 0xa2b   :  { %v5873_v18 = vpop.permute.xlu2 %5872 }
 0xa2c   :  { %6064 = vst.msk [vmem:[#allocation3] sm:$0xff] %vm1631_vm4, %v5873_v18  ;;  %v5803_v18 = vld [vmem:[#allocation2 + $0x309] sm:$0xff] }
 0xa2e   :  { %5946 = vrot.lane.b32.xlu0 %v14509_v3, %s9555_s13 }
 0xa2f   :  { %5936 = vrot.lane.b32.xlu1 %v5776_v38, %s9555_s13  ;;  %v5804_v38 = vld [vmem:[#allocation2 + $0x319] sm:$0xff] }
 0xa30   :  { %v5607_v9 = vpop.permute.xlu0 %5606 }
 0xa31   :  { %v5597_v19 = vpop.permute.xlu1 %5596  ;;  %5739 = vst.msk [vmem:[#allocation3 + $0x1d8] sm:$0xff] %vm1246_vm3, %v5607_v9  ;;  %5944 = vrot.lane.b32.xlu2 %v14516_v27, %s9555_s13 }
 0xa32   :  { %5734 = vst.msk [vmem:[#allocation3 + $0x1b0] sm:$0xff] %vm1246_vm3, %v5597_v19  ;;  %v6128_v19 = vld [vmem:[#allocation2 + $0x1a] sm:$0xff] }
 0xa33   :  { %v5879_v5 = vpop.permute.xlu2 %5878 }
 0xa34   :  { %6067 = vst.msk [vmem:[#allocation3 + $0x18] sm:$0xff] %vm1631_vm4, %v5879_v5 }
 0xa36   :  { %5952 = vrot.lane.b32.xlu0 %v5784_v47, %s9555_s13 }
 0xa37   :  { %5942 = vrot.lane.b32.xlu1 %v14518_v7, %s9555_s13 }
 0xa38   :  { %v5613_v36 = vpop.permute.xlu0 %5612 }
 0xa39   :  { %v5603_v6 = vpop.permute.xlu1 %5602  ;;  %5742 = vst.msk [vmem:[#allocation3 + $0x1f0] sm:$0xff] %vm1246_vm3, %v5613_v36  ;;  %5950 = vrot.lane.b32.xlu2 %v14528_v13, %s9555_s13  ;;  %v5806_v36 = vld [vmem:[#allocation2 + $0x331] sm:$0xff] }
 0xa3a   :  { %5737 = vst.msk [vmem:[#allocation3 + $0x1c8] sm:$0xff] %vm1246_vm3, %v5603_v6  ;;  %v5807_v6 = vld [vmem:[#allocation2 + $0x339] sm:$0xff] }
 0xa3b   :  { %v5885_v56 = vpop.permute.xlu2 %5884 }
 0xa3c   :  { %6070 = vst.msk [vmem:[#allocation3 + $0x30] sm:$0xff] %vm1631_vm4, %v5885_v56 }
 0xa3e   :  { %5958 = vrot.lane.b32.xlu0 %v5787_v15, %s9555_s13  ;;  %v14584_v15 = vld [vmem:[#allocation2 + $0x3a] sm:$0xff] }
 0xa3f   :  { %5948 = vrot.lane.b32.xlu1 %v14530_v25, %s9555_s13 }
 0xa40   :  { %v5875_v39 = vpop.permute.xlu0 %5874 }
 0xa41   :  { %v5609_v53 = vpop.permute.xlu1 %5608  ;;  %6065 = vst.msk [vmem:[#allocation3 + $0x8] sm:$0xff] %vm1631_vm4, %v5875_v39  ;;  %5956 = vrot.lane.b32.xlu2 %v5786_v49, %s9555_s13  ;;  %v14591_v49 = vld [vmem:[#allocation2 + $0x32] sm:$0xff] }
 0xa42   :  { %5740 = vst.msk [vmem:[#allocation3 + $0x1e0] sm:$0xff] %vm1246_vm3, %v5609_v53 }
 0xa43   :  { %v5891_v12 = vpop.permute.xlu2 %5890 }
 0xa44   :  { %6073 = vst.msk [vmem:[#allocation3 + $0x48] sm:$0xff] %vm1631_vm4, %v5891_v12 }
 0xa46   :  { %5964 = vrot.lane.b32.xlu0 %v5790_v51, %s9555_s13  ;;  %v14596_v51 = vld [vmem:[#allocation2 + $0x62] sm:$0xff] }
 0xa47   :  { %5954 = vrot.lane.b32.xlu1 %v5785_v62, %s9555_s13  ;;  %v6129_v62 = vld [vmem:[#allocation2 + $0x22] sm:$0xff] }
 0xa48   :  { %v5881_v44 = vpop.permute.xlu0 %5880 }
 0xa49   :  { %v5615_v59 = vpop.permute.xlu1 %5614  ;;  %6068 = vst.msk [vmem:[#allocation3 + $0x20] sm:$0xff] %vm1631_vm4, %v5881_v44  ;;  %5962 = vrot.lane.b32.xlu2 %v5789_v21, %s9555_s13  ;;  %v14603_v21 = vld [vmem:[#allocation2 + $0x52] sm:$0xff] }
 0xa4a   :  { %5743 = vst.msk [vmem:[#allocation3 + $0x1f8] sm:$0xff] %vm1246_vm3, %v5615_v59 }
 0xa4b   :  { %v5897_v26 = vpop.permute.xlu2 %5896 }
 0xa4c   :  { %6076 = vst.msk [vmem:[#allocation3 + $0x60] sm:$0xff] %vm1631_vm4, %v5897_v26 }
 0xa4e   :  { %5970 = vrot.lane.b32.xlu0 %v5793_v11, %s9555_s13  ;;  %v14611_v11 = vld [vmem:[#allocation2 + $0x82] sm:$0xff] }
 0xa4f   :  { %5960 = vrot.lane.b32.xlu1 %v5788_v52, %s9555_s13  ;;  %v14605_v52 = vld [vmem:[#allocation2 + $0x4a] sm:$0xff] }
 0xa50   :  { %v5887_v45 = vpop.permute.xlu0 %5886 }
 0xa51   :  { %v5877_v0 = vpop.permute.xlu1 %5876  ;;  %6071 = vst.msk [vmem:[#allocation3 + $0x38] sm:$0xff] %vm1631_vm4, %v5887_v45  ;;  %5968 = vrot.lane.b32.xlu2 %v5792_v29, %s9555_s13  ;;  %v14618_v29 = vld [vmem:[#allocation2 + $0x7a] sm:$0xff] }
 0xa52   :  { %6066 = vst.msk [vmem:[#allocation3 + $0x10] sm:$0xff] %vm1631_vm4, %v5877_v0 }
 0xa53   :  { %v5903_v16 = vpop.permute.xlu2 %5902 }
 0xa54   :  { %6079 = vst.msk [vmem:[#allocation3 + $0x78] sm:$0xff] %vm1631_vm4, %v5903_v16 }
 0xa56   :  { %5976 = vrot.lane.b32.xlu0 %v5796_v8, %s9555_s13  ;;  %v14626_v8 = vld [vmem:[#allocation2 + $0xaa] sm:$0xff] }
 0xa57   :  { %5966 = vrot.lane.b32.xlu1 %v5791_v41, %s9555_s13  ;;  %v14620_v41 = vld [vmem:[#allocation2 + $0x6a] sm:$0xff] }
 0xa58   :  { %v5893_v48 = vpop.permute.xlu0 %5892 }
 0xa59   :  { %v5883_v54 = vpop.permute.xlu1 %5882  ;;  %6074 = vst.msk [vmem:[#allocation3 + $0x50] sm:$0xff] %vm1631_vm4, %v5893_v48  ;;  %5974 = vrot.lane.b32.xlu2 %v5795_v14, %s9555_s13  ;;  %v14633_v14 = vld [vmem:[#allocation2 + $0x9a] sm:$0xff] }
 0xa5a   :  { %6069 = vst.msk [vmem:[#allocation3 + $0x28] sm:$0xff] %vm1631_vm4, %v5883_v54 }
 0xa5b   :  { %v5909_v43 = vpop.permute.xlu2 %5908 }
 0xa5c   :  { %6082 = vst.msk [vmem:[#allocation3 + $0x90] sm:$0xff] %vm1631_vm4, %v5909_v43 }
 0xa5e   :  { %5982 = vrot.lane.b32.xlu0 %v5799_v60, %s9555_s13  ;;  %v14641_v60 = vld [vmem:[#allocation2 + $0xca] sm:$0xff] }
 0xa5f   :  { %5972 = vrot.lane.b32.xlu1 %v5794_v32, %s9555_s13  ;;  %v14635_v32 = vld [vmem:[#allocation2 + $0x92] sm:$0xff] }
 0xa60   :  { %v5899_v1 = vpop.permute.xlu0 %5898 }
 0xa61   :  { %v5889_v50 = vpop.permute.xlu1 %5888  ;;  %6077 = vst.msk [vmem:[#allocation3 + $0x68] sm:$0xff] %vm1631_vm4, %v5899_v1  ;;  %5980 = vrot.lane.b32.xlu2 %v5798_v4, %s9555_s13  ;;  %v14648_v4 = vld [vmem:[#allocation2 + $0xc2] sm:$0xff] }
 0xa62   :  { %6072 = vst.msk [vmem:[#allocation3 + $0x40] sm:$0xff] %vm1631_vm4, %v5889_v50 }
 0xa63   :  { %v5915_v22 = vpop.permute.xlu2 %5914 }
 0xa64   :  { %6085 = vst.msk [vmem:[#allocation3 + $0xa8] sm:$0xff] %vm1631_vm4, %v5915_v22 }
 0xa66   :  { %5988 = vrot.lane.b32.xlu0 %v5802_v33, %s9555_s13  ;;  %v14656_v33 = vld [vmem:[#allocation2 + $0xf2] sm:$0xff] }
 0xa67   :  { %5978 = vrot.lane.b32.xlu1 %v5797_v31, %s9555_s13  ;;  %v14650_v31 = vld [vmem:[#allocation2 + $0xb2] sm:$0xff] }
 0xa68   :  { %v5905_v28 = vpop.permute.xlu0 %5904 }
 0xa69   :  { %v5895_v61 = vpop.permute.xlu1 %5894  ;;  %6080 = vst.msk [vmem:[#allocation3 + $0x80] sm:$0xff] %vm1631_vm4, %v5905_v28  ;;  %5986 = vrot.lane.b32.xlu2 %v5801_v42, %s9555_s13  ;;  %v14663_v42 = vld [vmem:[#allocation2 + $0xe2] sm:$0xff] }
 0xa6a   :  { %6075 = vst.msk [vmem:[#allocation3 + $0x58] sm:$0xff] %vm1631_vm4, %v5895_v61 }
 0xa6b   :  { %v5921_v17 = vpop.permute.xlu2 %5920 }
 0xa6c   :  { %6088 = vst.msk [vmem:[#allocation3 + $0xc0] sm:$0xff] %vm1631_vm4, %v5921_v17 }
 0xa6e   :  { %5994 = vrot.lane.b32.xlu0 %v5805_v58, %s9555_s13  ;;  %v6149_v58 = vld [vmem:[#allocation2 + $0x112] sm:$0xff] }
 0xa6f   :  { %5984 = vrot.lane.b32.xlu1 %v5800_v55, %s9555_s13  ;;  %v14665_v55 = vld [vmem:[#allocation2 + $0xda] sm:$0xff] }
 0xa70   :  { %v5911_v63 = vpop.permute.xlu0 %5910 }
 0xa71   :  { %v5901_v35 = vpop.permute.xlu1 %5900  ;;  %6083 = vst.msk [vmem:[#allocation3 + $0x98] sm:$0xff] %vm1631_vm4, %v5911_v63  ;;  %5992 = vrot.lane.b32.xlu2 %v5804_v38, %s9555_s13  ;;  %v14675_v38 = vld [vmem:[#allocation2 + $0x10a] sm:$0xff] }
 0xa72   :  { %6078 = vst.msk [vmem:[#allocation3 + $0x70] sm:$0xff] %vm1631_vm4, %v5901_v35 }
 0xa73   :  { %v5927_v9 = vpop.permute.xlu2 %5926 }
 0xa74   :  { %6091 = vst.msk [vmem:[#allocation3 + $0xd8] sm:$0xff] %vm1631_vm4, %v5927_v9 }
 0xa76   :  { %6256 = vrot.lane.b32.xlu0 %v6128_v19, %s9556_s29  ;;  %v6152_v19 = vld [vmem:[#allocation2 + $0x13a] sm:$0xff] }
 0xa77   :  { %5990 = vrot.lane.b32.xlu1 %v5803_v18, %s9555_s13  ;;  %v14677_v18 = vld [vmem:[#allocation2 + $0xfa] sm:$0xff] }
 0xa78   :  { %v5917_v5 = vpop.permute.xlu0 %5916 }
 0xa79   :  { %v5907_v47 = vpop.permute.xlu1 %5906  ;;  %6086 = vst.msk [vmem:[#allocation3 + $0xb0] sm:$0xff] %vm1631_vm4, %v5917_v5  ;;  %5998 = vrot.lane.b32.xlu2 %v5807_v6, %s9555_s13  ;;  %v6151_v6 = vld [vmem:[#allocation2 + $0x12a] sm:$0xff] }
 0xa7a   :  { %6081 = vst.msk [vmem:[#allocation3 + $0x88] sm:$0xff] %vm1631_vm4, %v5907_v47 }
 0xa7b   :  { %v5933_v56 = vpop.permute.xlu2 %5932 }
 0xa7c   :  { %6094 = vst.msk [vmem:[#allocation3 + $0xf0] sm:$0xff] %vm1631_vm4, %v5933_v56  ;;  %v6155_v56 = vld [vmem:[#allocation2 + $0x15a] sm:$0xff] }
 0xa7e   :  { %6262 = vrot.lane.b32.xlu0 %v14584_v15, %s9556_s29 }
 0xa7f   :  { %5996 = vrot.lane.b32.xlu1 %v5806_v36, %s9555_s13  ;;  %v6150_v36 = vld [vmem:[#allocation2 + $0x122] sm:$0xff] }
 0xa80   :  { %v5923_v39 = vpop.permute.xlu0 %5922 }
 0xa81   :  { %v5913_v53 = vpop.permute.xlu1 %5912  ;;  %6089 = vst.msk [vmem:[#allocation3 + $0xc8] sm:$0xff] %vm1631_vm4, %v5923_v39  ;;  %6260 = vrot.lane.b32.xlu2 %v14591_v49, %s9556_s29 }
 0xa82   :  { %6084 = vst.msk [vmem:[#allocation3 + $0xa0] sm:$0xff] %vm1631_vm4, %v5913_v53 }
 0xa83   :  { %v5939_v12 = vpop.permute.xlu2 %5938 }
 0xa84   :  { %6097 = vst.msk [vmem:[#allocation3 + $0x108] sm:$0xff] %vm1631_vm4, %v5939_v12  ;;  %v6154_v12 = vld [vmem:[#allocation2 + $0x152] sm:$0xff] }
 0xa86   :  { %6268 = vrot.lane.b32.xlu0 %v14596_v51, %s9556_s29 }
 0xa87   :  { %6258 = vrot.lane.b32.xlu1 %v6129_v62, %s9556_s29 }
 0xa88   :  { %v5929_v44 = vpop.permute.xlu0 %5928 }
 0xa89   :  { %v5919_v59 = vpop.permute.xlu1 %5918  ;;  %6092 = vst.msk [vmem:[#allocation3 + $0xe0] sm:$0xff] %vm1631_vm4, %v5929_v44  ;;  %6266 = vrot.lane.b32.xlu2 %v14603_v21, %s9556_s29 }
 0xa8a   :  { %6087 = vst.msk [vmem:[#allocation3 + $0xb8] sm:$0xff] %vm1631_vm4, %v5919_v59  ;;  %v6153_v59 = vld [vmem:[#allocation2 + $0x142] sm:$0xff] }
 0xa8b   :  { %v5945_v26 = vpop.permute.xlu2 %5944 }
 0xa8c   :  { %6100 = vst.msk [vmem:[#allocation3 + $0x120] sm:$0xff] %vm1631_vm4, %v5945_v26 }
 0xa8e   :  { %6274 = vrot.lane.b32.xlu0 %v14611_v11, %s9556_s29 }
 0xa8f   :  { %6264 = vrot.lane.b32.xlu1 %v14605_v52, %s9556_s29 }
 0xa90   :  { %v5935_v45 = vpop.permute.xlu0 %5934 }
 0xa91   :  { %v5925_v0 = vpop.permute.xlu1 %5924  ;;  %6095 = vst.msk [vmem:[#allocation3 + $0xf8] sm:$0xff] %vm1631_vm4, %v5935_v45  ;;  %6272 = vrot.lane.b32.xlu2 %v14618_v29, %s9556_s29  ;;  %v6513_v45 = vld [vmem:[#allocation2 + $0x30] sm:$0xff] }
 0xa92   :  { %6090 = vst.msk [vmem:[#allocation3 + $0xd0] sm:$0xff] %vm1631_vm4, %v5925_v0 }
 0xa93   :  { %v5951_v16 = vpop.permute.xlu2 %5950 }
 0xa94   :  { %6103 = vst.msk [vmem:[#allocation3 + $0x138] sm:$0xff] %vm1631_vm4, %v5951_v16  ;;  %v6156_v16 = vld [vmem:[#allocation2 + $0x16a] sm:$0xff] }
 0xa96   :  { %6280 = vrot.lane.b32.xlu0 %v14626_v8, %s9556_s29 }
 0xa97   :  { %6270 = vrot.lane.b32.xlu1 %v14620_v41, %s9556_s29 }
 0xa98   :  { %v5941_v48 = vpop.permute.xlu0 %5940 }
 0xa99   :  { %v5931_v54 = vpop.permute.xlu1 %5930  ;;  %6098 = vst.msk [vmem:[#allocation3 + $0x110] sm:$0xff] %vm1631_vm4, %v5941_v48  ;;  %6278 = vrot.lane.b32.xlu2 %v14633_v14, %s9556_s29 }
 0xa9a   :  { %6093 = vst.msk [vmem:[#allocation3 + $0xe8] sm:$0xff] %vm1631_vm4, %v5931_v54 }
 0xa9b   :  { %v5957_v43 = vpop.permute.xlu2 %5956 }
 0xa9c   :  { %6106 = vst.msk [vmem:[#allocation3 + $0x150] sm:$0xff] %vm1631_vm4, %v5957_v43  ;;  %v6514_v43 = vld [vmem:[#allocation2 + $0x38] sm:$0xff] }
 0xa9e   :  { %6286 = vrot.lane.b32.xlu0 %v14641_v60, %s9556_s29 }
 0xa9f   :  { %6276 = vrot.lane.b32.xlu1 %v14635_v32, %s9556_s29 }
 0xaa0   :  { %v5947_v1 = vpop.permute.xlu0 %5946 }
 0xaa1   :  { %v5937_v50 = vpop.permute.xlu1 %5936  ;;  %6101 = vst.msk [vmem:[#allocation3 + $0x128] sm:$0xff] %vm1631_vm4, %v5947_v1  ;;  %6284 = vrot.lane.b32.xlu2 %v14648_v4, %s9556_s29 }
 0xaa2   :  { %6096 = vst.msk [vmem:[#allocation3 + $0x100] sm:$0xff] %vm1631_vm4, %v5937_v50 }
 0xaa3   :  { %v5963_v22 = vpop.permute.xlu2 %5962 }
 0xaa4   :  { %6109 = vst.msk [vmem:[#allocation3 + $0x168] sm:$0xff] %vm1631_vm4, %v5963_v22  ;;  %v6515_v22 = vld [vmem:[#allocation2 + $0x48] sm:$0xff] }
 0xaa6   :  { %6292 = vrot.lane.b32.xlu0 %v14656_v33, %s9556_s29 }
 0xaa7   :  { %6282 = vrot.lane.b32.xlu1 %v14650_v31, %s9556_s29 }
 0xaa8   :  { %v5953_v28 = vpop.permute.xlu0 %5952 }
 0xaa9   :  { %v5943_v61 = vpop.permute.xlu1 %5942  ;;  %6104 = vst.msk [vmem:[#allocation3 + $0x140] sm:$0xff] %vm1631_vm4, %v5953_v28  ;;  %6290 = vrot.lane.b32.xlu2 %v14663_v42, %s9556_s29  ;;  %v6516_v28 = vld [vmem:[#allocation2 + $0x50] sm:$0xff] }
 0xaaa   :  { %6099 = vst.msk [vmem:[#allocation3 + $0x118] sm:$0xff] %vm1631_vm4, %v5943_v61 }
 0xaab   :  { %v5969_v17 = vpop.permute.xlu2 %5968 }
 0xaac   :  { %6112 = vst.msk [vmem:[#allocation3 + $0x180] sm:$0xff] %vm1631_vm4, %v5969_v17  ;;  %v6517_v17 = vld [vmem:[#allocation2 + $0x60] sm:$0xff] }
 0xaae   :  { %6298 = vrot.lane.b32.xlu0 %v6149_v58, %s9556_s29 }
 0xaaf   :  { %6288 = vrot.lane.b32.xlu1 %v14665_v55, %s9556_s29 }
 0xab0   :  { %v5959_v63 = vpop.permute.xlu0 %5958 }
 0xab1   :  { %v5949_v35 = vpop.permute.xlu1 %5948  ;;  %6107 = vst.msk [vmem:[#allocation3 + $0x158] sm:$0xff] %vm1631_vm4, %v5959_v63  ;;  %6296 = vrot.lane.b32.xlu2 %v14675_v38, %s9556_s29  ;;  %v6518_v63 = vld [vmem:[#allocation2 + $0x68] sm:$0xff] }
 0xab2   :  { %6102 = vst.msk [vmem:[#allocation3 + $0x130] sm:$0xff] %vm1631_vm4, %v5949_v35 }
 0xab3   :  { %v5975_v9 = vpop.permute.xlu2 %5974 }
 0xab4   :  { %6115 = vst.msk [vmem:[#allocation3 + $0x198] sm:$0xff] %vm1631_vm4, %v5975_v9  ;;  %v6519_v9 = vld [vmem:[#allocation2 + $0x78] sm:$0xff] }
 0xab6   :  { %6304 = vrot.lane.b32.xlu0 %v6152_v19, %s9556_s29 }
 0xab7   :  { %6294 = vrot.lane.b32.xlu1 %v14677_v18, %s9556_s29 }
 0xab8   :  { %v5965_v5 = vpop.permute.xlu0 %5964 }
 0xab9   :  { %v5955_v47 = vpop.permute.xlu1 %5954  ;;  %6110 = vst.msk [vmem:[#allocation3 + $0x170] sm:$0xff] %vm1631_vm4, %v5965_v5  ;;  %6302 = vrot.lane.b32.xlu2 %v6151_v6, %s9556_s29  ;;  %v6520_v6 = vld [vmem:[#allocation2 + $0x80] sm:$0xff] }
 0xaba   :  { %6105 = vst.msk [vmem:[#allocation3 + $0x148] sm:$0xff] %vm1631_vm4, %v5955_v47  ;;  %v6160_v47 = vld [vmem:[#allocation2 + $0x1ca] sm:$0xff] }
 0xabb   :  { %v5981_v53 = vpop.permute.xlu2 %5980 }
 0xabc   :  { %6118 = vst.msk [vmem:[#allocation3 + $0x1b0] sm:$0xff] %vm1631_vm4, %v5981_v53  ;;  %v6545_v53 = vld [vmem:[#allocation2 + $0x1e0] sm:$0xff] }
 0xabe   :  { %6310 = vrot.lane.b32.xlu0 %v6155_v56, %s9556_s29 }
 0xabf   :  { %6300 = vrot.lane.b32.xlu1 %v6150_v36, %s9556_s29 }
 0xac0   :  { %v5971_v62 = vpop.permute.xlu0 %5970 }
 0xac1   :  { %v5961_v39 = vpop.permute.xlu1 %5960  ;;  %6113 = vst.msk [vmem:[#allocation3 + $0x188] sm:$0xff] %vm1631_vm4, %v5971_v62  ;;  %6308 = vrot.lane.b32.xlu2 %v6154_v12, %s9556_s29  ;;  %v7313_v12 = vld [vmem:[#allocation2 + $0x1e2] sm:$0xff] }
 0xac2   :  { %6108 = vst.msk [vmem:[#allocation3 + $0x160] sm:$0xff] %vm1631_vm4, %v5961_v39  ;;  %v6521_v39 = vld [vmem:[#allocation2 + $0x90] sm:$0xff] }
 0xac3   :  { %v5987_v44 = vpop.permute.xlu2 %5986 }
 0xac4   :  { %6121 = vst.msk [vmem:[#allocation3 + $0x1c8] sm:$0xff] %vm1631_vm4, %v5987_v44 }
 0xac6   :  { %7025 = vrot.lane.b32.xlu0 %v14419_v23, %s9558_s24 }
 0xac7   :  { %6306 = vrot.lane.b32.xlu1 %v6153_v59, %s9556_s29  ;;  %v6546_v59 = vld [vmem:[#allocation2 + $0x1e8] sm:$0xff] }
 0xac8   :  { %v5977_v0 = vpop.permute.xlu0 %5976 }
 0xac9   :  { %v5967_v26 = vpop.permute.xlu1 %5966  ;;  %6116 = vst.msk [vmem:[#allocation3 + $0x1a0] sm:$0xff] %vm1631_vm4, %v5977_v0  ;;  %6641 = vrot.lane.b32.xlu2 %v6513_v45, %s9557_s9  ;;  %v6161_v0 = vld [vmem:[#allocation2 + $0x1d2] sm:$0xff]  ;;  %v7314_v45 = vld [vmem:[#allocation2 + $0x1ea] sm:$0xff] }
 0xaca   :  { %6111 = vst.msk [vmem:[#allocation3 + $0x178] sm:$0xff] %vm1631_vm4, %v5967_v26 }
 0xacb   :  { %v5993_v54 = vpop.permute.xlu2 %5992 }
 0xacc   :  { %6124 = vst.msk [vmem:[#allocation3 + $0x1e0] sm:$0xff] %vm1631_vm4, %v5993_v54 }
 0xace   :  { %7027 = vrot.lane.b32.xlu0 %v14417_v57, %s9558_s24 }
 0xacf   :  { %6312 = vrot.lane.b32.xlu1 %v6156_v16, %s9556_s29 }
 0xad0   :  { %v5983_v48 = vpop.permute.xlu0 %5982 }
 0xad1   :  { %v5973_v23 = vpop.permute.xlu1 %5972  ;;  %6119 = vst.msk [vmem:[#allocation3 + $0x1b8] sm:$0xff] %vm1631_vm4, %v5983_v48  ;;  %6643 = vrot.lane.b32.xlu2 %v6514_v43, %s9557_s9  ;;  %v7735_v48 = vld [vmem:[%s16665_s2 + $0x30] sm:$0xff]  ;;  %v7734_v43 = vld [vmem:[%s16665_s2 + $0x28] sm:$0xff] }
 0xad2   :  { %6114 = vst.msk [vmem:[#allocation3 + $0x190] sm:$0xff] %vm1631_vm4, %v5973_v23 }
 0xad3   :  { %v5999_v50 = vpop.permute.xlu2 %5998 }
 0xad4   :  { %6127 = vst.msk [vmem:[#allocation3 + $0x1f8] sm:$0xff] %vm1631_vm4, %v5999_v50  ;;  %v7733_v50 = vld [vmem:[%s16665_s2 + $0x20] sm:$0xff] }
 0xad6   :  { %7029 = vrot.lane.b32.xlu0 %v14410_v20, %s9558_s24 }
 0xad7   :  { %7409 = vrot.lane.b32.xlu1 %v14591_v49, %s9559_s21 }
 0xad8   :  { %v5989_v1 = vpop.permute.xlu0 %5988 }
 0xad9   :  { %v5979_v57 = vpop.permute.xlu1 %5978  ;;  %6122 = vst.msk [vmem:[#allocation3 + $0x1d0] sm:$0xff] %vm1631_vm4, %v5989_v1  ;;  %6645 = vrot.lane.b32.xlu2 %v6515_v22, %s9557_s9 }
 0xada   :  { %6117 = vst.msk [vmem:[#allocation3 + $0x1a8] sm:$0xff] %vm1631_vm4, %v5979_v57 }
 0xadb   :  { %v6261_v49 = vpop.permute.xlu2 %6260 }
 0xadc   :  { %6450 = vst.msk [vmem:[#allocation3 + $0x10] sm:$0xff] %vm2016_vm5, %v6261_v49  ;;  %v6522_v49 = vld [vmem:[#allocation2 + $0x98] sm:$0xff] }
 0xade   :  { %7031 = vrot.lane.b32.xlu0 %v14434_v30, %s9558_s24 }
 0xadf   :  { %7411 = vrot.lane.b32.xlu1 %v14584_v15, %s9559_s21 }
 0xae0   :  { %v5995_v61 = vpop.permute.xlu0 %5994 }
 0xae1   :  { %v5985_v20 = vpop.permute.xlu1 %5984  ;;  %6125 = vst.msk [vmem:[#allocation3 + $0x1e8] sm:$0xff] %vm1631_vm4, %v5995_v61  ;;  %6647 = vrot.lane.b32.xlu2 %v6516_v28, %s9557_s9 }
 0xae2   :  { %6120 = vst.msk [vmem:[#allocation3 + $0x1c0] sm:$0xff] %vm1631_vm4, %v5985_v20  ;;  %v7729_v20 = vld [vmem:[%s16665_s2] sm:$0xff] }
 0xae3   :  { %v6267_v15 = vpop.permute.xlu2 %6266 }
 0xae4   :  { %6453 = vst.msk [vmem:[#allocation3 + $0x28] sm:$0xff] %vm2016_vm5, %v6267_v15 }
 0xae6   :  { %7033 = vrot.lane.b32.xlu0 %v14432_v24, %s9558_s24 }
 0xae7   :  { %7413 = vrot.lane.b32.xlu1 %v14605_v52, %s9559_s21 }
 0xae8   :  { %v6257_v58 = vpop.permute.xlu0 %6256 }
 0xae9   :  { %v5991_v30 = vpop.permute.xlu1 %5990  ;;  %6448 = vst.msk [vmem:[#allocation3] sm:$0xff] %vm2016_vm5, %v6257_v58  ;;  %6649 = vrot.lane.b32.xlu2 %v6517_v17, %s9557_s9 }
 0xaea   :  { %6123 = vst.msk [vmem:[#allocation3 + $0x1d8] sm:$0xff] %vm1631_vm4, %v5991_v30  ;;  %v6547_v30 = vld [vmem:[#allocation2 + $0x1f8] sm:$0xff] }
 0xaeb   :  { %v6273_v52 = vpop.permute.xlu2 %6272 }
 0xaec   :  { %6456 = vst.msk [vmem:[#allocation3 + $0x40] sm:$0xff] %vm2016_vm5, %v6273_v52  ;;  %v6523_v52 = vld [vmem:[#allocation2 + $0xa8] sm:$0xff] }
 0xaee   :  { %7035 = vrot.lane.b32.xlu0 %v14425_v46, %s9558_s24 }
 0xaef   :  { %7415 = vrot.lane.b32.xlu1 %v14603_v21, %s9559_s21 }
 0xaf0   :  { %v6263_v35 = vpop.permute.xlu0 %6262 }
 0xaf1   :  { %v5997_v24 = vpop.permute.xlu1 %5996  ;;  %6451 = vst.msk [vmem:[#allocation3 + $0x18] sm:$0xff] %vm2016_vm5, %v6263_v35  ;;  %6651 = vrot.lane.b32.xlu2 %v6518_v63, %s9557_s9 }
 0xaf2   :  { %6126 = vst.msk [vmem:[#allocation3 + $0x1f0] sm:$0xff] %vm1631_vm4, %v5997_v24  ;;  %v7315_v24 = vld [vmem:[#allocation2 + $0x1fa] sm:$0xff] }
 0xaf3   :  { %v6279_v21 = vpop.permute.xlu2 %6278 }
 0xaf4   :  { %6459 = vst.msk [vmem:[#allocation3 + $0x58] sm:$0xff] %vm2016_vm5, %v6279_v21  ;;  %v6548_v21 = vld [vmem:[#allocation2 + $0x200] sm:$0xff] }
 0xaf6   :  { %7037 = vrot.lane.b32.xlu0 %v14449_v40, %s9558_s24 }
 0xaf7   :  { %7417 = vrot.lane.b32.xlu1 %v14596_v51, %s9559_s21 }
 0xaf8   :  { %v6269_v19 = vpop.permute.xlu0 %6268 }
 0xaf9   :  { %v6259_v46 = vpop.permute.xlu1 %6258  ;;  %6454 = vst.msk [vmem:[#allocation3 + $0x30] sm:$0xff] %vm2016_vm5, %v6269_v19  ;;  %6653 = vrot.lane.b32.xlu2 %v6519_v9, %s9557_s9  ;;  %v6524_v19 = vld [vmem:[#allocation2 + $0xb0] sm:$0xff] }
 0xafa   :  { %6449 = vst.msk [vmem:[#allocation3 + $0x8] sm:$0xff] %vm2016_vm5, %v6259_v46  ;;  %v6907_v46 = vld [vmem:[#allocation2 + $0xa9] sm:$0xff] }
 0xafb   :  { %v6285_v51 = vpop.permute.xlu2 %6284 }
 0xafc   :  { %6462 = vst.msk [vmem:[#allocation3 + $0x70] sm:$0xff] %vm2016_vm5, %v6285_v51  ;;  %v7316_v51 = vld [vmem:[#allocation2 + $0x202] sm:$0xff] }
 0xafe   :  { %6320 = vrot.lane.b32.xlu0 %v6160_v47, %s9556_s29 }
 0xaff   :  { %7419 = vrot.lane.b32.xlu1 %v14620_v41, %s9559_s21 }
 0xb00   :  { %v6275_v5 = vpop.permute.xlu0 %6274 }
 0xb01   :  { %v6265_v40 = vpop.permute.xlu1 %6264  ;;  %6457 = vst.msk [vmem:[#allocation3 + $0x48] sm:$0xff] %vm2016_vm5, %v6275_v5  ;;  %6655 = vrot.lane.b32.xlu2 %v6520_v6, %s9557_s9 }
 0xb02   :  { %6452 = vst.msk [vmem:[#allocation3 + $0x20] sm:$0xff] %vm2016_vm5, %v6265_v40  ;;  %v6549_v40 = vld [vmem:[#allocation2 + $0x210] sm:$0xff] }
 0xb03   :  { %v6291_v41 = vpop.permute.xlu2 %6290 }
 0xb04   :  { %6465 = vst.msk [vmem:[#allocation3 + $0x88] sm:$0xff] %vm2016_vm5, %v6291_v41 }
 0xb06   :  { %7423 = vrot.lane.b32.xlu0 %v14611_v11, %s9559_s21 }
 0xb07   :  { %7421 = vrot.lane.b32.xlu1 %v14618_v29, %s9559_s21 }
 0xb08   :  { %v6281_v56 = vpop.permute.xlu0 %6280 }
 0xb09   :  { %v6271_v36 = vpop.permute.xlu1 %6270  ;;  %6460 = vst.msk [vmem:[#allocation3 + $0x60] sm:$0xff] %vm2016_vm5, %v6281_v56  ;;  %6705 = vrot.lane.b32.xlu2 %v6545_v53, %s9557_s9  ;;  %v6908_v56 = vld [vmem:[#allocation2 + $0xb1] sm:$0xff] }
 0xb0a   :  { %6455 = vst.msk [vmem:[#allocation3 + $0x38] sm:$0xff] %vm2016_vm5, %v6271_v36 }
 0xb0b   :  { %v6297_v29 = vpop.permute.xlu2 %6296 }
 0xb0c   :  { %6468 = vst.msk [vmem:[#allocation3 + $0xa0] sm:$0xff] %vm2016_vm5, %v6297_v29 }
 0xb0e   :  { %6657 = vrot.lane.b32.xlu0 %v6521_v39, %s9557_s9 }
 0xb0f   :  { %7039 = vrot.lane.b32.xlu1 %v14447_v2, %s9558_s24 }
 0xb10   :  { %v6287_v62 = vpop.permute.xlu0 %6286 }
 0xb11   :  { %v6277_v11 = vpop.permute.xlu1 %6276  ;;  %6463 = vst.msk [vmem:[#allocation3 + $0x78] sm:$0xff] %vm2016_vm5, %v6287_v62  ;;  %7473 = vrot.lane.b32.xlu2 %v7313_v12, %s9559_s21  ;;  %v6909_v62 = vld [vmem:[#allocation2 + $0xc1] sm:$0xff] }
 0xb12   :  { %6458 = vst.msk [vmem:[#allocation3 + $0x50] sm:$0xff] %vm2016_vm5, %v6277_v11 }
 0xb13   :  { %v6303_v2 = vpop.permute.xlu2 %6302 }
 0xb14   :  { %6471 = vst.msk [vmem:[#allocation3 + $0xb8] sm:$0xff] %vm2016_vm5, %v6303_v2 }
 0xb16   :  { %6707 = vrot.lane.b32.xlu0 %v6546_v59, %s9557_s9 }
 0xb17   :  { %7089 = vrot.lane.b32.xlu1 %v14500_v10, %s9558_s24  ;;  %v7737_v10 = vld [vmem:[%s16665_s2 + $0x40] sm:$0xff] }
 0xb18   :  { %v6293_v26 = vpop.permute.xlu0 %6292  ;;  %7937 = vmatpush.msra.mxu1 %v7737_v10  ;;  %9528 = vmatpush.msra.mxu3 %v7737_v10  ;;  %v6550_v10 = vld [vmem:[#allocation2 + $0x218] sm:$0xff] }
 0xb19   :  { %v6283_v44 = vpop.permute.xlu1 %6282  ;;  %6466 = vst.msk [vmem:[#allocation3 + $0x90] sm:$0xff] %vm2016_vm5, %v6293_v26  ;;  %7041 = vrot.lane.b32.xlu2 %v14440_v34, %s9558_s24  ;;  %v7736_v34 = vld [vmem:[%s16665_s2 + $0x38] sm:$0xff]  ;;  %v6525_v26 = vld [vmem:[#allocation2 + $0xc0] sm:$0xff] }
 0xb1a   :  { %6461 = vst.msk [vmem:[#allocation3 + $0x68] sm:$0xff] %vm2016_vm5, %v6283_v44  ;;  %7938 = vmatpush.msra.mxu1 %v7736_v34  ;;  %9529 = vmatpush.msra.mxu3 %v7736_v34  ;;  %v6526_v34 = vld [vmem:[#allocation2 + $0xc8] sm:$0xff] }
 0xb1b   :  { %v6309_v16 = vpop.permute.xlu2 %6308 }
 0xb1c   :  { %6474 = vst.msk [vmem:[#allocation3 + $0xd0] sm:$0xff] %vm2016_vm5, %v6309_v16  ;;  %7939 = vmatpush.msra.mxu1 %v7735_v48  ;;  %9530 = vmatpush.msra.mxu3 %v7735_v48  ;;  %v7318_v48 = vld [vmem:[#allocation2 + $0x21a] sm:$0xff] }
 0xb1e   :  { %7475 = vrot.lane.b32.xlu0 %v7314_v45, %s9559_s21  ;;  %7940 = vmatpush.msra.mxu1 %v7734_v43 }
 0xb1f   :  { %6322 = vrot.lane.b32.xlu1 %v6161_v0, %s9556_s29  ;;  %9531 = vmatpush.msra.mxu3 %v7734_v43 }
 0xb20   :  { %v6299_v23 = vpop.permute.xlu0 %6298  ;;  %7941 = vmatpush.msra.mxu1 %v7733_v50 }
 0xb21   :  { %v6289_v54 = vpop.permute.xlu1 %6288  ;;  %6469 = vst.msk [vmem:[#allocation3 + $0xa8] sm:$0xff] %vm2016_vm5, %v6299_v23  ;;  %7091 = vrot.lane.b32.xlu2 %v14518_v7, %s9558_s24  ;;  %v7732_v7 = vld [vmem:[%s16665_s2 + $0x18] sm:$0xff]  ;;  %9532 = vmatpush.msra.mxu3 %v7733_v50 }
 0xb22   :  { %6464 = vst.msk [vmem:[#allocation3 + $0x80] sm:$0xff] %vm2016_vm5, %v6289_v54  ;;  %7942 = vmatpush.msra.mxu1 %v7732_v7 }
 0xb23   :  { %v6642_v57 = vpop.permute.xlu2 %6641  ;;  %9533 = vmatpush.msra.mxu3 %v7732_v7  ;;  %v6527_v7 = vld [vmem:[#allocation2 + $0xd8] sm:$0xff] }
 0xb24   :  { %6833 = vst.msk [vmem:[#allocation3] sm:$0xff] %vm2402_vm6, %v6642_v57 }
 0xb26   :  { %7043 = vrot.lane.b32.xlu0 %v14459_v37, %s9558_s24  ;;  %v7730_v37 = vld [vmem:[%s16665_s2 + $0x8] sm:$0xff] }
 0xb27   :  { %7425 = vrot.lane.b32.xlu1 %v14635_v32, %s9559_s21  ;;  %v7731_v32 = vld [vmem:[%s16665_s2 + $0x10] sm:$0xff] }
 0xb28   :  { %v6305_v22 = vpop.permute.xlu0 %6304  ;;  %7943 = vmatpush.msra.mxu1 %v7731_v32  ;;  %9534 = vmatpush.msra.mxu3 %v7731_v32 }
 0xb29   :  { %v6295_v1 = vpop.permute.xlu1 %6294  ;;  %6472 = vst.msk [vmem:[#allocation3 + $0xc0] sm:$0xff] %vm2016_vm5, %v6305_v22  ;;  %6324 = vrot.lane.b32.xlu2 %v7313_v12, %s9556_s29  ;;  %v6910_v22 = vld [vmem:[#allocation2 + $0xc9] sm:$0xff] }
 0xb2a   :  { %6467 = vst.msk [vmem:[#allocation3 + $0x98] sm:$0xff] %vm2016_vm5, %v6295_v1  ;;  %7944 = vmatpush.msra.mxu1 %v7730_v37  ;;  %9535 = vmatpush.msra.mxu3 %v7730_v37  ;;  %v6551_v1 = vld [vmem:[#allocation2 + $0x228] sm:$0xff] }
 0xb2b   :  { %v6644_v61 = vpop.permute.xlu2 %6643 }
 0xb2c   :  { %6834 = vst.msk [vmem:[#allocation3 + $0x8] sm:$0xff] %vm2402_vm6, %v6644_v61  ;;  %7945 = vmatpush.msra.mxu1 %v7729_v20  ;;  %9536 = vmatpush.msra.mxu3 %v7729_v20  ;;  %v7319_v20 = vld [vmem:[#allocation2 + $0x22a] sm:$0xff] }
 0xb2d   :  { %v6935_v61 = vld [vmem:[#allocation2 + $0x229] sm:$0xff] }
 0xb2e   :  { %7093 = vrot.lane.b32.xlu0 %v14516_v27, %s9558_s24 }
 0xb2f   :  { %6659 = vrot.lane.b32.xlu1 %v6522_v49, %s9557_s9 }
 0xb30   :  { %v6311_v15 = vpop.permute.xlu0 %6310 }
 0xb31   :  { %v6301_v28 = vpop.permute.xlu1 %6300  ;;  %6475 = vst.msk [vmem:[#allocation3 + $0xd8] sm:$0xff] %vm2016_vm5, %v6311_v15  ;;  %7427 = vrot.lane.b32.xlu2 %v14633_v14, %s9559_s21 }
 0xb32   :  { %6470 = vst.msk [vmem:[#allocation3 + $0xb0] sm:$0xff] %vm2016_vm5, %v6301_v28  ;;  %v6552_v28 = vld [vmem:[#allocation2 + $0x230] sm:$0xff] }
 0xb33   :  { %v6646_v27 = vpop.permute.xlu2 %6645 }
 0xb34   :  { %6835 = vst.msk [vmem:[#allocation3 + $0x10] sm:$0xff] %vm2402_vm6, %v6646_v27 }
 0xb36   :  { %6326 = vrot.lane.b32.xlu0 %v7314_v45, %s9556_s29 }
 0xb37   :  { %6709 = vrot.lane.b32.xlu1 %v6547_v30, %s9557_s9 }
 0xb38   :  { %v7026_v17 = vpop.permute.xlu0 %7025 }
 0xb39   :  { %v6307_v58 = vpop.permute.xlu1 %6306  ;;  %7217 = vst.msk [vmem:[#allocation3] sm:$0xff] %vm2787_vm7, %v7026_v17  ;;  %6661 = vrot.lane.b32.xlu2 %v6523_v52, %s9557_s9  ;;  %v6911_v17 = vld [vmem:[#allocation2 + $0xd9] sm:$0xff] }
 0xb3a   :  { %6473 = vst.msk [vmem:[#allocation3 + $0xc8] sm:$0xff] %vm2016_vm5, %v6307_v58  ;;  %v7320_v52 = vld [vmem:[#allocation2 + $0x232] sm:$0xff] }
 0xb3b   :  { %v6648_v14 = vpop.permute.xlu2 %6647 }
 0xb3c   :  { %6836 = vst.msk [vmem:[#allocation3 + $0x18] sm:$0xff] %vm2402_vm6, %v6648_v14 }
 0xb3e   :  { %7429 = vrot.lane.b32.xlu0 %v14626_v8, %s9559_s21 }
 0xb3f   :  { %7477 = vrot.lane.b32.xlu1 %v7315_v24, %s9559_s21 }
 0xb40   :  { %v7028_v63 = vpop.permute.xlu0 %7027 }
 0xb41   :  { %v6313_v35 = vpop.permute.xlu1 %6312  ;;  %7218 = vst.msk [vmem:[#allocation3 + $0x8] sm:$0xff] %vm2787_vm7, %v7028_v63  ;;  %6711 = vrot.lane.b32.xlu2 %v6548_v21, %s9557_s9  ;;  %v6936_v21 = vld [vmem:[#allocation2 + $0x231] sm:$0xff] }
 0xb42   :  { %6476 = vst.msk [vmem:[#allocation3 + $0xe0] sm:$0xff] %vm2016_vm5, %v6313_v35 }
 0xb43   :  { %v6650_v9 = vpop.permute.xlu2 %6649 }
 0xb44   :  { %6837 = vst.msk [vmem:[#allocation3 + $0x20] sm:$0xff] %vm2402_vm6, %v6650_v9 }
 0xb46   :  { %6663 = vrot.lane.b32.xlu0 %v6524_v19, %s9557_s9 }
 0xb47   :  { %7045 = vrot.lane.b32.xlu1 %v6907_v46, %s9558_s24  ;;  %v6912_v46 = vld [vmem:[#allocation2 + $0xe1] sm:$0xff] }
 0xb48   :  { %v7030_v47 = vpop.permute.xlu0 %7029 }
 0xb49   :  { %v7410_v8 = vpop.permute.xlu1 %7409  ;;  %7219 = vst.msk [vmem:[#allocation3 + $0x10] sm:$0xff] %vm2787_vm7, %v7030_v47  ;;  %7479 = vrot.lane.b32.xlu2 %v7316_v51, %s9559_s21 }
 0xb4a   :  { %7601 = vst.msk [vmem:[#allocation3] sm:$0xff] %vm3172_vm8, %v7410_v8 }
 0xb4b   :  { %v6652_v5 = vpop.permute.xlu2 %6651 }
 0xb4c   :  { %6838 = vst.msk [vmem:[#allocation3 + $0x28] sm:$0xff] %vm2402_vm6, %v6652_v5 }
 0xb4e   :  { %6713 = vrot.lane.b32.xlu0 %v6549_v40, %s9557_s9  ;;  %v6937_v40 = vld [vmem:[#allocation2 + $0x241] sm:$0xff] }
 0xb4f   :  { %7095 = vrot.lane.b32.xlu1 %v14509_v3, %s9558_s24  ;;  %v7317_v3 = vld [vmem:[#allocation2 + $0x212] sm:$0xff] }
 0xb50   :  { %v7032_v36 = vpop.permute.xlu0 %7031 }
 0xb51   :  { %v7412_v6 = vpop.permute.xlu1 %7411  ;;  %v7665_v41 = vld [vmem:[#allocation3] sm:$0xff]  ;;  %7220 = vst.msk [vmem:[#allocation3 + $0x18] sm:$0xff] %vm2787_vm7, %v7032_v36  ;;  %7047 = vrot.lane.b32.xlu2 %v6908_v56, %s9558_s24 }
 0xb52   :  { %7602 = vst.msk [vmem:[#allocation3 + $0x8] sm:$0xff] %vm3172_vm8, %v7412_v6  ;;  %9391 = vmatmul.msk.f32.vlgmr.msra.gmra.mxu1 %vm3310_vm9, %v7665_v41  ;;  %v6553_v36 = vld [vmem:[#allocation2 + $0x240] sm:$0xff] }
 0xb53   :  { %v6654_v53 = vpop.permute.xlu2 %6653 }
 0xb54   :  { %6839 = vst.msk [vmem:[#allocation3 + $0x30] sm:$0xff] %vm2402_vm6, %v6654_v53 }
 0xb56   :  { %7481 = vrot.lane.b32.xlu0 %v7317_v3, %s9559_s21 }
 0xb57   :  { %6328 = vrot.lane.b32.xlu1 %v7315_v24, %s9556_s29 }
 0xb58   :  { %v7034_v11 = vpop.permute.xlu0 %7033 }
 0xb59   :  { %v7414_v39 = vpop.permute.xlu1 %7413  ;;  %v7666_v29 = vld [vmem:[#allocation3 + $0x8] sm:$0xff]  ;;  %7221 = vst.msk [vmem:[#allocation3 + $0x20] sm:$0xff] %vm2787_vm7, %v7034_v11  ;;  %7097 = vrot.lane.b32.xlu2 %v14530_v25, %s9558_s24 }
 0xb5a   :  { %7603 = vst.msk [vmem:[#allocation3 + $0x10] sm:$0xff] %vm3172_vm8, %v7414_v39  ;;  %9392 = vmatmul.msk.f32.gmra.mxu1 %vm3310_vm9, %v7666_v29  ;;  %v6529_v29 = vld [vmem:[#allocation2 + $0xf0] sm:$0xff] }
 0xb5b   :  { %v6656_v12 = vpop.permute.xlu2 %6655 }
 0xb5c   :  { %6840 = vst.msk [vmem:[#allocation3 + $0x38] sm:$0xff] %vm2402_vm6, %v6656_v12 }
 0xb5e   :  { %7049 = vrot.lane.b32.xlu0 %v6909_v62, %s9558_s24 }
 0xb5f   :  { %7431 = vrot.lane.b32.xlu1 %v14650_v31, %s9559_s21 }
 0xb60   :  { %v7036_v44 = vpop.permute.xlu0 %7035 }
 0xb61   :  { %v7416_v59 = vpop.permute.xlu1 %7415  ;;  %v7667_v2 = vld [vmem:[#allocation3 + $0x10] sm:$0xff]  ;;  %7222 = vst.msk [vmem:[#allocation3 + $0x28] sm:$0xff] %vm2787_vm7, %v7036_v44  ;;  %6330 = vrot.lane.b32.xlu2 %v7316_v51, %s9556_s29  ;;  %v6528_v51 = vld [vmem:[#allocation2 + $0xe0] sm:$0xff]  ;;  %v6530_v44 = vld [vmem:[#allocation2 + $0xf8] sm:$0xff] }
 0xb62   :  { %7604 = vst.msk [vmem:[#allocation3 + $0x18] sm:$0xff] %vm3172_vm8, %v7416_v59  ;;  %9393 = vmatmul.msk.f32.gmra.mxu1 %vm3310_vm9, %v7667_v2  ;;  %v6554_v59 = vld [vmem:[#allocation2 + $0x248] sm:$0xff]  ;;  %v6913_v2 = vld [vmem:[#allocation2 + $0xf1] sm:$0xff] }
 0xb63   :  { %v6706_v25 = vpop.permute.xlu2 %6705 }
 0xb66   :  { %7099 = vrot.lane.b32.xlu0 %v14528_v13, %s9558_s24 }
 0xb67   :  { %6665 = vrot.lane.b32.xlu1 %v6525_v26, %s9557_s9 }
 0xb68   :  { %v7038_v45 = vpop.permute.xlu0 %7037 }
 0xb69   :  { %v7418_v31 = vpop.permute.xlu1 %7417  ;;  %v7668_v0 = vld [vmem:[#allocation3 + $0x18] sm:$0xff]  ;;  %7223 = vst.msk [vmem:[#allocation3 + $0x30] sm:$0xff] %vm2787_vm7, %v7038_v45  ;;  %7433 = vrot.lane.b32.xlu2 %v14648_v4, %s9559_s21  ;;  %v6938_v45 = vld [vmem:[#allocation2 + $0x249] sm:$0xff] }
 0xb6a   :  { %7605 = vst.msk [vmem:[#allocation3 + $0x20] sm:$0xff] %vm3172_vm8, %v7418_v31  ;;  %9394 = vmatmul.msk.f32.gmra.mxu1 %vm3310_vm9, %v7668_v0  ;;  %v7322_v0 = vld [vmem:[#allocation2 + $0x24a] sm:$0xff] }
 0xb6b   :  { %v7474_v16 = vpop.permute.xlu2 %7473 }
 0xb6e   :  { %6332 = vrot.lane.b32.xlu0 %v7317_v3, %s9556_s29 }
 0xb6f   :  { %6715 = vrot.lane.b32.xlu1 %v6550_v10, %s9557_s9  ;;  %v6555_v10 = vld [vmem:[#allocation2 + $0x258] sm:$0xff] }
 0xb70   :  { %v6321_v23 = vpop.permute.xlu0 %6320 }
 0xb71   :  { %v7420_v13 = vpop.permute.xlu1 %7419  ;;  %v7669_v54 = vld [vmem:[#allocation3 + $0x20] sm:$0xff]  ;;  %6480 = vst.msk [vmem:[#allocation3 + $0x100] sm:$0xff] %vm2016_vm5, %v6321_v23  ;;  %6667 = vrot.lane.b32.xlu2 %v6526_v34, %s9557_s9 }
 0xb72   :  { %7606 = vst.msk [vmem:[#allocation3 + $0x28] sm:$0xff] %vm3172_vm8, %v7420_v13  ;;  %9395 = vmatmul.msk.f32.gmra.mxu1 %vm3310_vm9, %v7669_v54  ;;  %v6914_v34 = vld [vmem:[#allocation2 + $0xf9] sm:$0xff] }
 0xb73   :  { %6865 = vst.msk [vmem:[#allocation3 + $0x100] sm:$0xff] %vm2402_vm6, %v6706_v25  ;;  %v7042_v4 = vpop.permute.xlu2 %7041 }
 0xb76   :  { %7435 = vrot.lane.b32.xlu0 %v14641_v60, %s9559_s21 }
 0xb77   :  { %7483 = vrot.lane.b32.xlu1 %v7318_v48, %s9559_s21 }
 0xb78   :  { %v7424_v57 = vpop.permute.xlu0 %7423 }
 0xb79   :  { %v7422_v43 = vpop.permute.xlu1 %7421  ;;  %v7670_v50 = vld [vmem:[#allocation3 + $0x28] sm:$0xff]  ;;  %6717 = vrot.lane.b32.xlu2 %v6551_v1, %s9557_s9  ;;  %v6939_v1 = vld [vmem:[#allocation2 + $0x259] sm:$0xff] }
 0xb7a   :  { %7607 = vst.msk [vmem:[#allocation3 + $0x30] sm:$0xff] %vm3172_vm8, %v7422_v43  ;;  %9396 = vmatmul.msk.f32.gmra.mxu1 %vm3310_vm9, %v7670_v50 }
 0xb7b   :  { %v7092_v32 = vpop.permute.xlu2 %7091 }
 0xb7e   :  { %6669 = vrot.lane.b32.xlu0 %v6527_v7, %s9557_s9 }
 0xb7f   :  { %7051 = vrot.lane.b32.xlu1 %v6910_v22, %s9558_s24  ;;  %v6915_v22 = vld [vmem:[#allocation2 + $0x109] sm:$0xff] }
 0xb80   :  { %v6658_v49 = vpop.permute.xlu0 %6657 }
 0xb81   :  { %v7040_v37 = vpop.permute.xlu1 %7039  ;;  %v7671_v60 = vld [vmem:[#allocation3 + $0x30] sm:$0xff]  ;;  %6841 = vst.msk [vmem:[#allocation3 + $0x40] sm:$0xff] %vm2402_vm6, %v6658_v49  ;;  %7485 = vrot.lane.b32.xlu2 %v7319_v20, %s9559_s21  ;;  %v6531_v49 = vld [vmem:[#allocation2 + $0x108] sm:$0xff] }
 0xb82   :  { %7224 = vst.msk [vmem:[#allocation3 + $0x38] sm:$0xff] %vm2787_vm7, %v7040_v37  ;;  %9397 = vmatmul.msk.f32.gmra.mxu1 %vm3310_vm9, %v7671_v60 }
 0xb83   :  { %7608 = vst.msk [vmem:[#allocation3 + $0x38] sm:$0xff] %vm3172_vm8, %v7424_v57  ;;  %v6325_v15 = vpop.permute.xlu2 %6324 }
 0xb84   :  { %7225 = vst.msk [vmem:[#allocation3 + $0x40] sm:$0xff] %vm2787_vm7, %v7042_v4 }
 0xb85   :  { %6482 = vst.msk [vmem:[#allocation3 + $0x110] sm:$0xff] %vm2016_vm5, %v6325_v15 }
 0xb86   :  { %6719 = vrot.lane.b32.xlu0 %v6552_v28, %s9557_s9 }
 0xb87   :  { %7101 = vrot.lane.b32.xlu1 %v6935_v61, %s9558_s24 }
 0xb88   :  { %v6708_v58 = vpop.permute.xlu0 %6707 }
 0xb89   :  { %v7090_v30 = vpop.permute.xlu1 %7089  ;;  %7053 = vrot.lane.b32.xlu2 %v6911_v17, %s9558_s24 }
 0xb8a   :  { %v7672_v27 = vld [vmem:[#allocation3 + $0x38] sm:$0xff]  ;;  %7249 = vst.msk [vmem:[#allocation3 + $0x100] sm:$0xff] %vm2787_vm7, %v7090_v30  ;;  %v6556_v30 = vld [vmem:[#allocation2 + $0x260] sm:$0xff] }
 0xb8b   :  { %9398 = vmatmul.msk.f32.gmra.mxu1 %vm3310_vm9, %v7672_v27  ;;  %7633 = vst.msk [vmem:[#allocation3 + $0x100] sm:$0xff] %vm3172_vm8, %v7474_v16  ;;  %v7428_v24 = vpop.permute.xlu2 %7427 }
 0xb8e   :  { %7487 = vrot.lane.b32.xlu0 %v7320_v52, %s9559_s21 }
 0xb8f   :  { %6334 = vrot.lane.b32.xlu1 %v7318_v48, %s9556_s29  ;;  %v7323_v48 = vld [vmem:[#allocation2 + $0x25a] sm:$0xff] }
 0xb90   :  { %v7476_v35 = vpop.permute.xlu0 %7475 }
 0xb91   :  { %v6323_v14 = vpop.permute.xlu1 %6322  ;;  %7103 = vrot.lane.b32.xlu2 %v6936_v21, %s9558_s24 }
 0xb92   :  { %6481 = vst.msk [vmem:[#allocation3 + $0x108] sm:$0xff] %vm2016_vm5, %v6323_v14  ;;  %v7697_v63 = vld [vmem:[#allocation3 + $0x100] sm:$0xff]  ;;  %v7300_v14 = vld [vmem:[#allocation2 + $0x112] sm:$0xff] }
 0xb93   :  { %6866 = vst.msk [vmem:[#allocation3 + $0x108] sm:$0xff] %vm2402_vm6, %v6708_v58  ;;  %9423 = vmatmul.msk.f32.vlgmr.msra.gmra.mxu3 %vm3310_vm9, %v7697_v63  ;;  %v6662_v19 = vpop.permute.xlu2 %6661 }
 0xb94   :  { %7250 = vst.msk [vmem:[#allocation3 + $0x108] sm:$0xff] %vm2787_vm7, %v7092_v32 }
 0xb95   :  { %7634 = vst.msk [vmem:[#allocation3 + $0x108] sm:$0xff] %vm3172_vm8, %v7476_v35 }
 0xb96   :  { %7055 = vrot.lane.b32.xlu0 %v6912_v46, %s9558_s24  ;;  %6843 = vst.msk [vmem:[#allocation3 + $0x50] sm:$0xff] %vm2402_vm6, %v6662_v19  ;;  %v6557_v46 = vld [vmem:[#allocation2 + $0x270] sm:$0xff] }
 0xb97   :  { %7437 = vrot.lane.b32.xlu1 %v14665_v55, %s9559_s21  ;;  %v6916_v19 = vld [vmem:[#allocation2 + $0x111] sm:$0xff] }
 0xb98   :  { %v7044_v8 = vpop.permute.xlu0 %7043 }
 0xb99   :  { %v7426_v9 = vpop.permute.xlu1 %7425  ;;  %6336 = vrot.lane.b32.xlu2 %v7319_v20, %s9556_s29  ;;  %v6940_v20 = vld [vmem:[#allocation2 + $0x261] sm:$0xff] }
 0xb9a   :  { %7609 = vst.msk [vmem:[#allocation3 + $0x40] sm:$0xff] %vm3172_vm8, %v7426_v9  ;;  %v6533_v9 = vld [vmem:[#allocation2 + $0x120] sm:$0xff] }
 0xb9b   :  { %v6712_v55 = vpop.permute.xlu2 %6711 }
 0xb9c   :  { %v7698_v47 = vld [vmem:[#allocation3 + $0x108] sm:$0xff] }
 0xb9d   :  { %9424 = vmatmul.msk.f32.gmra.mxu3 %vm3310_vm9, %v7698_v47 }
 0xb9e   :  { %7105 = vrot.lane.b32.xlu0 %v6937_v40, %s9558_s24 }
 0xb9f   :  { %6671 = vrot.lane.b32.xlu1 %v6528_v51, %s9557_s9 }
 0xba0   :  { %v7094_v41 = vpop.permute.xlu0 %7093 }
 0xba1   :  { %v6660_v5 = vpop.permute.xlu1 %6659  ;;  %v7673_v6 = vld [vmem:[#allocation3 + $0x40] sm:$0xff]  ;;  %7439 = vrot.lane.b32.xlu2 %v14663_v42, %s9559_s21 }
 0xba2   :  { %6842 = vst.msk [vmem:[#allocation3 + $0x48] sm:$0xff] %vm2402_vm6, %v6660_v5  ;;  %9399 = vmatmul.msk.f32.gmra.mxu1 %vm3310_vm9, %v7673_v6  ;;  %v7321_v42 = vld [vmem:[#allocation2 + $0x242] sm:$0xff]  ;;  %v6941_v5 = vld [vmem:[#allocation2 + $0x271] sm:$0xff] }
 0xba3   :  { %7226 = vst.msk [vmem:[#allocation3 + $0x48] sm:$0xff] %vm2787_vm7, %v7044_v8  ;;  %v7480_v56 = vpop.permute.xlu2 %7479  ;;  %v6558_v6 = vld [vmem:[#allocation2 + $0x278] sm:$0xff] }
 0xba4   :  { %7610 = vst.msk [vmem:[#allocation3 + $0x48] sm:$0xff] %vm3172_vm8, %v7428_v24  ;;  %v6532_v24 = vld [vmem:[#allocation2 + $0x110] sm:$0xff] }
 0xba6   :  { %6338 = vrot.lane.b32.xlu0 %v7320_v52, %s9556_s29 }
 0xba7   :  { %6721 = vrot.lane.b32.xlu1 %v6553_v36, %s9557_s9 }
 0xba8   :  { %v6327_v53 = vpop.permute.xlu0 %6326 }
 0xba9   :  { %v6710_v3 = vpop.permute.xlu1 %6709  ;;  %6483 = vst.msk [vmem:[#allocation3 + $0x118] sm:$0xff] %vm2016_vm5, %v6327_v53  ;;  %6673 = vrot.lane.b32.xlu2 %v6529_v29, %s9557_s9  ;;  %v6917_v53 = vld [vmem:[#allocation2 + $0x121] sm:$0xff] }
 0xbaa   :  { %6867 = vst.msk [vmem:[#allocation3 + $0x110] sm:$0xff] %vm2402_vm6, %v6710_v3 }
 0xbab   :  { %7251 = vst.msk [vmem:[#allocation3 + $0x110] sm:$0xff] %vm2787_vm7, %v7094_v41  ;;  %v7674_v39 = vld [vmem:[#allocation3 + $0x48] sm:$0xff]  ;;  %v7048_v11 = vpop.permute.xlu2 %7047 }
 0xbac   :  { %9400 = vmatmul.msk.f32.gmra.mxu1 %vm3310_vm9, %v7674_v39  ;;  %6868 = vst.msk [vmem:[#allocation3 + $0x118] sm:$0xff] %vm2402_vm6, %v6712_v55  ;;  %v7325_v55 = vld [vmem:[#allocation2 + $0x272] sm:$0xff]  ;;  %v7326_v39 = vld [vmem:[#allocation2 + $0x27a] sm:$0xff] }
 0xbae   :  { %7441 = vrot.lane.b32.xlu0 %v14656_v33, %s9559_s21 }
 0xbaf   :  { %7489 = vrot.lane.b32.xlu1 %v7321_v42, %s9559_s21 }
 0xbb0   :  { %v7430_v12 = vpop.permute.xlu0 %7429 }
 0xbb1   :  { %v7478_v62 = vpop.permute.xlu1 %7477  ;;  %6723 = vrot.lane.b32.xlu2 %v6554_v59, %s9557_s9  ;;  %v7301_v59 = vld [vmem:[#allocation2 + $0x122] sm:$0xff] }
 0xbb2   :  { %7635 = vst.msk [vmem:[#allocation3 + $0x110] sm:$0xff] %vm3172_vm8, %v7478_v62 }
 0xbb3   :  { %v7098_v26 = vpop.permute.xlu2 %7097 }
 0xbb6   :  { %6675 = vrot.lane.b32.xlu0 %v6530_v44, %s9557_s9 }
 0xbb7   :  { %7057 = vrot.lane.b32.xlu1 %v6913_v2, %s9558_s24  ;;  %v6918_v2 = vld [vmem:[#allocation2 + $0x129] sm:$0xff] }
 0xbb8   :  { %v6664_v33 = vpop.permute.xlu0 %6663 }
 0xbb9   :  { %v7046_v25 = vpop.permute.xlu1 %7045  ;;  %v7699_v31 = vld [vmem:[#allocation3 + $0x110] sm:$0xff]  ;;  %6844 = vst.msk [vmem:[#allocation3 + $0x58] sm:$0xff] %vm2402_vm6, %v6664_v33  ;;  %7491 = vrot.lane.b32.xlu2 %v7322_v0, %s9559_s21  ;;  %v6534_v33 = vld [vmem:[#allocation2 + $0x128] sm:$0xff] }
 0xbba   :  { %7227 = vst.msk [vmem:[#allocation3 + $0x50] sm:$0xff] %vm2787_vm7, %v7046_v25  ;;  %9425 = vmatmul.msk.f32.gmra.mxu3 %vm3310_vm9, %v7699_v31 }
 0xbbb   :  { %7611 = vst.msk [vmem:[#allocation3 + $0x50] sm:$0xff] %vm3172_vm8, %v7430_v12  ;;  %v6331_v16 = vpop.permute.xlu2 %6330  ;;  %v6942_v12 = vld [vmem:[#allocation2 + $0x279] sm:$0xff] }
 0xbbc   :  { %7228 = vst.msk [vmem:[#allocation3 + $0x58] sm:$0xff] %vm2787_vm7, %v7048_v11 }
 0xbbd   :  { %6485 = vst.msk [vmem:[#allocation3 + $0x128] sm:$0xff] %vm2016_vm5, %v6331_v16 }
 0xbbe   :  { %6725 = vrot.lane.b32.xlu0 %v6555_v10, %s9557_s9 }
 0xbbf   :  { %7107 = vrot.lane.b32.xlu1 %v6938_v45, %s9558_s24 }
 0xbc0   :  { %v6714_v23 = vpop.permute.xlu0 %6713 }
 0xbc1   :  { %v7096_v13 = vpop.permute.xlu1 %7095  ;;  %7059 = vrot.lane.b32.xlu2 %v6914_v34, %s9558_s24 }
 0xbc2   :  { %v7675_v54 = vld [vmem:[#allocation3 + $0x50] sm:$0xff]  ;;  %7252 = vst.msk [vmem:[#allocation3 + $0x118] sm:$0xff] %vm2787_vm7, %v7096_v13 }
 0xbc3   :  { %9401 = vmatmul.msk.f32.gmra.mxu1 %vm3310_vm9, %v7675_v54  ;;  %7636 = vst.msk [vmem:[#allocation3 + $0x118] sm:$0xff] %vm3172_vm8, %v7480_v56  ;;  %v7434_v4 = vpop.permute.xlu2 %7433  ;;  %v7302_v54 = vld [vmem:[#allocation2 + $0x12a] sm:$0xff] }
 0xbc6   :  { %7493 = vrot.lane.b32.xlu0 %v7323_v48, %s9559_s21 }
 0xbc7   :  { %6340 = vrot.lane.b32.xlu1 %v7321_v42, %s9556_s29 }
 0xbc8   :  { %v7482_v50 = vpop.permute.xlu0 %7481 }
 0xbc9   :  { %v6329_v43 = vpop.permute.xlu1 %6328  ;;  %7109 = vrot.lane.b32.xlu2 %v6939_v1, %s9558_s24  ;;  %v7303_v1 = vld [vmem:[#allocation2 + $0x13a] sm:$0xff] }
 0xbca   :  { %6484 = vst.msk [vmem:[#allocation3 + $0x120] sm:$0xff] %vm2016_vm5, %v6329_v43  ;;  %v7700_v57 = vld [vmem:[#allocation3 + $0x118] sm:$0xff] }
 0xbcb   :  { %6869 = vst.msk [vmem:[#allocation3 + $0x120] sm:$0xff] %vm2402_vm6, %v6714_v23  ;;  %9426 = vmatmul.msk.f32.gmra.mxu3 %vm3310_vm9, %v7700_v57  ;;  %v6668_v7 = vpop.permute.xlu2 %6667  ;;  %v6559_v23 = vld [vmem:[#allocation2 + $0x288] sm:$0xff] }
 0xbcc   :  { %7253 = vst.msk [vmem:[#allocation3 + $0x120] sm:$0xff] %vm2787_vm7, %v7098_v26  ;;  %v7327_v57 = vld [vmem:[#allocation2 + $0x28a] sm:$0xff] }
 0xbcd   :  { %7637 = vst.msk [vmem:[#allocation3 + $0x120] sm:$0xff] %vm3172_vm8, %v7482_v50  ;;  %v6535_v50 = vld [vmem:[#allocation2 + $0x138] sm:$0xff] }
 0xbce   :  { %7061 = vrot.lane.b32.xlu0 %v6915_v22, %s9558_s24  ;;  %6846 = vst.msk [vmem:[#allocation3 + $0x68] sm:$0xff] %vm2402_vm6, %v6668_v7 }
 0xbcf   :  { %7443 = vrot.lane.b32.xlu1 %v14677_v18, %s9559_s21 }
 0xbd0   :  { %v7050_v37 = vpop.permute.xlu0 %7049 }
 0xbd1   :  { %v7432_v32 = vpop.permute.xlu1 %7431  ;;  %6342 = vrot.lane.b32.xlu2 %v7322_v0, %s9556_s29  ;;  %v6943_v0 = vld [vmem:[#allocation2 + $0x289] sm:$0xff] }
 0xbd2   :  { %7612 = vst.msk [vmem:[#allocation3 + $0x58] sm:$0xff] %vm3172_vm8, %v7432_v32 }
 0xbd3   :  { %v6718_v18 = vpop.permute.xlu2 %6717 }
 0xbd4   :  { %v7701_v60 = vld [vmem:[#allocation3 + $0x120] sm:$0xff] }
 0xbd5   :  { %9427 = vmatmul.msk.f32.gmra.mxu3 %vm3310_vm9, %v7701_v60  ;;  %v6919_v60 = vld [vmem:[#allocation2 + $0x139] sm:$0xff] }
 0xbd6   :  { %7111 = vrot.lane.b32.xlu0 %v6940_v20, %s9558_s24 }
 0xbd7   :  { %6677 = vrot.lane.b32.xlu1 %v6531_v49, %s9557_s9  ;;  %v6536_v49 = vld [vmem:[#allocation2 + $0x140] sm:$0xff] }
 0xbd8   :  { %v7100_v15 = vpop.permute.xlu0 %7099 }
 0xbd9   :  { %v6666_v61 = vpop.permute.xlu1 %6665  ;;  %v7676_v28 = vld [vmem:[#allocation3 + $0x58] sm:$0xff]  ;;  %7445 = vrot.lane.b32.xlu2 %v14675_v38, %s9559_s21  ;;  %v7324_v38 = vld [vmem:[#allocation2 + $0x262] sm:$0xff] }
 0xbda   :  { %6845 = vst.msk [vmem:[#allocation3 + $0x60] sm:$0xff] %vm2402_vm6, %v6666_v61  ;;  %9402 = vmatmul.msk.f32.gmra.mxu1 %vm3310_vm9, %v7676_v28 }
 0xbdb   :  { %7229 = vst.msk [vmem:[#allocation3 + $0x60] sm:$0xff] %vm2787_vm7, %v7050_v37  ;;  %v7486_v27 = vpop.permute.xlu2 %7485  ;;  %v6560_v37 = vld [vmem:[#allocation2 + $0x290] sm:$0xff] }
 0xbdc   :  { %7613 = vst.msk [vmem:[#allocation3 + $0x60] sm:$0xff] %vm3172_vm8, %v7434_v4 }
 0xbde   :  { %6344 = vrot.lane.b32.xlu0 %v7323_v48, %s9556_s29 }
 0xbdf   :  { %6727 = vrot.lane.b32.xlu1 %v6556_v30, %s9557_s9  ;;  %v6944_v30 = vld [vmem:[#allocation2 + $0x291] sm:$0xff] }
 0xbe0   :  { %v6333_v17 = vpop.permute.xlu0 %6332 }
 0xbe1   :  { %v6716_v58 = vpop.permute.xlu1 %6715  ;;  %6486 = vst.msk [vmem:[#allocation3 + $0x130] sm:$0xff] %vm2016_vm5, %v6333_v17  ;;  %6679 = vrot.lane.b32.xlu2 %v6532_v24, %s9557_s9 }
 0xbe2   :  { %6870 = vst.msk [vmem:[#allocation3 + $0x128] sm:$0xff] %vm2402_vm6, %v6716_v58 }
 0xbe3   :  { %7254 = vst.msk [vmem:[#allocation3 + $0x128] sm:$0xff] %vm2787_vm7, %v7100_v15  ;;  %v7677_v52 = vld [vmem:[#allocation3 + $0x60] sm:$0xff]  ;;  %v7054_v35 = vpop.permute.xlu2 %7053  ;;  %v7328_v15 = vld [vmem:[#allocation2 + $0x292] sm:$0xff] }
 0xbe4   :  { %9403 = vmatmul.msk.f32.gmra.mxu1 %vm3310_vm9, %v7677_v52  ;;  %6871 = vst.msk [vmem:[#allocation3 + $0x130] sm:$0xff] %vm2402_vm6, %v6718_v18 }
 0xbe6   :  { %7447 = vrot.lane.b32.xlu0 %v7300_v14, %s9559_s21  ;;  %v7329_v14 = vld [vmem:[#allocation2 + $0x2a2] sm:$0xff] }
 0xbe7   :  { %7495 = vrot.lane.b32.xlu1 %v7324_v38, %s9559_s21 }
 0xbe8   :  { %v7436_v21 = vpop.permute.xlu0 %7435 }
 0xbe9   :  { %v7484_v63 = vpop.permute.xlu1 %7483  ;;  %6729 = vrot.lane.b32.xlu2 %v6557_v46, %s9557_s9 }
 0xbea   :  { %7638 = vst.msk [vmem:[#allocation3 + $0x128] sm:$0xff] %vm3172_vm8, %v7484_v63 }
 0xbeb   :  { %v7104_v8 = vpop.permute.xlu2 %7103 }
 0xbee   :  { %6681 = vrot.lane.b32.xlu0 %v6533_v9, %s9557_s9  ;;  %v7304_v9 = vld [vmem:[#allocation2 + $0x142] sm:$0xff] }
 0xbef   :  { %7063 = vrot.lane.b32.xlu1 %v6916_v19, %s9558_s24  ;;  %v6945_v19 = vld [vmem:[#allocation2 + $0x2a1] sm:$0xff] }
 0xbf0   :  { %v6670_v40 = vpop.permute.xlu0 %6669 }
 0xbf1   :  { %v7052_v47 = vpop.permute.xlu1 %7051  ;;  %v7702_v51 = vld [vmem:[#allocation3 + $0x128] sm:$0xff]  ;;  %6847 = vst.msk [vmem:[#allocation3 + $0x70] sm:$0xff] %vm2402_vm6, %v6670_v40  ;;  %7497 = vrot.lane.b32.xlu2 %v7325_v55, %s9559_s21 }
 0xbf2   :  { %7230 = vst.msk [vmem:[#allocation3 + $0x68] sm:$0xff] %vm2787_vm7, %v7052_v47  ;;  %9428 = vmatmul.msk.f32.gmra.mxu3 %vm3310_vm9, %v7702_v51 }
 0xbf3   :  { %7614 = vst.msk [vmem:[#allocation3 + $0x68] sm:$0xff] %vm3172_vm8, %v7436_v21  ;;  %v6337_v41 = vpop.permute.xlu2 %6336 }
 0xbf4   :  { %7231 = vst.msk [vmem:[#allocation3 + $0x70] sm:$0xff] %vm2787_vm7, %v7054_v35 }
 0xbf5   :  { %6488 = vst.msk [vmem:[#allocation3 + $0x140] sm:$0xff] %vm2016_vm5, %v6337_v41 }
 0xbf6   :  { %6731 = vrot.lane.b32.xlu0 %v6558_v6, %s9557_s9  ;;  %v6946_v6 = vld [vmem:[#allocation2 + $0x2a9] sm:$0xff] }
 0xbf7   :  { %7113 = vrot.lane.b32.xlu1 %v6941_v5, %s9558_s24  ;;  %v6537_v5 = vld [vmem:[#allocation2 + $0x150] sm:$0xff] }
 0xbf8   :  { %v6720_v3 = vpop.permute.xlu0 %6719 }
 0xbf9   :  { %v7102_v36 = vpop.permute.xlu1 %7101  ;;  %7065 = vrot.lane.b32.xlu2 %v6917_v53, %s9558_s24  ;;  %v7305_v53 = vld [vmem:[#allocation2 + $0x152] sm:$0xff] }
 0xbfa   :  { %v7678_v56 = vld [vmem:[#allocation3 + $0x68] sm:$0xff]  ;;  %7255 = vst.msk [vmem:[#allocation3 + $0x130] sm:$0xff] %vm2787_vm7, %v7102_v36 }
 0xbfb   :  { %9404 = vmatmul.msk.f32.gmra.mxu1 %vm3310_vm9, %v7678_v56  ;;  %7639 = vst.msk [vmem:[#allocation3 + $0x130] sm:$0xff] %vm3172_vm8, %v7486_v27  ;;  %v7440_v29 = vpop.permute.xlu2 %7439  ;;  %v6561_v27 = vld [vmem:[#allocation2 + $0x2a0] sm:$0xff] }
 0xbfe   :  { %7499 = vrot.lane.b32.xlu0 %v7326_v39, %s9559_s21 }
 0xbff   :  { %6346 = vrot.lane.b32.xlu1 %v7324_v38, %s9556_s29  ;;  %v6920_v38 = vld [vmem:[#allocation2 + $0x141] sm:$0xff] }
 0xc00   :  { %v7488_v11 = vpop.permute.xlu0 %7487 }
 0xc01   :  { %v6335_v42 = vpop.permute.xlu1 %6334  ;;  %7115 = vrot.lane.b32.xlu2 %v6942_v12, %s9558_s24  ;;  %v6538_v12 = vld [vmem:[#allocation2 + $0x158] sm:$0xff] }
 0xc02   :  { %6487 = vst.msk [vmem:[#allocation3 + $0x138] sm:$0xff] %vm2016_vm5, %v6335_v42  ;;  %v7703_v62 = vld [vmem:[#allocation3 + $0x130] sm:$0xff] }
 0xc03   :  { %6872 = vst.msk [vmem:[#allocation3 + $0x138] sm:$0xff] %vm2402_vm6, %v6720_v3  ;;  %9429 = vmatmul.msk.f32.gmra.mxu3 %vm3310_vm9, %v7703_v62  ;;  %v6674_v44 = vpop.permute.xlu2 %6673 }
 0xc04   :  { %7256 = vst.msk [vmem:[#allocation3 + $0x138] sm:$0xff] %vm2787_vm7, %v7104_v8  ;;  %v6921_v8 = vld [vmem:[#allocation2 + $0x151] sm:$0xff] }
 0xc05   :  { %7640 = vst.msk [vmem:[#allocation3 + $0x138] sm:$0xff] %vm3172_vm8, %v7488_v11 }
 0xc06   :  { %7067 = vrot.lane.b32.xlu0 %v6918_v2, %s9558_s24  ;;  %6849 = vst.msk [vmem:[#allocation3 + $0x80] sm:$0xff] %vm2402_vm6, %v6674_v44  ;;  %v7306_v2 = vld [vmem:[#allocation2 + $0x15a] sm:$0xff] }
 0xc07   :  { %7449 = vrot.lane.b32.xlu1 %v7301_v59, %s9559_s21  ;;  %v7330_v59 = vld [vmem:[#allocation2 + $0x2aa] sm:$0xff] }
 0xc08   :  { %v7056_v25 = vpop.permute.xlu0 %7055 }
 0xc09   :  { %v7438_v26 = vpop.permute.xlu1 %7437  ;;  %6348 = vrot.lane.b32.xlu2 %v7325_v55, %s9556_s29 }
 0xc0a   :  { %7615 = vst.msk [vmem:[#allocation3 + $0x70] sm:$0xff] %vm3172_vm8, %v7438_v26 }
 0xc0b   :  { %v6724_v45 = vpop.permute.xlu2 %6723 }
 0xc0c   :  { %v7704_v31 = vld [vmem:[#allocation3 + $0x138] sm:$0xff] }
 0xc0d   :  { %9430 = vmatmul.msk.f32.gmra.mxu3 %vm3310_vm9, %v7704_v31  ;;  %v6563_v31 = vld [vmem:[#allocation2 + $0x2b8] sm:$0xff] }
 0xc0e   :  { %7117 = vrot.lane.b32.xlu0 %v6943_v0, %s9558_s24  ;;  %v6539_v0 = vld [vmem:[#allocation2 + $0x168] sm:$0xff] }
 0xc0f   :  { %6683 = vrot.lane.b32.xlu1 %v6534_v33, %s9557_s9  ;;  %v6922_v33 = vld [vmem:[#allocation2 + $0x159] sm:$0xff] }
 0xc10   :  { %v7106_v13 = vpop.permute.xlu0 %7105 }
 0xc11   :  { %v6672_v10 = vpop.permute.xlu1 %6671  ;;  %v7679_v16 = vld [vmem:[#allocation3 + $0x70] sm:$0xff]  ;;  %7451 = vrot.lane.b32.xlu2 %v7302_v54, %s9559_s21  ;;  %v7331_v54 = vld [vmem:[#allocation2 + $0x2ba] sm:$0xff] }
 0xc12   :  { %6848 = vst.msk [vmem:[#allocation3 + $0x78] sm:$0xff] %vm2402_vm6, %v6672_v10  ;;  %9405 = vmatmul.msk.f32.gmra.mxu1 %vm3310_vm9, %v7679_v16 }
 0xc13   :  { %7232 = vst.msk [vmem:[#allocation3 + $0x78] sm:$0xff] %vm2787_vm7, %v7056_v25  ;;  %v7492_v34 = vpop.permute.xlu2 %7491 }
 0xc14   :  { %7616 = vst.msk [vmem:[#allocation3 + $0x78] sm:$0xff] %vm3172_vm8, %v7440_v29 }
 0xc16   :  { %6350 = vrot.lane.b32.xlu0 %v7326_v39, %s9556_s29  ;;  %v6562_v39 = vld [vmem:[#allocation2 + $0x2a8] sm:$0xff] }
 0xc17   :  { %6733 = vrot.lane.b32.xlu1 %v6559_v23, %s9557_s9  ;;  %v6947_v23 = vld [vmem:[#allocation2 + $0x2b9] sm:$0xff] }
 0xc18   :  { %v6339_v4 = vpop.permute.xlu0 %6338 }
 0xc19   :  { %v6722_v48 = vpop.permute.xlu1 %6721  ;;  %6489 = vst.msk [vmem:[#allocation3 + $0x148] sm:$0xff] %vm2016_vm5, %v6339_v4  ;;  %6685 = vrot.lane.b32.xlu2 %v6535_v50, %s9557_s9 }
 0xc1a   :  { %6873 = vst.msk [vmem:[#allocation3 + $0x140] sm:$0xff] %vm2402_vm6, %v6722_v48 }
 0xc1b   :  { %7257 = vst.msk [vmem:[#allocation3 + $0x140] sm:$0xff] %vm2787_vm7, %v7106_v13  ;;  %v7680_v43 = vld [vmem:[#allocation3 + $0x78] sm:$0xff]  ;;  %v7060_v22 = vpop.permute.xlu2 %7059 }
 0xc1c   :  { %9406 = vmatmul.msk.f32.gmra.mxu1 %vm3310_vm9, %v7680_v43  ;;  %6874 = vst.msk [vmem:[#allocation3 + $0x148] sm:$0xff] %vm2402_vm6, %v6724_v45 }
 0xc1e   :  { %7453 = vrot.lane.b32.xlu0 %v7303_v1, %s9559_s21  ;;  %v7332_v1 = vld [vmem:[#allocation2 + $0x2c2] sm:$0xff] }
 0xc1f   :  { %7501 = vrot.lane.b32.xlu1 %v7327_v57, %s9559_s21 }
 0xc20   :  { %v7442_v32 = vpop.permute.xlu0 %7441 }
 0xc21   :  { %v7490_v7 = vpop.permute.xlu1 %7489  ;;  %6735 = vrot.lane.b32.xlu2 %v6560_v37, %s9557_s9 }
 0xc22   :  { %7641 = vst.msk [vmem:[#allocation3 + $0x140] sm:$0xff] %vm3172_vm8, %v7490_v7 }
 0xc23   :  { %v7110_v20 = vpop.permute.xlu2 %7109 }
 0xc26   :  { %6687 = vrot.lane.b32.xlu0 %v6536_v49, %s9557_s9  ;;  %v7307_v49 = vld [vmem:[#allocation2 + $0x16a] sm:$0xff] }
 0xc27   :  { %7069 = vrot.lane.b32.xlu1 %v6919_v60, %s9558_s24  ;;  %v6948_v60 = vld [vmem:[#allocation2 + $0x2c1] sm:$0xff] }
 0xc28   :  { %v6676_v28 = vpop.permute.xlu0 %6675 }
 0xc29   :  { %v7058_v18 = vpop.permute.xlu1 %7057  ;;  %v7705_v61 = vld [vmem:[#allocation3 + $0x140] sm:$0xff]  ;;  %6850 = vst.msk [vmem:[#allocation3 + $0x88] sm:$0xff] %vm2402_vm6, %v6676_v28  ;;  %7503 = vrot.lane.b32.xlu2 %v7328_v15, %s9559_s21 }
 0xc2a   :  { %7233 = vst.msk [vmem:[#allocation3 + $0x80] sm:$0xff] %vm2787_vm7, %v7058_v18  ;;  %9431 = vmatmul.msk.f32.gmra.mxu3 %vm3310_vm9, %v7705_v61 }
 0xc2b   :  { %7617 = vst.msk [vmem:[#allocation3 + $0x80] sm:$0xff] %vm3172_vm8, %v7442_v32  ;;  %v6343_v58 = vpop.permute.xlu2 %6342 }
 0xc2c   :  { %7234 = vst.msk [vmem:[#allocation3 + $0x88] sm:$0xff] %vm2787_vm7, %v7060_v22 }
 0xc2d   :  { %6491 = vst.msk [vmem:[#allocation3 + $0x158] sm:$0xff] %vm2016_vm5, %v6343_v58 }
 0xc2e   :  { %6737 = vrot.lane.b32.xlu0 %v6561_v27, %s9557_s9  ;;  %v6949_v27 = vld [vmem:[#allocation2 + $0x2d1] sm:$0xff] }
 0xc2f   :  { %7119 = vrot.lane.b32.xlu1 %v6944_v30, %s9558_s24  ;;  %v6540_v30 = vld [vmem:[#allocation2 + $0x170] sm:$0xff] }
 0xc30   :  { %v6726_v24 = vpop.permute.xlu0 %6725 }
 0xc31   :  { %v7108_v17 = vpop.permute.xlu1 %7107  ;;  %7071 = vrot.lane.b32.xlu2 %v6920_v38, %s9558_s24  ;;  %v7308_v38 = vld [vmem:[#allocation2 + $0x172] sm:$0xff] }
 0xc32   :  { %v7681_v52 = vld [vmem:[#allocation3 + $0x80] sm:$0xff]  ;;  %7258 = vst.msk [vmem:[#allocation3 + $0x148] sm:$0xff] %vm2787_vm7, %v7108_v17 }
 0xc33   :  { %9407 = vmatmul.msk.f32.gmra.mxu1 %vm3310_vm9, %v7681_v52  ;;  %7642 = vst.msk [vmem:[#allocation3 + $0x148] sm:$0xff] %vm3172_vm8, %v7492_v34  ;;  %v7446_v35 = vpop.permute.xlu2 %7445  ;;  %v6564_v34 = vld [vmem:[#allocation2 + $0x2c0] sm:$0xff] }
 0xc36   :  { %7505 = vrot.lane.b32.xlu0 %v7329_v14, %s9559_s21 }
 0xc37   :  { %6352 = vrot.lane.b32.xlu1 %v7327_v57, %s9556_s29  ;;  %v6923_v57 = vld [vmem:[#allocation2 + $0x169] sm:$0xff] }
 0xc38   :  { %v7494_v21 = vpop.permute.xlu0 %7493 }
 0xc39   :  { %v6341_v63 = vpop.permute.xlu1 %6340  ;;  %7121 = vrot.lane.b32.xlu2 %v6945_v19, %s9558_s24  ;;  %v6541_v19 = vld [vmem:[#allocation2 + $0x180] sm:$0xff] }
 0xc3a   :  { %6490 = vst.msk [vmem:[#allocation3 + $0x150] sm:$0xff] %vm2016_vm5, %v6341_v63  ;;  %v7706_v46 = vld [vmem:[#allocation3 + $0x148] sm:$0xff] }
 0xc3b   :  { %6875 = vst.msk [vmem:[#allocation3 + $0x150] sm:$0xff] %vm2402_vm6, %v6726_v24  ;;  %9432 = vmatmul.msk.f32.gmra.mxu3 %vm3310_vm9, %v7706_v46  ;;  %v6680_v47 = vpop.permute.xlu2 %6679 }
 0xc3c   :  { %7259 = vst.msk [vmem:[#allocation3 + $0x150] sm:$0xff] %vm2787_vm7, %v7110_v20  ;;  %v6924_v20 = vld [vmem:[#allocation2 + $0x171] sm:$0xff] }
 0xc3d   :  { %7643 = vst.msk [vmem:[#allocation3 + $0x150] sm:$0xff] %vm3172_vm8, %v7494_v21 }
 0xc3e   :  { %7073 = vrot.lane.b32.xlu0 %v6921_v8, %s9558_s24  ;;  %6852 = vst.msk [vmem:[#allocation3 + $0x98] sm:$0xff] %vm2402_vm6, %v6680_v47  ;;  %v7309_v8 = vld [vmem:[#allocation2 + $0x182] sm:$0xff] }
 0xc3f   :  { %7455 = vrot.lane.b32.xlu1 %v7304_v9, %s9559_s21  ;;  %v7333_v9 = vld [vmem:[#allocation2 + $0x2d2] sm:$0xff] }
 0xc40   :  { %v7062_v40 = vpop.permute.xlu0 %7061 }
 0xc41   :  { %v7444_v51 = vpop.permute.xlu1 %7443  ;;  %6354 = vrot.lane.b32.xlu2 %v7328_v15, %s9556_s29 }
 0xc42   :  { %7618 = vst.msk [vmem:[#allocation3 + $0x88] sm:$0xff] %vm3172_vm8, %v7444_v51 }
 0xc43   :  { %v6730_v41 = vpop.permute.xlu2 %6729 }
 0xc44   :  { %v7707_v55 = vld [vmem:[#allocation3 + $0x150] sm:$0xff] }
 0xc45   :  { %9433 = vmatmul.msk.f32.gmra.mxu3 %vm3310_vm9, %v7707_v55  ;;  %v6566_v55 = vld [vmem:[#allocation2 + $0x2d8] sm:$0xff] }
 0xc46   :  { %7123 = vrot.lane.b32.xlu0 %v6946_v6, %s9558_s24 }
 0xc47   :  { %6689 = vrot.lane.b32.xlu1 %v6537_v5, %s9557_s9  ;;  %v6925_v5 = vld [vmem:[#allocation2 + $0x181] sm:$0xff] }
 0xc48   :  { %v7112_v3 = vpop.permute.xlu0 %7111 }
 0xc49   :  { %v6678_v36 = vpop.permute.xlu1 %6677  ;;  %v7682_v56 = vld [vmem:[#allocation3 + $0x88] sm:$0xff]  ;;  %7457 = vrot.lane.b32.xlu2 %v7305_v53, %s9559_s21  ;;  %v6950_v53 = vld [vmem:[#allocation2 + $0x2d9] sm:$0xff] }
 0xc4a   :  { %6851 = vst.msk [vmem:[#allocation3 + $0x90] sm:$0xff] %vm2402_vm6, %v6678_v36  ;;  %9408 = vmatmul.msk.f32.gmra.mxu1 %vm3310_vm9, %v7682_v56 }
 0xc4b   :  { %7235 = vst.msk [vmem:[#allocation3 + $0x90] sm:$0xff] %vm2787_vm7, %v7062_v40  ;;  %v7498_v29 = vpop.permute.xlu2 %7497 }
 0xc4c   :  { %7619 = vst.msk [vmem:[#allocation3 + $0x90] sm:$0xff] %vm3172_vm8, %v7446_v35 }
 0xc4e   :  { %6356 = vrot.lane.b32.xlu0 %v7329_v14, %s9556_s29  ;;  %v6565_v14 = vld [vmem:[#allocation2 + $0x2d0] sm:$0xff] }
 0xc4f   :  { %6739 = vrot.lane.b32.xlu1 %v6562_v39, %s9557_s9  ;;  %v6926_v39 = vld [vmem:[#allocation2 + $0x189] sm:$0xff] }
 0xc50   :  { %v6345_v11 = vpop.permute.xlu0 %6344 }
 0xc51   :  { %v6728_v42 = vpop.permute.xlu1 %6727  ;;  %6492 = vst.msk [vmem:[#allocation3 + $0x160] sm:$0xff] %vm2016_vm5, %v6345_v11  ;;  %6691 = vrot.lane.b32.xlu2 %v6538_v12, %s9557_s9  ;;  %v6542_v12 = vld [vmem:[#allocation2 + $0x188] sm:$0xff] }
 0xc52   :  { %6876 = vst.msk [vmem:[#allocation3 + $0x158] sm:$0xff] %vm2402_vm6, %v6728_v42 }
 0xc53   :  { %7260 = vst.msk [vmem:[#allocation3 + $0x158] sm:$0xff] %vm2787_vm7, %v7112_v3  ;;  %v7683_v62 = vld [vmem:[#allocation3 + $0x90] sm:$0xff]  ;;  %v7066_v44 = vpop.permute.xlu2 %7065  ;;  %v7334_v3 = vld [vmem:[#allocation2 + $0x2da] sm:$0xff] }
 0xc54   :  { %9409 = vmatmul.msk.f32.gmra.mxu1 %vm3310_vm9, %v7683_v62  ;;  %6877 = vst.msk [vmem:[#allocation3 + $0x160] sm:$0xff] %vm2402_vm6, %v6730_v41 }
 0xc56   :  { %7459 = vrot.lane.b32.xlu0 %v7306_v2, %s9559_s21 }
 0xc57   :  { %7507 = vrot.lane.b32.xlu1 %v7330_v59, %s9559_s21 }
 0xc58   :  { %v7448_v25 = vpop.permute.xlu0 %7447 }
 0xc59   :  { %v7496_v26 = vpop.permute.xlu1 %7495  ;;  %6741 = vrot.lane.b32.xlu2 %v6563_v31, %s9557_s9  ;;  %v6543_v31 = vld [vmem:[#allocation2 + $0x198] sm:$0xff] }
 0xc5a   :  { %7644 = vst.msk [vmem:[#allocation3 + $0x158] sm:$0xff] %vm3172_vm8, %v7496_v26 }
 0xc5b   :  { %v7116_v45 = vpop.permute.xlu2 %7115 }
 0xc5e   :  { %6693 = vrot.lane.b32.xlu0 %v6539_v0, %s9557_s9  ;;  %v6567_v0 = vld [vmem:[#allocation2 + $0x2e8] sm:$0xff] }
 0xc5f   :  { %7075 = vrot.lane.b32.xlu1 %v6922_v33, %s9558_s24  ;;  %v7310_v33 = vld [vmem:[#allocation2 + $0x18a] sm:$0xff] }
 0xc60   :  { %v6682_v13 = vpop.permute.xlu0 %6681 }
 0xc61   :  { %v7064_v10 = vpop.permute.xlu1 %7063  ;;  %v7708_v16 = vld [vmem:[#allocation3 + $0x158] sm:$0xff]  ;;  %6853 = vst.msk [vmem:[#allocation3 + $0xa0] sm:$0xff] %vm2402_vm6, %v6682_v13  ;;  %7509 = vrot.lane.b32.xlu2 %v7331_v54, %s9559_s21 }
 0xc62   :  { %7236 = vst.msk [vmem:[#allocation3 + $0x98] sm:$0xff] %vm2787_vm7, %v7064_v10  ;;  %9434 = vmatmul.msk.f32.gmra.mxu3 %vm3310_vm9, %v7708_v16 }
 0xc63   :  { %7620 = vst.msk [vmem:[#allocation3 + $0x98] sm:$0xff] %vm3172_vm8, %v7448_v25  ;;  %v6349_v48 = vpop.permute.xlu2 %6348 }
 0xc64   :  { %7237 = vst.msk [vmem:[#allocation3 + $0xa0] sm:$0xff] %vm2787_vm7, %v7066_v44 }
 0xc65   :  { %6494 = vst.msk [vmem:[#allocation3 + $0x170] sm:$0xff] %vm2016_vm5, %v6349_v48 }
 0xc66   :  { %6743 = vrot.lane.b32.xlu0 %v6564_v34, %s9557_s9 }
 0xc67   :  { %7125 = vrot.lane.b32.xlu1 %v6947_v23, %s9558_s24  ;;  %v6568_v23 = vld [vmem:[#allocation2 + $0x2f0] sm:$0xff] }
 0xc68   :  { %v6732_v50 = vpop.permute.xlu0 %6731 }
 0xc69   :  { %v7114_v4 = vpop.permute.xlu1 %7113  ;;  %7077 = vrot.lane.b32.xlu2 %v6923_v57, %s9558_s24  ;;  %v7336_v57 = vld [vmem:[#allocation2 + $0x2f2] sm:$0xff] }
 0xc6a   :  { %v7684_v43 = vld [vmem:[#allocation3 + $0x98] sm:$0xff]  ;;  %7261 = vst.msk [vmem:[#allocation3 + $0x160] sm:$0xff] %vm2787_vm7, %v7114_v4 }
 0xc6b   :  { %9410 = vmatmul.msk.f32.gmra.mxu1 %vm3310_vm9, %v7684_v43  ;;  %7645 = vst.msk [vmem:[#allocation3 + $0x160] sm:$0xff] %vm3172_vm8, %v7498_v29  ;;  %v7452_v22 = vpop.permute.xlu2 %7451 }
 0xc6e   :  { %7511 = vrot.lane.b32.xlu0 %v7332_v1, %s9559_s21 }
 0xc6f   :  { %6358 = vrot.lane.b32.xlu1 %v7330_v59, %s9556_s29  ;;  %v6951_v59 = vld [vmem:[#allocation2 + $0x2e9] sm:$0xff] }
 0xc70   :  { %v7500_v32 = vpop.permute.xlu0 %7499 }
 0xc71   :  { %v6347_v7 = vpop.permute.xlu1 %6346  ;;  %7127 = vrot.lane.b32.xlu2 %v6948_v60, %s9558_s24  ;;  %v7311_v60 = vld [vmem:[#allocation2 + $0x19a] sm:$0xff] }
 0xc72   :  { %6493 = vst.msk [vmem:[#allocation3 + $0x168] sm:$0xff] %vm2016_vm5, %v6347_v7  ;;  %v7709_v37 = vld [vmem:[#allocation3 + $0x160] sm:$0xff] }
 0xc73   :  { %6878 = vst.msk [vmem:[#allocation3 + $0x168] sm:$0xff] %vm2402_vm6, %v6732_v50  ;;  %9435 = vmatmul.msk.f32.gmra.mxu3 %vm3310_vm9, %v7709_v37  ;;  %v6686_v18 = vpop.permute.xlu2 %6685  ;;  %v6927_v50 = vld [vmem:[#allocation2 + $0x199] sm:$0xff]  ;;  %v15177_v37 = vpop.f32.mrf.mxu1 }
 0xc74   :  { %7262 = vst.msk [vmem:[#allocation3 + $0x168] sm:$0xff] %vm2787_vm7, %v7116_v45 }
 0xc75   :  { %7646 = vst.msk [vmem:[#allocation3 + $0x168] sm:$0xff] %vm3172_vm8, %v7500_v32 }
 0xc76   :  { %7079 = vrot.lane.b32.xlu0 %v6924_v20, %s9558_s24  ;;  %6855 = vst.msk [vmem:[#allocation3 + $0xb0] sm:$0xff] %vm2402_vm6, %v6686_v18 }
 0xc77   :  { %7461 = vrot.lane.b32.xlu1 %v7307_v49, %s9559_s21  ;;  %v6952_v49 = vld [vmem:[#allocation2 + $0x2f1] sm:$0xff] }
 0xc78   :  { %v7068_v28 = vpop.permute.xlu0 %7067 }
 0xc79   :  { %v7450_v61 = vpop.permute.xlu1 %7449  ;;  %6360 = vrot.lane.b32.xlu2 %v7331_v54, %s9556_s29  ;;  %v7335_v54 = vld [vmem:[#allocation2 + $0x2ea] sm:$0xff] }
 0xc7a   :  { %7621 = vst.msk [vmem:[#allocation3 + $0xa0] sm:$0xff] %vm3172_vm8, %v7450_v61 }
 0xc7b   :  { %v6736_v58 = vpop.permute.xlu2 %6735 }
 0xc7c   :  { %v7710_v15 = vld [vmem:[#allocation3 + $0x168] sm:$0xff] }
 0xc7d   :  { %9436 = vmatmul.msk.f32.gmra.mxu3 %vm3310_vm9, %v7710_v15  ;;  %v7312_v15 = vld [vmem:[#allocation2 + $0x1a2] sm:$0xff] }
 0xc7e   :  { %7129 = vrot.lane.b32.xlu0 %v6949_v27, %s9558_s24 }
 0xc7f   :  { %6695 = vrot.lane.b32.xlu1 %v6540_v30, %s9557_s9 }
 0xc80   :  { %v7118_v24 = vpop.permute.xlu0 %7117 }
 0xc81   :  { %v6684_v17 = vpop.permute.xlu1 %6683  ;;  %v7685_v52 = vld [vmem:[#allocation3 + $0xa0] sm:$0xff]  ;;  %7463 = vrot.lane.b32.xlu2 %v7308_v38, %s9559_s21 }
 0xc82   :  { %6854 = vst.msk [vmem:[#allocation3 + $0xa8] sm:$0xff] %vm2402_vm6, %v6684_v17  ;;  %9411 = vmatmul.msk.f32.gmra.mxu1 %vm3310_vm9, %v7685_v52  ;;  %v15192_v52 = vpop.f32.mrf.mxu1 }
 0xc83   :  { %7238 = vst.msk [vmem:[#allocation3 + $0xa8] sm:$0xff] %vm2787_vm7, %v7068_v28  ;;  %v7504_v35 = vpop.permute.xlu2 %7503  ;;  %v6544_v28 = vld [vmem:[#allocation2 + $0x1a0] sm:$0xff] }
 0xc84   :  { %7622 = vst.msk [vmem:[#allocation3 + $0xa8] sm:$0xff] %vm3172_vm8, %v7452_v22 }
 0xc86   :  { %6362 = vrot.lane.b32.xlu0 %v7332_v1, %s9556_s29 }
 0xc87   :  { %6745 = vrot.lane.b32.xlu1 %v6565_v14, %s9557_s9 }
 0xc88   :  { %v6351_v21 = vpop.permute.xlu0 %6350 }
 0xc89   :  { %v6734_v63 = vpop.permute.xlu1 %6733  ;;  %6495 = vst.msk [vmem:[#allocation3 + $0x178] sm:$0xff] %vm2016_vm5, %v6351_v21  ;;  %6697 = vrot.lane.b32.xlu2 %v6541_v19, %s9557_s9  ;;  %v7337_v19 = vld [vmem:[#allocation2 + $0x302] sm:$0xff] }
 0xc8a   :  { %6879 = vst.msk [vmem:[#allocation3 + $0x170] sm:$0xff] %vm2402_vm6, %v6734_v63 }
 0xc8b   :  { %7263 = vst.msk [vmem:[#allocation3 + $0x170] sm:$0xff] %vm2787_vm7, %v7118_v24  ;;  %v7686_v46 = vld [vmem:[#allocation3 + $0xa8] sm:$0xff]  ;;  %v7072_v47 = vpop.permute.xlu2 %7071 }
 0xc8c   :  { %9412 = vmatmul.msk.f32.gmra.mxu1 %vm3310_vm9, %v7686_v46  ;;  %6880 = vst.msk [vmem:[#allocation3 + $0x178] sm:$0xff] %vm2402_vm6, %v6736_v58  ;;  %v6928_v24 = vld [vmem:[#allocation2 + $0x1a1] sm:$0xff]  ;;  %v15203_v46 = vpop.f32.mrf.mxu1 }
 0xc8e   :  { %7465 = vrot.lane.b32.xlu0 %v7309_v8, %s9559_s21 }
 0xc8f   :  { %7513 = vrot.lane.b32.xlu1 %v7333_v9, %s9559_s21 }
 0xc90   :  { %v7454_v40 = vpop.permute.xlu0 %7453 }
 0xc91   :  { %v7502_v51 = vpop.permute.xlu1 %7501  ;;  %6747 = vrot.lane.b32.xlu2 %v6566_v55, %s9557_s9 }
 0xc92   :  { %7647 = vst.msk [vmem:[#allocation3 + $0x170] sm:$0xff] %vm3172_vm8, %v7502_v51 }
 0xc93   :  { %v7122_v6 = vpop.permute.xlu2 %7121 }
 0xc96   :  { %6314 = vrot.lane.b32.xlu0 %v7308_v38, %s9556_s29  ;;  %v6569_v38 = vld [vmem:[#allocation2 + $0x300] sm:$0xff] }
 0xc97   :  { %7081 = vrot.lane.b32.xlu1 %v6925_v5, %s9558_s24  ;;  %v6954_v5 = vld [vmem:[#allocation2 + $0x309] sm:$0xff] }
 0xc98   :  { %v6688_v56 = vpop.permute.xlu0 %6687 }
 0xc99   :  { %v7070_v41 = vpop.permute.xlu1 %7069  ;;  %v7711_v36 = vld [vmem:[#allocation3 + $0x170] sm:$0xff]  ;;  %6856 = vst.msk [vmem:[#allocation3 + $0xb8] sm:$0xff] %vm2402_vm6, %v6688_v56  ;;  %7515 = vrot.lane.b32.xlu2 %v7334_v3, %s9559_s21 }
 0xc9a   :  { %7239 = vst.msk [vmem:[#allocation3 + $0xb0] sm:$0xff] %vm2787_vm7, %v7070_v41  ;;  %9437 = vmatmul.msk.f32.gmra.mxu3 %vm3310_vm9, %v7711_v36  ;;  %v6955_v41 = vld [vmem:[#allocation2 + $0x319] sm:$0xff]  ;;  %v15215_v36 = vpop.f32.mrf.mxu1 }
 0xc9b   :  { %7623 = vst.msk [vmem:[#allocation3 + $0xb0] sm:$0xff] %vm3172_vm8, %v7454_v40  ;;  %v6355_v29 = vpop.permute.xlu2 %6354 }
 0xc9c   :  { %7240 = vst.msk [vmem:[#allocation3 + $0xb8] sm:$0xff] %vm2787_vm7, %v7072_v47 }
 0xc9d   :  { %6497 = vst.msk [vmem:[#allocation3 + $0x188] sm:$0xff] %vm2016_vm5, %v6355_v29  ;;  %v6571_v29 = vld [vmem:[#allocation2 + $0x318] sm:$0xff] }
 0xc9e   :  { %7083 = vrot.lane.b32.xlu0 %v6926_v39, %s9558_s24 }
 0xc9f   :  { %7131 = vrot.lane.b32.xlu1 %v6950_v53, %s9558_s24 }
 0xca0   :  { %v6738_v62 = vpop.permute.xlu0 %6737 }
 0xca1   :  { %v7120_v42 = vpop.permute.xlu1 %7119  ;;  %6364 = vrot.lane.b32.xlu2 %v7333_v9, %s9556_s29  ;;  %v6953_v9 = vld [vmem:[#allocation2 + $0x301] sm:$0xff] }
 0xca2   :  { %v7687_v11 = vld [vmem:[#allocation3 + $0xb0] sm:$0xff]  ;;  %7264 = vst.msk [vmem:[#allocation3 + $0x178] sm:$0xff] %vm2787_vm7, %v7120_v42  ;;  %v6572_v42 = vld [vmem:[#allocation2 + $0x320] sm:$0xff] }
 0xca3   :  { %9413 = vmatmul.msk.f32.gmra.mxu1 %vm3310_vm9, %v7687_v11  ;;  %7648 = vst.msk [vmem:[#allocation3 + $0x178] sm:$0xff] %vm3172_vm8, %v7504_v35  ;;  %v7458_v2 = vpop.permute.xlu2 %7457 }
 0xca6   :  { %7133 = vrot.lane.b32.xlu0 %v6951_v59, %s9558_s24 }
 0xca7   :  { %6699 = vrot.lane.b32.xlu1 %v6542_v12, %s9557_s9  ;;  %v15224_v12 = vpop.f32.mrf.mxu1 }
 0xca8   :  { %v7506_v26 = vpop.permute.xlu0 %7505 }
 0xca9   :  { %v6353_v44 = vpop.permute.xlu1 %6352  ;;  %7467 = vrot.lane.b32.xlu2 %v7310_v33, %s9559_s21 }
 0xcaa   :  { %6496 = vst.msk [vmem:[#allocation3 + $0x180] sm:$0xff] %vm2016_vm5, %v6353_v44  ;;  %v7712_v25 = vld [vmem:[#allocation3 + $0x178] sm:$0xff] }
 0xcab   :  { %6881 = vst.msk [vmem:[#allocation3 + $0x180] sm:$0xff] %vm2402_vm6, %v6738_v62  ;;  %9438 = vmatmul.msk.f32.gmra.mxu3 %vm3310_vm9, %v7712_v25  ;;  %v6692_v45 = vpop.permute.xlu2 %6691  ;;  %v7339_v44 = vld [vmem:[#allocation2 + $0x31a] sm:$0xff] }
 0xcac   :  { %7265 = vst.msk [vmem:[#allocation3 + $0x180] sm:$0xff] %vm2787_vm7, %v7122_v6  ;;  %v6570_v6 = vld [vmem:[#allocation2 + $0x308] sm:$0xff] }
 0xcad   :  { %7649 = vst.msk [vmem:[#allocation3 + $0x180] sm:$0xff] %vm3172_vm8, %v7506_v26 }
 0xcae   :  { %6701 = vrot.lane.b32.xlu0 %v6543_v31, %s9557_s9  ;;  %6858 = vst.msk [vmem:[#allocation3 + $0xc8] sm:$0xff] %vm2402_vm6, %v6692_v45  ;;  %v7340_v45 = vld [vmem:[#allocation2 + $0x322] sm:$0xff] }
 0xcaf   :  { %6749 = vrot.lane.b32.xlu1 %v6567_v0, %s9557_s9  ;;  %v15235_v0 = vpop.f32.mrf.mxu1 }
 0xcb0   :  { %v7074_v16 = vpop.permute.xlu0 %7073 }
 0xcb1   :  { %v7456_v10 = vpop.permute.xlu1 %7455  ;;  %6316 = vrot.lane.b32.xlu2 %v7309_v8, %s9556_s29  ;;  %v7338_v8 = vld [vmem:[#allocation2 + $0x30a] sm:$0xff] }
 0xcb2   :  { %7624 = vst.msk [vmem:[#allocation3 + $0xb8] sm:$0xff] %vm3172_vm8, %v7456_v10  ;;  %v6956_v10 = vld [vmem:[#allocation2 + $0x321] sm:$0xff] }
 0xcb3   :  { %v6742_v34 = vpop.permute.xlu2 %6741 }
 0xcb4   :  { %v7713_v13 = vld [vmem:[#allocation3 + $0x180] sm:$0xff] }
 0xcb5   :  { %9439 = vmatmul.msk.f32.gmra.mxu3 %vm3310_vm9, %v7713_v13 }
 0xcb6   :  { %6751 = vrot.lane.b32.xlu0 %v6568_v23, %s9557_s9 }
 0xcb7   :  { %7517 = vrot.lane.b32.xlu1 %v7335_v54, %s9559_s21 }
 0xcb8   :  { %v7124_v43 = vpop.permute.xlu0 %7123 }
 0xcb9   :  { %v6690_v48 = vpop.permute.xlu1 %6689  ;;  %v7688_v4 = vld [vmem:[#allocation3 + $0xb8] sm:$0xff]  ;;  %7085 = vrot.lane.b32.xlu2 %v6927_v50, %s9558_s24 }
 0xcba   :  { %6857 = vst.msk [vmem:[#allocation3 + $0xc0] sm:$0xff] %vm2402_vm6, %v6690_v48  ;;  %9414 = vmatmul.msk.f32.gmra.mxu1 %vm3310_vm9, %v7688_v4  ;;  %v6957_v48 = vld [vmem:[#allocation2 + $0x331] sm:$0xff] }
 0xcbb   :  { %7241 = vst.msk [vmem:[#allocation3 + $0xc0] sm:$0xff] %vm2787_vm7, %v7074_v16  ;;  %v7510_v1 = vpop.permute.xlu2 %7509  ;;  %v7341_v16 = vld [vmem:[#allocation2 + $0x332] sm:$0xff] }
 0xcbc   :  { %7625 = vst.msk [vmem:[#allocation3 + $0xc0] sm:$0xff] %vm3172_vm8, %v7458_v2  ;;  %v6573_v4 = vld [vmem:[#allocation2 + $0x330] sm:$0xff] }
 0xcbe   :  { %7519 = vrot.lane.b32.xlu0 %v7336_v57, %s9559_s21 }
 0xcbf   :  { %6366 = vrot.lane.b32.xlu1 %v7334_v3, %s9556_s29 }
 0xcc0   :  { %v6357_v7 = vpop.permute.xlu0 %6356 }
 0xcc1   :  { %v6740_v22 = vpop.permute.xlu1 %6739  ;;  %6498 = vst.msk [vmem:[#allocation3 + $0x190] sm:$0xff] %vm2016_vm5, %v6357_v7  ;;  %7135 = vrot.lane.b32.xlu2 %v6952_v49, %s9558_s24  ;;  %v6575_v7 = vld [vmem:[#allocation2 + $0x348] sm:$0xff] }
 0xcc2   :  { %6882 = vst.msk [vmem:[#allocation3 + $0x188] sm:$0xff] %vm2402_vm6, %v6740_v22 }
 0xcc3   :  { %7266 = vst.msk [vmem:[#allocation3 + $0x188] sm:$0xff] %vm2787_vm7, %v7124_v43  ;;  %v7689_v32 = vld [vmem:[#allocation3 + $0xc0] sm:$0xff]  ;;  %v7078_v20 = vpop.permute.xlu2 %7077 }
 0xcc4   :  { %9415 = vmatmul.msk.f32.gmra.mxu1 %vm3310_vm9, %v7689_v32  ;;  %6883 = vst.msk [vmem:[#allocation3 + $0x190] sm:$0xff] %vm2402_vm6, %v6742_v34  ;;  %v15245_v34 = vpop.f32.mrf.mxu1  ;;  %v6958_v43 = vld [vmem:[#allocation2 + $0x339] sm:$0xff] }
 0xcc5   :  { %v6574_v32 = vld [vmem:[#allocation2 + $0x338] sm:$0xff] }
 0xcc6   :  { %6368 = vrot.lane.b32.xlu0 %v7335_v54, %s9556_s29 }
 0xcc7   :  { %7469 = vrot.lane.b32.xlu1 %v7311_v60, %s9559_s21 }
 0xcc8   :  { %v7460_v61 = vpop.permute.xlu0 %7459 }
 0xcc9   :  { %v7508_v18 = vpop.permute.xlu1 %7507  ;;  %6703 = vrot.lane.b32.xlu2 %v6544_v28, %s9557_s9  ;;  %v7342_v28 = vld [vmem:[#allocation2 + $0x33a] sm:$0xff] }
 0xcca   :  { %7650 = vst.msk [vmem:[#allocation3 + $0x188] sm:$0xff] %vm3172_vm8, %v7508_v18 }
 0xccb   :  { %v7128_v30 = vpop.permute.xlu2 %7127 }
 0xccc   :  { %v15256_v60 = vpop.f32.mrf.mxu1 }
 0xcce   :  { %7471 = vrot.lane.b32.xlu0 %v7312_v15, %s9559_s21 }
 0xccf   :  { %6318 = vrot.lane.b32.xlu1 %v7310_v33, %s9556_s29 }
 0xcd0   :  { %v6694_v17 = vpop.permute.xlu0 %6693 }
 0xcd1   :  { %v7076_v27 = vpop.permute.xlu1 %7075  ;;  %v7714_v58 = vld [vmem:[#allocation3 + $0x188] sm:$0xff]  ;;  %6859 = vst.msk [vmem:[#allocation3 + $0xd0] sm:$0xff] %vm2402_vm6, %v6694_v17  ;;  %6753 = vrot.lane.b32.xlu2 %v6569_v38, %s9557_s9 }
 0xcd2   :  { %7242 = vst.msk [vmem:[#allocation3 + $0xc8] sm:$0xff] %vm2787_vm7, %v7076_v27  ;;  %9440 = vmatmul.msk.f32.gmra.mxu3 %vm3310_vm9, %v7714_v58  ;;  %v7343_v38 = vld [vmem:[#allocation2 + $0x34a] sm:$0xff] }
 0xcd3   :  { %7626 = vst.msk [vmem:[#allocation3 + $0xc8] sm:$0xff] %vm3172_vm8, %v7460_v61  ;;  %v6361_v14 = vpop.permute.xlu2 %6360 }
 0xcd4   :  { %7243 = vst.msk [vmem:[#allocation3 + $0xd0] sm:$0xff] %vm2787_vm7, %v7078_v20  ;;  %v15265_v15 = vpop.f32.mrf.mxu1 }
 0xcd5   :  { %6500 = vst.msk [vmem:[#allocation3 + $0x1a0] sm:$0xff] %vm2016_vm5, %v6361_v14  ;;  %v7344_v14 = vld [vmem:[#allocation2 + $0x352] sm:$0xff] }
 0xcd6   :  { %6370 = vrot.lane.b32.xlu0 %v7336_v57, %s9556_s29 }
 0xcd7   :  { %7087 = vrot.lane.b32.xlu1 %v6928_v24, %s9558_s24  ;;  %v6959_v24 = vld [vmem:[#allocation2 + $0x349] sm:$0xff] }
 0xcd8   :  { %v6744_v21 = vpop.permute.xlu0 %6743 }
 0xcd9   :  { %v7126_v35 = vpop.permute.xlu1 %7125  ;;  %7521 = vrot.lane.b32.xlu2 %v7337_v19, %s9559_s21 }
 0xcda   :  { %v7690_v63 = vld [vmem:[#allocation3 + $0xc8] sm:$0xff]  ;;  %7267 = vst.msk [vmem:[#allocation3 + $0x190] sm:$0xff] %vm2787_vm7, %v7126_v35 }
 0xcdb   :  { %9416 = vmatmul.msk.f32.gmra.mxu1 %vm3310_vm9, %v7690_v63  ;;  %7651 = vst.msk [vmem:[#allocation3 + $0x190] sm:$0xff] %vm3172_vm8, %v7510_v1  ;;  %v7464_v47 = vpop.permute.xlu2 %7463 }
 0xcdc   :  { %v15274_v35 = vpop.f32.mrf.mxu1 }
 0xcde   :  { %7523 = vrot.lane.b32.xlu0 %v7338_v8, %s9559_s21 }
 0xcdf   :  { %7137 = vrot.lane.b32.xlu1 %v6953_v9, %s9558_s24 }
 0xce0   :  { %v7512_v40 = vpop.permute.xlu0 %7511 }
 0xce1   :  { %v6359_v51 = vpop.permute.xlu1 %6358  ;;  %7139 = vrot.lane.b32.xlu2 %v6954_v5, %s9558_s24 }
 0xce2   :  { %6499 = vst.msk [vmem:[#allocation3 + $0x198] sm:$0xff] %vm2016_vm5, %v6359_v51  ;;  %v7715_v55 = vld [vmem:[#allocation3 + $0x190] sm:$0xff]  ;;  %v15282_v51 = vpop.f32.mrf.mxu3 }
 0xce3   :  { %6884 = vst.msk [vmem:[#allocation3 + $0x198] sm:$0xff] %vm2402_vm6, %v6744_v21  ;;  %9441 = vmatmul.msk.f32.gmra.mxu3 %vm3310_vm9, %v7715_v55  ;;  %v6698_v56 = vpop.permute.xlu2 %6697 }
 0xce4   :  { %7268 = vst.msk [vmem:[#allocation3 + $0x198] sm:$0xff] %vm2787_vm7, %v7128_v30 }
 0xce5   :  { %7652 = vst.msk [vmem:[#allocation3 + $0x198] sm:$0xff] %vm3172_vm8, %v7512_v40  ;;  %v15286_v40 = vpop.f32.mrf.mxu1 }
 0xce6   :  { %7141 = vrot.lane.b32.xlu0 %v6955_v41, %s9558_s24  ;;  %6861 = vst.msk [vmem:[#allocation3 + $0xe0] sm:$0xff] %vm2402_vm6, %v6698_v56 }
 0xce7   :  { %6755 = vrot.lane.b32.xlu1 %v6570_v6, %s9557_s9 }
 0xce8   :  { %v7080_v53 = vpop.permute.xlu0 %7079 }
 0xce9   :  { %v7462_v3 = vpop.permute.xlu1 %7461  ;;  %6757 = vrot.lane.b32.xlu2 %v6571_v29, %s9557_s9 }
 0xcea   :  { %7627 = vst.msk [vmem:[#allocation3 + $0xd0] sm:$0xff] %vm3172_vm8, %v7462_v3  ;;  %v15289_v41 = vpop.f32.mrf.mxu3 }
 0xceb   :  { %v6748_v11 = vpop.permute.xlu2 %6747 }
 0xcec   :  { %v7716_v39 = vld [vmem:[#allocation3 + $0x198] sm:$0xff] }
 0xced   :  { %9442 = vmatmul.msk.f32.gmra.mxu3 %vm3310_vm9, %v7716_v39  ;;  %v15291_v56 = vpop.f32.mrf.mxu1 }
 0xcee   :  { %6759 = vrot.lane.b32.xlu0 %v6572_v42, %s9557_s9 }
 0xcef   :  { %6372 = vrot.lane.b32.xlu1 %v7337_v19, %s9556_s29 }
 0xcf0   :  { %v7130_v2 = vpop.permute.xlu0 %7129 }
 0xcf1   :  { %v6696_v62 = vpop.permute.xlu1 %6695  ;;  %v7691_v59 = vld [vmem:[#allocation3 + $0xd0] sm:$0xff]  ;;  %6374 = vrot.lane.b32.xlu2 %v7338_v8, %s9556_s29 }
 0xcf2   :  { %6860 = vst.msk [vmem:[#allocation3 + $0xd8] sm:$0xff] %vm2402_vm6, %v6696_v62  ;;  %9417 = vmatmul.msk.f32.gmra.mxu1 %vm3310_vm9, %v7691_v59  ;;  %v6576_v8 = vld [vmem:[#allocation2 + $0x350] sm:$0xff]  ;;  %v15298_v42 = vpop.f32.mrf.mxu3 }
 0xcf3   :  { %7244 = vst.msk [vmem:[#allocation3 + $0xd8] sm:$0xff] %vm2787_vm7, %v7080_v53  ;;  %v7516_v26 = vpop.permute.xlu2 %7515 }
 0xcf4   :  { %7628 = vst.msk [vmem:[#allocation3 + $0xd8] sm:$0xff] %vm3172_vm8, %v7464_v47  ;;  %v6960_v47 = vld [vmem:[#allocation2 + $0x351] sm:$0xff] }
 0xcf5   :  { %16839 = vst [vmem:[#allocation8_spill] sm:$0xff] %v15298_v42 }
 0xcf6   :  { %6376 = vrot.lane.b32.xlu0 %v7339_v44, %s9556_s29 }
 0xcf7   :  { %7525 = vrot.lane.b32.xlu1 %v7339_v44, %s9559_s21 }
 0xcf8   :  { %v6363_v31 = vpop.permute.xlu0 %6362 }
 0xcf9   :  { %v6746_v25 = vpop.permute.xlu1 %6745  ;;  %6501 = vst.msk [vmem:[#allocation3 + $0x1a8] sm:$0xff] %vm2016_vm5, %v6363_v31  ;;  %7527 = vrot.lane.b32.xlu2 %v7340_v45, %s9559_s21 }
 0xcfa   :  { %6885 = vst.msk [vmem:[#allocation3 + $0x1a0] sm:$0xff] %vm2402_vm6, %v6746_v25 }
 0xcfb   :  { %7269 = vst.msk [vmem:[#allocation3 + $0x1a0] sm:$0xff] %vm2787_vm7, %v7130_v2  ;;  %v7692_v33 = vld [vmem:[#allocation3 + $0xd8] sm:$0xff]  ;;  %v6365_v13 = vpop.permute.xlu2 %6364 }
 0xcfc   :  { %9418 = vmatmul.msk.f32.gmra.mxu1 %vm3310_vm9, %v7692_v33  ;;  %6886 = vst.msk [vmem:[#allocation3 + $0x1a8] sm:$0xff] %vm2402_vm6, %v6748_v11  ;;  %v15300_v11 = vpop.f32.mrf.mxu1 }
 0xcfd   :  { %6502 = vst.msk [vmem:[#allocation3 + $0x1b0] sm:$0xff] %vm2016_vm5, %v6365_v13 }
 0xcfe   :  { %7529 = vrot.lane.b32.xlu0 %v7341_v16, %s9559_s21 }
 0xcff   :  { %7143 = vrot.lane.b32.xlu1 %v6956_v10, %s9558_s24 }
 0xd00   :  { %v7466_v23 = vpop.permute.xlu0 %7465 }
 0xd01   :  { %v7514_v54 = vpop.permute.xlu1 %7513  ;;  %7145 = vrot.lane.b32.xlu2 %v6957_v48, %s9558_s24 }
 0xd02   :  { %7653 = vst.msk [vmem:[#allocation3 + $0x1a0] sm:$0xff] %vm3172_vm8, %v7514_v54 }
 0xd03   :  { %v7468_v50 = vpop.permute.xlu2 %7467 }
 0xd04   :  { %v15308_v25 = vpop.f32.mrf.mxu1 }
 0xd06   :  { %7147 = vrot.lane.b32.xlu0 %v6958_v43, %s9558_s24 }
 0xd07   :  { %6761 = vrot.lane.b32.xlu1 %v6573_v4, %s9557_s9 }
 0xd08   :  { %v6315_v22 = vpop.permute.xlu0 %6314 }
 0xd09   :  { %v7082_v57 = vpop.permute.xlu1 %7081  ;;  %v7717_v1 = vld [vmem:[#allocation3 + $0x1a0] sm:$0xff]  ;;  %6477 = vst.msk [vmem:[#allocation3 + $0xe8] sm:$0xff] %vm2016_vm5, %v6315_v22  ;;  %6763 = vrot.lane.b32.xlu2 %v6574_v32, %s9557_s9 }
 0xd0a   :  { %7245 = vst.msk [vmem:[#allocation3 + $0xe0] sm:$0xff] %vm2787_vm7, %v7082_v57  ;;  %9443 = vmatmul.msk.f32.gmra.mxu3 %vm3310_vm9, %v7717_v1 }
 0xd0b   :  { %7629 = vst.msk [vmem:[#allocation3 + $0xe0] sm:$0xff] %vm3172_vm8, %v7466_v23  ;;  %v6317_v49 = vpop.permute.xlu2 %6316 }
 0xd0c   :  { %6478 = vst.msk [vmem:[#allocation3 + $0xf0] sm:$0xff] %vm2016_vm5, %v6317_v49  ;;  %v15315_v13 = vpop.f32.mrf.mxu1 }
 0xd0e   :  { %6765 = vrot.lane.b32.xlu0 %v6575_v7, %s9557_s9 }
 0xd0f   :  { %6378 = vrot.lane.b32.xlu1 %v7340_v45, %s9556_s29 }
 0xd10   :  { %v7084_v61 = vpop.permute.xlu0 %7083 }
 0xd11   :  { %v7132_v20 = vpop.permute.xlu1 %7131  ;;  %6380 = vrot.lane.b32.xlu2 %v7341_v16, %s9556_s29 }
 0xd12   :  { %v7693_v18 = vld [vmem:[#allocation3 + $0xe0] sm:$0xff]  ;;  %7270 = vst.msk [vmem:[#allocation3 + $0x1a8] sm:$0xff] %vm2787_vm7, %v7132_v20 }
 0xd13   :  { %9419 = vmatmul.msk.f32.gmra.mxu1 %vm3310_vm9, %v7693_v18  ;;  %7654 = vst.msk [vmem:[#allocation3 + $0x1a8] sm:$0xff] %vm3172_vm8, %v7516_v26  ;;  %v7086_v30 = vpop.permute.xlu2 %7085  ;;  %v15306_v26 = vpop.f32.mrf.mxu3 }
 0xd14   :  { %v15322_v43 = vpop.f32.mrf.mxu1 }
 0xd16   :  { %6382 = vrot.lane.b32.xlu0 %v7342_v28, %s9556_s29 }
 0xd17   :  { %7531 = vrot.lane.b32.xlu1 %v7342_v28, %s9559_s21 }
 0xd18   :  { %v7134_v58 = vpop.permute.xlu0 %7133 }
 0xd19   :  { %v6700_v27 = vpop.permute.xlu1 %6699  ;;  %7533 = vrot.lane.b32.xlu2 %v7343_v38, %s9559_s21 }
 0xd1a   :  { %6862 = vst.msk [vmem:[#allocation3 + $0xe8] sm:$0xff] %vm2402_vm6, %v6700_v27  ;;  %v7718_v17 = vld [vmem:[#allocation3 + $0x1a8] sm:$0xff] }
 0xd1b   :  { %7246 = vst.msk [vmem:[#allocation3 + $0xe8] sm:$0xff] %vm2787_vm7, %v7084_v61  ;;  %9444 = vmatmul.msk.f32.gmra.mxu3 %vm3310_vm9, %v7718_v17  ;;  %v7136_v63 = vpop.permute.xlu2 %7135  ;;  %v15313_v16 = vpop.f32.mrf.mxu3 }
 0xd1c   :  { %7630 = vst.msk [vmem:[#allocation3 + $0xe8] sm:$0xff] %vm3172_vm8, %v7468_v50  ;;  %v15330_v32 = vpop.f32.mrf.mxu1 }
 0xd1e   :  { %7535 = vrot.lane.b32.xlu0 %v7344_v14, %s9559_s21 }
 0xd1f   :  { %7149 = vrot.lane.b32.xlu1 %v6959_v24, %s9558_s24 }
 0xd20   :  { %v6702_v19 = vpop.permute.xlu0 %6701 }
 0xd21   :  { %v6750_v21 = vpop.permute.xlu1 %6749  ;;  %6863 = vst.msk [vmem:[#allocation3 + $0xf0] sm:$0xff] %vm2402_vm6, %v6702_v19  ;;  %7151 = vrot.lane.b32.xlu2 %v6960_v47, %s9558_s24 }
 0xd22   :  { %6887 = vst.msk [vmem:[#allocation3 + $0x1b0] sm:$0xff] %vm2402_vm6, %v6750_v21 }
 0xd23   :  { %7271 = vst.msk [vmem:[#allocation3 + $0x1b0] sm:$0xff] %vm2787_vm7, %v7134_v58  ;;  %v7694_v9 = vld [vmem:[#allocation3 + $0xe8] sm:$0xff]  ;;  %v6704_v55 = vpop.permute.xlu2 %6703  ;;  %v15320_v4 = vpop.f32.mrf.mxu3 }
 0xd24   :  { %9420 = vmatmul.msk.f32.gmra.mxu1 %vm3310_vm9, %v7694_v9  ;;  %7247 = vst.msk [vmem:[#allocation3 + $0xf0] sm:$0xff] %vm2787_vm7, %v7086_v30  ;;  %v15338_v30 = vpop.f32.mrf.mxu1 }
 0xd27   :  { %6767 = vrot.lane.b32.xlu1 %v6576_v8, %s9557_s9 }
 0xd28   :  { %v6752_v6 = vpop.permute.xlu0 %6751 }
 0xd29   :  { %v7518_v5 = vpop.permute.xlu1 %7517 }
 0xd2a   :  { %7655 = vst.msk [vmem:[#allocation3 + $0x1b0] sm:$0xff] %vm3172_vm8, %v7518_v5 }
 0xd2b   :  { %v6754_v3 = vpop.permute.xlu2 %6753  ;;  %v15328_v7 = vpop.f32.mrf.mxu3 }
 0xd2c   :  { %16840 = vst [vmem:[#allocation9_spill] sm:$0xff] %v15328_v7  ;;  %v15347_v14 = vpop.f32.mrf.mxu1 }
 0xd30   :  { %v7520_v29 = vpop.permute.xlu0 %7519 }
 0xd31   :  { %v6367_v53 = vpop.permute.xlu1 %6366  ;;  %v7719_v39 = vld [vmem:[#allocation3 + $0x1b0] sm:$0xff] }
 0xd32   :  { %6503 = vst.msk [vmem:[#allocation3 + $0x1b8] sm:$0xff] %vm2016_vm5, %v6367_v53  ;;  %9445 = vmatmul.msk.f32.gmra.mxu3 %vm3310_vm9, %v7719_v39 }
 0xd33   :  { %6888 = vst.msk [vmem:[#allocation3 + $0x1b8] sm:$0xff] %vm2402_vm6, %v6752_v6  ;;  %v7522_v62 = vpop.permute.xlu2 %7521  ;;  %v15336_v28 = vpop.f32.mrf.mxu3 }
 0xd34   :  { %7272 = vst.msk [vmem:[#allocation3 + $0x1b8] sm:$0xff] %vm2787_vm7, %v7136_v63  ;;  %v15353_v8 = vpop.f32.mrf.mxu1 }
 0xd35   :  { %7656 = vst.msk [vmem:[#allocation3 + $0x1b8] sm:$0xff] %vm3172_vm8, %v7520_v29 }
 0xd38   :  { %v6369_v2 = vpop.permute.xlu0 %6368 }
 0xd39   :  { %v7470_v59 = vpop.permute.xlu1 %7469  ;;  %6504 = vst.msk [vmem:[#allocation3 + $0x1c0] sm:$0xff] %vm2016_vm5, %v6369_v2 }
 0xd3a   :  { %7631 = vst.msk [vmem:[#allocation3 + $0xf0] sm:$0xff] %vm3172_vm8, %v7470_v59 }
 0xd3b   :  { %6889 = vst.msk [vmem:[#allocation3 + $0x1c0] sm:$0xff] %vm2402_vm6, %v6754_v3  ;;  %v7140_v31 = vpop.permute.xlu2 %7139  ;;  %v15345_v38 = vpop.f32.mrf.mxu3 }
 0xd3c   :  { %v7720_v44 = vld [vmem:[#allocation3 + $0x1b8] sm:$0xff]  ;;  %v15361_v53 = vpop.f32.mrf.mxu1 }
 0xd3d   :  { %9446 = vmatmul.msk.f32.gmra.mxu3 %vm3310_vm9, %v7720_v44 }
 0xd40   :  { %v7472_v10 = vpop.permute.xlu0 %7471 }
 0xd41   :  { %v6319_v33 = vpop.permute.xlu1 %6318  ;;  %v7695_v45 = vld [vmem:[#allocation3 + $0xf0] sm:$0xff] }
 0xd42   :  { %6479 = vst.msk [vmem:[#allocation3 + $0xf8] sm:$0xff] %vm2016_vm5, %v6319_v33  ;;  %9421 = vmatmul.msk.f32.gmra.mxu1 %vm3310_vm9, %v7695_v45 }
 0xd43   :  { %6864 = vst.msk [vmem:[#allocation3 + $0xf8] sm:$0xff] %vm2402_vm6, %v6704_v55  ;;  %v6758_v54 = vpop.permute.xlu2 %6757  ;;  %v15351_v9 = vpop.f32.mrf.mxu3 }
 0xd44   :  { %v15369_v2 = vpop.f32.mrf.mxu1 }
 0xd48   :  { %v6371_v48 = vpop.permute.xlu0 %6370 }
 0xd49   :  { %v7088_v23 = vpop.permute.xlu1 %7087  ;;  %6505 = vst.msk [vmem:[#allocation3 + $0x1c8] sm:$0xff] %vm2016_vm5, %v6371_v48 }
 0xd4a   :  { %7248 = vst.msk [vmem:[#allocation3 + $0xf8] sm:$0xff] %vm2787_vm7, %v7088_v23 }
 0xd4b   :  { %7632 = vst.msk [vmem:[#allocation3 + $0xf8] sm:$0xff] %vm3172_vm8, %v7472_v10  ;;  %v6375_v50 = vpop.permute.xlu2 %6374  ;;  %v15359_v3 = vpop.f32.mrf.mxu3 }
 0xd4c   :  { %6507 = vst.msk [vmem:[#allocation3 + $0x1d8] sm:$0xff] %vm2016_vm5, %v6375_v50  ;;  %v15378_v10 = vpop.f32.mrf.mxu1 }
 0xd4d   :  { %16841 = vst [vmem:[#allocation10_spill] sm:$0xff] %v15359_v3 }
 0xd50   :  { %v7524_v22 = vpop.permute.xlu0 %7523 }
 0xd51   :  { %v7138_v57 = vpop.permute.xlu1 %7137 }
 0xd52   :  { %v7696_v1 = vld [vmem:[#allocation3 + $0xf8] sm:$0xff]  ;;  %7273 = vst.msk [vmem:[#allocation3 + $0x1c0] sm:$0xff] %vm2787_vm7, %v7138_v57 }
 0xd53   :  { %9422 = vmatmul.msk.f32.gmra.mxu1 %vm3310_vm9, %v7696_v1  ;;  %7657 = vst.msk [vmem:[#allocation3 + $0x1c0] sm:$0xff] %vm3172_vm8, %v7522_v62  ;;  %v7528_v49 = vpop.permute.xlu2 %7527  ;;  %v15367_v59 = vpop.f32.mrf.mxu3 }
 0xd54   :  { %v15384_v57 = vpop.f32.mrf.mxu1 }
 0xd58   :  { %v7142_v18 = vpop.permute.xlu0 %7141 }
 0xd59   :  { %v6756_v20 = vpop.permute.xlu1 %6755 }
 0xd5a   :  { %6890 = vst.msk [vmem:[#allocation3 + $0x1c8] sm:$0xff] %vm2402_vm6, %v6756_v20  ;;  %v7721_v61 = vld [vmem:[#allocation3 + $0x1c0] sm:$0xff]  ;;  %v8141_v20 = vsel %vm90_vm0, %v15177_v37, 0.0 }
 0xd5b   :  { %7274 = vst.msk [vmem:[#allocation3 + $0x1c8] sm:$0xff] %vm2787_vm7, %v7140_v31  ;;  %9447 = vmatmul.msk.f32.gmra.mxu3 %vm3310_vm9, %v7721_v61  ;;  %v7146_v27 = vpop.permute.xlu2 %7145  ;;  %v15376_v45 = vpop.f32.mrf.mxu3 }
 0xd5c   :  { %7658 = vst.msk [vmem:[#allocation3 + $0x1c8] sm:$0xff] %vm3172_vm8, %v7524_v22 }
 0xd60   :  { %v6760_v17 = vpop.permute.xlu0 %6759 }
 0xd61   :  { %v6373_v58 = vpop.permute.xlu1 %6372  ;;  %6892 = vst.msk [vmem:[#allocation3 + $0x1d8] sm:$0xff] %vm2402_vm6, %v6760_v17 }
 0xd62   :  { %6506 = vst.msk [vmem:[#allocation3 + $0x1d0] sm:$0xff] %vm2016_vm5, %v6373_v58 }
 0xd63   :  { %6891 = vst.msk [vmem:[#allocation3 + $0x1d0] sm:$0xff] %vm2402_vm6, %v6758_v54  ;;  %v7722_v24 = vld [vmem:[#allocation3 + $0x1c8] sm:$0xff]  ;;  %v6764_v63 = vpop.permute.xlu2 %6763  ;;  %v15382_v50 = vpop.f32.mrf.mxu3 }
 0xd64   :  { %7275 = vst.msk [vmem:[#allocation3 + $0x1d0] sm:$0xff] %vm2787_vm7, %v7142_v18  ;;  %9448 = vmatmul.msk.f32.gmra.mxu3 %vm3310_vm9, %v7722_v24  ;;  %v8144_v18 = vsel %vm90_vm0, %v15203_v46, 0.0  ;;  %v15399_v24 = vpop.f32.mrf.mxu1 }
 0xd65   :  { %16842 = vst [vmem:[#allocation11_spill] sm:$0xff] %v15382_v50 }
 0xd68   :  { %v6377_v19 = vpop.permute.xlu0 %6376 }
 0xd69   :  { %v7526_v21 = vpop.permute.xlu1 %7525  ;;  %6508 = vst.msk [vmem:[#allocation3 + $0x1e0] sm:$0xff] %vm2016_vm5, %v6377_v19 }
 0xd6a   :  { %7659 = vst.msk [vmem:[#allocation3 + $0x1d0] sm:$0xff] %vm3172_vm8, %v7526_v21  ;;  %v8148_v21 = vsel %vm90_vm0, %v15224_v12, 0.0 }
 0xd6b   :  { %v6381_v47 = vpop.permute.xlu2 %6380  ;;  %v15397_v58 = vpop.f32.mrf.mxu3 }
 0xd6c   :  { %6510 = vst.msk [vmem:[#allocation3 + $0x1f0] sm:$0xff] %vm2016_vm5, %v6381_v47 }
 0xd70   :  { %v7530_v6 = vpop.permute.xlu0 %7529 }
 0xd71   :  { %v7144_v55 = vpop.permute.xlu1 %7143  ;;  %v7723_v5 = vld [vmem:[#allocation3 + $0x1d0] sm:$0xff] }
 0xd72   :  { %9449 = vmatmul.msk.f32.gmra.mxu3 %vm3310_vm9, %v7723_v5  ;;  %7276 = vst.msk [vmem:[#allocation3 + $0x1d8] sm:$0xff] %vm2787_vm7, %v7144_v55 }
 0xd73   :  { %7660 = vst.msk [vmem:[#allocation3 + $0x1d8] sm:$0xff] %vm3172_vm8, %v7528_v49  ;;  %v7534_v48 = vpop.permute.xlu2 %7533  ;;  %v8142_v49 = vsel %vm90_vm0, %v15192_v52, 0.0 }
 0xd74   :  { %v8143_v61 = vadd.f32 %v8142_v49, %v8141_v20  ;;  %v8160_v20 = vsel %vm90_vm0, %v15286_v40, 0.0 }
 0xd76   :  { %v8145_v17 = vadd.f32 %v8144_v18, %v8143_v61  ;;  %v8162_v61 = vsel %vm90_vm0, %v15291_v56, 0.0 }
 0xd78   :  { %v7148_v29 = vpop.permute.xlu0 %7147 }
 0xd79   :  { %v6762_v39 = vpop.permute.xlu1 %6761 }
 0xd7a   :  { %6893 = vst.msk [vmem:[#allocation3 + $0x1e0] sm:$0xff] %vm2402_vm6, %v6762_v39  ;;  %v7724_v62 = vld [vmem:[#allocation3 + $0x1d8] sm:$0xff] }
 0xd7b   :  { %7277 = vst.msk [vmem:[#allocation3 + $0x1e0] sm:$0xff] %vm2787_vm7, %v7146_v27  ;;  %9450 = vmatmul.msk.f32.gmra.mxu3 %vm3310_vm9, %v7724_v62  ;;  %v8146_v27 = vsel %vm90_vm0, %v15215_v36, 0.0 }
 0xd7c   :  { %7661 = vst.msk [vmem:[#allocation3 + $0x1e0] sm:$0xff] %vm3172_vm8, %v7530_v6  ;;  %v8147_v55 = vadd.f32 %v8146_v27, %v8145_v17  ;;  %v8150_v6 = vsel %vm90_vm0, %v15235_v0, 0.0 }
 0xd7e   :  { %v8149_v39 = vadd.f32 %v8148_v21, %v8147_v55  ;;  %v8164_v21 = vsel %vm90_vm0, %v15300_v11, 0.0 }
 0xd80   :  { %v6766_v31 = vpop.permute.xlu0 %6765  ;;  %v8151_v62 = vadd.f32 %v8150_v6, %v8149_v39  ;;  %v8170_v39 = vsel %vm90_vm0, %v15322_v43, 0.0 }
 0xd81   :  { %v6379_v44 = vpop.permute.xlu1 %6378  ;;  %6895 = vst.msk [vmem:[#allocation3 + $0x1f0] sm:$0xff] %vm2402_vm6, %v6766_v31  ;;  %v15413_v31 = vpop.f32.mrf.mxu3 }
 0xd82   :  { %6509 = vst.msk [vmem:[#allocation3 + $0x1e8] sm:$0xff] %vm2016_vm5, %v6379_v44  ;;  %v8154_v44 = vsel %vm90_vm0, %v15256_v60, 0.0 }
 0xd83   :  { %6894 = vst.msk [vmem:[#allocation3 + $0x1e8] sm:$0xff] %vm2402_vm6, %v6764_v63  ;;  %v7725_v33 = vld [vmem:[#allocation3 + $0x1e0] sm:$0xff]  ;;  %v7152_v63 = vpop.permute.xlu2 %7151 }
 0xd84   :  { %7278 = vst.msk [vmem:[#allocation3 + $0x1e8] sm:$0xff] %vm2787_vm7, %v7148_v29  ;;  %9451 = vmatmul.msk.f32.gmra.mxu3 %vm3310_vm9, %v7725_v33  ;;  %v8152_v29 = vsel %vm90_vm0, %v15245_v34, 0.0 }
 0xd85   :  { %v8153_v33 = vadd.f32 %v8152_v29, %v8151_v62 }
 0xd88   :  { %v6383_v23 = vpop.permute.xlu0 %6382 }
 0xd89   :  { %v7532_v54 = vpop.permute.xlu1 %7531  ;;  %6511 = vst.msk [vmem:[#allocation3 + $0x1f8] sm:$0xff] %vm2016_vm5, %v6383_v23  ;;  %v8156_v23 = vsel %vm90_vm0, %v15265_v15, 0.0  ;;  %v15426_v27 = vpop.f32.mrf.mxu3 }
 0xd8a   :  { %7662 = vst.msk [vmem:[#allocation3 + $0x1e8] sm:$0xff] %vm3172_vm8, %v7532_v54  ;;  %v15415_v54 = vpop.f32.mrf.mxu1 }
 0xd8b   :  { %16843 = vst [vmem:[#allocation12_spill] sm:$0xff] %v15426_v27 }
 0xd90   :  { %v7536_v47 = vpop.permute.xlu0 %7535 }
 0xd91   :  { %v7150_v1 = vpop.permute.xlu1 %7149  ;;  %v7726_v22 = vld [vmem:[#allocation3 + $0x1e8] sm:$0xff]  ;;  %v15438_v29 = vpop.f32.mrf.mxu3 }
 0xd92   :  { %7279 = vst.msk [vmem:[#allocation3 + $0x1f0] sm:$0xff] %vm2787_vm7, %v7150_v1  ;;  %9452 = vmatmul.msk.f32.gmra.mxu3 %vm3310_vm9, %v7726_v22  ;;  %v8158_v1 = vsel %vm90_vm0, %v15274_v35, 0.0 }
 0xd93   :  { %7663 = vst.msk [vmem:[#allocation3 + $0x1f0] sm:$0xff] %vm3172_vm8, %v7534_v48  ;;  %v8155_v48 = vadd.f32 %v8154_v44, %v8153_v33  ;;  %v8172_v33 = vsel %vm90_vm0, %v15330_v32, 0.0 }
 0xd95   :  { %v8157_v49 = vadd.f32 %v8156_v23, %v8155_v48  ;;  %v8174_v48 = vsel %vm90_vm0, %v15338_v30, 0.0 }
 0xd97   :  { %v8159_v18 = vadd.f32 %v8158_v1, %v8157_v49 }
 0xd99   :  { %v6768_v19 = vpop.permute.xlu1 %6767  ;;  %v8161_v17 = vadd.f32 %v8160_v20, %v8159_v18  ;;  %v8178_v20 = vsel %vm90_vm0, %v15353_v8, 0.0  ;;  %v15450_v18 = vpop.f32.mrf.mxu3 }
 0xd9a   :  { %6896 = vst.msk [vmem:[#allocation3 + $0x1f8] sm:$0xff] %vm2402_vm6, %v6768_v19  ;;  %v7727_v5 = vld [vmem:[#allocation3 + $0x1f0] sm:$0xff] }
 0xd9b   :  { %7280 = vst.msk [vmem:[#allocation3 + $0x1f8] sm:$0xff] %vm2787_vm7, %v7152_v63  ;;  %9453 = vmatmul.msk.f32.gmra.mxu3 %vm3310_vm9, %v7727_v5  ;;  %v15428_v63 = vpop.f32.mrf.mxu1  ;;  %v8163_v19 = vadd.f32 %v8162_v61, %v8161_v17  ;;  %v8168_v5 = vsel %vm90_vm0, %v15315_v13, 0.0 }
 0xd9c   :  { %7664 = vst.msk [vmem:[#allocation3 + $0x1f8] sm:$0xff] %vm3172_vm8, %v7536_v47  ;;  %v8166_v47 = vsel %vm90_vm0, %v15308_v25, 0.0 }
 0xd9d   :  { %v8165_v55 = vadd.f32 %v8164_v21, %v8163_v19  ;;  %16845 = vst [vmem:[#allocation14_spill] sm:$0xff] %v15450_v18  ;;  %v8180_v21 = vsel %vm90_vm0, %v15361_v53, 0.0 }
 0xd9f   :  { %v8167_v6 = vadd.f32 %v8166_v47, %v8165_v55  ;;  %v8182_v47 = vsel %vm90_vm0, %v15369_v2, 0.0 }
 0xda1   :  { %v8169_v62 = vadd.f32 %v8168_v5, %v8167_v6  ;;  %v8184_v5 = vsel %vm90_vm0, %v15378_v10, 0.0 }
 0xda3   :  { %v7728_v22 = vld [vmem:[#allocation3 + $0x1f8] sm:$0xff]  ;;  %v15440_v44 = vpop.f32.mrf.mxu1  ;;  %v8171_v23 = vadd.f32 %v8170_v39, %v8169_v62  ;;  %v8186_v39 = vsel %vm90_vm0, %v15384_v57, 0.0  ;;  %v15462_v62 = vpop.f32.mrf.mxu3 }
 0xda4   :  { %9454 = vmatmul.msk.f32.gmra.mxu3 %vm3310_vm9, %v7728_v22  ;;  %16844 = vst [vmem:[#allocation13_spill] sm:$0xff] %v15440_v44  ;;  %v8176_v22 = vsel %vm90_vm0, %v15347_v14, 0.0 }
 0xda5   :  { %v8173_v1 = vadd.f32 %v8172_v33, %v8171_v23  ;;  %16846 = vst [vmem:[#allocation15_spill] sm:$0xff] %v15462_v62 }
 0xda7   :  { %v8175_v49 = vadd.f32 %v8174_v48, %v8173_v1  ;;  %v8188_v48 = vsel %vm90_vm0, %v15399_v24, 0.0 }
 0xda9   :  { %v8177_v61 = vadd.f32 %v8176_v22, %v8175_v49  ;;  %v8190_v22 = vsel %vm90_vm0, %v15415_v54, 0.0 }
 0xdab   :  { %v15452_v17 = vpop.f32.mrf.mxu1  ;;  %v8179_v19 = vadd.f32 %v8178_v20, %v8177_v61  ;;  %v8192_v20 = vsel %vm90_vm0, %v15428_v63, 0.0 }
 0xdad   :  { %v8181_v55 = vadd.f32 %v8180_v21, %v8179_v19  ;;  %v8194_v21 = vsel %vm90_vm0, %v15440_v44, 0.0  ;;  %v15474_v19 = vpop.f32.mrf.mxu3 }
 0xdae   :  { %16847 = vst [vmem:[#allocation16_spill] sm:$0xff] %v15474_v19 }
 0xdaf   :  { %v8183_v6 = vadd.f32 %v8182_v47, %v8181_v55 }
 0xdb1   :  { %v8185_v33 = vadd.f32 %v8184_v5, %v8183_v6  ;;  %v8196_v5 = vsel %vm90_vm0, %v15452_v17, 0.0 }
 0xdb3   :  { %v15464_v23 = vpop.f32.mrf.mxu1  ;;  %v8187_v1 = vadd.f32 %v8186_v39, %v8185_v33 }
 0xdb4   :  { %v8198_v39 = vsel %vm90_vm0, %v15464_v23, 0.0 }
 0xdb5   :  { %v8189_v49 = vadd.f32 %v8188_v48, %v8187_v1 }
 0xdb7   :  { %v8191_v61 = vadd.f32 %v8190_v22, %v8189_v49  ;;  %v15484_v22 = vpop.f32.mrf.mxu3 }
 0xdb8   :  { %16849 = vst [vmem:[#allocation18_spill] sm:$0xff] %v15484_v22 }
 0xdb9   :  { %v8193_v47 = vadd.f32 %v8192_v20, %v8191_v61 }
 0xdbb   :  { %v8195_v6 = vadd.f32 %v8194_v21, %v8193_v47  ;;  %v8204_v21 = vsel %vm90_vm0, %v15282_v51, 0.0 }
 0xdbd   :  { %v8197_v33 = vadd.f32 %v8196_v5, %v8195_v6  ;;  %v8206_v5 = vsel %vm90_vm0, %v15289_v41, 0.0 }
 0xdbf   :  { %v15476_v55 = vpop.f32.mrf.mxu1  ;;  %v8199_v1 = vadd.f32 %v8198_v39, %v8197_v33  ;;  %v8208_v39 = vsel %vm90_vm0, %v15298_v42, 0.0  ;;  %v15496_v33 = vpop.f32.mrf.mxu3 }
 0xdc0   :  { %16848 = vst [vmem:[#allocation17_spill] sm:$0xff] %v15476_v55  ;;  %v8200_v48 = vsel %vm90_vm0, %v15476_v55, 0.0 }
 0xdc1   :  { %v8201_v49 = vadd.f32 %v8200_v48, %v8199_v1  ;;  %16850 = vst [vmem:[#allocation19_spill] sm:$0xff] %v15496_v33  ;;  %v8210_v1 = vsel %vm90_vm0, %v15306_v26, 0.0 }
 0xdd0   :  { %v15486_v44 = vpop.f32.mrf.mxu1 }
 0xdd1   :  { %v8202_v20 = vsel %vm90_vm0, %v15486_v44, 0.0 }
 0xdd2   :  { %v8203_v61 = vadd.f32 %v8202_v20, %v8201_v49  ;;  %v8212_v49 = vsel %vm90_vm0, %v15313_v16, 0.0 }
 0xdd4   :  { %v8205_v47 = vadd.f32 %v8204_v21, %v8203_v61  ;;  %v8214_v61 = vsel %vm90_vm0, %v15320_v4, 0.0 }
 0xdd6   :  { %v8207_v6 = vadd.f32 %v8206_v5, %v8205_v47  ;;  %v8216_v47 = vsel %vm90_vm0, %v15328_v7, 0.0  ;;  %v15506_v5 = vpop.f32.mrf.mxu3 }
 0xdd7   :  { %16851 = vst [vmem:[#allocation20_spill] sm:$0xff] %v15506_v5 }
 0xdd8   :  { %v8209_v48 = vadd.f32 %v8208_v39, %v8207_v6  ;;  %v8218_v6 = vsel %vm90_vm0, %v15336_v28, 0.0 }
 0xdda   :  { %v8211_v55 = vadd.f32 %v8210_v1, %v8209_v48  ;;  %v8220_v48 = vsel %vm90_vm0, %v15345_v38, 0.0 }
 0xddc   :  { %v8213_v20 = vadd.f32 %v8212_v49, %v8211_v55  ;;  %v8222_v55 = vsel %vm90_vm0, %v15351_v9, 0.0 }
 0xdde   :  { %v8215_v21 = vadd.f32 %v8214_v61, %v8213_v20  ;;  %v8224_v20 = vsel %vm90_vm0, %v15359_v3, 0.0  ;;  %v15516_v61 = vpop.f32.mrf.mxu3  ;;  %v8234_v3 = vsel %vm90_vm0, %v15413_v31, 0.0 }
 0xddf   :  { %16852 = vst [vmem:[#allocation21_spill] sm:$0xff] %v15516_v61 }
 0xde0   :  { %v8217_v42 = vadd.f32 %v8216_v47, %v8215_v21  ;;  %v8226_v21 = vsel %vm90_vm0, %v15367_v59, 0.0 }
 0xde2   :  { %v8219_v39 = vadd.f32 %v8218_v6, %v8217_v42  ;;  %v8228_v42 = vsel %vm90_vm0, %v15376_v45, 0.0 }
 0xde4   :  { %v8221_v1 = vadd.f32 %v8220_v48, %v8219_v39  ;;  %v8230_v39 = vsel %vm90_vm0, %v15382_v50, 0.0 }
 0xde6   :  { %v8223_v49 = vadd.f32 %v8222_v55, %v8221_v1  ;;  %v8232_v1 = vsel %vm90_vm0, %v15397_v58, 0.0 }
 0xde8   :  { %v8225_v7 = vadd.f32 %v8224_v20, %v8223_v49  ;;  %v15528_v49 = vpop.f32.mrf.mxu3 }
 0xde9   :  { %16853 = vst [vmem:[#allocation22_spill] sm:$0xff] %v15528_v49 }
 0xdea   :  { %v8227_v47 = vadd.f32 %v8226_v21, %v8225_v7  ;;  %v8236_v7 = vsel %vm90_vm0, %v15426_v27, 0.0 }
 0xdec   :  { %v8229_v6 = vadd.f32 %v8228_v42, %v8227_v47  ;;  %v8238_v47 = vsel %vm90_vm0, %v15438_v29, 0.0 }
 0xdee   :  { %v8231_v48 = vadd.f32 %v8230_v39, %v8229_v6  ;;  %v8240_v6 = vsel %vm90_vm0, %v15450_v18, 0.0 }
 0xdf0   :  { %v8233_v55 = vadd.f32 %v8232_v1, %v8231_v48  ;;  %v8242_v48 = vsel %vm90_vm0, %v15462_v62, 0.0 }
 0xdf2   :  { %v8235_v20 = vadd.f32 %v8234_v3, %v8233_v55  ;;  %v8244_v3 = vsel %vm90_vm0, %v15474_v19, 0.0 }
 0xdf4   :  { %v8237_v21 = vadd.f32 %v8236_v7, %v8235_v20  ;;  %v8246_v20 = vsel %vm90_vm0, %v15484_v22, 0.0 }
 0xdf5   :  { %v15534_v50 = vpop.f32.mrf.mxu3 }
 0xdf6   :  { %v8239_v42 = vadd.f32 %v8238_v47, %v8237_v21  ;;  %16854 = vst [vmem:[#allocation23_spill] sm:$0xff] %v15534_v50  ;;  %v8248_v21 = vsel %vm90_vm0, %v15496_v33, 0.0 }
 0xdf8   :  { %v8241_v39 = vadd.f32 %v8240_v6, %v8239_v42  ;;  %v8250_v42 = vsel %vm90_vm0, %v15506_v5, 0.0 }
 0xdfa   :  { %v8243_v1 = vadd.f32 %v8242_v48, %v8241_v39  ;;  %v8252_v39 = vsel %vm90_vm0, %v15516_v61, 0.0 }
 0xdfc   :  { %v8245_v55 = vadd.f32 %v8244_v3, %v8243_v1  ;;  %v8254_v3 = vsel %vm90_vm0, %v15528_v49, 0.0 }
 0xdfe   :  { %v15542_v27 = vpop.f32.mrf.mxu3  ;;  %v8247_v7 = vadd.f32 %v8246_v20, %v8245_v55  ;;  %v8256_v55 = vsel %vm90_vm0, %v15534_v50, 0.0 }
 0xdff   :  { %16855 = vst [vmem:[#allocation24_spill] sm:$0xff] %v15542_v27 }
 0xe00   :  { %v8249_v47 = vadd.f32 %v8248_v21, %v8247_v7  ;;  %v8258_v7 = vsel %vm90_vm0, %v15542_v27, 0.0 }
 0xe02   :  { %v8251_v6 = vadd.f32 %v8250_v42, %v8249_v47 }
 0xe04   :  { %v8253_v48 = vadd.f32 %v8252_v39, %v8251_v6 }
 0xe06   :  { %v8255_v19 = vadd.f32 %v8254_v3, %v8253_v48 }
 0xe07   :  { %v8127_v18 = vpop.f32.mrf.mxu3 }
 0xe08   :  { %v8257_v20 = vadd.f32 %v8256_v55, %v8255_v19  ;;  %v8260_v47 = vsel %vm90_vm0, %v8127_v18, 0.0 }
 0xe0a   :  { %v8259_v33 = vadd.f32 %v8258_v7, %v8257_v20 }
 0xe0c   :  { %v8261_v61 = vadd.f32 %v8260_v47, %v8259_v33 }
 0xe15   :  { %v8130_v1 = vpop.f32.mrf.mxu3 }
 0xe16   :  { %v8262_v42 = vsel %vm90_vm0, %v8130_v1, 0.0 }
 0xe17   :  { %v8263_v39 = vadd.f32 %v8262_v42, %v8261_v61 }
 0xe1e   :  { %v8133_v21 = vpop.f32.mrf.mxu3 }
 0xe1f   :  { %v8264_v6 = vsel %vm90_vm0, %v8133_v21, 0.0 }
 0xe20   :  { %v8265_v5 = vadd.f32 %v8264_v6, %v8263_v39 }
 0xe27   :  { %v8136_v49 = vpop.f32.mrf.mxu3 }
 0xe28   :  { %v8266_v48 = vsel %vm90_vm0, %v8136_v49, 0.0 }
 0xe29   :  { %v8267_v3 = vadd.f32 %v8266_v48, %v8265_v5 }
 0xe2b   :  { %v8268_v50 = vrot.slane %v8267_v3, 4 }
 0xe2d   :  { %v8269_v19 = vadd.f32 %v8268_v50, %v8267_v3 }
 0xe2f   :  { %v8270_v55 = vrot.slane %v8269_v19, 2 }
 0xe31   :  { %v8271_v22 = vadd.f32 %v8270_v55, %v8269_v19 }
 0xe33   :  { %v8272_v27 = vrot.slane %v8271_v22, 1 }
 0xe35   :  { %v8273_v62 = vadd.f32 %v8272_v27, %v8271_v22 }
 0xe37   :  { %v15562_v20 = vmul.f32 0.001953125, %v8273_v62 }
 0xe39   :  { %v15565_v7 = vsub.f32 %v8127_v18, %v15562_v20  ;;  %v15568_v33 = vsub.f32 %v8130_v1, %v15562_v20  ;;  %v15571_v61 = vsub.f32 %v8133_v21, %v15562_v20  ;;  %v15574_v47 = vsub.f32 %v8136_v49, %v15562_v20 }
 0xe3a   :  { %v15578_v50 = vsub.f32 %v15177_v37, %v15562_v20  ;;  %v15582_v27 = vsub.f32 %v15192_v52, %v15562_v20  ;;  %v15586_v18 = vsub.f32 %v15203_v46, %v15562_v20  ;;  %v15590_v62 = vsub.f32 %v15215_v36, %v15562_v20 }
 0xe3b   :  { %16856 = vst [vmem:[#allocation25_spill] sm:$0xff] %v15565_v7  ;;  %v15598_v37 = vsub.f32 %v15224_v12, %v15562_v20  ;;  %v15604_v46 = vsub.f32 %v15235_v0, %v15562_v20  ;;  %v15612_v42 = vsub.f32 %v15245_v34, %v15562_v20  ;;  %v15619_v0 = vsub.f32 %v15256_v60, %v15562_v20 }
 0xe3c   :  { %16857 = vst [vmem:[#allocation26_spill] sm:$0xff] %v15568_v33  ;;  %v8339_v22 = vmul.f32 %v15578_v50, %v15578_v50  ;;  %v8340_v5 = vmul.f32 %v15582_v27, %v15582_v27  ;;  %v8341_v52 = vmul.f32 %v15586_v18, %v15586_v18  ;;  %v8342_v36 = vmul.f32 %v15590_v62, %v15590_v62 }
 0xe3d   :  { %16858 = vst [vmem:[#allocation27_spill] sm:$0xff] %v15571_v61  ;;  %v8343_v12 = vmul.f32 %v15598_v37, %v15598_v37  ;;  %v8344_v48 = vmul.f32 %v15604_v46, %v15604_v46  ;;  %v15626_v34 = vsub.f32 %v15265_v15, %v15562_v20  ;;  %v8345_v55 = vmul.f32 %v15612_v42, %v15612_v42 }
 0xe3e   :  { %v8403_v49 = vsel %vm90_vm0, %v8339_v22, 0.0  ;;  %v8404_v1 = vsel %vm90_vm0, %v8340_v5, 0.0  ;;  %v8406_v6 = vsel %vm90_vm0, %v8341_v52, 0.0  ;;  %v8408_v3 = vsel %vm90_vm0, %v8342_v36, 0.0 }
 0xe3f   :  { %v8405_v21 = vadd.f32 %v8404_v1, %v8403_v49  ;;  %v8410_v22 = vsel %vm90_vm0, %v8343_v12, 0.0  ;;  %v15633_v60 = vsub.f32 %v15274_v35, %v15562_v20  ;;  %v8346_v52 = vmul.f32 %v15619_v0, %v15619_v0 }
 0xe40   :  { %v8412_v36 = vsel %vm90_vm0, %v8344_v48, 0.0  ;;  %v15640_v15 = vsub.f32 %v15286_v40, %v15562_v20  ;;  %v8347_v1 = vmul.f32 %v15626_v34, %v15626_v34  ;;  %v15647_v35 = vsub.f32 %v15291_v56, %v15562_v20 }
 0xe41   :  { %v8407_v39 = vadd.f32 %v8406_v6, %v8405_v21  ;;  %v8414_v21 = vsel %vm90_vm0, %v8345_v55, 0.0  ;;  %v8348_v6 = vmul.f32 %v15633_v60, %v15633_v60  ;;  %v15654_v40 = vsub.f32 %v15300_v11, %v15562_v20 }
 0xe42   :  { %v15661_v56 = vsub.f32 %v15308_v25, %v15562_v20  ;;  %v15668_v11 = vsub.f32 %v15315_v13, %v15562_v20  ;;  %v15675_v25 = vsub.f32 %v15322_v43, %v15562_v20  ;;  %v15682_v13 = vsub.f32 %v15330_v32, %v15562_v20 }
 0xe43   :  { %v8409_v19 = vadd.f32 %v8408_v3, %v8407_v39  ;;  %v8416_v39 = vsel %vm90_vm0, %v8346_v52, 0.0  ;;  %v8349_v3 = vmul.f32 %v15640_v15, %v15640_v15  ;;  %v15689_v43 = vsub.f32 %v15338_v30, %v15562_v20 }
 0xe44   :  { %v15696_v32 = vsub.f32 %v15347_v14, %v15562_v20  ;;  %v15703_v30 = vsub.f32 %v15353_v8, %v15562_v20  ;;  %v15710_v14 = vsub.f32 %v15361_v53, %v15562_v20  ;;  %v15717_v8 = vsub.f32 %v15369_v2, %v15562_v20 }
 0xe45   :  { %v8411_v5 = vadd.f32 %v8410_v22, %v8409_v19  ;;  %v8418_v19 = vsel %vm90_vm0, %v8347_v1, 0.0  ;;  %v8350_v22 = vmul.f32 %v15647_v35, %v15647_v35  ;;  %v15724_v53 = vsub.f32 %v15378_v10, %v15562_v20 }
 0xe46   :  { %v15731_v2 = vsub.f32 %v15384_v57, %v15562_v20  ;;  %v15738_v10 = vsub.f32 %v15399_v24, %v15562_v20  ;;  %v15745_v57 = vsub.f32 %v15415_v54, %v15562_v20  ;;  %v15752_v24 = vsub.f32 %v15428_v63, %v15562_v20 }
 0xe47   :  { %v8413_v49 = vadd.f32 %v8412_v36, %v8411_v5  ;;  %v8420_v5 = vsel %vm90_vm0, %v8348_v6, 0.0  ;;  %v8351_v36 = vmul.f32 %v15654_v40, %v15654_v40  ;;  %v15766_v63 = vsub.f32 %v15452_v17, %v15562_v20 }
 0xe49   :  { %v8415_v12 = vadd.f32 %v8414_v21, %v8413_v49  ;;  %v8422_v49 = vsel %vm90_vm0, %v8349_v3, 0.0  ;;  %v8352_v21 = vmul.f32 %v15661_v56, %v15661_v56 }
 0xe4b   :  { %v8417_v48 = vadd.f32 %v8416_v39, %v8415_v12  ;;  %v8424_v12 = vsel %vm90_vm0, %v8350_v22, 0.0  ;;  %v8353_v39 = vmul.f32 %v15668_v11, %v15668_v11 }
 0xe4d   :  { %v8419_v55 = vadd.f32 %v8418_v19, %v8417_v48  ;;  %v8426_v48 = vsel %vm90_vm0, %v8351_v36, 0.0  ;;  %v8354_v19 = vmul.f32 %v15675_v25, %v15675_v25 }
 0xe4f   :  { %v8421_v52 = vadd.f32 %v8420_v5, %v8419_v55  ;;  %v8428_v55 = vsel %vm90_vm0, %v8352_v21, 0.0  ;;  %v8355_v5 = vmul.f32 %v15682_v13, %v15682_v13 }
 0xe51   :  { %v8423_v1 = vadd.f32 %v8422_v49, %v8421_v52  ;;  %v8430_v52 = vsel %vm90_vm0, %v8353_v39, 0.0  ;;  %v8356_v49 = vmul.f32 %v15689_v43, %v15689_v43 }
 0xe53   :  { %v8425_v6 = vadd.f32 %v8424_v12, %v8423_v1  ;;  %v8432_v1 = vsel %vm90_vm0, %v8354_v19, 0.0  ;;  %v8357_v12 = vmul.f32 %v15696_v32, %v15696_v32 }
 0xe55   :  { %v8427_v3 = vadd.f32 %v8426_v48, %v8425_v6  ;;  %v8434_v6 = vsel %vm90_vm0, %v8355_v5, 0.0  ;;  %v8358_v48 = vmul.f32 %v15703_v30, %v15703_v30 }
 0xe57   :  { %v8429_v22 = vadd.f32 %v8428_v55, %v8427_v3  ;;  %v8436_v3 = vsel %vm90_vm0, %v8356_v49, 0.0  ;;  %v8359_v55 = vmul.f32 %v15710_v14, %v15710_v14 }
 0xe59   :  { %v8431_v36 = vadd.f32 %v8430_v52, %v8429_v22  ;;  %v8438_v22 = vsel %vm90_vm0, %v8357_v12, 0.0  ;;  %v8360_v52 = vmul.f32 %v15717_v8, %v15717_v8 }
 0xe5b   :  { %v8433_v21 = vadd.f32 %v8432_v1, %v8431_v36  ;;  %v8440_v36 = vsel %vm90_vm0, %v8358_v48, 0.0  ;;  %v8361_v1 = vmul.f32 %v15724_v53, %v15724_v53 }
 0xe5d   :  { %v8435_v39 = vadd.f32 %v8434_v6, %v8433_v21  ;;  %v8442_v21 = vsel %vm90_vm0, %v8359_v55, 0.0  ;;  %v8362_v6 = vmul.f32 %v15731_v2, %v15731_v2 }
 0xe5f   :  { %v8437_v19 = vadd.f32 %v8436_v3, %v8435_v39  ;;  %v8444_v39 = vsel %vm90_vm0, %v8360_v52, 0.0  ;;  %v8363_v3 = vmul.f32 %v15738_v10, %v15738_v10  ;;  %v8448_v52 = vsel %vm90_vm0, %v8362_v6, 0.0 }
 0xe61   :  { %v8439_v5 = vadd.f32 %v8438_v22, %v8437_v19  ;;  %v8446_v19 = vsel %vm90_vm0, %v8361_v1, 0.0  ;;  %v16859_v22 = vld [vmem:[#allocation13_spill] sm:$0xff]  ;;  %v8450_v1 = vsel %vm90_vm0, %v8363_v3, 0.0 }
 0xe62   :  { %v15759_v54 = vsub.f32 %v16859_v22, %v15562_v20 }
 0xe63   :  { %v8441_v49 = vadd.f32 %v8440_v36, %v8439_v5  ;;  %v8364_v5 = vmul.f32 %v15745_v57, %v15745_v57 }
 0xe65   :  { %v8443_v12 = vadd.f32 %v8442_v21, %v8441_v49  ;;  %v8365_v49 = vmul.f32 %v15752_v24, %v15752_v24  ;;  %v8452_v6 = vsel %vm90_vm0, %v8364_v5, 0.0 }
 0xe67   :  { %v8445_v48 = vadd.f32 %v8444_v39, %v8443_v12  ;;  %v15773_v12 = vsub.f32 %v15464_v23, %v15562_v20  ;;  %v8366_v39 = vmul.f32 %v15759_v54, %v15759_v54  ;;  %v8454_v3 = vsel %vm90_vm0, %v8365_v49, 0.0 }
 0xe68   :  { %v15787_v23 = vsub.f32 %v15486_v44, %v15562_v20  ;;  %v15801_v44 = vsub.f32 %v15289_v41, %v15562_v20  ;;  %v15815_v41 = vsub.f32 %v15306_v26, %v15562_v20  ;;  %v15829_v26 = vsub.f32 %v15320_v4, %v15562_v20 }
 0xe69   :  { %v8447_v55 = vadd.f32 %v8446_v19, %v8445_v48  ;;  %v16860_v19 = vld [vmem:[#allocation17_spill] sm:$0xff]  ;;  %v8456_v5 = vsel %vm90_vm0, %v8366_v39, 0.0  ;;  %v15843_v4 = vsub.f32 %v15336_v28, %v15562_v20  ;;  %v15857_v28 = vsub.f32 %v15351_v9, %v15562_v20 }
 0xe6a   :  { %v15780_v17 = vsub.f32 %v16860_v19, %v15562_v20  ;;  %v15871_v9 = vsub.f32 %v15367_v59, %v15562_v20 }
 0xe6b   :  { %v8449_v36 = vadd.f32 %v8448_v52, %v8447_v55  ;;  %v8367_v55 = vmul.f32 %v15766_v63, %v15766_v63  ;;  %v8368_v52 = vmul.f32 %v15773_v12, %v15773_v12  ;;  %16864 = vst [vmem:[#allocation29_spill] sm:$0xff] %v15857_v28 }
 0xe6d   :  { %v8451_v21 = vadd.f32 %v8450_v1, %v8449_v36  ;;  %v15794_v1 = vsub.f32 %v15282_v51, %v15562_v20  ;;  %v8458_v49 = vsel %vm90_vm0, %v8367_v55, 0.0  ;;  %v8460_v39 = vsel %vm90_vm0, %v8368_v52, 0.0 }
 0xe6f   :  { %v8453_v48 = vadd.f32 %v8452_v6, %v8451_v21  ;;  %v8369_v21 = vmul.f32 %v15780_v17, %v15780_v17 }
 0xe71   :  { %v8455_v22 = vadd.f32 %v8454_v3, %v8453_v48  ;;  %v8370_v48 = vmul.f32 %v15787_v23, %v15787_v23  ;;  %v16861_v3 = vld [vmem:[#allocation8_spill] sm:$0xff]  ;;  %v8462_v55 = vsel %vm90_vm0, %v8369_v21, 0.0 }
 0xe72   :  { %v15808_v51 = vsub.f32 %v16861_v3, %v15562_v20  ;;  %v8374_v3 = vmul.f32 %v15815_v41, %v15815_v41 }
 0xe73   :  { %v8457_v36 = vadd.f32 %v8456_v5, %v8455_v22  ;;  %v8371_v22 = vmul.f32 %v15794_v1, %v15794_v1  ;;  %v8464_v52 = vsel %vm90_vm0, %v8370_v48, 0.0 }
 0xe75   :  { %v8459_v6 = vadd.f32 %v8458_v49, %v8457_v36  ;;  %v8372_v36 = vmul.f32 %v15801_v44, %v15801_v44  ;;  %v8466_v21 = vsel %vm90_vm0, %v8371_v22, 0.0 }
 0xe77   :  { %v8461_v19 = vadd.f32 %v8460_v39, %v8459_v6  ;;  %v15822_v6 = vsub.f32 %v15313_v16, %v15562_v20  ;;  %v8373_v39 = vmul.f32 %v15808_v51, %v15808_v51  ;;  %v8468_v48 = vsel %vm90_vm0, %v8372_v36, 0.0 }
 0xe78   :  { %v8472_v36 = vsel %vm90_vm0, %v8374_v3, 0.0 }
 0xe79   :  { %v8463_v5 = vadd.f32 %v8462_v55, %v8461_v19  ;;  %v8470_v22 = vsel %vm90_vm0, %v8373_v39, 0.0 }
 0xe7b   :  { %v8465_v49 = vadd.f32 %v8464_v52, %v8463_v5  ;;  %v16862_v5 = vld [vmem:[#allocation9_spill] sm:$0xff]  ;;  %v8375_v52 = vmul.f32 %v15822_v6, %v15822_v6 }
 0xe7c   :  { %v15836_v16 = vsub.f32 %v16862_v5, %v15562_v20 }
 0xe7d   :  { %v8467_v19 = vadd.f32 %v8466_v21, %v8465_v49  ;;  %v8376_v21 = vmul.f32 %v15829_v26, %v15829_v26  ;;  %v8474_v39 = vsel %vm90_vm0, %v8375_v52, 0.0 }
 0xe7e   :  { %16863 = vst [vmem:[#allocation28_spill] sm:$0xff] %v15836_v16  ;;  %v8377_v5 = vmul.f32 %v15836_v16, %v15836_v16 }
 0xe7f   :  { %v8469_v55 = vadd.f32 %v8468_v48, %v8467_v19  ;;  %v15850_v48 = vsub.f32 %v15345_v38, %v15562_v20  ;;  %v8476_v3 = vsel %vm90_vm0, %v8376_v21, 0.0 }
 0xe80   :  { %v8478_v52 = vsel %vm90_vm0, %v8377_v5, 0.0 }
 0xe81   :  { %v8471_v49 = vadd.f32 %v8470_v22, %v8469_v55  ;;  %v8378_v22 = vmul.f32 %v15843_v4, %v15843_v4  ;;  %v8379_v16 = vmul.f32 %v15850_v48, %v15850_v48 }
 0xe83   :  { %v8473_v19 = vadd.f32 %v8472_v36, %v8471_v49  ;;  %v16865_v36 = vld [vmem:[#allocation10_spill] sm:$0xff]  ;;  %v8480_v21 = vsel %vm90_vm0, %v8378_v22, 0.0  ;;  %v8482_v5 = vsel %vm90_vm0, %v8379_v16, 0.0 }
 0xe84   :  { %v15864_v38 = vsub.f32 %v16865_v36, %v15562_v20 }
 0xe85   :  { %v8475_v55 = vadd.f32 %v8474_v39, %v8473_v19  ;;  %v8380_v39 = vmul.f32 %v15857_v28, %v15857_v28  ;;  %v8382_v28 = vmul.f32 %v15871_v9, %v15871_v9 }
 0xe86   :  { %v8381_v36 = vmul.f32 %v15864_v38, %v15864_v38 }
 0xe87   :  { %v8477_v49 = vadd.f32 %v8476_v3, %v8475_v55  ;;  %v15878_v3 = vsub.f32 %v15376_v45, %v15562_v20  ;;  %v8484_v22 = vsel %vm90_vm0, %v8380_v39, 0.0  ;;  %v15892_v45 = vsub.f32 %v15397_v58, %v15562_v20 }
 0xe88   :  { %v8486_v16 = vsel %vm90_vm0, %v8381_v36, 0.0  ;;  %v8488_v39 = vsel %vm90_vm0, %v8382_v28, 0.0 }
 0xe89   :  { %v8479_v19 = vadd.f32 %v8478_v52, %v8477_v49  ;;  %16866 = vst [vmem:[#allocation30_spill] sm:$0xff] %v15878_v3  ;;  %v16867_v52 = vld [vmem:[#allocation11_spill] sm:$0xff] }
 0xe8a   :  { %v15885_v59 = vsub.f32 %v16867_v52, %v15562_v20  ;;  %16869 = vst [vmem:[#allocation32_spill] sm:$0xff] %v15892_v45 }
 0xe8b   :  { %v8481_v55 = vadd.f32 %v8480_v21, %v8479_v19  ;;  %v8383_v21 = vmul.f32 %v15878_v3, %v15878_v3  ;;  %v8385_v3 = vmul.f32 %v15892_v45, %v15892_v45 }
 0xe8c   :  { %16868 = vst [vmem:[#allocation31_spill] sm:$0xff] %v15885_v59  ;;  %v8384_v52 = vmul.f32 %v15885_v59, %v15885_v59 }
 0xe8d   :  { %v8483_v49 = vadd.f32 %v8482_v5, %v8481_v55  ;;  %v15899_v5 = vsub.f32 %v15413_v31, %v15562_v20  ;;  %v8490_v36 = vsel %vm90_vm0, %v8383_v21, 0.0  ;;  %v15913_v31 = vsub.f32 %v15438_v29, %v15562_v20 }
 0xe8e   :  { %v8492_v28 = vsel %vm90_vm0, %v8384_v52, 0.0  ;;  %v8494_v21 = vsel %vm90_vm0, %v8385_v3, 0.0 }
 0xe8f   :  { %v8485_v19 = vadd.f32 %v8484_v22, %v8483_v49  ;;  %16870 = vst [vmem:[#allocation33_spill] sm:$0xff] %v15899_v5  ;;  %v16871_v22 = vld [vmem:[#allocation12_spill] sm:$0xff] }
 0xe90   :  { %v15906_v58 = vsub.f32 %v16871_v22, %v15562_v20  ;;  %16873 = vst [vmem:[#allocation35_spill] sm:$0xff] %v15913_v31 }
 0xe91   :  { %v8487_v55 = vadd.f32 %v8486_v16, %v8485_v19  ;;  %v8386_v16 = vmul.f32 %v15899_v5, %v15899_v5  ;;  %v8388_v5 = vmul.f32 %v15913_v31, %v15913_v31 }
 0xe92   :  { %16872 = vst [vmem:[#allocation34_spill] sm:$0xff] %v15906_v58  ;;  %v8387_v45 = vmul.f32 %v15906_v58, %v15906_v58 }
 0xe93   :  { %v8489_v49 = vadd.f32 %v8488_v39, %v8487_v55  ;;  %v16874_v39 = vld [vmem:[#allocation14_spill] sm:$0xff]  ;;  %v8496_v52 = vsel %vm90_vm0, %v8386_v16, 0.0  ;;  %v8500_v16 = vsel %vm90_vm0, %v8388_v5, 0.0 }
 0xe94   :  { %v15920_v22 = vsub.f32 %v16874_v39, %v15562_v20  ;;  %v8498_v3 = vsel %vm90_vm0, %v8387_v45, 0.0 }
 0xe95   :  { %v8491_v19 = vadd.f32 %v8490_v36, %v8489_v49  ;;  %v16876_v36 = vld [vmem:[#allocation15_spill] sm:$0xff] }
 0xe96   :  { %16875 = vst [vmem:[#allocation36_spill] sm:$0xff] %v15920_v22  ;;  %v15927_v29 = vsub.f32 %v16876_v36, %v15562_v20  ;;  %v8389_v58 = vmul.f32 %v15920_v22, %v15920_v22 }
 0xe97   :  { %v8493_v55 = vadd.f32 %v8492_v28, %v8491_v19  ;;  %v16878_v28 = vld [vmem:[#allocation16_spill] sm:$0xff] }
 0xe98   :  { %16877 = vst [vmem:[#allocation37_spill] sm:$0xff] %v15927_v29  ;;  %v15934_v39 = vsub.f32 %v16878_v28, %v15562_v20  ;;  %v8390_v31 = vmul.f32 %v15927_v29, %v15927_v29  ;;  %v8502_v45 = vsel %vm90_vm0, %v8389_v58, 0.0 }
 0xe99   :  { %v8495_v49 = vadd.f32 %v8494_v21, %v8493_v55  ;;  %v16880_v21 = vld [vmem:[#allocation18_spill] sm:$0xff] }
 0xe9a   :  { %16879 = vst [vmem:[#allocation38_spill] sm:$0xff] %v15934_v39  ;;  %v15941_v36 = vsub.f32 %v16880_v21, %v15562_v20  ;;  %v8391_v22 = vmul.f32 %v15934_v39, %v15934_v39  ;;  %v8504_v5 = vsel %vm90_vm0, %v8390_v31, 0.0 }
 0xe9b   :  { %v8497_v19 = vadd.f32 %v8496_v52, %v8495_v49  ;;  %v16882_v52 = vld [vmem:[#allocation19_spill] sm:$0xff] }
 0xe9c   :  { %16881 = vst [vmem:[#allocation39_spill] sm:$0xff] %v15941_v36  ;;  %v15948_v28 = vsub.f32 %v16882_v52, %v15562_v20  ;;  %v8392_v29 = vmul.f32 %v15941_v36, %v15941_v36  ;;  %v8506_v58 = vsel %vm90_vm0, %v8391_v22, 0.0 }
 0xe9d   :  { %v8499_v55 = vadd.f32 %v8498_v3, %v8497_v19  ;;  %v16884_v3 = vld [vmem:[#allocation20_spill] sm:$0xff] }
 0xe9e   :  { %16883 = vst [vmem:[#allocation4_spill] sm:$0xff] %v15948_v28  ;;  %v15955_v21 = vsub.f32 %v16884_v3, %v15562_v20  ;;  %v8393_v39 = vmul.f32 %v15948_v28, %v15948_v28  ;;  %v8508_v31 = vsel %vm90_vm0, %v8392_v29, 0.0 }
 0xe9f   :  { %v8501_v49 = vadd.f32 %v8500_v16, %v8499_v55  ;;  %v16886_v16 = vld [vmem:[#allocation21_spill] sm:$0xff] }
 0xea0   :  { %16885 = vst [vmem:[#allocation40_spill] sm:$0xff] %v15955_v21  ;;  %v15962_v52 = vsub.f32 %v16886_v16, %v15562_v20  ;;  %v8394_v36 = vmul.f32 %v15955_v21, %v15955_v21  ;;  %v8510_v22 = vsel %vm90_vm0, %v8393_v39, 0.0 }
 0xea1   :  { %v8503_v19 = vadd.f32 %v8502_v45, %v8501_v49  ;;  %v16888_v45 = vld [vmem:[#allocation22_spill] sm:$0xff] }
 0xea2   :  { %16887 = vst [vmem:[#allocation6_spill] sm:$0xff] %v15962_v52  ;;  %v15969_v3 = vsub.f32 %v16888_v45, %v15562_v20  ;;  %v8395_v28 = vmul.f32 %v15962_v52, %v15962_v52  ;;  %v8512_v29 = vsel %vm90_vm0, %v8394_v36, 0.0  ;;  %v8400_v36 = vmul.f32 %v15568_v33, %v15568_v33 }
 0xea3   :  { %v8505_v55 = vadd.f32 %v8504_v5, %v8503_v19  ;;  %v16890_v5 = vld [vmem:[#allocation23_spill] sm:$0xff] }
 0xea4   :  { %16889 = vst [vmem:[#allocation5_spill] sm:$0xff] %v15969_v3  ;;  %v15976_v16 = vsub.f32 %v16890_v5, %v15562_v20  ;;  %v8396_v21 = vmul.f32 %v15969_v3, %v15969_v3  ;;  %v8514_v5 = vsel %vm90_vm0, %v8395_v28, 0.0  ;;  %v8401_v28 = vmul.f32 %v15571_v61, %v15571_v61 }
 0xea5   :  { %v8507_v49 = vadd.f32 %v8506_v58, %v8505_v55  ;;  %v16892_v58 = vld [vmem:[#allocation24_spill] sm:$0xff] }
 0xea6   :  { %16891 = vst [vmem:[#allocation7_spill] sm:$0xff] %v15976_v16  ;;  %v15983_v45 = vsub.f32 %v16892_v58, %v15562_v20  ;;  %v8399_v20 = vmul.f32 %v15565_v7, %v15565_v7 }
 0xea7   :  { %v8509_v19 = vadd.f32 %v8508_v31, %v8507_v49  ;;  %v8397_v31 = vmul.f32 %v15976_v16, %v15976_v16 }
 0xea8   :  { %16893 = vst [vmem:[#allocation13_spill] sm:$0xff] %v15983_v45  ;;  %v8398_v39 = vmul.f32 %v15983_v45, %v15983_v45 }
 0xea9   :  { %v8511_v55 = vadd.f32 %v8510_v22, %v8509_v19  ;;  %v8516_v19 = vsel %vm90_vm0, %v8396_v21, 0.0  ;;  %v8518_v58 = vsel %vm90_vm0, %v8397_v31, 0.0  ;;  %v8524_v21 = vsel %vm90_vm0, %v8400_v36, 0.0 }
 0xeaa   :  { %v8526_v31 = vsel %vm90_vm0, %v8401_v28, 0.0 }
 0xeab   :  { %v8513_v49 = vadd.f32 %v8512_v29, %v8511_v55  ;;  %v8520_v55 = vsel %vm90_vm0, %v8398_v39, 0.0 }
 0xead   :  { %v8515_v59 = vadd.f32 %v8514_v5, %v8513_v49  ;;  %v8522_v49 = vsel %vm90_vm0, %v8399_v20, 0.0 }
 0xeaf   :  { %v8517_v22 = vadd.f32 %v8516_v19, %v8515_v59  ;;  %v8402_v59 = vmul.f32 %v15574_v47, %v15574_v47 }
 0xeb1   :  { %v8519_v3 = vadd.f32 %v8518_v58, %v8517_v22  ;;  %v8528_v58 = vsel %vm90_vm0, %v8402_v59, 0.0 }
 0xeb3   :  { %v8521_v29 = vadd.f32 %v8520_v55, %v8519_v3 }
 0xeb5   :  { %v8523_v5 = vadd.f32 %v8522_v49, %v8521_v29 }
 0xeb7   :  { %v8525_v19 = vadd.f32 %v8524_v21, %v8523_v5 }
 0xeb9   :  { %v8527_v22 = vadd.f32 %v8526_v31, %v8525_v19 }
 0xebb   :  { %v8529_v33 = vadd.f32 %v8528_v58, %v8527_v22 }
 0xebd   :  { %v8530_v39 = vrot.slane %v8529_v33, 4 }
 0xebf   :  { %v8531_v3 = vadd.f32 %v8530_v39, %v8529_v33  ;;  %v8139_v33 = vld [vmem:[%s16667_s5] sm:$0x1] }
 0xec1   :  { %v8532_v55 = vrot.slane %v8531_v3, 2 }
 0xec3   :  { %v8533_v7 = vadd.f32 %v8532_v55, %v8531_v3 }
 0xec5   :  { %v8534_v61 = vrot.slane %v8533_v7, 1 }
 0xec7   :  { %v8535_v45 = vadd.f32 %v8534_v61, %v8533_v7  ;;  %v16018_v61 = vld [vmem:[%s16666_s6] ss:$0 sm:$0xff] }
 0xec9   :  { %v8536_v20 = vmul.f32 0.001953125, %v8535_v45 }
 0xecb   :  { %v8537_v29 = vadd.f32 1e-05, %v8536_v20 }
 0xecd   :  { %9550 = vrsqrt.f32 %v8537_v29  ;;  %vm8544_vm1 = vweird.f32 %v8537_v29 }
 0xed3   :  { %v9551_v49 = vpop.eup %9550 }
 0xed4   :  { %v8539_v16 = vmul.f32 %v9551_v49, %v8537_v29  ;;  %vm8545_vm15 = vweird.f32 %v9551_v49 }
 0xed5   :  { %vm8546_vm2 = vmor %vm8544_vm1, %vm8545_vm15 }
 0xed6   :  { %v8540_v52 = vmul.f32 %v9551_v49, %v8539_v16 }
 0xed8   :  { %v8541_v36 = vmul.f32 0.5, %v8540_v52 }
 0xeda   :  { %v8542_v5 = vsub.f32 1.5, %v8541_v36 }
 0xedc   :  { %v8543_v21 = vmul.f32 %v9551_v49, %v8542_v5  ;;  %v9459_v5 = vld [vmem:[%s16661_s0 + $0x49] sm:$0xff] }
 0xede   :  { %v8547_v28 = vsel %vm8546_vm2, %v9551_v49, %v8543_v21  ;;  %v9460_v21 = vld [vmem:[%s16661_s0 + $0x51] sm:$0xff] }
 0xedf   :  { %v8548_v59 = vmul.f32 %v8547_v28, %v8139_v33 }
 0xee1   :  { %v16011_v19 = vperm.slane %v8548_v59, 0 }
 0xee3   :  { %v8615_v7 = vmul.f32 %v16011_v19, %v15574_v47  ;;  %v8552_v16 = vmul.f32 %v16011_v19, %v15578_v50  ;;  %v8553_v45 = vmul.f32 %v16011_v19, %v15582_v27  ;;  %v8554_v31 = vmul.f32 %v16011_v19, %v15586_v18 }
 0xee4   :  { %v8555_v47 = vmul.f32 %v16011_v19, %v15590_v62  ;;  %v8556_v22 = vmul.f32 %v16011_v19, %v15598_v37  ;;  %v8557_v58 = vmul.f32 %v16011_v19, %v15604_v46  ;;  %v8558_v39 = vmul.f32 %v16011_v19, %v15612_v42  ;;  %v9455_v37 = vld [vmem:[%s16661_s0 + $0x19] sm:$0xff]  ;;  %v9456_v46 = vld [vmem:[%s16661_s0 + $0x21] sm:$0xff]  ;;  %v9457_v42 = vld [vmem:[%s16661_s0 + $0x31] sm:$0xff] }
 0xee5   :  { %v16021_v52 = vadd.f32 %v16018_v61, %v8615_v7  ;;  %v8619_v50 = vadd.f32 %v16018_v61, %v8552_v16  ;;  %v8620_v3 = vadd.f32 %v16018_v61, %v8553_v45  ;;  %v8621_v27 = vadd.f32 %v16018_v61, %v8554_v31  ;;  %v9461_v7 = vld [vmem:[%s16661_s0 + $0x61] sm:$0xff] }
 0xee6   :  { %v8559_v18 = vmul.f32 %v16011_v19, %v15619_v0  ;;  %v8622_v62 = vadd.f32 %v16018_v61, %v8555_v47  ;;  %v8560_v55 = vmul.f32 %v16011_v19, %v15626_v34  ;;  %v8623_v20 = vadd.f32 %v16018_v61, %v8556_v22  ;;  %v9458_v0 = vld [vmem:[%s16661_s0 + $0x39] sm:$0xff]  ;;  %v9462_v22 = vld [vmem:[%s16661_s0 + $0x69] sm:$0xff] }
 0xee7   :  { %v8561_v29 = vmul.f32 %v16011_v19, %v15633_v60  ;;  %v8562_v49 = vmul.f32 %v16011_v19, %v15640_v15  ;;  %v8624_v36 = vadd.f32 %v16018_v61, %v8557_v58  ;;  %v8625_v34 = vadd.f32 %v16018_v61, %v8558_v39 }
 0xee8   :  { %v8747_v33 = vadd.f32 %v9455_v37, %v8619_v50  ;;  %v8748_v28 = vadd.f32 %v9456_v46, %v8620_v3  ;;  %v8749_v59 = vadd.f32 %v9457_v42, %v8621_v27  ;;  %v8563_v60 = vmul.f32 %v16011_v19, %v15647_v35  ;;  %v9465_v42 = vld [vmem:[%s16661_s0 + $0x91] sm:$0xff] }
 0xee9   :  { %v8626_v15 = vadd.f32 %v16018_v61, %v8559_v18  ;;  %v8750_v16 = vadd.f32 %v9458_v0, %v8622_v62  ;;  %v8564_v45 = vmul.f32 %v16011_v19, %v15654_v40  ;;  %v8565_v31 = vmul.f32 %v16011_v19, %v15661_v56  ;;  %v9463_v40 = vld [vmem:[%s16661_s0 + $0x79] sm:$0xff]  ;;  %v9464_v56 = vld [vmem:[%s16661_s0 + $0x81] sm:$0xff] }
 0xeea   :  { %v8627_v47 = vadd.f32 %v16018_v61, %v8560_v55  ;;  %v8751_v35 = vadd.f32 %v9459_v5, %v8623_v20  ;;  %v8566_v58 = vmul.f32 %v16011_v19, %v15668_v11  ;;  %v8628_v39 = vadd.f32 %v16018_v61, %v8561_v29 }
 0xeeb   :  { %v8629_v50 = vadd.f32 %v16018_v61, %v8562_v49  ;;  %v8752_v3 = vadd.f32 %v9460_v21, %v8624_v36  ;;  %v8753_v27 = vadd.f32 %v9461_v7, %v8625_v34  ;;  %v8811_v18 = vmax.f32 %v8747_v33, 0.0  ;;  %v9466_v49 = vld [vmem:[%s16661_s0 + $0x99] sm:$0xff] }
 0xeec   :  { %v8812_v62 = vmax.f32 %v8748_v28, 0.0  ;;  %v8813_v37 = vmax.f32 %v8749_v59, 0.0  ;;  %v8567_v11 = vmul.f32 %v16011_v19, %v15675_v25  ;;  %v8630_v46 = vadd.f32 %v16018_v61, %v8563_v60 }
 0xeed   :  { %v8754_v55 = vadd.f32 %v9462_v22, %v8626_v15  ;;  %v8814_v20 = vmax.f32 %v8750_v16, 0.0  ;;  %v8568_v0 = vmul.f32 %v16011_v19, %v15682_v13  ;;  %v8631_v29 = vadd.f32 %v16018_v61, %v8564_v45  ;;  %8875 = vst.msk [vmem:[%s16668_s7] sm:$0xff] %vm90_vm0, %v8811_v18  ;;  %v9467_v13 = vld [vmem:[%s16661_s0 + $0xa9] sm:$0xff] }
 0xeee   :  { %v8755_v36 = vadd.f32 %v9463_v40, %v8627_v47  ;;  %v8815_v5 = vmax.f32 %v8751_v35, 0.0  ;;  %v8569_v25 = vmul.f32 %v16011_v19, %v15689_v43  ;;  %v8632_v34 = vadd.f32 %v16018_v61, %v8565_v31  ;;  %8876 = vst.msk [vmem:[%s16668_s7 + $0x8] sm:$0xff] %vm90_vm0, %v8812_v62  ;;  %v9468_v43 = vld [vmem:[%s16661_s0 + $0xb1] sm:$0xff] }
 0xeef   :  { %v8756_v21 = vadd.f32 %v9464_v56, %v8628_v39  ;;  %v8816_v33 = vmax.f32 %v8752_v3, 0.0  ;;  %v8570_v28 = vmul.f32 %v16011_v19, %v15696_v32  ;;  %v8633_v59 = vadd.f32 %v16018_v61, %v8566_v58  ;;  %8877 = vst.msk [vmem:[%s16668_s7 + $0x10] sm:$0xff] %vm90_vm0, %v8813_v37  ;;  %v9469_v32 = vld [vmem:[%s16661_s0 + $0xc1] sm:$0xff] }
 0xef0   :  { %v8757_v60 = vadd.f32 %v9465_v42, %v8629_v50  ;;  %v8817_v15 = vmax.f32 %v8753_v27, 0.0  ;;  %v8571_v7 = vmul.f32 %v16011_v19, %v15703_v30  ;;  %v8634_v16 = vadd.f32 %v16018_v61, %v8567_v11  ;;  %8878 = vst.msk [vmem:[%s16668_s7 + $0x18] sm:$0xff] %vm90_vm0, %v8814_v20  ;;  %v9470_v30 = vld [vmem:[%s16661_s0 + $0xc9] sm:$0xff] }
 0xef1   :  { %v8758_v45 = vadd.f32 %v9466_v49, %v8630_v46  ;;  %v8818_v31 = vmax.f32 %v8754_v55, 0.0  ;;  %v8572_v47 = vmul.f32 %v16011_v19, %v15710_v14  ;;  %v8635_v22 = vadd.f32 %v16018_v61, %v8568_v0  ;;  %8879 = vst.msk [vmem:[%s16668_s7 + $0x20] sm:$0xff] %vm90_vm0, %v8815_v5  ;;  %v9471_v14 = vld [vmem:[%s16661_s0 + $0xd9] sm:$0xff] }
 0xef2   :  { %v8759_v35 = vadd.f32 %v9467_v13, %v8631_v29  ;;  %v8819_v58 = vmax.f32 %v8755_v36, 0.0  ;;  %v8573_v39 = vmul.f32 %v16011_v19, %v15717_v8  ;;  %v8636_v50 = vadd.f32 %v16018_v61, %v8569_v25  ;;  %8880 = vst.msk [vmem:[%s16668_s7 + $0x28] sm:$0xff] %vm90_vm0, %v8816_v33  ;;  %v9472_v8 = vld [vmem:[%s16661_s0 + $0xe1] sm:$0xff] }
 0xef3   :  { %v8760_v40 = vadd.f32 %v9468_v43, %v8632_v34  ;;  %v8820_v3 = vmax.f32 %v8756_v21, 0.0  ;;  %v8574_v56 = vmul.f32 %v16011_v19, %v15724_v53  ;;  %v8637_v27 = vadd.f32 %v16018_v61, %v8570_v28  ;;  %8881 = vst.msk [vmem:[%s16668_s7 + $0x30] sm:$0xff] %vm90_vm0, %v8817_v15  ;;  %v9473_v53 = vld [vmem:[%s16661_s0 + $0xf1] sm:$0xff] }
 0xef4   :  { %v8761_v18 = vadd.f32 %v9469_v32, %v8633_v59  ;;  %v8821_v62 = vmax.f32 %v8757_v60, 0.0  ;;  %v8575_v37 = vmul.f32 %v16011_v19, %v15731_v2  ;;  %v8638_v11 = vadd.f32 %v16018_v61, %v8571_v7  ;;  %8882 = vst.msk [vmem:[%s16668_s7 + $0x38] sm:$0xff] %vm90_vm0, %v8818_v31  ;;  %v9474_v2 = vld [vmem:[%s16661_s0 + $0xf9] sm:$0xff] }
 0xef5   :  { %v8762_v46 = vadd.f32 %v9470_v30, %v8634_v16  ;;  %v8822_v42 = vmax.f32 %v8758_v45, 0.0  ;;  %v8576_v55 = vmul.f32 %v16011_v19, %v15738_v10  ;;  %v8639_v20 = vadd.f32 %v16018_v61, %v8572_v47  ;;  %8883 = vst.msk [vmem:[%s16668_s7 + $0x40] sm:$0xff] %vm90_vm0, %v8819_v58  ;;  %v9475_v10 = vld [vmem:[%s16661_s0 + $0x109] sm:$0xff] }
 0xef6   :  { %v8763_v0 = vadd.f32 %v9471_v14, %v8635_v22  ;;  %v8823_v29 = vmax.f32 %v8759_v35, 0.0  ;;  %v8577_v49 = vmul.f32 %v16011_v19, %v15745_v57  ;;  %v8640_v36 = vadd.f32 %v16018_v61, %v8573_v39  ;;  %8884 = vst.msk [vmem:[%s16668_s7 + $0x48] sm:$0xff] %vm90_vm0, %v8820_v3  ;;  %v9476_v57 = vld [vmem:[%s16661_s0 + $0x111] sm:$0xff] }
 0xef7   :  { %v8764_v5 = vadd.f32 %v9472_v8, %v8636_v50  ;;  %v8824_v25 = vmax.f32 %v8760_v40, 0.0  ;;  %v8578_v34 = vmul.f32 %v16011_v19, %v15752_v24  ;;  %v8641_v13 = vadd.f32 %v16018_v61, %v8574_v56  ;;  %8885 = vst.msk [vmem:[%s16668_s7 + $0x50] sm:$0xff] %vm90_vm0, %v8821_v62  ;;  %v9477_v24 = vld [vmem:[%s16661_s0 + $0x121] sm:$0xff] }
 0xef8   :  { %v8765_v21 = vadd.f32 %v9473_v53, %v8637_v27  ;;  %v8825_v33 = vmax.f32 %v8761_v18, 0.0  ;;  %v8579_v28 = vmul.f32 %v16011_v19, %v15759_v54  ;;  %v8642_v59 = vadd.f32 %v16018_v61, %v8575_v37  ;;  %8886 = vst.msk [vmem:[%s16668_s7 + $0x58] sm:$0xff] %vm90_vm0, %v8822_v42  ;;  %v9478_v54 = vld [vmem:[%s16661_s0 + $0x129] sm:$0xff] }
 0xef9   :  { %v8766_v43 = vadd.f32 %v9474_v2, %v8638_v11  ;;  %v8826_v60 = vmax.f32 %v8762_v46, 0.0  ;;  %v8580_v15 = vmul.f32 %v16011_v19, %v15766_v63  ;;  %v8643_v7 = vadd.f32 %v16018_v61, %v8576_v55  ;;  %8887 = vst.msk [vmem:[%s16668_s7 + $0x60] sm:$0xff] %vm90_vm0, %v8823_v29  ;;  %v9479_v63 = vld [vmem:[%s16661_s0 + $0x139] sm:$0xff] }
 0xefa   :  { %v8767_v16 = vadd.f32 %v9475_v10, %v8639_v20  ;;  %v8827_v32 = vmax.f32 %v8763_v0, 0.0  ;;  %v8581_v45 = vmul.f32 %v16011_v19, %v15773_v12  ;;  %v8644_v31 = vadd.f32 %v16018_v61, %v8577_v49  ;;  %8888 = vst.msk [vmem:[%s16668_s7 + $0x68] sm:$0xff] %vm90_vm0, %v8824_v25  ;;  %v9480_v12 = vld [vmem:[%s16661_s0 + $0x141] sm:$0xff] }
 0xefb   :  { %v8768_v47 = vadd.f32 %v9476_v57, %v8640_v36  ;;  %v8828_v22 = vmax.f32 %v8764_v5, 0.0  ;;  %v8582_v30 = vmul.f32 %v16011_v19, %v15780_v17  ;;  %v8645_v35 = vadd.f32 %v16018_v61, %v8578_v34  ;;  %8889 = vst.msk [vmem:[%s16668_s7 + $0x70] sm:$0xff] %vm90_vm0, %v8825_v33  ;;  %v9481_v17 = vld [vmem:[%s16661_s0 + $0x151] sm:$0xff]  ;;  %v16894_v33 = vld [vmem:[#allocation28_spill] sm:$0xff] }
 0xefc   :  { %v8769_v58 = vadd.f32 %v9477_v24, %v8641_v13  ;;  %v8829_v39 = vmax.f32 %v8765_v21, 0.0  ;;  %v8583_v50 = vmul.f32 %v16011_v19, %v15787_v23  ;;  %v8646_v14 = vadd.f32 %v16018_v61, %v8579_v28  ;;  %8890 = vst.msk [vmem:[%s16668_s7 + $0x78] sm:$0xff] %vm90_vm0, %v8826_v60  ;;  %v9482_v23 = vld [vmem:[%s16661_s0 + $0x159] sm:$0xff] }
 0xefd   :  { %v8770_v40 = vadd.f32 %v9478_v54, %v8642_v59  ;;  %v8830_v3 = vmax.f32 %v8766_v43, 0.0  ;;  %v8584_v56 = vmul.f32 %v16011_v19, %v15794_v1  ;;  %v8647_v27 = vadd.f32 %v16018_v61, %v8580_v15  ;;  %8891 = vst.msk [vmem:[%s16668_s7 + $0x80] sm:$0xff] %vm90_vm0, %v8827_v32  ;;  %v9483_v1 = vld [vmem:[%s16661_s0 + $0x169] sm:$0xff] }
 0xefe   :  { %v8771_v8 = vadd.f32 %v9479_v63, %v8643_v7  ;;  %v8831_v18 = vmax.f32 %v8767_v16, 0.0  ;;  %v8585_v62 = vmul.f32 %v16011_v19, %v15801_v44  ;;  %v8648_v37 = vadd.f32 %v16018_v61, %v8581_v45  ;;  %8892 = vst.msk [vmem:[%s16668_s7 + $0x88] sm:$0xff] %vm90_vm0, %v8828_v22  ;;  %v9484_v44 = vld [vmem:[%s16661_s0 + $0x171] sm:$0xff]  ;;  %v9489_v7 = vld [vmem:[%s16661_s0 + $0x1e1] sm:$0xff] }
 0xeff   :  { %v8772_v11 = vadd.f32 %v9480_v12, %v8644_v31  ;;  %v8832_v53 = vmax.f32 %v8768_v47, 0.0  ;;  %v8586_v46 = vmul.f32 %v16011_v19, %v15808_v51  ;;  %v8649_v42 = vadd.f32 %v16018_v61, %v8582_v30  ;;  %8893 = vst.msk [vmem:[%s16668_s7 + $0x90] sm:$0xff] %vm90_vm0, %v8829_v39  ;;  %v9485_v51 = vld [vmem:[%s16661_s0 + $0x181] sm:$0xff] }
 0xf00   :  { %v8773_v55 = vadd.f32 %v9481_v17, %v8645_v35  ;;  %v8833_v20 = vmax.f32 %v8769_v58, 0.0  ;;  %v8587_v2 = vmul.f32 %v16011_v19, %v15815_v41  ;;  %v8650_v0 = vadd.f32 %v16018_v61, %v8583_v50  ;;  %8894 = vst.msk [vmem:[%s16668_s7 + $0x98] sm:$0xff] %vm90_vm0, %v8830_v3  ;;  %v9486_v41 = vld [vmem:[%s16661_s0 + $0x189] sm:$0xff]  ;;  %v9492_v50 = vld [vmem:[%s16661_s0 + $0x201] sm:$0xff] }
 0xf01   :  { %v8774_v29 = vadd.f32 %v9482_v23, %v8646_v14  ;;  %v8834_v49 = vmax.f32 %v8770_v40, 0.0  ;;  %v8588_v36 = vmul.f32 %v16011_v19, %v15822_v6  ;;  %v8651_v10 = vadd.f32 %v16018_v61, %v8584_v56  ;;  %8895 = vst.msk [vmem:[%s16668_s7 + $0xa0] sm:$0xff] %vm90_vm0, %v8831_v18  ;;  %v9487_v6 = vld [vmem:[%s16661_s0 + $0x1c9] sm:$0xff] }
 0xf02   :  { %v8775_v5 = vadd.f32 %v9483_v1, %v8647_v27  ;;  %v8835_v25 = vmax.f32 %v8771_v8, 0.0  ;;  %v8589_v34 = vmul.f32 %v16011_v19, %v15829_v26  ;;  %v8652_v13 = vadd.f32 %v16018_v61, %v8585_v62  ;;  %8896 = vst.msk [vmem:[%s16668_s7 + $0xa8] sm:$0xff] %vm90_vm0, %v8832_v53  ;;  %v9488_v26 = vld [vmem:[%s16661_s0 + $0x1d1] sm:$0xff]  ;;  %v16895_v47 = vld [vmem:[#allocation29_spill] sm:$0xff] }
 0xf03   :  { %v8776_v57 = vadd.f32 %v9484_v44, %v8648_v37  ;;  %v8836_v21 = vmax.f32 %v8772_v11, 0.0  ;;  %v8590_v28 = vmul.f32 %v16011_v19, %v16894_v33  ;;  %v8653_v59 = vadd.f32 %v16018_v61, %v8586_v46  ;;  %8897 = vst.msk [vmem:[%s16668_s7 + $0xb0] sm:$0xff] %vm90_vm0, %v8833_v20  ;;  %v16896_v23 = vld [vmem:[#allocation30_spill] sm:$0xff]  ;;  %v16897_v1 = vld [vmem:[#allocation31_spill] sm:$0xff] }
 0xf04   :  { %v8777_v24 = vadd.f32 %v9485_v51, %v8649_v42  ;;  %v8837_v43 = vmax.f32 %v8773_v55, 0.0  ;;  %v8591_v60 = vmul.f32 %v16011_v19, %v15843_v4  ;;  %v8654_v15 = vadd.f32 %v16018_v61, %v8587_v2  ;;  %8898 = vst.msk [vmem:[%s16668_s7 + $0xb8] sm:$0xff] %vm90_vm0, %v8834_v49  ;;  %v9490_v4 = vld [vmem:[%s16661_s0 + $0x1e9] sm:$0xff]  ;;  %v16898_v55 = vld [vmem:[#allocation32_spill] sm:$0xff] }
 0xf05   :  { %v8778_v54 = vadd.f32 %v9486_v41, %v8650_v0  ;;  %v8838_v16 = vmax.f32 %v8774_v29, 0.0  ;;  %v8592_v32 = vmul.f32 %v16011_v19, %v15850_v48  ;;  %v8655_v45 = vadd.f32 %v16018_v61, %v8588_v36  ;;  %8899 = vst.msk [vmem:[%s16668_s7 + $0xc0] sm:$0xff] %vm90_vm0, %v8835_v25  ;;  %v9491_v48 = vld [vmem:[%s16661_s0 + $0x1f9] sm:$0xff]  ;;  %v9495_v46 = vld [vmem:[%s16661_s0 + $0x229] sm:$0xff]  ;;  %v9496_v0 = vld [vmem:[%s16661_s0 + $0x231] sm:$0xff] }
 0xf06   :  { %v8779_v31 = vadd.f32 %v9487_v6, %v8651_v10  ;;  %v8839_v63 = vmax.f32 %v8775_v5, 0.0  ;;  %v8593_v22 = vmul.f32 %v16011_v19, %v16895_v47  ;;  %v8656_v30 = vadd.f32 %v16018_v61, %v8589_v34  ;;  %8900 = vst.msk [vmem:[%s16668_s7 + $0xc8] sm:$0xff] %vm90_vm0, %v8836_v21  ;;  %v16899_v49 = vld [vmem:[#allocation33_spill] sm:$0xff]  ;;  %v16900_v34 = vld [vmem:[#allocation34_spill] sm:$0xff] }
 0xf07   :  { %v8780_v35 = vadd.f32 %v9488_v26, %v8652_v13  ;;  %v8840_v12 = vmax.f32 %v8776_v57, 0.0  ;;  %v8594_v58 = vmul.f32 %v16011_v19, %v15864_v38  ;;  %v8657_v39 = vadd.f32 %v16018_v61, %v8590_v28  ;;  %8901 = vst.msk [vmem:[%s16668_s7 + $0xd0] sm:$0xff] %vm90_vm0, %v8837_v43  ;;  %v9493_v38 = vld [vmem:[%s16661_s0 + $0x211] sm:$0xff]  ;;  %v9497_v41 = vld [vmem:[%s16661_s0 + $0x241] sm:$0xff]  ;;  %v9498_v57 = vld [vmem:[%s16661_s0 + $0x249] sm:$0xff] }
 0xf08   :  { %v8781_v14 = vadd.f32 %v9489_v7, %v8653_v59  ;;  %v8841_v17 = vmax.f32 %v8777_v24, 0.0  ;;  %v8595_v40 = vmul.f32 %v16011_v19, %v15871_v9  ;;  %v8658_v3 = vadd.f32 %v16018_v61, %v8591_v60  ;;  %8902 = vst.msk [vmem:[%s16668_s7 + $0xd8] sm:$0xff] %vm90_vm0, %v8838_v16  ;;  %v9494_v9 = vld [vmem:[%s16661_s0 + $0x219] sm:$0xff]  ;;  %v9500_v16 = vld [vmem:[%s16661_s0 + $0x261] sm:$0xff]  ;;  %v9501_v47 = vld [vmem:[%s16661_s0 + $0x271] sm:$0xff] }
 0xf09   :  { %v8782_v56 = vadd.f32 %v9490_v4, %v8654_v15  ;;  %v8842_v27 = vmax.f32 %v8778_v54, 0.0  ;;  %v8596_v8 = vmul.f32 %v16011_v19, %v16896_v23  ;;  %v8659_v18 = vadd.f32 %v16018_v61, %v8592_v32  ;;  %8903 = vst.msk [vmem:[%s16668_s7 + $0xe0] sm:$0xff] %vm90_vm0, %v8839_v63  ;;  %v16901_v28 = vld [vmem:[#allocation35_spill] sm:$0xff]  ;;  %v16902_v15 = vld [vmem:[#allocation36_spill] sm:$0xff]  ;;  %v16903_v4 = vld [vmem:[#allocation37_spill] sm:$0xff] }
 0xf0a   :  { %v8783_v62 = vadd.f32 %v9491_v48, %v8655_v45  ;;  %v8843_v37 = vmax.f32 %v8779_v31, 0.0  ;;  %v8597_v11 = vmul.f32 %v16011_v19, %v16897_v1  ;;  %v8660_v53 = vadd.f32 %v16018_v61, %v8593_v22  ;;  %8904 = vst.msk [vmem:[%s16668_s7 + $0xe8] sm:$0xff] %vm90_vm0, %v8840_v12  ;;  %v9499_v24 = vld [vmem:[%s16661_s0 + $0x259] sm:$0xff]  ;;  %v16904_v48 = vld [vmem:[#allocation38_spill] sm:$0xff] }
 0xf0b   :  { %v8784_v42 = vadd.f32 %v9492_v50, %v8656_v30  ;;  %v8844_v44 = vmax.f32 %v8780_v35, 0.0  ;;  %v8598_v20 = vmul.f32 %v16011_v19, %v16898_v55  ;;  %v8661_v2 = vadd.f32 %v16018_v61, %v8594_v58  ;;  %8905 = vst.msk [vmem:[%s16668_s7 + $0xf0] sm:$0xff] %vm90_vm0, %v8841_v17  ;;  %v9502_v58 = vld [vmem:[%s16661_s0 + $0x279] sm:$0xff] }
 0xf0c   :  { %v8785_v51 = vadd.f32 %v9493_v38, %v8657_v39  ;;  %v8845_v29 = vmax.f32 %v8781_v14, 0.0  ;;  %v8599_v36 = vmul.f32 %v16011_v19, %v16899_v49  ;;  %v8662_v10 = vadd.f32 %v16018_v61, %v8595_v40  ;;  %8906 = vst.msk [vmem:[%s16668_s7 + $0xf8] sm:$0xff] %vm90_vm0, %v8842_v27  ;;  %v16905_v14 = vld [vmem:[#allocation39_spill] sm:$0xff]  ;;  %v16906_v27 = vld [vmem:[#allocation4_spill] sm:$0xff] }
 0xf0d   :  { %v8786_v5 = vadd.f32 %v9494_v9, %v8658_v3  ;;  %v8846_v25 = vmax.f32 %v8782_v56, 0.0  ;;  %v8600_v13 = vmul.f32 %v16011_v19, %v16900_v34  ;;  %v8663_v6 = vadd.f32 %v16018_v61, %v8596_v8  ;;  %8907 = vst.msk [vmem:[%s16668_s7 + $0x100] sm:$0xff] %vm90_vm0, %v8843_v37  ;;  %v9503_v3 = vld [vmem:[%s16661_s0 + $0x289] sm:$0xff]  ;;  %v16907_v37 = vld [vmem:[#allocation40_spill] sm:$0xff] }
 0xf0e   :  { %v8787_v21 = vadd.f32 %v9495_v46, %v8659_v18  ;;  %v8847_v33 = vmax.f32 %v8783_v62, 0.0  ;;  %v8601_v59 = vmul.f32 %v16011_v19, %v16901_v28  ;;  %v8664_v26 = vadd.f32 %v16018_v61, %v8597_v11  ;;  %8908 = vst.msk [vmem:[%s16668_s7 + $0x108] sm:$0xff] %vm90_vm0, %v8844_v44  ;;  %v9504_v18 = vld [vmem:[%s16661_s0 + $0x291] sm:$0xff] }
 0xf0f   :  { %v8788_v43 = vadd.f32 %v9496_v0, %v8660_v53  ;;  %v8848_v60 = vmax.f32 %v8784_v42, 0.0  ;;  %v8602_v7 = vmul.f32 %v16011_v19, %v16902_v15  ;;  %v8665_v54 = vadd.f32 %v16018_v61, %v8598_v20  ;;  %8909 = vst.msk [vmem:[%s16668_s7 + $0x110] sm:$0xff] %vm90_vm0, %v8845_v29  ;;  %v9505_v53 = vld [vmem:[%s16661_s0 + $0x2a1] sm:$0xff]  ;;  %v16908_v44 = vld [vmem:[#allocation6_spill] sm:$0xff] }
 0xf10   :  { %v8789_v32 = vadd.f32 %v9497_v41, %v8661_v2  ;;  %v8849_v45 = vmax.f32 %v8785_v51, 0.0  ;;  %v8603_v31 = vmul.f32 %v16011_v19, %v16903_v4  ;;  %v8666_v63 = vadd.f32 %v16018_v61, %v8599_v36  ;;  %8910 = vst.msk [vmem:[%s16668_s7 + $0x118] sm:$0xff] %vm90_vm0, %v8846_v25  ;;  %v9506_v2 = vld [vmem:[%s16661_s0 + $0x2a9] sm:$0xff]  ;;  %v16910_v25 = vld [vmem:[#allocation7_spill] sm:$0xff] }
 0xf11   :  { %v8790_v22 = vadd.f32 %v9498_v57, %v8662_v10  ;;  %v8850_v30 = vmax.f32 %v8786_v5, 0.0  ;;  %v8604_v35 = vmul.f32 %v16011_v19, %v16904_v48  ;;  %v8667_v12 = vadd.f32 %v16018_v61, %v8600_v13  ;;  %8911 = vst.msk [vmem:[%s16668_s7 + $0x120] sm:$0xff] %vm90_vm0, %v8847_v33  ;;  %v16909_v29 = vld [vmem:[#allocation5_spill] sm:$0xff]  ;;  %v9507_v10 = vld [vmem:[%s16661_s0 + $0x2b9] sm:$0xff] }
 0xf12   :  { %v8791_v39 = vadd.f32 %v9499_v24, %v8663_v6  ;;  %v8851_v50 = vmax.f32 %v8787_v21, 0.0  ;;  %v8605_v17 = vmul.f32 %v16011_v19, %v16905_v14  ;;  %v8668_v40 = vadd.f32 %v16018_v61, %v8601_v59  ;;  %8912 = vst.msk [vmem:[%s16668_s7 + $0x128] sm:$0xff] %vm90_vm0, %v8848_v60  ;;  %v9508_v6 = vld [vmem:[%s16661_s0 + $0x2c1] sm:$0xff] }
 0xf13   :  { %v8792_v38 = vadd.f32 %v9500_v16, %v8664_v26  ;;  %v8852_v56 = vmax.f32 %v8788_v43, 0.0  ;;  %v8606_v23 = vmul.f32 %v16011_v19, %v16906_v27  ;;  %v8669_v8 = vadd.f32 %v16018_v61, %v8602_v7  ;;  %8913 = vst.msk [vmem:[%s16668_s7 + $0x130] sm:$0xff] %vm90_vm0, %v8849_v45  ;;  %v16911_v33 = vld [vmem:[#allocation13_spill] sm:$0xff]  ;;  %v9509_v26 = vld [vmem:[%s16661_s0 + $0x2d1] sm:$0xff] }
 0xf14   :  { %v8793_v9 = vadd.f32 %v9501_v47, %v8665_v54  ;;  %v8853_v62 = vmax.f32 %v8789_v32, 0.0  ;;  %v8607_v1 = vmul.f32 %v16011_v19, %v16907_v37  ;;  %v8670_v11 = vadd.f32 %v16018_v61, %v8603_v31  ;;  %8914 = vst.msk [vmem:[%s16668_s7 + $0x138] sm:$0xff] %vm90_vm0, %v8850_v30  ;;  %v16912_v60 = vld [vmem:[#allocation25_spill] sm:$0xff]  ;;  %v9510_v54 = vld [vmem:[%s16661_s0 + $0x2d9] sm:$0xff]  ;;  %v16913_v45 = vld [vmem:[#allocation26_spill] sm:$0xff] }
 0xf15   :  { %v8794_v46 = vadd.f32 %v9502_v58, %v8666_v63  ;;  %v8854_v42 = vmax.f32 %v8790_v22, 0.0  ;;  %v8608_v55 = vmul.f32 %v16011_v19, %v16908_v44  ;;  %v8671_v20 = vadd.f32 %v16018_v61, %v8604_v35  ;;  %8915 = vst.msk [vmem:[%s16668_s7 + $0x140] sm:$0xff] %vm90_vm0, %v8851_v50  ;;  %v9511_v63 = vld [vmem:[%s16661_s0 + $0x2e9] sm:$0xff]  ;;  %v16914_v30 = vld [vmem:[#allocation27_spill] sm:$0xff]  ;;  %v9513_v14 = vld [vmem:[%s16661_s0 + $0x301] sm:$0xff] }
 0xf16   :  { %v8795_v0 = vadd.f32 %v9503_v3, %v8667_v12  ;;  %v8855_v51 = vmax.f32 %v8791_v39, 0.0  ;;  %v8609_v49 = vmul.f32 %v16011_v19, %v16909_v29  ;;  %v8672_v36 = vadd.f32 %v16018_v61, %v8605_v17  ;;  %8916 = vst.msk [vmem:[%s16668_s7 + $0x148] sm:$0xff] %vm90_vm0, %v8852_v56  ;;  %v9512_v12 = vld [vmem:[%s16661_s0 + $0x2f1] sm:$0xff]  ;;  %v9514_v3 = vld [vmem:[%s16661_s0 + $0x309] sm:$0xff] }
 0xf17   :  { %v8796_v41 = vadd.f32 %v9504_v18, %v8668_v40  ;;  %v8856_v5 = vmax.f32 %v8792_v38, 0.0  ;;  %v8610_v34 = vmul.f32 %v16011_v19, %v16910_v25  ;;  %v8673_v13 = vadd.f32 %v16018_v61, %v8606_v23  ;;  %8917 = vst.msk [vmem:[%s16668_s7 + $0x150] sm:$0xff] %vm90_vm0, %v8853_v62  ;;  %v9515_v23 = vld [vmem:[%s16661_s0 + $0x319] sm:$0xff]  ;;  %v9516_v62 = vld [vmem:[%s16661_s0 + $0x321] sm:$0xff] }
 0xf18   :  { %v8797_v57 = vadd.f32 %v9505_v53, %v8669_v8  ;;  %v8857_v21 = vmax.f32 %v8793_v9, 0.0  ;;  %v8611_v28 = vmul.f32 %v16011_v19, %v16911_v33  ;;  %v8674_v59 = vadd.f32 %v16018_v61, %v8607_v1  ;;  %8918 = vst.msk [vmem:[%s16668_s7 + $0x158] sm:$0xff] %vm90_vm0, %v8854_v42 }
 0xf19   :  { %v8798_v24 = vadd.f32 %v9506_v2, %v8670_v11  ;;  %v8858_v43 = vmax.f32 %v8794_v46, 0.0  ;;  %v8612_v15 = vmul.f32 %v16011_v19, %v16912_v60  ;;  %v8675_v7 = vadd.f32 %v16018_v61, %v8608_v55  ;;  %8919 = vst.msk [vmem:[%s16668_s7 + $0x160] sm:$0xff] %vm90_vm0, %v8855_v51  ;;  %v9517_v11 = vld [vmem:[%s16661_s0 + $0x331] sm:$0xff] }
 0xf1a   :  { %v8799_v16 = vadd.f32 %v9507_v10, %v8671_v20  ;;  %v8859_v32 = vmax.f32 %v8795_v0, 0.0  ;;  %v8613_v4 = vmul.f32 %v16011_v19, %v16913_v45  ;;  %v8676_v31 = vadd.f32 %v16018_v61, %v8609_v49  ;;  %8920 = vst.msk [vmem:[%s16668_s7 + $0x168] sm:$0xff] %vm90_vm0, %v8856_v5 }
 0xf1b   :  { %v8800_v47 = vadd.f32 %v9508_v6, %v8672_v36  ;;  %v8860_v22 = vmax.f32 %v8796_v41, 0.0  ;;  %v8614_v48 = vmul.f32 %v16011_v19, %v16914_v30  ;;  %v8677_v35 = vadd.f32 %v16018_v61, %v8610_v34  ;;  %8921 = vst.msk [vmem:[%s16668_s7 + $0x170] sm:$0xff] %vm90_vm0, %v8857_v21 }
 0xf1c   :  { %v8801_v58 = vadd.f32 %v9509_v26, %v8673_v13  ;;  %v8861_v39 = vmax.f32 %v8797_v57, 0.0  ;;  %v8678_v50 = vadd.f32 %v16018_v61, %v8611_v28  ;;  %v8802_v19 = vadd.f32 %v9510_v54, %v8674_v59  ;;  %8922 = vst.msk [vmem:[%s16668_s7 + $0x178] sm:$0xff] %vm90_vm0, %v8858_v43 }
 0xf1d   :  { %v8862_v17 = vmax.f32 %v8798_v24, 0.0  ;;  %v8679_v40 = vadd.f32 %v16018_v61, %v8612_v15  ;;  %v8803_v38 = vadd.f32 %v9511_v63, %v8675_v7  ;;  %v8863_v56 = vmax.f32 %v8799_v16, 0.0  ;;  %8923 = vst.msk [vmem:[%s16668_s7 + $0x180] sm:$0xff] %vm90_vm0, %v8859_v32 }
 0xf1e   :  { %v8680_v27 = vadd.f32 %v16018_v61, %v8613_v4  ;;  %v8804_v8 = vadd.f32 %v9512_v12, %v8676_v31  ;;  %v8864_v18 = vmax.f32 %v8800_v47, 0.0  ;;  %8924 = vst.msk [vmem:[%s16668_s7 + $0x188] sm:$0xff] %vm90_vm0, %v8860_v22  ;;  %v8681_v9 = vadd.f32 %v16018_v61, %v8614_v48  ;;  %v9518_v61 = vld [vmem:[%s16661_s0 + $0x339] sm:$0xff] }
 0xf1f   :  { %v8805_v37 = vadd.f32 %v9513_v14, %v8677_v35  ;;  %v8865_v1 = vmax.f32 %v8801_v58, 0.0  ;;  %8925 = vst.msk [vmem:[%s16668_s7 + $0x190] sm:$0xff] %vm90_vm0, %v8861_v39  ;;  %v8806_v53 = vadd.f32 %v9514_v3, %v8678_v50  ;;  %v8866_v46 = vmax.f32 %v8802_v19, 0.0 }
 0xf20   :  { %8926 = vst.msk [vmem:[%s16668_s7 + $0x198] sm:$0xff] %vm90_vm0, %v8862_v17  ;;  %v8807_v42 = vadd.f32 %v9515_v23, %v8679_v40  ;;  %v8867_v44 = vmax.f32 %v8803_v38, 0.0  ;;  %v8808_v55 = vadd.f32 %v9516_v62, %v8680_v27  ;;  %v8868_v20 = vmax.f32 %v8804_v8, 0.0 }
 0xf21   :  { %8927 = vst.msk [vmem:[%s16668_s7 + $0x1a0] sm:$0xff] %vm90_vm0, %v8863_v56  ;;  %v8809_v2 = vadd.f32 %v9517_v11, %v8681_v9  ;;  %v8869_v0 = vmax.f32 %v8805_v37, 0.0  ;;  %v8810_v51 = vadd.f32 %v9518_v61, %v16021_v52  ;;  %v8870_v29 = vmax.f32 %v8806_v53, 0.0 }
 0xf22   :  { %8928 = vst.msk [vmem:[%s16668_s7 + $0x1a8] sm:$0xff] %vm90_vm0, %v8864_v18  ;;  %v8871_v49 = vmax.f32 %v8807_v42, 0.0  ;;  %v8872_v36 = vmax.f32 %v8808_v55, 0.0 }
 0xf23   :  { %8929 = vst.msk [vmem:[%s16668_s7 + $0x1b0] sm:$0xff] %vm90_vm0, %v8865_v1  ;;  %v8873_v10 = vmax.f32 %v8809_v2, 0.0  ;;  %v8874_v52 = vmax.f32 %v8810_v51, 0.0 }
 0xf24   :  { %8930 = vst.msk [vmem:[%s16668_s7 + $0x1b8] sm:$0xff] %vm90_vm0, %v8866_v46 }
 0xf25   :  { %8931 = vst.msk [vmem:[%s16668_s7 + $0x1c0] sm:$0xff] %vm90_vm0, %v8867_v44 }
 0xf26   :  { %8932 = vst.msk [vmem:[%s16668_s7 + $0x1c8] sm:$0xff] %vm90_vm0, %v8868_v20 }
 0xf27   :  { %8933 = vst.msk [vmem:[%s16668_s7 + $0x1d0] sm:$0xff] %vm90_vm0, %v8869_v0 }
 0xf28   :  { %8934 = vst.msk [vmem:[%s16668_s7 + $0x1d8] sm:$0xff] %vm90_vm0, %v8870_v29 }
 0xf29   :  { %8935 = vst.msk [vmem:[%s16668_s7 + $0x1e0] sm:$0xff] %vm90_vm0, %v8871_v49 }
 0xf2a   :  { %8936 = vst.msk [vmem:[%s16668_s7 + $0x1e8] sm:$0xff] %vm90_vm0, %v8872_v36 }
 0xf2b   :  { %8937 = vst.msk [vmem:[%s16668_s7 + $0x1f0] sm:$0xff] %vm90_vm0, %v8873_v10 }
 0xf2c   :  { %8938 = vst.msk [vmem:[%s16668_s7 + $0x1f8] sm:$0xff] %vm90_vm0, %v8874_v52 }

</bundles_post_ra>
